<compile_context>
chip_gen: v5e
topology: v5e:2x2
jax: 0.10.0
libtpu: 0.0.40
codegen_flags: <defaults>
</compile_context>

<pallas_src>
import math

import jax
import jax.numpy as jnp
from jax import lax
from jax.experimental import pallas as pl
from jax.experimental.pallas import tpu as pltpu

# ----------------------------- configuration --------------------------------
NUM_LAYERS = 2
NUM_TYPES = 4
M = 8                      # env_embed_multiplicity
LATENT_DIM = 32
HIDDEN = 64
EDGE_INV_DIM = 8
R_MAX = 4.0
POLY_P = 6                 # PolynomialCutoff_p
AVG_NUM_NEIGHBORS = 4.0
N_ATOMS = 16
N_EDGES = 64

ENV_W_NUMEL = M * 2        # MakeWeightedChannels weight_numel (2 input irreps: 0e, 1o)
LINEAR_NPATHS = 5          # per-layer irreps-Linear path count -> weight_numel = 5*M*M

INV3 = 1.0 / math.sqrt(3.0)
INV6 = 1.0 / math.sqrt(6.0)
INV_M = 1.0 / math.sqrt(M)
ENV_NORM = 1.0 / math.sqrt(AVG_NUM_NEIGHBORS)       # env_sum_normalizations = rsqrt(avg_n_neigh)
_SIG = 0.5                                          # sigmoid(latent_resnet_update_params=0)
C_OLD = 1.0 / math.sqrt(_SIG * _SIG + 1.0)          # rsqrt(coeff^2 + 1)
C_NEW = _SIG * C_OLD
FINAL_FEATURES_MODULATOR = 1.0

MXU_INPUT_DTYPE = jnp.bfloat16                      # MXU operands for MLPs (f32 accumulation)

# expanded generated-weight widths (per layer) for the weighted irreps-Linear
LW0_EXP_WIDTH = 2 * M * M + 3 * M * M + 2 * 3 * M * M        # 128 + 192 + 384 = 704
LW1_EXP_WIDTH = 3 * 3 * M * M                                # 576


# ----------------------------- in-kernel helpers ------------------------------
def _mmb(x, w_bf16):
    """MXU matmul with bf16 operands (weights pre-cast host-side), f32 accumulation."""
    return jnp.dot(x.astype(MXU_INPUT_DTYPE), w_bf16, preferred_element_type=jnp.float32)


def _mmf(x, w):
    """f32 MXU matmul (exact) — used for the emulated scatter/gather/replicate steps."""
    return jnp.dot(x, w, preferred_element_type=jnp.float32)


def _silu(x):
    return jax.nn.silu(x)


def _ipow(x, n):
    """x**n for a positive python int n via repeated multiplies (Mosaic-safe)."""
    assert n >= 1
    result = None
    base = x
    while n:
        if n & 1:
            result = base if result is None else result * base
        n >>= 1
        if n:
            base = base * base
    return result


def _tile3(x):
    """[E, M] -> [E, 3M] lane-tiled (same values for each vector component)."""
    return jnp.concatenate([x, x, x], axis=-1)


def _dot3(a, b):
    """Component dot product of two lane-packed [E, 3M] vector slabs -> [E, M]."""
    p = a * b
    return p[:, 0:M] + p[:, M:2 * M] + p[:, 2 * M:3 * M]


def _cross3(a, b):
    """Component cross product of lane-packed [E, 3M] slabs -> lane-packed [E, 3M]."""
    ax, ay, az = a[:, 0:M], a[:, M:2 * M], a[:, 2 * M:3 * M]
    bx, by, bz = b[:, 0:M], b[:, M:2 * M], b[:, 2 * M:3 * M]
    return jnp.concatenate(
        [ay * bz - az * by, az * bx - ax * bz, ax * by - ay * bx], axis=-1)


def _fold_blocks(x, out_width):
    """Sum adjacent blocks of width `out_width` along lanes (log-depth halving,
    with one thirds-step for non-power-of-two factors)."""
    while x.shape[-1] > out_width:
        w = x.shape[-1]
        if (w // out_width) % 2 == 0:
            h = w // 2
            x = x[:, :h] + x[:, h:]
        else:
            t = w // 3
            x = x[:, :t] + x[:, t:2 * t] + x[:, 2 * t:]
    return x


# ------------------------------- fused kernel ---------------------------------
def _fused_allegro_kernel(
    attr_ref, elen_ref, ctr_col_ref, nbr_col_ref, ctr_row_ref,
    einv_ref, ninv2_ref, rv3_ref,
    w2b_w1_ref, w2b_w2_ref,
    env0_w1_ref, env0_w2_ref,
    fusedA_w1_ref, fusedA_w2_ref,
    env1_w1_ref, env1_w2_ref,
    fusedB_w1_ref, fusedB_w2_ref,
    envlin0_ref, envlin1_ref,
    out_ref,
):
    f32 = jnp.float32
    bf16 = jnp.bfloat16
    attr = attr_ref[...]                       # [E, 4]  (1x0e + 1x1o)
    elen = elen_ref[...]                       # [E, 1]
    num_e = attr.shape[0]
    num_a = ninv2_ref.shape[0] // 2

    # ---- one-hot scatter/gather operators (built once from the int32 indices) ----
    # center|neighbor gather one-hot in bf16 (0/1 is exact in bf16)
    iota_e2a = lax.broadcasted_iota(jnp.int32, (num_e, 2 * num_a), 1)
    onehot_cn = jnp.where(
        jnp.logical_or(iota_e2a == ctr_col_ref[...],
                       iota_e2a == nbr_col_ref[...] + num_a), 1.0, 0.0).astype(bf16)
    # env scatter-sum / gather-back one-hots kept in f32 (exact segment_sum semantics)
    iota_ea = lax.broadcasted_iota(jnp.int32, (num_e, num_a), 1)
    onehot_c = (iota_ea == ctr_col_ref[...]).astype(f32)       # [E, A] gather
    iota_ae = lax.broadcasted_iota(jnp.int32, (num_a, num_e), 0)
    onehot_ct = (iota_ae == ctr_row_ref[...]).astype(f32)      # [A, E] scatter-sum

    # ---- small constant 0/1 matrices (loop-invariant, built once) ----
    # EXPAND: [4, 4M] edge_attr -> lane-packed [s*M | x*M | y*M | z*M]
    r4 = lax.broadcasted_iota(jnp.int32, (4, 4 * M), 0)
    c4 = lax.broadcasted_iota(jnp.int32, (4, 4 * M), 1)
    expand4 = jnp.logical_and(c4 >= r4 * M, c4 < (r4 + 1) * M).astype(f32)
    # REP0: [2M, 2M*M] scalar-group replication (X[:, k] -> lanes k*M .. k*M+M-1)
    rk = lax.broadcasted_iota(jnp.int32, (2 * M, 2 * M * M), 0)
    ck = lax.broadcasted_iota(jnp.int32, (2 * M, 2 * M * M), 1)
    rep0 = jnp.logical_and(ck >= rk * M, ck < (rk + 1) * M).astype(f32)
    # S: [3M, 8] final per-component sum with the final-Linear 1/sqrt(M) folded in
    rs = lax.broadcasted_iota(jnp.int32, (3 * M, M), 0)
    cs = lax.broadcasted_iota(jnp.int32, (3 * M, M), 1)
    s_mat = (jnp.logical_and(rs >= cs * M, rs < (cs + 1) * M).astype(f32)
             * (INV_M * FINAL_FEATURES_MODULATOR))

    rv3 = rv3_ref[...]                          # [72, 576] 3-path vector replication
    rv1 = rv3[0:3 * M, 0:3 * M * M]             # [24, 192] single-path slice
    rv2 = rv3[0:2 * 3 * M, 0:2 * 3 * M * M]     # [48, 384] two-path slice

    # ---- polynomial cutoff, p = POLY_P, identical for every layer (all cutoffs = r_max)
    p = float(POLY_P)
    x = elen * (1.0 / R_MAX)
    xp = _ipow(x, POLY_P)
    xp1 = xp * x
    xp2 = xp1 * x
    poly = (1.0 - ((p + 1.0) * (p + 2.0) / 2.0) * xp
            + (p * (p + 2.0)) * xp1
            - (p * (p + 1.0) / 2.0) * xp2)
    cutoff = jnp.where(x < 1.0, poly, 0.0)                     # [E, 1]

    # lane-packed edge_attr used by every env_weighter application
    attr_exp = _mmf(attr, expand4)                             # [E, 4M]

    # =========================== layer 0 ===========================
    # two-body latent: one fused one-hot gather of center+neighbor node invariants
    gathered = _mmb(onehot_cn, ninv2_ref[...])                 # [E, 2*num_types]
    latent_in = jnp.concatenate([gathered, einv_ref[...]], axis=-1)
    h = _silu(_mmb(latent_in, w2b_w1_ref[...]))
    latents = _mmb(h, w2b_w2_ref[...]) * cutoff                # [E, LATENT_DIM]

    # env-embed weight generator (columns pre-expanded host-side to [ew0|ew1 ew1 ew1] x2)
    he = _silu(_mmb(latents, env0_w1_ref[...]))
    wts0 = _mmb(he, env0_w2_ref[...])                          # [E, 8M]
    feats = attr_exp * wts0[:, 0:4 * M]                        # embed_initial_edge
    f0 = feats[:, 0:M]                                         # [E, M]   0e
    f1o = feats[:, M:4 * M]                                    # [E, 3M]  1o (packed)
    emb0 = attr_exp * wts0[:, 4 * M:8 * M]                     # env embedding of edge_attr

    # scatter-sum over edge centers -> env_linear (block-diag, ENV_NORM & 1/sqrt(M)
    # folded) -> gather back to edges.  All three matmuls are f32-exact.
    per_atom0 = _mmf(onehot_ct, emb0)                          # [A, 4M]
    env_atom0 = _mmf(per_atom0, envlin0_ref[...])              # [A, 4M]
    env_edge0 = _mmf(onehot_c, env_atom0)                      # [E, 4M]
    e0 = env_edge0[:, 0:M]
    e1 = env_edge0[:, M:4 * M]

    # Contracter ('uuu', unweighted) on lane-packed slabs
    s_a = f0 * e0                                              # (0e x 0e) -> 0e
    s_b = _dot3(f1o, e1) * INV3                                # (1o . 1o) -> 0e
    t1e = _cross3(f1o, e1) * INV6                              # (1o x 1o) -> 1e
    t1o_a = _tile3(f0) * e1 * INV3                             # (0e * 1o) -> 1o
    t1o_b = f1o * _tile3(e0) * INV3                            # (1o * 0e) -> 1o

    latent_in = jnp.concatenate([latents, s_a, s_b], axis=-1)  # [E, 48]

    # fused [layer-0 latents_to_weights | layer-1 latent] MLP (shared input,
    # block-diagonal W2 host-side)
    ha = _silu(_mmb(latent_in, fusedA_w1_ref[...]))            # [E, 2*HIDDEN]
    biga = _mmb(ha, fusedA_w2_ref[...])                        # [E, 704 + 32]
    lw0 = biga[:, 0:LW0_EXP_WIDTH]
    new_lat = biga[:, LW0_EXP_WIDTH:LW0_EXP_WIDTH + LATENT_DIM] * cutoff
    latents = C_OLD * latents + C_NEW * new_lat                # latent resnet

    # layer-0 weighted irreps-Linear: replicate-matmul + wide product + block-fold
    # (path-count normalizations are folded into the expanded weight columns)
    x0r = _mmf(jnp.concatenate([s_a, s_b], axis=-1), rep0)     # [E, 128]
    g0 = _fold_blocks(x0r * lw0[:, 0:2 * M * M], M)            # [E, M]   0e out
    x1r = _mmf(t1e, rv1)                                       # [E, 192]
    g1e = _fold_blocks(x1r * lw0[:, 2 * M * M:5 * M * M], 3 * M)   # [E, 3M] 1e out
    xvr = _mmf(jnp.concatenate([t1o_a, t1o_b], axis=-1), rv2)  # [E, 384]
    g1o = _fold_blocks(xvr * lw0[:, 5 * M * M:LW0_EXP_WIDTH], 3 * M)  # [E, 3M] 1o out

    # =========================== layer 1 ===========================
    he = _silu(_mmb(latents, env1_w1_ref[...]))
    wts1 = _mmb(he, env1_w2_ref[...])                          # [E, 4M]
    emb1 = attr_exp * wts1
    per_atom1 = _mmf(onehot_ct, emb1)
    env_atom1 = _mmf(per_atom1, envlin1_ref[...])
    env_edge1 = _mmf(onehot_c, env_atom1)
    e0 = env_edge1[:, 0:M]
    e1 = env_edge1[:, M:4 * M]

    s_a = g0 * e0                                              # (0e x 0e) -> 0e
    s_b = _dot3(g1o, e1) * INV3                                # (1o . 1o) -> 0e
    t1o_a = _tile3(g0) * e1 * INV3                             # (0e * 1o) -> 1o
    t1o_b = _cross3(g1e, e1) * INV6                            # (1e x 1o) -> 1o
    t1o_c = g1o * _tile3(e0) * INV3                            # (1o * 0e) -> 1o

    latent_in = jnp.concatenate([latents, s_a, s_b], axis=-1)  # [E, 48]

    # fused [layer-1 latents_to_weights | final_latent_to_weights] MLP
    hb = _silu(_mmb(latent_in, fusedB_w1_ref[...]))
    bigb = _mmb(hb, fusedB_w2_ref[...])                        # [E, 576 + M]
    lw1 = bigb[:, 0:LW1_EXP_WIDTH]
    final_w = bigb[:, LW1_EXP_WIDTH:LW1_EXP_WIDTH + M] * cutoff    # [E, M]

    # layer-1 weighted Linear: only the Mx1o output feeds final_linear (the Mx0e
    # output of the reference's last Linear is dead downstream and is not generated)
    xvr2 = _mmf(jnp.concatenate([t1o_a, t1o_b, t1o_c], axis=-1), rv3)  # [E, 576]
    h1o = _fold_blocks(xvr2 * lw1, 3 * M)                      # [E, 3M]

    # final_linear (Mx1o -> 1x1o, per-edge external weights) + cutoff + modulator.
    # (cutoff is applied both to the generated weights and to the output, as in the ref.)
    out8 = _mmf(h1o * _tile3(final_w), s_mat) * cutoff         # [E, 8] (first 3 lanes live)
    out_ref[...] = out8.astype(out_ref.dtype)


# --------------------------- host-side weight packing -------------------------
def pack_params(params):
    """One-time transform of the logical module parameters into kernel layouts:
    bf16 MLP weights, expanded env/linear weight-generator columns with e3nn-style
    normalizations folded in, block-diagonal fusions, and the constant replication
    matrix for the weighted Linear."""
    f32 = jnp.float32
    bf16 = jnp.bfloat16
    alpha1 = 1.0 / math.sqrt(M * 1)
    alpha2 = 1.0 / math.sqrt(M * 2)
    alpha3 = 1.0 / math.sqrt(M * 3)

    def expand_env_w2(w2):
        # logical per-application columns [ew0(M) | ew1(M)]  ->  [ew0 | ew1 | ew1 | ew1]
        k = w2.shape[1] // (2 * M)
        blocks = []
        for i in range(k):
            ew0 = w2[:, i * 2 * M:i * 2 * M + M]
            ew1 = w2[:, i * 2 * M + M:(i + 1) * 2 * M]
            blocks += [ew0, ew1, ew1, ew1]
        return jnp.concatenate(blocks, axis=1)

    def expand_linear_w2_layer0(w2):
        hd = w2.shape[0]
        w = w2.reshape(hd, LINEAR_NPATHS, M, M)            # [H, path, m, n]
        g0e = (w[:, 0:2] * alpha2).reshape(hd, 2 * M * M)
        g1e = jnp.broadcast_to((w[:, 2] * alpha1)[:, :, None, :],
                               (hd, M, 3, M)).reshape(hd, 3 * M * M)
        g1o = jnp.broadcast_to((w[:, 3:5] * alpha2)[:, :, :, None, :],
                               (hd, 2, M, 3, M)).reshape(hd, 2 * 3 * M * M)
        return jnp.concatenate([g0e, g1e, g1o], axis=1)    # [H, 704]

    def expand_linear_w2_layer1(w2):
        hd = w2.shape[0]
        w = w2.reshape(hd, LINEAR_NPATHS, M, M)
        return jnp.broadcast_to((w[:, 2:5] * alpha3)[:, :, :, None, :],
                                (hd, 3, M, 3, M)).reshape(hd, 3 * 3 * M * M)   # [H, 576]

    def envlin_blockdiag(w_s, w_v):
        z = jnp.zeros((M, M), f32)
        blocks = [w_s, w_v, w_v, w_v]
        rows = [jnp.concatenate([blocks[j] if j == i else z for j in range(4)], axis=1)
                for i in range(4)]
        return jnp.concatenate(rows, axis=0) * (ENV_NORM * INV_M)   # [4M, 4M]

    def make_rv(n_paths):
        # rows: p*3M + c*M + m  ;  cols: (p*M + m)*3M + c*M + n
        rows = jnp.arange(n_paths * 3 * M)
        cols = jnp.arange(n_paths * M * 3 * M)
        r_p = rows // (3 * M)
        r_c = (rows % (3 * M)) // M
        r_m = rows % M
        c_k = cols // (3 * M)
        c_c = (cols % (3 * M)) // M
        mat = ((c_k[None, :] == (r_p * M + r_m)[:, None])
               & (c_c[None, :] == r_c[:, None]))
        return mat.astype(f32)

    ltw0_exp = expand_linear_w2_layer0(params["ltw_w2_0"])      # [64, 704]
    ltw1_exp = expand_linear_w2_layer1(params["ltw_w2_1"])      # [64, 576]

    fused_a_w1 = jnp.concatenate([params["ltw_w1_0"], params["latent_w1_1"]], axis=1)
    fused_a_w2 = jnp.concatenate([
        jnp.concatenate([ltw0_exp, jnp.zeros((HIDDEN, LATENT_DIM), f32)], axis=1),
        jnp.concatenate([jnp.zeros((HIDDEN, LW0_EXP_WIDTH), f32),
                         params["latent_w2_1"]], axis=1),
    ], axis=0)                                                  # [128, 736]

    fused_b_w1 = jnp.concatenate([params["ltw_w1_1"], params["final_ltw_w1"]], axis=1)
    fused_b_w2 = jnp.concatenate([
        jnp.concatenate([ltw1_exp, jnp.zeros((HIDDEN, M), f32)], axis=1),
        jnp.concatenate([jnp.zeros((HIDDEN, LW1_EXP_WIDTH), f32),
                         params["final_ltw_w2"]], axis=1),
    ], axis=0)                                                  # [128, 584]

    return dict(
        rv3=make_rv(3),
        w2b_w1=params["latent_w1_0"].astype(bf16),
        w2b_w2=params["latent_w2_0"].astype(bf16),
        env0_w1=params["env_w1_0"].astype(bf16),
        env0_w2=expand_env_w2(params["env_w2_0"]).astype(bf16),
        fused_a_w1=fused_a_w1.astype(bf16),
        fused_a_w2=fused_a_w2.astype(bf16),
        env1_w1=params["env_w1_1"].astype(bf16),
        env1_w2=expand_env_w2(params["env_w2_1"]).astype(bf16),
        fused_b_w1=fused_b_w1.astype(bf16),
        fused_b_w2=fused_b_w2.astype(bf16),
        envlin0=envlin_blockdiag(params["envlin_w0_0"], params["envlin_w1_0"]),
        envlin1=envlin_blockdiag(params["envlin_w0_1"], params["envlin_w1_1"]),
    )


# ------------------------------ forward pass ---------------------------------
def allegro_gdml_forward(packed, edge_index, edge_attr, edge_length,
                         edge_invariants, node_invariants):
    assert NUM_LAYERS == 2
    num_edges = edge_attr.shape[0]
    num_atoms = node_invariants.shape[0]
    n_types = node_invariants.shape[1]
    center = edge_index[0].astype(jnp.int32)
    neighbor = edge_index[1].astype(jnp.int32)

    # block-diagonal copy of the node invariants so the center- and neighbor-gathers
    # come out of a single one-hot matmul inside the kernel
    zt = jnp.zeros((num_atoms, n_types), jnp.float32)
    node_inv2 = jnp.concatenate([
        jnp.concatenate([node_invariants, zt], axis=1),
        jnp.concatenate([zt, node_invariants], axis=1),
    ], axis=0).astype(jnp.bfloat16)                             # [2A, 2*num_types]

    args = (
        edge_attr.astype(jnp.float32),
        edge_length.reshape(num_edges, 1).astype(jnp.float32),
        center.reshape(num_edges, 1),
        neighbor.reshape(num_edges, 1),
        center.reshape(1, num_edges),
        edge_invariants.astype(jnp.float32),
        node_inv2,
        packed["rv3"],
        packed["w2b_w1"], packed["w2b_w2"],
        packed["env0_w1"], packed["env0_w2"],
        packed["fused_a_w1"], packed["fused_a_w2"],
        packed["env1_w1"], packed["env1_w2"],
        packed["fused_b_w1"], packed["fused_b_w2"],
        packed["envlin0"], packed["envlin1"],
    )

    vmem_spec = lambda: pl.BlockSpec(memory_space=pltpu.MemorySpace.VMEM)
    out8 = pl.pallas_call(
        _fused_allegro_kernel,
        out_shape=jax.ShapeDtypeStruct((num_edges, 8), jnp.float32),
        in_specs=[vmem_spec() for _ in args],
        out_specs=vmem_spec(),
        compiler_params=pltpu.CompilerParams(vmem_limit_bytes=32 * 1024 * 1024),
        cost_estimate=pl.CostEstimate(flops=40_000_000, transcendentals=30_000,
                                      bytes_accessed=2_000_000),
        # No grid: at E=64 / A=16 everything is VMEM-resident and the cross-edge
        # scatter over atoms couples all edges; a single block is the fastest choice.
    )(*args)
    return out8[:, :3]


# ------------------------------- parameters ----------------------------------
def init_params(key):
    keys = iter(jax.random.split(key, 32))

    def lin(shape):
        return jax.random.normal(next(keys), shape, jnp.float32) / math.sqrt(shape[0])

    cat_dim = LATENT_DIM + M * 2
    p = {
        # two_body_latent (layer 0) and latent (layer 1)
        "latent_w1_0": lin((2 * NUM_TYPES + EDGE_INV_DIM, HIDDEN)),
        "latent_w2_0": lin((HIDDEN, LATENT_DIM)),
        "latent_w1_1": lin((cat_dim, HIDDEN)),
        "latent_w2_1": lin((HIDDEN, LATENT_DIM)),
        # env_embed_mlps (layer 0 generates 2x env-weighter weights)
        "env_w1_0": lin((LATENT_DIM, HIDDEN)),
        "env_w2_0": lin((HIDDEN, 2 * ENV_W_NUMEL)),
        "env_w1_1": lin((LATENT_DIM, HIDDEN)),
        "env_w2_1": lin((HIDDEN, ENV_W_NUMEL)),
        # latents_to_weights (per-layer Linear weight generators, weight_numel = 5*M*M)
        "ltw_w1_0": lin((cat_dim, HIDDEN)),
        "ltw_w2_0": lin((HIDDEN, LINEAR_NPATHS * M * M)),
        "ltw_w1_1": lin((cat_dim, HIDDEN)),
        "ltw_w2_1": lin((HIDDEN, LINEAR_NPATHS * M * M)),
        # final_latent_to_weights (final_linear weight_numel = M)
        "final_ltw_w1": lin((cat_dim, HIDDEN)),
        "final_ltw_w2": lin((HIDDEN, M)),
        # env_linears (internal, shared weights; one [M_in, M_out] matrix per irrep)
        "envlin_w0_0": jax.random.normal(next(keys), (M, M), jnp.float32),
        "envlin_w1_0": jax.random.normal(next(keys), (M, M), jnp.float32),
        "envlin_w0_1": jax.random.normal(next(keys), (M, M), jnp.float32),
        "envlin_w1_1": jax.random.normal(next(keys), (M, M), jnp.float32),
    }
    return p


# --------------------------------- driver ------------------------------------
if __name__ == "__main__":
    key = jax.random.PRNGKey(0)
    kp, ke, kv, ki, kt = jax.random.split(key, 5)

    params = init_params(kp)
    packed = pack_params(params)       # one-time host-side layout/precision packing

    edge_index = jax.random.randint(ke, (2, N_EDGES), 0, N_ATOMS, dtype=jnp.int32)
    edge_vec = jax.random.normal(kv, (N_EDGES, 3), jnp.float32)
    edge_length = jnp.linalg.norm(edge_vec, axis=-1)
    unit = edge_vec / jnp.maximum(edge_length, 1e-6)[:, None]
    # edge_attr = spherical harmonics of the edge vector, irreps 1x0e + 1x1o (dim 4)
    edge_attr = jnp.concatenate([jnp.ones((N_EDGES, 1), jnp.float32), unit], axis=-1)
    edge_invariants = jax.random.normal(ki, (N_EDGES, EDGE_INV_DIM), jnp.float32)
    atom_types = jax.random.randint(kt, (N_ATOMS,), 0, NUM_TYPES, dtype=jnp.int32)
    node_invariants = jax.nn.one_hot(atom_types, NUM_TYPES, dtype=jnp.float32)

    fwd = jax.jit(allegro_gdml_forward)
    out = fwd(packed, edge_index, edge_attr, edge_length, edge_invariants, node_invariants)
    jax.block_until_ready(out)

    assert out.shape == (N_EDGES, 3) and out.dtype == jnp.float32
    assert bool(jnp.all(jnp.isfinite(out)))
    print("KERNEL_OK")
</pallas_src>

<mosaic_0001>
module attributes {stable_mosaic.version = 11 : i64} {
  func.func @_fused_allegro_kernel(%arg0: memref<64x4xf32, #tpu.memory_space<vmem>>, %arg1: memref<64x1xf32, #tpu.memory_space<vmem>>, %arg2: memref<64x1xi32, #tpu.memory_space<vmem>>, %arg3: memref<64x1xi32, #tpu.memory_space<vmem>>, %arg4: memref<1x64xi32, #tpu.memory_space<vmem>>, %arg5: memref<64x8xf32, #tpu.memory_space<vmem>>, %arg6: memref<32x8xbf16, #tpu.memory_space<vmem>>, %arg7: memref<72x576xf32, #tpu.memory_space<vmem>>, %arg8: memref<16x64xbf16, #tpu.memory_space<vmem>>, %arg9: memref<64x32xbf16, #tpu.memory_space<vmem>>, %arg10: memref<32x64xbf16, #tpu.memory_space<vmem>>, %arg11: memref<64x64xbf16, #tpu.memory_space<vmem>>, %arg12: memref<48x128xbf16, #tpu.memory_space<vmem>>, %arg13: memref<128x736xbf16, #tpu.memory_space<vmem>>, %arg14: memref<32x64xbf16, #tpu.memory_space<vmem>>, %arg15: memref<64x32xbf16, #tpu.memory_space<vmem>>, %arg16: memref<48x128xbf16, #tpu.memory_space<vmem>>, %arg17: memref<128x584xbf16, #tpu.memory_space<vmem>>, %arg18: memref<32x32xf32, #tpu.memory_space<vmem>>, %arg19: memref<32x32xf32, #tpu.memory_space<vmem>>, %arg20: memref<64x8xf32, #tpu.memory_space<vmem>>) attributes {dimension_semantics = [], scalar_prefetch = 0 : i64, scratch_operands = 0 : i64, tpu.core_type = #tpu.core_type<tc>} {
    %c0 = arith.constant 0 : index
    %c0_0 = arith.constant 0 : index
    %0 = vector.load %arg0[%c0, %c0_0] : memref<64x4xf32, #tpu.memory_space<vmem>>, vector<64x4xf32>
    %c0_1 = arith.constant 0 : index
    %c0_2 = arith.constant 0 : index
    %1 = vector.load %arg1[%c0_1, %c0_2] : memref<64x1xf32, #tpu.memory_space<vmem>>, vector<64x1xf32>
    %2 = tpu.iota {dimensions = array<i32: 1>} : vector<64x32xi32>
    %c0_3 = arith.constant 0 : index
    %c0_4 = arith.constant 0 : index
    %3 = vector.load %arg2[%c0_3, %c0_4] : memref<64x1xi32, #tpu.memory_space<vmem>>, vector<64x1xi32>
    %4 = vector.broadcast %3 : vector<64x1xi32> to vector<64x32xi32>
    %5 = arith.cmpi eq, %2, %4 : vector<64x32xi32>
    %c0_5 = arith.constant 0 : index
    %c0_6 = arith.constant 0 : index
    %6 = vector.load %arg3[%c0_5, %c0_6] : memref<64x1xi32, #tpu.memory_space<vmem>>, vector<64x1xi32>
    %c16_i32 = arith.constant 16 : i32
    %7 = vector.broadcast %c16_i32 : i32 to vector<64x1xi32>
    %8 = arith.addi %6, %7 : vector<64x1xi32>
    %9 = vector.broadcast %8 : vector<64x1xi32> to vector<64x32xi32>
    %10 = arith.cmpi eq, %2, %9 : vector<64x32xi32>
    %11 = arith.ori %5, %10 : vector<64x32xi1>
    %cst = arith.constant 1.000000e+00 : f32
    %cst_7 = arith.constant 0.000000e+00 : f32
    %12 = vector.broadcast %cst : f32 to vector<64x32xf32>
    %13 = vector.broadcast %cst_7 : f32 to vector<64x32xf32>
    %14 = arith.select %11, %12, %13 : vector<64x32xi1>, vector<64x32xf32>
    %15 = arith.truncf %14 : vector<64x32xf32> to vector<64x32xbf16>
    %16 = tpu.iota {dimensions = array<i32: 1>} : vector<64x16xi32>
    %c0_8 = arith.constant 0 : index
    %c0_9 = arith.constant 0 : index
    %17 = vector.load %arg2[%c0_8, %c0_9] : memref<64x1xi32, #tpu.memory_space<vmem>>, vector<64x1xi32>
    %18 = vector.broadcast %17 : vector<64x1xi32> to vector<64x16xi32>
    %19 = arith.cmpi eq, %16, %18 : vector<64x16xi32>
    %20 = arith.extui %19 : vector<64x16xi1> to vector<64x16xi32>
    %21 = arith.sitofp %20 : vector<64x16xi32> to vector<64x16xf32>
    %22 = tpu.iota {dimensions = array<i32: 0>} : vector<16x64xi32>
    %c0_10 = arith.constant 0 : index
    %c0_11 = arith.constant 0 : index
    %23 = vector.load %arg4[%c0_10, %c0_11] : memref<1x64xi32, #tpu.memory_space<vmem>>, vector<1x64xi32>
    %24 = vector.broadcast %23 : vector<1x64xi32> to vector<16x64xi32>
    %25 = arith.cmpi eq, %22, %24 : vector<16x64xi32>
    %26 = arith.extui %25 : vector<16x64xi1> to vector<16x64xi32>
    %27 = arith.sitofp %26 : vector<16x64xi32> to vector<16x64xf32>
    %28 = tpu.iota {dimensions = array<i32: 0>} : vector<4x32xi32>
    %29 = tpu.iota {dimensions = array<i32: 1>} : vector<4x32xi32>
    %c8_i32 = arith.constant 8 : i32
    %30 = vector.broadcast %c8_i32 : i32 to vector<4x32xi32>
    %31 = arith.muli %28, %30 : vector<4x32xi32>
    %32 = arith.cmpi sge, %29, %31 : vector<4x32xi32>
    %c1_i32 = arith.constant 1 : i32
    %33 = vector.broadcast %c1_i32 : i32 to vector<4x32xi32>
    %34 = arith.addi %28, %33 : vector<4x32xi32>
    %c8_i32_12 = arith.constant 8 : i32
    %35 = vector.broadcast %c8_i32_12 : i32 to vector<4x32xi32>
    %36 = arith.muli %34, %35 : vector<4x32xi32>
    %37 = arith.cmpi slt, %29, %36 : vector<4x32xi32>
    %38 = arith.andi %32, %37 : vector<4x32xi1>
    %39 = arith.extui %38 : vector<4x32xi1> to vector<4x32xi32>
    %40 = arith.sitofp %39 : vector<4x32xi32> to vector<4x32xf32>
    %41 = tpu.iota {dimensions = array<i32: 0>} : vector<16x128xi32>
    %42 = tpu.iota {dimensions = array<i32: 1>} : vector<16x128xi32>
    %c8_i32_13 = arith.constant 8 : i32
    %43 = vector.broadcast %c8_i32_13 : i32 to vector<16x128xi32>
    %44 = arith.muli %41, %43 : vector<16x128xi32>
    %45 = arith.cmpi sge, %42, %44 : vector<16x128xi32>
    %c1_i32_14 = arith.constant 1 : i32
    %46 = vector.broadcast %c1_i32_14 : i32 to vector<16x128xi32>
    %47 = arith.addi %41, %46 : vector<16x128xi32>
    %c8_i32_15 = arith.constant 8 : i32
    %48 = vector.broadcast %c8_i32_15 : i32 to vector<16x128xi32>
    %49 = arith.muli %47, %48 : vector<16x128xi32>
    %50 = arith.cmpi slt, %42, %49 : vector<16x128xi32>
    %51 = arith.andi %45, %50 : vector<16x128xi1>
    %52 = arith.extui %51 : vector<16x128xi1> to vector<16x128xi32>
    %53 = arith.sitofp %52 : vector<16x128xi32> to vector<16x128xf32>
    %54 = tpu.iota {dimensions = array<i32: 0>} : vector<24x8xi32>
    %55 = tpu.iota {dimensions = array<i32: 1>} : vector<24x8xi32>
    %c8_i32_16 = arith.constant 8 : i32
    %56 = vector.broadcast %c8_i32_16 : i32 to vector<24x8xi32>
    %57 = arith.muli %55, %56 : vector<24x8xi32>
    %58 = arith.cmpi sge, %54, %57 : vector<24x8xi32>
    %c1_i32_17 = arith.constant 1 : i32
    %59 = vector.broadcast %c1_i32_17 : i32 to vector<24x8xi32>
    %60 = arith.addi %55, %59 : vector<24x8xi32>
    %c8_i32_18 = arith.constant 8 : i32
    %61 = vector.broadcast %c8_i32_18 : i32 to vector<24x8xi32>
    %62 = arith.muli %60, %61 : vector<24x8xi32>
    %63 = arith.cmpi slt, %54, %62 : vector<24x8xi32>
    %64 = arith.andi %58, %63 : vector<24x8xi1>
    %65 = arith.extui %64 : vector<24x8xi1> to vector<24x8xi32>
    %66 = arith.sitofp %65 : vector<24x8xi32> to vector<24x8xf32>
    %cst_19 = arith.constant 0.353553385 : f32
    %67 = vector.broadcast %cst_19 : f32 to vector<24x8xf32>
    %68 = arith.mulf %66, %67 : vector<24x8xf32>
    %c0_20 = arith.constant 0 : index
    %c0_21 = arith.constant 0 : index
    %69 = vector.load %arg7[%c0_20, %c0_21] : memref<72x576xf32, #tpu.memory_space<vmem>>, vector<72x576xf32>
    %70 = vector.extract_strided_slice %69 {offsets = [0, 0], sizes = [24, 192], strides = [1, 1]} : vector<72x576xf32> to vector<24x192xf32>
    %71 = vector.extract_strided_slice %69 {offsets = [0, 0], sizes = [48, 384], strides = [1, 1]} : vector<72x576xf32> to vector<48x384xf32>
    %cst_22 = arith.constant 2.500000e-01 : f32
    %72 = vector.broadcast %cst_22 : f32 to vector<64x1xf32>
    %73 = arith.mulf %1, %72 : vector<64x1xf32>
    %74 = arith.mulf %73, %73 : vector<64x1xf32>
    %75 = arith.mulf %74, %74 : vector<64x1xf32>
    %76 = arith.mulf %74, %75 : vector<64x1xf32>
    %77 = arith.mulf %76, %73 : vector<64x1xf32>
    %78 = arith.mulf %77, %73 : vector<64x1xf32>
    %cst_23 = arith.constant 2.800000e+01 : f32
    %79 = vector.broadcast %cst_23 : f32 to vector<64x1xf32>
    %80 = arith.mulf %79, %76 : vector<64x1xf32>
    %cst_24 = arith.constant 1.000000e+00 : f32
    %81 = vector.broadcast %cst_24 : f32 to vector<64x1xf32>
    %82 = arith.subf %81, %80 : vector<64x1xf32>
    %cst_25 = arith.constant 4.800000e+01 : f32
    %83 = vector.broadcast %cst_25 : f32 to vector<64x1xf32>
    %84 = arith.mulf %83, %77 : vector<64x1xf32>
    %85 = arith.addf %82, %84 : vector<64x1xf32>
    %cst_26 = arith.constant 2.100000e+01 : f32
    %86 = vector.broadcast %cst_26 : f32 to vector<64x1xf32>
    %87 = arith.mulf %86, %78 : vector<64x1xf32>
    %88 = arith.subf %85, %87 : vector<64x1xf32>
    %cst_27 = arith.constant 1.000000e+00 : f32
    %89 = vector.broadcast %cst_27 : f32 to vector<64x1xf32>
    %90 = arith.cmpf olt, %73, %89 : vector<64x1xf32>
    %cst_28 = arith.constant 0.000000e+00 : f32
    %91 = vector.broadcast %cst_28 : f32 to vector<64x1xf32>
    %92 = arith.select %90, %88, %91 : vector<64x1xi1>, vector<64x1xf32>
    %cst_29 = arith.constant dense<0.000000e+00> : vector<64x32xf32>
    %93 = tpu.matmul %0, %40, %cst_29 {dimension_numbers = #tpu.dot_dimension_numbers<[1], [0], [0], [1], [0, 0, 1, 1], [], []>} : vector<64x4xf32>, vector<4x32xf32>, vector<64x32xf32> -> vector<64x32xf32>
    %c0_30 = arith.constant 0 : index
    %c0_31 = arith.constant 0 : index
    %94 = vector.load %arg6[%c0_30, %c0_31] : memref<32x8xbf16, #tpu.memory_space<vmem>>, vector<32x8xbf16>
    %cst_32 = arith.constant dense<0.000000e+00> : vector<64x8xf32>
    %95 = tpu.matmul %15, %94, %cst_32 {dimension_numbers = #tpu.dot_dimension_numbers<[1], [0], [0], [1], [0, 0, 1, 1], [], []>} : vector<64x32xbf16>, vector<32x8xbf16>, vector<64x8xf32> -> vector<64x8xf32>
    %c0_33 = arith.constant 0 : index
    %c0_34 = arith.constant 0 : index
    %96 = vector.load %arg5[%c0_33, %c0_34] : memref<64x8xf32, #tpu.memory_space<vmem>>, vector<64x8xf32>
    %97 = tpu.concatenate %95, %96 in 1 : vector<64x8xf32>, vector<64x8xf32> -> vector<64x16xf32>
    %c0_35 = arith.constant 0 : index
    %c0_36 = arith.constant 0 : index
    %98 = vector.load %arg8[%c0_35, %c0_36] : memref<16x64xbf16, #tpu.memory_space<vmem>>, vector<16x64xbf16>
    %99 = arith.truncf %97 : vector<64x16xf32> to vector<64x16xbf16>
    %cst_37 = arith.constant dense<0.000000e+00> : vector<64x64xf32>
    %100 = tpu.matmul %99, %98, %cst_37 {dimension_numbers = #tpu.dot_dimension_numbers<[1], [0], [0], [1], [0, 0, 1, 1], [], []>} : vector<64x16xbf16>, vector<16x64xbf16>, vector<64x64xf32> -> vector<64x64xf32>
    %101 = arith.negf %100 : vector<64x64xf32>
    %102 = math.exp %101 : vector<64x64xf32>
    %cst_38 = arith.constant 1.000000e+00 : f32
    %103 = vector.broadcast %cst_38 : f32 to vector<64x64xf32>
    %104 = arith.addf %103, %102 : vector<64x64xf32>
    %105 = arith.divf %103, %104 : vector<64x64xf32>
    %106 = arith.mulf %100, %105 : vector<64x64xf32>
    %c0_39 = arith.constant 0 : index
    %c0_40 = arith.constant 0 : index
    %107 = vector.load %arg9[%c0_39, %c0_40] : memref<64x32xbf16, #tpu.memory_space<vmem>>, vector<64x32xbf16>
    %108 = arith.truncf %106 : vector<64x64xf32> to vector<64x64xbf16>
    %cst_41 = arith.constant dense<0.000000e+00> : vector<64x32xf32>
    %109 = tpu.matmul %108, %107, %cst_41 {dimension_numbers = #tpu.dot_dimension_numbers<[1], [0], [0], [1], [0, 0, 1, 1], [], []>} : vector<64x64xbf16>, vector<64x32xbf16>, vector<64x32xf32> -> vector<64x32xf32>
    %110 = vector.broadcast %92 : vector<64x1xf32> to vector<64x32xf32>
    %111 = arith.mulf %109, %110 : vector<64x32xf32>
    %c0_42 = arith.constant 0 : index
    %c0_43 = arith.constant 0 : index
    %112 = vector.load %arg10[%c0_42, %c0_43] : memref<32x64xbf16, #tpu.memory_space<vmem>>, vector<32x64xbf16>
    %113 = arith.truncf %111 : vector<64x32xf32> to vector<64x32xbf16>
    %cst_44 = arith.constant dense<0.000000e+00> : vector<64x64xf32>
    %114 = tpu.matmul %113, %112, %cst_44 {dimension_numbers = #tpu.dot_dimension_numbers<[1], [0], [0], [1], [0, 0, 1, 1], [], []>} : vector<64x32xbf16>, vector<32x64xbf16>, vector<64x64xf32> -> vector<64x64xf32>
    %115 = arith.negf %114 : vector<64x64xf32>
    %116 = math.exp %115 : vector<64x64xf32>
    %cst_45 = arith.constant 1.000000e+00 : f32
    %117 = vector.broadcast %cst_45 : f32 to vector<64x64xf32>
    %118 = arith.addf %117, %116 : vector<64x64xf32>
    %119 = arith.divf %117, %118 : vector<64x64xf32>
    %120 = arith.mulf %114, %119 : vector<64x64xf32>
    %c0_46 = arith.constant 0 : index
    %c0_47 = arith.constant 0 : index
    %121 = vector.load %arg11[%c0_46, %c0_47] : memref<64x64xbf16, #tpu.memory_space<vmem>>, vector<64x64xbf16>
    %122 = arith.truncf %120 : vector<64x64xf32> to vector<64x64xbf16>
    %cst_48 = arith.constant dense<0.000000e+00> : vector<64x64xf32>
    %123 = tpu.matmul %122, %121, %cst_48 {dimension_numbers = #tpu.dot_dimension_numbers<[1], [0], [0], [1], [0, 0, 1, 1], [], []>} : vector<64x64xbf16>, vector<64x64xbf16>, vector<64x64xf32> -> vector<64x64xf32>
    %124 = vector.extract_strided_slice %123 {offsets = [0, 0], sizes = [64, 32], strides = [1, 1]} : vector<64x64xf32> to vector<64x32xf32>
    %125 = arith.mulf %93, %124 : vector<64x32xf32>
    %126 = vector.extract_strided_slice %125 {offsets = [0, 0], sizes = [64, 8], strides = [1, 1]} : vector<64x32xf32> to vector<64x8xf32>
    %127 = vector.extract_strided_slice %125 {offsets = [0, 8], sizes = [64, 24], strides = [1, 1]} : vector<64x32xf32> to vector<64x24xf32>
    %128 = vector.extract_strided_slice %123 {offsets = [0, 32], sizes = [64, 32], strides = [1, 1]} : vector<64x64xf32> to vector<64x32xf32>
    %129 = arith.mulf %93, %128 : vector<64x32xf32>
    %cst_49 = arith.constant dense<0.000000e+00> : vector<16x32xf32>
    %130 = tpu.matmul %27, %129, %cst_49 {dimension_numbers = #tpu.dot_dimension_numbers<[1], [0], [0], [1], [0, 0, 1, 1], [], []>} : vector<16x64xf32>, vector<64x32xf32>, vector<16x32xf32> -> vector<16x32xf32>
    %c0_50 = arith.constant 0 : index
    %c0_51 = arith.constant 0 : index
    %131 = vector.load %arg18[%c0_50, %c0_51] : memref<32x32xf32, #tpu.memory_space<vmem>>, vector<32x32xf32>
    %cst_52 = arith.constant dense<0.000000e+00> : vector<16x32xf32>
    %132 = tpu.matmul %130, %131, %cst_52 {dimension_numbers = #tpu.dot_dimension_numbers<[1], [0], [0], [1], [0, 0, 1, 1], [], []>} : vector<16x32xf32>, vector<32x32xf32>, vector<16x32xf32> -> vector<16x32xf32>
    %cst_53 = arith.constant dense<0.000000e+00> : vector<64x32xf32>
    %133 = tpu.matmul %21, %132, %cst_53 {dimension_numbers = #tpu.dot_dimension_numbers<[1], [0], [0], [1], [0, 0, 1, 1], [], []>} : vector<64x16xf32>, vector<16x32xf32>, vector<64x32xf32> -> vector<64x32xf32>
    %134 = vector.extract_strided_slice %133 {offsets = [0, 0], sizes = [64, 8], strides = [1, 1]} : vector<64x32xf32> to vector<64x8xf32>
    %135 = vector.extract_strided_slice %133 {offsets = [0, 8], sizes = [64, 24], strides = [1, 1]} : vector<64x32xf32> to vector<64x24xf32>
    %136 = arith.mulf %126, %134 : vector<64x8xf32>
    %137 = arith.mulf %127, %135 : vector<64x24xf32>
    %138 = vector.extract_strided_slice %137 {offsets = [0, 0], sizes = [64, 8], strides = [1, 1]} : vector<64x24xf32> to vector<64x8xf32>
    %139 = vector.extract_strided_slice %137 {offsets = [0, 8], sizes = [64, 8], strides = [1, 1]} : vector<64x24xf32> to vector<64x8xf32>
    %140 = arith.addf %138, %139 : vector<64x8xf32>
    %141 = vector.extract_strided_slice %137 {offsets = [0, 16], sizes = [64, 8], strides = [1, 1]} : vector<64x24xf32> to vector<64x8xf32>
    %142 = arith.addf %140, %141 : vector<64x8xf32>
    %cst_54 = arith.constant 0.577350259 : f32
    %143 = vector.broadcast %cst_54 : f32 to vector<64x8xf32>
    %144 = arith.mulf %142, %143 : vector<64x8xf32>
    %145 = vector.extract_strided_slice %127 {offsets = [0, 0], sizes = [64, 8], strides = [1, 1]} : vector<64x24xf32> to vector<64x8xf32>
    %146 = vector.extract_strided_slice %127 {offsets = [0, 8], sizes = [64, 8], strides = [1, 1]} : vector<64x24xf32> to vector<64x8xf32>
    %147 = vector.extract_strided_slice %127 {offsets = [0, 16], sizes = [64, 8], strides = [1, 1]} : vector<64x24xf32> to vector<64x8xf32>
    %148 = vector.extract_strided_slice %135 {offsets = [0, 0], sizes = [64, 8], strides = [1, 1]} : vector<64x24xf32> to vector<64x8xf32>
    %149 = vector.extract_strided_slice %135 {offsets = [0, 8], sizes = [64, 8], strides = [1, 1]} : vector<64x24xf32> to vector<64x8xf32>
    %150 = vector.extract_strided_slice %135 {offsets = [0, 16], sizes = [64, 8], strides = [1, 1]} : vector<64x24xf32> to vector<64x8xf32>
    %151 = arith.mulf %146, %150 : vector<64x8xf32>
    %152 = arith.mulf %147, %149 : vector<64x8xf32>
    %153 = arith.subf %151, %152 : vector<64x8xf32>
    %154 = arith.mulf %147, %148 : vector<64x8xf32>
    %155 = arith.mulf %145, %150 : vector<64x8xf32>
    %156 = arith.subf %154, %155 : vector<64x8xf32>
    %157 = arith.mulf %145, %149 : vector<64x8xf32>
    %158 = arith.mulf %146, %148 : vector<64x8xf32>
    %159 = arith.subf %157, %158 : vector<64x8xf32>
    %160 = tpu.concatenate %153, %156, %159 in 1 : vector<64x8xf32>, vector<64x8xf32>, vector<64x8xf32> -> vector<64x24xf32>
    %cst_55 = arith.constant 0.408248305 : f32
    %161 = vector.broadcast %cst_55 : f32 to vector<64x24xf32>
    %162 = arith.mulf %160, %161 : vector<64x24xf32>
    %163 = tpu.concatenate %126, %126, %126 in 1 : vector<64x8xf32>, vector<64x8xf32>, vector<64x8xf32> -> vector<64x24xf32>
    %164 = arith.mulf %163, %135 : vector<64x24xf32>
    %cst_56 = arith.constant 0.577350259 : f32
    %165 = vector.broadcast %cst_56 : f32 to vector<64x24xf32>
    %166 = arith.mulf %164, %165 : vector<64x24xf32>
    %167 = tpu.concatenate %134, %134, %134 in 1 : vector<64x8xf32>, vector<64x8xf32>, vector<64x8xf32> -> vector<64x24xf32>
    %168 = arith.mulf %127, %167 : vector<64x24xf32>
    %cst_57 = arith.constant 0.577350259 : f32
    %169 = vector.broadcast %cst_57 : f32 to vector<64x24xf32>
    %170 = arith.mulf %168, %169 : vector<64x24xf32>
    %171 = tpu.concatenate %111, %136, %144 in 1 : vector<64x32xf32>, vector<64x8xf32>, vector<64x8xf32> -> vector<64x48xf32>
    %c0_58 = arith.constant 0 : index
    %c0_59 = arith.constant 0 : index
    %172 = vector.load %arg12[%c0_58, %c0_59] : memref<48x128xbf16, #tpu.memory_space<vmem>>, vector<48x128xbf16>
    %173 = arith.truncf %171 : vector<64x48xf32> to vector<64x48xbf16>
    %cst_60 = arith.constant dense<0.000000e+00> : vector<64x128xf32>
    %174 = tpu.matmul %173, %172, %cst_60 {dimension_numbers = #tpu.dot_dimension_numbers<[1], [0], [0], [1], [0, 0, 1, 1], [], []>} : vector<64x48xbf16>, vector<48x128xbf16>, vector<64x128xf32> -> vector<64x128xf32>
    %175 = arith.negf %174 : vector<64x128xf32>
    %176 = math.exp %175 : vector<64x128xf32>
    %cst_61 = arith.constant 1.000000e+00 : f32
    %177 = vector.broadcast %cst_61 : f32 to vector<64x128xf32>
    %178 = arith.addf %177, %176 : vector<64x128xf32>
    %179 = arith.divf %177, %178 : vector<64x128xf32>
    %180 = arith.mulf %174, %179 : vector<64x128xf32>
    %c0_62 = arith.constant 0 : index
    %c0_63 = arith.constant 0 : index
    %181 = vector.load %arg13[%c0_62, %c0_63] : memref<128x736xbf16, #tpu.memory_space<vmem>>, vector<128x736xbf16>
    %182 = arith.truncf %180 : vector<64x128xf32> to vector<64x128xbf16>
    %cst_64 = arith.constant dense<0.000000e+00> : vector<64x736xf32>
    %183 = tpu.matmul %182, %181, %cst_64 {dimension_numbers = #tpu.dot_dimension_numbers<[1], [0], [0], [1], [0, 0, 1, 1], [], []>} : vector<64x128xbf16>, vector<128x736xbf16>, vector<64x736xf32> -> vector<64x736xf32>
    %184 = vector.extract_strided_slice %183 {offsets = [0, 0], sizes = [64, 704], strides = [1, 1]} : vector<64x736xf32> to vector<64x704xf32>
    %185 = vector.extract_strided_slice %183 {offsets = [0, 704], sizes = [64, 32], strides = [1, 1]} : vector<64x736xf32> to vector<64x32xf32>
    %186 = vector.broadcast %92 : vector<64x1xf32> to vector<64x32xf32>
    %187 = arith.mulf %185, %186 : vector<64x32xf32>
    %cst_65 = arith.constant 0.89442718 : f32
    %188 = vector.broadcast %cst_65 : f32 to vector<64x32xf32>
    %189 = arith.mulf %188, %111 : vector<64x32xf32>
    %cst_66 = arith.constant 0.44721359 : f32
    %190 = vector.broadcast %cst_66 : f32 to vector<64x32xf32>
    %191 = arith.mulf %190, %187 : vector<64x32xf32>
    %192 = arith.addf %189, %191 : vector<64x32xf32>
    %193 = tpu.concatenate %136, %144 in 1 : vector<64x8xf32>, vector<64x8xf32> -> vector<64x16xf32>
    %cst_67 = arith.constant dense<0.000000e+00> : vector<64x128xf32>
    %194 = tpu.matmul %193, %53, %cst_67 {dimension_numbers = #tpu.dot_dimension_numbers<[1], [0], [0], [1], [0, 0, 1, 1], [], []>} : vector<64x16xf32>, vector<16x128xf32>, vector<64x128xf32> -> vector<64x128xf32>
    %195 = vector.extract_strided_slice %184 {offsets = [0, 0], sizes = [64, 128], strides = [1, 1]} : vector<64x704xf32> to vector<64x128xf32>
    %196 = arith.mulf %194, %195 : vector<64x128xf32>
    %197 = vector.extract_strided_slice %196 {offsets = [0, 0], sizes = [64, 64], strides = [1, 1]} : vector<64x128xf32> to vector<64x64xf32>
    %198 = vector.extract_strided_slice %196 {offsets = [0, 64], sizes = [64, 64], strides = [1, 1]} : vector<64x128xf32> to vector<64x64xf32>
    %199 = arith.addf %197, %198 : vector<64x64xf32>
    %200 = vector.extract_strided_slice %199 {offsets = [0, 0], sizes = [64, 32], strides = [1, 1]} : vector<64x64xf32> to vector<64x32xf32>
    %201 = vector.extract_strided_slice %199 {offsets = [0, 32], sizes = [64, 32], strides = [1, 1]} : vector<64x64xf32> to vector<64x32xf32>
    %202 = arith.addf %200, %201 : vector<64x32xf32>
    %203 = vector.extract_strided_slice %202 {offsets = [0, 0], sizes = [64, 16], strides = [1, 1]} : vector<64x32xf32> to vector<64x16xf32>
    %204 = vector.extract_strided_slice %202 {offsets = [0, 16], sizes = [64, 16], strides = [1, 1]} : vector<64x32xf32> to vector<64x16xf32>
    %205 = arith.addf %203, %204 : vector<64x16xf32>
    %206 = vector.extract_strided_slice %205 {offsets = [0, 0], sizes = [64, 8], strides = [1, 1]} : vector<64x16xf32> to vector<64x8xf32>
    %207 = vector.extract_strided_slice %205 {offsets = [0, 8], sizes = [64, 8], strides = [1, 1]} : vector<64x16xf32> to vector<64x8xf32>
    %208 = arith.addf %206, %207 : vector<64x8xf32>
    %cst_68 = arith.constant dense<0.000000e+00> : vector<64x192xf32>
    %209 = tpu.matmul %162, %70, %cst_68 {dimension_numbers = #tpu.dot_dimension_numbers<[1], [0], [0], [1], [0, 0, 1, 1], [], []>} : vector<64x24xf32>, vector<24x192xf32>, vector<64x192xf32> -> vector<64x192xf32>
    %210 = vector.extract_strided_slice %184 {offsets = [0, 128], sizes = [64, 192], strides = [1, 1]} : vector<64x704xf32> to vector<64x192xf32>
    %211 = arith.mulf %209, %210 : vector<64x192xf32>
    %212 = vector.extract_strided_slice %211 {offsets = [0, 0], sizes = [64, 96], strides = [1, 1]} : vector<64x192xf32> to vector<64x96xf32>
    %213 = vector.extract_strided_slice %211 {offsets = [0, 96], sizes = [64, 96], strides = [1, 1]} : vector<64x192xf32> to vector<64x96xf32>
    %214 = arith.addf %212, %213 : vector<64x96xf32>
    %215 = vector.extract_strided_slice %214 {offsets = [0, 0], sizes = [64, 48], strides = [1, 1]} : vector<64x96xf32> to vector<64x48xf32>
    %216 = vector.extract_strided_slice %214 {offsets = [0, 48], sizes = [64, 48], strides = [1, 1]} : vector<64x96xf32> to vector<64x48xf32>
    %217 = arith.addf %215, %216 : vector<64x48xf32>
    %218 = vector.extract_strided_slice %217 {offsets = [0, 0], sizes = [64, 24], strides = [1, 1]} : vector<64x48xf32> to vector<64x24xf32>
    %219 = vector.extract_strided_slice %217 {offsets = [0, 24], sizes = [64, 24], strides = [1, 1]} : vector<64x48xf32> to vector<64x24xf32>
    %220 = arith.addf %218, %219 : vector<64x24xf32>
    %221 = tpu.concatenate %166, %170 in 1 : vector<64x24xf32>, vector<64x24xf32> -> vector<64x48xf32>
    %cst_69 = arith.constant dense<0.000000e+00> : vector<64x384xf32>
    %222 = tpu.matmul %221, %71, %cst_69 {dimension_numbers = #tpu.dot_dimension_numbers<[1], [0], [0], [1], [0, 0, 1, 1], [], []>} : vector<64x48xf32>, vector<48x384xf32>, vector<64x384xf32> -> vector<64x384xf32>
    %223 = vector.extract_strided_slice %184 {offsets = [0, 320], sizes = [64, 384], strides = [1, 1]} : vector<64x704xf32> to vector<64x384xf32>
    %224 = arith.mulf %222, %223 : vector<64x384xf32>
    %225 = vector.extract_strided_slice %224 {offsets = [0, 0], sizes = [64, 192], strides = [1, 1]} : vector<64x384xf32> to vector<64x192xf32>
    %226 = vector.extract_strided_slice %224 {offsets = [0, 192], sizes = [64, 192], strides = [1, 1]} : vector<64x384xf32> to vector<64x192xf32>
    %227 = arith.addf %225, %226 : vector<64x192xf32>
    %228 = vector.extract_strided_slice %227 {offsets = [0, 0], sizes = [64, 96], strides = [1, 1]} : vector<64x192xf32> to vector<64x96xf32>
    %229 = vector.extract_strided_slice %227 {offsets = [0, 96], sizes = [64, 96], strides = [1, 1]} : vector<64x192xf32> to vector<64x96xf32>
    %230 = arith.addf %228, %229 : vector<64x96xf32>
    %231 = vector.extract_strided_slice %230 {offsets = [0, 0], sizes = [64, 48], strides = [1, 1]} : vector<64x96xf32> to vector<64x48xf32>
    %232 = vector.extract_strided_slice %230 {offsets = [0, 48], sizes = [64, 48], strides = [1, 1]} : vector<64x96xf32> to vector<64x48xf32>
    %233 = arith.addf %231, %232 : vector<64x48xf32>
    %234 = vector.extract_strided_slice %233 {offsets = [0, 0], sizes = [64, 24], strides = [1, 1]} : vector<64x48xf32> to vector<64x24xf32>
    %235 = vector.extract_strided_slice %233 {offsets = [0, 24], sizes = [64, 24], strides = [1, 1]} : vector<64x48xf32> to vector<64x24xf32>
    %236 = arith.addf %234, %235 : vector<64x24xf32>
    %c0_70 = arith.constant 0 : index
    %c0_71 = arith.constant 0 : index
    %237 = vector.load %arg14[%c0_70, %c0_71] : memref<32x64xbf16, #tpu.memory_space<vmem>>, vector<32x64xbf16>
    %238 = arith.truncf %192 : vector<64x32xf32> to vector<64x32xbf16>
    %cst_72 = arith.constant dense<0.000000e+00> : vector<64x64xf32>
    %239 = tpu.matmul %238, %237, %cst_72 {dimension_numbers = #tpu.dot_dimension_numbers<[1], [0], [0], [1], [0, 0, 1, 1], [], []>} : vector<64x32xbf16>, vector<32x64xbf16>, vector<64x64xf32> -> vector<64x64xf32>
    %240 = arith.negf %239 : vector<64x64xf32>
    %241 = math.exp %240 : vector<64x64xf32>
    %cst_73 = arith.constant 1.000000e+00 : f32
    %242 = vector.broadcast %cst_73 : f32 to vector<64x64xf32>
    %243 = arith.addf %242, %241 : vector<64x64xf32>
    %244 = arith.divf %242, %243 : vector<64x64xf32>
    %245 = arith.mulf %239, %244 : vector<64x64xf32>
    %c0_74 = arith.constant 0 : index
    %c0_75 = arith.constant 0 : index
    %246 = vector.load %arg15[%c0_74, %c0_75] : memref<64x32xbf16, #tpu.memory_space<vmem>>, vector<64x32xbf16>
    %247 = arith.truncf %245 : vector<64x64xf32> to vector<64x64xbf16>
    %cst_76 = arith.constant dense<0.000000e+00> : vector<64x32xf32>
    %248 = tpu.matmul %247, %246, %cst_76 {dimension_numbers = #tpu.dot_dimension_numbers<[1], [0], [0], [1], [0, 0, 1, 1], [], []>} : vector<64x64xbf16>, vector<64x32xbf16>, vector<64x32xf32> -> vector<64x32xf32>
    %249 = arith.mulf %93, %248 : vector<64x32xf32>
    %cst_77 = arith.constant dense<0.000000e+00> : vector<16x32xf32>
    %250 = tpu.matmul %27, %249, %cst_77 {dimension_numbers = #tpu.dot_dimension_numbers<[1], [0], [0], [1], [0, 0, 1, 1], [], []>} : vector<16x64xf32>, vector<64x32xf32>, vector<16x32xf32> -> vector<16x32xf32>
    %c0_78 = arith.constant 0 : index
    %c0_79 = arith.constant 0 : index
    %251 = vector.load %arg19[%c0_78, %c0_79] : memref<32x32xf32, #tpu.memory_space<vmem>>, vector<32x32xf32>
    %cst_80 = arith.constant dense<0.000000e+00> : vector<16x32xf32>
    %252 = tpu.matmul %250, %251, %cst_80 {dimension_numbers = #tpu.dot_dimension_numbers<[1], [0], [0], [1], [0, 0, 1, 1], [], []>} : vector<16x32xf32>, vector<32x32xf32>, vector<16x32xf32> -> vector<16x32xf32>
    %cst_81 = arith.constant dense<0.000000e+00> : vector<64x32xf32>
    %253 = tpu.matmul %21, %252, %cst_81 {dimension_numbers = #tpu.dot_dimension_numbers<[1], [0], [0], [1], [0, 0, 1, 1], [], []>} : vector<64x16xf32>, vector<16x32xf32>, vector<64x32xf32> -> vector<64x32xf32>
    %254 = vector.extract_strided_slice %253 {offsets = [0, 0], sizes = [64, 8], strides = [1, 1]} : vector<64x32xf32> to vector<64x8xf32>
    %255 = vector.extract_strided_slice %253 {offsets = [0, 8], sizes = [64, 24], strides = [1, 1]} : vector<64x32xf32> to vector<64x24xf32>
    %256 = arith.mulf %208, %254 : vector<64x8xf32>
    %257 = arith.mulf %236, %255 : vector<64x24xf32>
    %258 = vector.extract_strided_slice %257 {offsets = [0, 0], sizes = [64, 8], strides = [1, 1]} : vector<64x24xf32> to vector<64x8xf32>
    %259 = vector.extract_strided_slice %257 {offsets = [0, 8], sizes = [64, 8], strides = [1, 1]} : vector<64x24xf32> to vector<64x8xf32>
    %260 = arith.addf %258, %259 : vector<64x8xf32>
    %261 = vector.extract_strided_slice %257 {offsets = [0, 16], sizes = [64, 8], strides = [1, 1]} : vector<64x24xf32> to vector<64x8xf32>
    %262 = arith.addf %260, %261 : vector<64x8xf32>
    %cst_82 = arith.constant 0.577350259 : f32
    %263 = vector.broadcast %cst_82 : f32 to vector<64x8xf32>
    %264 = arith.mulf %262, %263 : vector<64x8xf32>
    %265 = tpu.concatenate %208, %208, %208 in 1 : vector<64x8xf32>, vector<64x8xf32>, vector<64x8xf32> -> vector<64x24xf32>
    %266 = arith.mulf %265, %255 : vector<64x24xf32>
    %cst_83 = arith.constant 0.577350259 : f32
    %267 = vector.broadcast %cst_83 : f32 to vector<64x24xf32>
    %268 = arith.mulf %266, %267 : vector<64x24xf32>
    %269 = vector.extract_strided_slice %220 {offsets = [0, 0], sizes = [64, 8], strides = [1, 1]} : vector<64x24xf32> to vector<64x8xf32>
    %270 = vector.extract_strided_slice %220 {offsets = [0, 8], sizes = [64, 8], strides = [1, 1]} : vector<64x24xf32> to vector<64x8xf32>
    %271 = vector.extract_strided_slice %220 {offsets = [0, 16], sizes = [64, 8], strides = [1, 1]} : vector<64x24xf32> to vector<64x8xf32>
    %272 = vector.extract_strided_slice %255 {offsets = [0, 0], sizes = [64, 8], strides = [1, 1]} : vector<64x24xf32> to vector<64x8xf32>
    %273 = vector.extract_strided_slice %255 {offsets = [0, 8], sizes = [64, 8], strides = [1, 1]} : vector<64x24xf32> to vector<64x8xf32>
    %274 = vector.extract_strided_slice %255 {offsets = [0, 16], sizes = [64, 8], strides = [1, 1]} : vector<64x24xf32> to vector<64x8xf32>
    %275 = arith.mulf %270, %274 : vector<64x8xf32>
    %276 = arith.mulf %271, %273 : vector<64x8xf32>
    %277 = arith.subf %275, %276 : vector<64x8xf32>
    %278 = arith.mulf %271, %272 : vector<64x8xf32>
    %279 = arith.mulf %269, %274 : vector<64x8xf32>
    %280 = arith.subf %278, %279 : vector<64x8xf32>
    %281 = arith.mulf %269, %273 : vector<64x8xf32>
    %282 = arith.mulf %270, %272 : vector<64x8xf32>
    %283 = arith.subf %281, %282 : vector<64x8xf32>
    %284 = tpu.concatenate %277, %280, %283 in 1 : vector<64x8xf32>, vector<64x8xf32>, vector<64x8xf32> -> vector<64x24xf32>
    %cst_84 = arith.constant 0.408248305 : f32
    %285 = vector.broadcast %cst_84 : f32 to vector<64x24xf32>
    %286 = arith.mulf %284, %285 : vector<64x24xf32>
    %287 = tpu.concatenate %254, %254, %254 in 1 : vector<64x8xf32>, vector<64x8xf32>, vector<64x8xf32> -> vector<64x24xf32>
    %288 = arith.mulf %236, %287 : vector<64x24xf32>
    %cst_85 = arith.constant 0.577350259 : f32
    %289 = vector.broadcast %cst_85 : f32 to vector<64x24xf32>
    %290 = arith.mulf %288, %289 : vector<64x24xf32>
    %291 = tpu.concatenate %192, %256, %264 in 1 : vector<64x32xf32>, vector<64x8xf32>, vector<64x8xf32> -> vector<64x48xf32>
    %c0_86 = arith.constant 0 : index
    %c0_87 = arith.constant 0 : index
    %292 = vector.load %arg16[%c0_86, %c0_87] : memref<48x128xbf16, #tpu.memory_space<vmem>>, vector<48x128xbf16>
    %293 = arith.truncf %291 : vector<64x48xf32> to vector<64x48xbf16>
    %cst_88 = arith.constant dense<0.000000e+00> : vector<64x128xf32>
    %294 = tpu.matmul %293, %292, %cst_88 {dimension_numbers = #tpu.dot_dimension_numbers<[1], [0], [0], [1], [0, 0, 1, 1], [], []>} : vector<64x48xbf16>, vector<48x128xbf16>, vector<64x128xf32> -> vector<64x128xf32>
    %295 = arith.negf %294 : vector<64x128xf32>
    %296 = math.exp %295 : vector<64x128xf32>
    %cst_89 = arith.constant 1.000000e+00 : f32
    %297 = vector.broadcast %cst_89 : f32 to vector<64x128xf32>
    %298 = arith.addf %297, %296 : vector<64x128xf32>
    %299 = arith.divf %297, %298 : vector<64x128xf32>
    %300 = arith.mulf %294, %299 : vector<64x128xf32>
    %c0_90 = arith.constant 0 : index
    %c0_91 = arith.constant 0 : index
    %301 = vector.load %arg17[%c0_90, %c0_91] : memref<128x584xbf16, #tpu.memory_space<vmem>>, vector<128x584xbf16>
    %302 = arith.truncf %300 : vector<64x128xf32> to vector<64x128xbf16>
    %cst_92 = arith.constant dense<0.000000e+00> : vector<64x584xf32>
    %303 = tpu.matmul %302, %301, %cst_92 {dimension_numbers = #tpu.dot_dimension_numbers<[1], [0], [0], [1], [0, 0, 1, 1], [], []>} : vector<64x128xbf16>, vector<128x584xbf16>, vector<64x584xf32> -> vector<64x584xf32>
    %304 = vector.extract_strided_slice %303 {offsets = [0, 0], sizes = [64, 576], strides = [1, 1]} : vector<64x584xf32> to vector<64x576xf32>
    %305 = vector.extract_strided_slice %303 {offsets = [0, 576], sizes = [64, 8], strides = [1, 1]} : vector<64x584xf32> to vector<64x8xf32>
    %306 = vector.broadcast %92 : vector<64x1xf32> to vector<64x8xf32>
    %307 = arith.mulf %305, %306 : vector<64x8xf32>
    %308 = tpu.concatenate %268, %286, %290 in 1 : vector<64x24xf32>, vector<64x24xf32>, vector<64x24xf32> -> vector<64x72xf32>
    %cst_93 = arith.constant dense<0.000000e+00> : vector<64x576xf32>
    %309 = tpu.matmul %308, %69, %cst_93 {dimension_numbers = #tpu.dot_dimension_numbers<[1], [0], [0], [1], [0, 0, 1, 1], [], []>} : vector<64x72xf32>, vector<72x576xf32>, vector<64x576xf32> -> vector<64x576xf32>
    %310 = arith.mulf %309, %304 : vector<64x576xf32>
    %311 = vector.extract_strided_slice %310 {offsets = [0, 0], sizes = [64, 288], strides = [1, 1]} : vector<64x576xf32> to vector<64x288xf32>
    %312 = vector.extract_strided_slice %310 {offsets = [0, 288], sizes = [64, 288], strides = [1, 1]} : vector<64x576xf32> to vector<64x288xf32>
    %313 = arith.addf %311, %312 : vector<64x288xf32>
    %314 = vector.extract_strided_slice %313 {offsets = [0, 0], sizes = [64, 144], strides = [1, 1]} : vector<64x288xf32> to vector<64x144xf32>
    %315 = vector.extract_strided_slice %313 {offsets = [0, 144], sizes = [64, 144], strides = [1, 1]} : vector<64x288xf32> to vector<64x144xf32>
    %316 = arith.addf %314, %315 : vector<64x144xf32>
    %317 = vector.extract_strided_slice %316 {offsets = [0, 0], sizes = [64, 72], strides = [1, 1]} : vector<64x144xf32> to vector<64x72xf32>
    %318 = vector.extract_strided_slice %316 {offsets = [0, 72], sizes = [64, 72], strides = [1, 1]} : vector<64x144xf32> to vector<64x72xf32>
    %319 = arith.addf %317, %318 : vector<64x72xf32>
    %320 = vector.extract_strided_slice %319 {offsets = [0, 0], sizes = [64, 24], strides = [1, 1]} : vector<64x72xf32> to vector<64x24xf32>
    %321 = vector.extract_strided_slice %319 {offsets = [0, 24], sizes = [64, 24], strides = [1, 1]} : vector<64x72xf32> to vector<64x24xf32>
    %322 = arith.addf %320, %321 : vector<64x24xf32>
    %323 = vector.extract_strided_slice %319 {offsets = [0, 48], sizes = [64, 24], strides = [1, 1]} : vector<64x72xf32> to vector<64x24xf32>
    %324 = arith.addf %322, %323 : vector<64x24xf32>
    %325 = tpu.concatenate %307, %307, %307 in 1 : vector<64x8xf32>, vector<64x8xf32>, vector<64x8xf32> -> vector<64x24xf32>
    %326 = arith.mulf %324, %325 : vector<64x24xf32>
    %cst_94 = arith.constant dense<0.000000e+00> : vector<64x8xf32>
    %327 = tpu.matmul %326, %68, %cst_94 {dimension_numbers = #tpu.dot_dimension_numbers<[1], [0], [0], [1], [0, 0, 1, 1], [], []>} : vector<64x24xf32>, vector<24x8xf32>, vector<64x8xf32> -> vector<64x8xf32>
    %328 = vector.broadcast %92 : vector<64x1xf32> to vector<64x8xf32>
    %329 = arith.mulf %327, %328 : vector<64x8xf32>
    %c0_95 = arith.constant 0 : index
    %c0_96 = arith.constant 0 : index
    %330 = vector.load %arg20[%c0_95, %c0_96] : memref<64x8xf32, #tpu.memory_space<vmem>>, vector<64x8xf32>
    tpu.vector_store %arg20[%c0_95, %c0_96], %329 {strides = array<i32>} : memref<64x8xf32, #tpu.memory_space<vmem>>, vector<64x8xf32>,
    return
  }
}

</mosaic_0001>

<bundles_post_ra>
// kernel: allegro_gdml_forward.1
= control target key start
LH: loop header
LB: loop body
LE: loop exit
PB: predicated region body
PF: predicated region fallthrough
CT: control target
= control target key end

     0   :  { %v7607_v0 = vmov 0   ;;  %vm500_vm14 = vcmask 261120   ;;  %s7620_s21 = smov 48   ;;  %s12359_s2 = inlined_call_operand.vmem [shape: s32[64,1], index: 2, kind: input, shape index: {}]   ;;  %s12360_s3 = inlined_call_operand.vmem [shape: s32[64,1], index: 3, kind: input, shape index: {}]   ;;  %s12361_s1 = inlined_call_operand.vmem [shape: f32[64,1], index: 1, kind: input, shape index: {}]   ;;  %s12362_s5 = inlined_call_operand.vmem [shape: f32[64,8], index: 5, kind: input, shape index: {}]   ;;  %s12363_s6 = inlined_call_operand.vmem [shape: bf16[32,8], index: 6, kind: input, shape index: {}]   ;;  %s12364_s8 = inlined_call_operand.vmem [shape: bf16[16,64], index: 8, kind: input, shape index: {}]   ;;  %s12365_s9 = inlined_call_operand.vmem [shape: bf16[64,32], index: 9, kind: input, shape index: {}]   ;;  %s12366_s0 = inlined_call_operand.vmem [shape: f32[64,4], index: 0, kind: input, shape index: {}]   ;;  %s12367_s10 = inlined_call_operand.vmem [shape: bf16[32,64], index: 10, kind: input, shape index: {}]   ;;  %s12368_s11 = inlined_call_operand.vmem [shape: bf16[64,64], index: 11, kind: input, shape index: {}]   ;;  %s12369_s4 = inlined_call_operand.vmem [shape: s32[1,64], index: 4, kind: input, shape index: {}]   ;;  %s12370_s18 = inlined_call_operand.vmem [shape: f32[32,32], index: 18, kind: input, shape index: {}]   ;;  %s12371_s12 = inlined_call_operand.vmem [shape: bf16[48,128], index: 12, kind: input, shape index: {}]   ;;  %s12372_s13 = inlined_call_operand.vmem [shape: bf16[128,736], index: 13, kind: input, shape index: {}]   ;;  %s12373_s7 = inlined_call_operand.vmem [shape: f32[72,576], index: 7, kind: input, shape index: {}]   ;;  %s12374_s14 = inlined_call_operand.vmem [shape: bf16[32,64], index: 14, kind: input, shape index: {}]   ;;  %s12375_s15 = inlined_call_operand.vmem [shape: bf16[64,32], index: 15, kind: input, shape index: {}]   ;;  %s12376_s19 = inlined_call_operand.vmem [shape: f32[32,32], index: 19, kind: input, shape index: {}]   ;;  %s12377_s16 = inlined_call_operand.vmem [shape: bf16[48,128], index: 16, kind: input, shape index: {}]   ;;  %s12378_s17 = inlined_call_operand.vmem [shape: bf16[128,584], index: 17, kind: input, shape index: {}]   ;;  %s12379_s20 = inlined_call_operand.vmem [shape: f32[64,8], index: 20, kind: output, shape index: {}]  }
   0x1   :  { %12491 = sst [smem:[#allocation63_spill]] %s12359_s2  ;;  %7327 = vset.pattern.permute.xlu2 %v7607_v0  ;;  %7325 = vset.pattern.permute.xlu0 %v7607_v0  ;;  %s7608_s2 = smov 8  }
   0x2   :  { %12492 = sst [smem:[#allocation64_spill]] %s12360_s3  ;;  %7326 = vset.pattern.permute.xlu1 %v7607_v0 }
   0x3   :  { %12493 = sst [smem:[#allocation65_spill]] %s12361_s1 }
   0x4   :  { %12494 = sst [smem:[#allocation66_spill]] %s12362_s5 }
   0x5   :  { %12495 = sst [smem:[#allocation67_spill]] %s12363_s6 }
   0x6   :  { %s12496_s23 = sld [smem:[#allocation63_spill]] }
   0x7   :  { %s12497_s26 = sld [smem:[#allocation64_spill]] }
   0x8   :  { %s12498_s1 = sld [smem:[#allocation65_spill]] }
   0x9   :  { %s12499_s30 = sld [smem:[#allocation66_spill]] }
   0xa   :  { %s12500_s25 = sld [smem:[#allocation67_spill]] }
   0xc   :  { %v86_v1 = vld [vmem:[%s12496_s23 + $0x10] sm:$0xff]  ;;  %v84_v2 = vld [vmem:[%s12496_s23] sm:$0xff]  ;;  %v87_v6 = vld [vmem:[%s12496_s23 + $0x18] sm:$0xff] }
   0xd   :  { %v124_v3 = vld [vmem:[%s12497_s26] sm:$0xff]  ;;  %99 = vperm.xlu2 %7327, %v86_v1   ;;  %93 = vperm.xlu0 %7325, %v84_v2   ;;  %v125_v5 = vld [vmem:[%s12497_s26 + $0x8] sm:$0xff]  ;;  %v126_v9 = vld [vmem:[%s12497_s26 + $0x10] sm:$0xff] }
   0xe   :  { %v132_v4 = vadd.s32 16, %v124_v3  ;;  %v85_v7 = vld [vmem:[%s12496_s23 + $0x8] sm:$0xff]  ;;  %v133_v8 = vadd.s32 16, %v125_v5  ;;  %v74_v10 = vld [vmem:[%s12498_s1] sm:$0xff]  ;;  %v127_v11 = vld [vmem:[%s12497_s26 + $0x18] sm:$0xff]  ;;  %v134_v12 = vadd.s32 16, %v126_v9 }
   0xf   :  { %v88_v13 = vld [vmem:[%s12496_s23 + $0x20] sm:$0xff]  ;;  %v7759_v14 = vmul.f32 0.25, %v74_v10  ;;  %v135_v15 = vadd.s32 16, %v127_v11  ;;  %v75_v16 = vld [vmem:[%s12498_s1 + $0x8] sm:$0xff]  ;;  %v77_v19 = vld [vmem:[%s12498_s1 + $0x18] sm:$0xff] }
  0x10   :  { %141 = vperm.xlu1 %7326, %v132_v4   ;;  %v129_v17 = vld [vmem:[%s12497_s26 + $0x28] sm:$0xff]  ;;  %v7772_v20 = vmul.f32 0.25, %v75_v16  ;;  %v128_v21 = vld [vmem:[%s12497_s26 + $0x20] sm:$0xff]  ;;  %v7777_v23 = vmul.f32 0.25, %v77_v19  ;;  %v76_v24 = vld [vmem:[%s12498_s1 + $0x10] sm:$0xff] }
  0x11   :  { %v310_v18 = vmul.f32 %v7759_v14, %v7759_v14  ;;  %v137_v22 = vadd.s32 16, %v129_v17  ;;  %v89_v25 = vld [vmem:[%s12496_s23 + $0x28] sm:$0xff]  ;;  %v136_v27 = vadd.s32 16, %v128_v21  ;;  %v7787_v29 = vmul.f32 0.25, %v76_v24  ;;  %v130_v31 = vld [vmem:[%s12497_s26 + $0x30] sm:$0xff]  ;;  %v78_v33 = vld [vmem:[%s12498_s1 + $0x20] sm:$0xff] }
  0x12   :  { %v311_v28 = vmul.f32 %v7772_v20, %v7772_v20  ;;  %v313_v30 = vmul.f32 %v7777_v23, %v7777_v23  ;;  %v80_v35 = vld [vmem:[%s12498_s1 + $0x30] sm:$0xff]  ;;  %v138_v37 = vadd.s32 16, %v130_v31  ;;  %v7802_v39 = vmul.f32 0.25, %v78_v33  ;;  %v79_v40 = vld [vmem:[%s12498_s1 + $0x28] sm:$0xff]  ;;  %v91_v46 = vld [vmem:[%s12496_s23 + $0x38] sm:$0xff] }
  0x13   :  { %v318_v26 = vmul.f32 %v310_v18, %v310_v18  ;;  %v312_v36 = vmul.f32 %v7787_v29, %v7787_v29  ;;  %v90_v41 = vld [vmem:[%s12496_s23 + $0x30] sm:$0xff]  ;;  %v7811_v44 = vmul.f32 0.25, %v80_v35  ;;  %v7816_v48 = vmul.f32 0.25, %v79_v40  ;;  %v545_v50 = vld [vmem:[%s12499_s30 + $0x18] sm:$0xff]  ;;  %v542_v62 = vld [vmem:[%s12499_s30] sm:$0xff] }
  0x14   :  { %v319_v34 = vmul.f32 %v311_v28, %v311_v28  ;;  %v321_v38 = vmul.f32 %v313_v30, %v313_v30  ;;  %v544_v49 = vld [vmem:[%s12499_s30 + $0x10] sm:$0xff]  ;;  %v314_v52 = vmul.f32 %v7802_v39, %v7802_v39  ;;  %v131_v53 = vld [vmem:[%s12497_s26 + $0x38] sm:$0xff]  ;;  %v543_v63 = vld [vmem:[%s12499_s30 + $0x8] sm:$0xff]  ;;  %vm398_vm0 = vcmp.lt.f32.partialorder %v7759_v14, 1.0 }
  0x15   :  { %102 = vperm.xlu2 %7327, %v87_v6   ;;  %96 = vperm.xlu0 %7325, %v85_v7   ;;  %v326_v32 = vmul.f32 %v318_v26, %v310_v18  ;;  %v320_v47 = vmul.f32 %v312_v36, %v312_v36  ;;  %v316_v57 = vmul.f32 %v7811_v44, %v7811_v44  ;;  %v81_v60 = vld [vmem:[%s12498_s1 + $0x38] sm:$0xff]  ;;  %v139_v2 = vadd.s32 16, %v131_v53  ;;  %v547_v16 = vld [vmem:[%s12499_s30 + $0x28] sm:$0xff]  ;;  %v548_v33 = vld [vmem:[%s12499_s30 + $0x30] sm:$0xff] }
  0x16   :  { %v327_v45 = vmul.f32 %v319_v34, %v311_v28  ;;  %v329_v51 = vmul.f32 %v321_v38, %v313_v30  ;;  %v7333_v61 = vpack.i.bf16 %v545_v50, %v544_v49  ;;  %v315_v1 = vmul.f32 %v7816_v48, %v7816_v48  ;;  %v549_v34 = vld [vmem:[%s12499_s30 + $0x38] sm:$0xff] }
  0x17   :  { %v334_v42 = vmul.f32 %v326_v32, %v7759_v14  ;;  %v350_v43 = vmul.f32 28.0, %v326_v32  ;;  %v328_v0 = vmul.f32 %v320_v47, %v312_v36  ;;  %v322_v5 = vmul.f32 %v314_v52, %v314_v52 }
  0x18   :  { %144 = vperm.xlu1 %7326, %v133_v8   ;;  %v335_v58 = vmul.f32 %v327_v45, %v7772_v20  ;;  %v351_v59 = vmul.f32 28.0, %v327_v45  ;;  %v337_v3 = vmul.f32 %v329_v51, %v7777_v23  ;;  %v353_v4 = vmul.f32 28.0, %v329_v51 }
  0x19   :  { %v342_v54 = vmul.f32 %v334_v42, %v7759_v14  ;;  %v358_v55 = vsub.f32 1.0, %v350_v43  ;;  %v366_v56 = vmul.f32 48.0, %v334_v42  ;;  %v324_v8 = vmul.f32 %v316_v57, %v316_v57 }
  0x1a   :  { %v7845_v9 = vmul.f32 0.25, %v81_v60  ;;  %v7328_v10 = vpack.i.bf16 %v543_v63, %v542_v62  ;;  %v343_v11 = vmul.f32 %v335_v58, %v7772_v20  ;;  %v336_v17 = vmul.f32 %v328_v0, %v7787_v29 }
  0x1b   :  { %v374_v6 = vadd.f32 %v366_v56, %v358_v55  ;;  %v382_v7 = vmul.f32 21.0, %v342_v54  ;;  %v352_v18 = vmul.f32 28.0, %v328_v0  ;;  %v323_v19 = vmul.f32 %v315_v1, %v315_v1 }
  0x1c   :  { %v345_v21 = vmul.f32 %v337_v3, %v7777_v23  ;;  %v369_v24 = vmul.f32 48.0, %v337_v3  ;;  %v317_v28 = vmul.f32 %v7845_v9, %v7845_v9  ;;  %v383_v32 = vmul.f32 21.0, %v343_v11 }
  0x1d   :  { %105 = vperm.xlu2 %7327, %v88_v13   ;;  %147 = vperm.xlu0 %7325, %v134_v12   ;;  %v359_v12 = vsub.f32 1.0, %v351_v59  ;;  %v367_v13 = vmul.f32 48.0, %v335_v58  ;;  %v390_v26 = vsub.f32 %v374_v6, %v382_v7  ;;  %v344_v35 = vmul.f32 %v336_v17, %v7787_v29 }
  0x1e   :  { %v360_v36 = vsub.f32 1.0, %v352_v18  ;;  %v331_v38 = vmul.f32 %v323_v19, %v315_v1  ;;  %v325_v47 = vmul.f32 %v317_v28, %v317_v28  ;;  %v7343_v49 = vpack.i.bf16 %v549_v34, %v548_v33 }
  0x1f   :  { %v375_v31 = vadd.f32 %v367_v13, %v359_v12  ;;  %v406_v43 = vsel %vm398_vm0, %v390_v26, 0.0  ;;  %vm399_vm1 = vcmp.lt.f32.partialorder %v7772_v20, 1.0  ;;  %vm401_vm2 = vcmp.lt.f32.partialorder %v7777_v23, 1.0 }
  0x20   :  { %150 = vperm.xlu1 %7326, %v135_v15   ;;  %v546_v15 = vld [vmem:[%s12499_s30 + $0x20] sm:$0xff]  ;;  %v339_v53 = vmul.f32 %v331_v38, %v7816_v48  ;;  %v355_v54 = vmul.f32 28.0, %v331_v38  ;;  %v333_v62 = vmul.f32 %v325_v47, %v317_v28  ;;  %vm400_vm3 = vcmp.lt.f32.partialorder %v7787_v29, 1.0 }
  0x21   :  { %v7338_v30 = vpack.i.bf16 %v547_v16, %v546_v15  ;;  %v391_v50 = vsub.f32 %v375_v31, %v383_v32  ;;  %vm402_vm4 = vcmp.lt.f32.partialorder %v7802_v39, 1.0  ;;  %vm404_vm5 = vcmp.lt.f32.partialorder %v7811_v44, 1.0 }
  0x22   :  { %v347_v1 = vmul.f32 %v339_v53, %v7816_v48  ;;  %v371_v3 = vmul.f32 48.0, %v339_v53  ;;  %v357_v11 = vmul.f32 28.0, %v333_v62  ;;  %vm403_vm6 = vcmp.lt.f32.partialorder %v7816_v48, 1.0 }
  0x23   :  { %v407_v63 = vsel %vm399_vm1, %v391_v50, 0.0  ;;  %vm405_vm7 = vcmp.lt.f32.partialorder %v7845_v9, 1.0  ;;  %v82_v28 = vlaneseq }
  0x24   :  { %v387_v13 = vmul.f32 21.0, %v347_v1  ;;  %v365_v23 = vsub.f32 1.0, %v357_v11 }
  0x25   :  { %156 = vperm.xlu2 %7327, %v137_v22   ;;  %108 = vperm.xlu0 %7325, %v89_v25   ;;  %v361_v22 = vsub.f32 1.0, %v353_v4  ;;  %v330_v25 = vmul.f32 %v322_v5, %v314_v52  ;;  %v384_v52 = vmul.f32 21.0, %v344_v35  ;;  %v7900_v31 = vand.u32 127, %v82_v28 }
  0x26   :  { %v12393_v35 = vmov 0.0  }
  0x27   :  { %v377_v40 = vadd.f32 %v369_v24, %v361_v22  ;;  %v338_v42 = vmul.f32 %v330_v25, %v7802_v39  ;;  %v354_v14 = vmul.f32 28.0, %v330_v25  ;;  %12501 = vst [vmem:[#allocation2_spill] sm:$0xff] %v7900_v31 }
  0x28   :  { %153 = vperm.xlu1 %7326, %v136_v27   ;;  %v332_v27 = vmul.f32 %v324_v8, %v316_v57 }
  0x29   :  { %v346_v56 = vmul.f32 %v338_v42, %v7802_v39  ;;  %v362_v57 = vsub.f32 1.0, %v354_v14  ;;  %v370_v58 = vmul.f32 48.0, %v338_v42  ;;  %v7194_v39 = vld [vmem:[%s12500_s25 + $0x8] sm:$0xff] }
  0x2a   :  { %v340_v45 = vmul.f32 %v332_v27, %v7811_v44  ;;  %519 = vmatpush.bf16.msra.mxu1 %v7194_v39  ;;  %7306 = vmatpush.bf16.msra.mxu3 %v7194_v39 }
  0x2b   :  { %v378_v5 = vadd.f32 %v370_v58, %v362_v57  ;;  %v386_v6 = vmul.f32 21.0, %v346_v56 }
  0x2c   :  { %v348_v59 = vmul.f32 %v340_v45, %v7811_v44  ;;  %v7193_v44 = vld [vmem:[%s12500_s25] sm:$0xff]  ;;  %s7612_s25 = smov 120  }
  0x2d   :  { %159 = vperm.xlu2 %7327, %v138_v37   ;;  %111 = vperm.xlu0 %7325, %v90_v41   ;;  %v368_v37 = vmul.f32 48.0, %v336_v17  ;;  %v385_v41 = vmul.f32 21.0, %v345_v21  ;;  %v394_v15 = vsub.f32 %v378_v5, %v386_v6 }
  0x2e   :  { %v388_v8 = vmul.f32 21.0, %v348_v59  ;;  %520 = vmatpush.bf16.msra.mxu1 %v7193_v44  ;;  %7307 = vmatpush.bf16.msra.mxu3 %v7193_v44 }
  0x2f   :  { %v376_v51 = vadd.f32 %v368_v37, %v360_v36  ;;  %v393_v55 = vsub.f32 %v377_v40, %v385_v41  ;;  %v410_v19 = vsel %vm402_vm4, %v394_v15, 0.0 }
  0x30   :  { %114 = vperm.xlu1 %7326, %v91_v46   ;;  %v356_v46 = vmul.f32 28.0, %v332_v27 }
  0x31   :  { %v392_v0 = vsub.f32 %v376_v51, %v384_v52  ;;  %v409_v4 = vsel %vm401_vm2, %v393_v55, 0.0 }
  0x32   :  { %v364_v60 = vsub.f32 1.0, %v356_v46 }
  0x33   :  { %v408_v12 = vsel %vm400_vm3, %v392_v0, 0.0 }
  0x35   :  { %7334 = vrot.lane.b32.xlu2 %v7333_v61, %s7608_s2  ;;  %162 = vperm.xlu0 %7325, %v139_v2   ;;  %v372_v61 = vmul.f32 48.0, %v340_v45  ;;  %v363_v2 = vsub.f32 1.0, %v355_v54 }
  0x37   :  { %v380_v7 = vadd.f32 %v372_v61, %v364_v60  ;;  %v379_v20 = vadd.f32 %v371_v3, %v363_v2  ;;  %v7195_v60 = vld [vmem:[%s12364_s8] sm:$0xff]  ;;  %s7616_s8 = smov 64  }
  0x38   :  { %7329 = vrot.lane.b32.xlu1 %v7328_v10, %s7608_s2  ;;  %v341_v10 = vmul.f32 %v333_v62, %v7845_v9  ;;  %623 = vmatpush.bf16.msra.mxu2 %v7195_v60 }
  0x39   :  { %v396_v16 = vsub.f32 %v380_v7, %v388_v8  ;;  %v395_v29 = vsub.f32 %v379_v20, %v387_v13 }
  0x3a   :  { %v349_v17 = vmul.f32 %v341_v10, %v7845_v9  ;;  %v373_v18 = vmul.f32 48.0, %v341_v10 }
  0x3b   :  { %v412_v21 = vsel %vm404_vm5, %v396_v16, 0.0  ;;  %v411_v25 = vsel %vm403_vm6, %v395_v29, 0.0 }
  0x3c   :  { %v381_v22 = vadd.f32 %v373_v18, %v365_v23  ;;  %v389_v24 = vmul.f32 21.0, %v349_v17 }
  0x3d   :  { %7339 = vrot.lane.b32.xlu0 %v7338_v30, %s7608_s2  ;;  %885 = vperm.xlu2 %7327, %v406_v43  }
  0x3e   :  { %v397_v26 = vsub.f32 %v381_v22, %v389_v24 }
  0x40   :  { %7344 = vrot.lane.b32.xlu1 %v7343_v49, %s7608_s2  ;;  %v413_v27 = vsel %vm405_vm7, %v397_v26, 0.0 }
  0x45   :  { %890 = vperm.xlu0 %7325, %v407_v63   ;;  %900 = vperm.xlu2 %7327, %v409_v4  }
  0x48   :  { %895 = vperm.xlu1 %7326, %v408_v12  }
  0x4d   :  { %905 = vperm.xlu0 %7325, %v410_v19   ;;  %915 = vperm.xlu2 %7327, %v412_v21  }
  0x50   :  { %910 = vperm.xlu1 %7326, %v411_v25  }
  0x55   :  { %920 = vperm.xlu0 %7325, %v413_v27  }
  0x67   :  { %v7895_v48 = vpop.permute.xlu2 %99 }
  0x68   :  { %vm12392_vm2 = vcmp.eq.s32.totalorder %v7900_v31, %v7895_v48 }
  0x6f   :  { %v7902_v32 = vpop.permute.xlu2 %102 }
  0x70   :  { %vm12391_vm1 = vcmp.eq.s32.totalorder %v7900_v31, %v7902_v32 }
  0x77   :  { %v7920_v38 = vpop.permute.xlu2 %105 }
  0x7f   :  { %v7897_v30 = vpop.permute.xlu0 %93  ;;  %v157_v14 = vpop.permute.xlu2 %156 }
  0x80   :  { %vm116_vm8 = vcmp.eq.s32.totalorder %v7900_v31, %v7897_v30  ;;  %vm169_vm4 = vcmp.eq.s32.totalorder %v7900_v31, %v157_v14 }
  0x82   :  { %v142_v9 = vpop.permute.xlu1 %141 }
  0x83   :  { %vm164_vm9 = vcmp.eq.s32.totalorder %v7900_v31, %v142_v9  ;;  %v7199_v9 = vld [vmem:[%s12365_s9 + $0x18] sm:$0xff] }
  0x84   :  { %vm172_vm10 = vmor %vm116_vm8, %vm164_vm9  ;;  %vm12389_vm9 = vcmp.eq.s32.totalorder %v7900_v31, %v7920_v38  ;;  %858 = vmatpush.bf16.msrb.mxu3 %v7199_v9 }
  0x85   :  { %v180_v36 = vsel %vm172_vm10, 1.0, %v12393_v35 }
  0x87   :  { %v7907_v33 = vpop.permute.xlu0 %96  ;;  %v160_v55 = vpop.permute.xlu2 %159 }
  0x88   :  { %vm117_vm11 = vcmp.eq.s32.totalorder %v7900_v31, %v7907_v33 }
  0x8a   :  { %v145_v34 = vpop.permute.xlu1 %144 }
  0x8b   :  { %vm165_vm12 = vcmp.eq.s32.totalorder %v7900_v31, %v145_v34  ;;  %v7198_v34 = vld [vmem:[%s12365_s9 + $0x10] sm:$0xff] }
  0x8c   :  { %vm173_vm13 = vmor %vm117_vm11, %vm165_vm12  ;;  %859 = vmatpush.bf16.msrb.mxu3 %v7198_v34 }
  0x8d   :  { %v181_v37 = vsel %vm173_vm13, 1.0, %v12393_v35 }
  0x8e   :  { %v188_v40 = vpack.c.bf16 %v181_v37, %v180_v36 }
  0x8f   :  { %v148_v41 = vpop.permute.xlu0 %147  ;;  %v7335_v6 = vpop.permute.xlu2 %7334 }
  0x90   :  { %6551 = vmatmul.msk.bf16.vlgmr.msra.gmra.mxu1 %vm500_vm14, %v188_v40  ;;  %vm166_vm0 = vcmp.eq.s32.totalorder %v7900_v31, %v148_v41  ;;  %v7337_v7 = vunpack.i.h.bf16 %v7335_v6  ;;  %v7336_v8 = vunpack.i.l.bf16 %v7335_v6  ;;  %v7197_v40 = vld [vmem:[%s12365_s9 + $0x8] sm:$0xff]  ;;  %v7196_v41 = vld [vmem:[%s12365_s9] sm:$0xff] }
  0x91   :  { %vm174_vm5 = vmor %vm12392_vm2, %vm166_vm0  ;;  %860 = vmatpush.bf16.msrb.mxu3 %v7197_v40 }
  0x92   :  { %v151_v42 = vpop.permute.xlu1 %150  ;;  %v182_v47 = vsel %vm174_vm5, 1.0, %v12393_v35 }
  0x93   :  { %vm167_vm15 = vcmp.eq.s32.totalorder %v7900_v31, %v151_v42 }
  0x94   :  { %vm175_vm3 = vmor %vm12391_vm1, %vm167_vm15  ;;  %vm170_vm15 = vcmp.eq.s32.totalorder %v7900_v31, %v160_v55 }
  0x95   :  { %v183_v46 = vsel %vm175_vm3, 1.0, %v12393_v35  ;;  %861 = vmatpush.bf16.msrb.mxu3 %v7196_v41 }
  0x96   :  { %v189_v51 = vpack.c.bf16 %v183_v46, %v182_v47 }
  0x97   :  { %v7932_v43 = vpop.permute.xlu0 %108 }
  0x98   :  { %vm12388_vm6 = vcmp.eq.s32.totalorder %v7900_v31, %v7932_v43 }
  0x99   :  { %vm177_vm7 = vmor %vm12388_vm6, %vm169_vm4 }
  0x9a   :  { %v154_v45 = vpop.permute.xlu1 %153  ;;  %v185_v49 = vsel %vm177_vm7, 1.0, %v12393_v35  ;;  %vm12385_vm7 = vcmask 64512  }
  0x9b   :  { %vm168_vm10 = vcmp.eq.s32.totalorder %v7900_v31, %v154_v45 }
  0x9c   :  { %vm176_vm12 = vmor %vm12389_vm9, %vm168_vm10  ;;  %vm603_vm10 = vcmask 130048   ;;  %vm439_vm9 = vcmask 1043456  }
  0x9d   :  { %v184_v50 = vsel %vm176_vm12, 1.0, %v12393_v35 }
  0x9e   :  { %v190_v52 = vpack.c.bf16 %v185_v49, %v184_v50 }
  0x9f   :  { %v7955_v53 = vpop.permute.xlu0 %111 }
  0xa0   :  { %6552 = vmatmul.msk.bf16.gmra.mxu1 %vm500_vm14, %v189_v51  ;;  %6553 = vmatmul.msk.bf16.vlgmr.msra.gmra.mxu3 %vm500_vm14, %v190_v52  ;;  %vm12387_vm13 = vcmp.eq.s32.totalorder %v7900_v31, %v7955_v53 }
  0xa1   :  { %vm178_vm0 = vmor %vm12387_vm13, %vm170_vm15 }
  0xa2   :  { %v7959_v54 = vpop.permute.xlu1 %114  ;;  %v186_v58 = vsel %vm178_vm0, 1.0, %v12393_v35 }
  0xa3   :  { %vm12386_vm3 = vcmp.eq.s32.totalorder %v7900_v31, %v7959_v54 }
  0xa7   :  { %v163_v56 = vpop.permute.xlu0 %162 }
  0xa8   :  { %vm171_vm4 = vcmp.eq.s32.totalorder %v7900_v31, %v163_v56 }
  0xa9   :  { %vm179_vm5 = vmor %vm12386_vm3, %vm171_vm4 }
  0xaa   :  { %v187_v57 = vsel %vm179_vm5, 1.0, %v12393_v35  ;;  %v7330_v62 = vpop.permute.xlu1 %7329 }
  0xab   :  { %v191_v59 = vpack.c.bf16 %v187_v57, %v186_v58  ;;  %v7332_v63 = vunpack.i.h.bf16 %v7330_v62  ;;  %v7331_v0 = vunpack.i.l.bf16 %v7330_v62 }
  0xaf   :  { %v7340_v16 = vpop.permute.xlu0 %7339 }
  0xb0   :  { %6554 = vmatmul.msk.bf16.gmra.mxu3 %vm500_vm14, %v191_v59  ;;  %v7342_v17 = vunpack.i.h.bf16 %v7340_v16  ;;  %v7341_v23 = vunpack.i.l.bf16 %v7340_v16 }
  0xb2   :  { %v7345_v22 = vpop.permute.xlu1 %7344 }
  0xb3   :  { %v7347_v24 = vunpack.i.h.bf16 %v7345_v22  ;;  %v7346_v26 = vunpack.i.l.bf16 %v7345_v22 }
 0x10d   :  { %v522_v61 = vpop.f32.mrf.mxu1 }
 0x10e   :  { %v583_v2 = vsel %vm12385_vm7, %v522_v61, %v7331_v0 }
 0x115   :  { %v524_v1 = vpop.f32.mrf.mxu1 }
 0x116   :  { %v584_v3 = vsel %vm12385_vm7, %v524_v1, %v7332_v63 }
 0x117   :  { %v593_v4 = vpack.c.bf16 %v584_v3, %v583_v2 }
 0x119   :  { %6559 = vmatmul.msk.bf16.vlgmr.msra.gmra.mxu2 %vm603_vm10, %v593_v4 }
 0x11d   :  { %v527_v5 = vpop.f32.mrf.mxu1 }
 0x11e   :  { %v585_v12 = vsel %vm12385_vm7, %v527_v5, %v7336_v8 }
 0x123   :  { %v532_v10 = vpop.f32.mrf.mxu3 }
 0x124   :  { %v587_v29 = vsel %vm12385_vm7, %v532_v10, %v7341_v23 }
 0x125   :  { %v529_v11 = vpop.f32.mrf.mxu1 }
 0x126   :  { %v586_v20 = vsel %vm12385_vm7, %v529_v11, %v7337_v7 }
 0x127   :  { %v594_v13 = vpack.c.bf16 %v586_v20, %v585_v12 }
 0x129   :  { %6560 = vmatmul.msk.bf16.gmra.mxu2 %vm603_vm10, %v594_v13 }
 0x12b   :  { %v534_v15 = vpop.f32.mrf.mxu3 }
 0x12c   :  { %v588_v18 = vsel %vm12385_vm7, %v534_v15, %v7342_v17 }
 0x12d   :  { %v595_v19 = vpack.c.bf16 %v588_v18, %v587_v29 }
 0x133   :  { %v537_v21 = vpop.f32.mrf.mxu3 }
 0x134   :  { %v589_v39 = vsel %vm12385_vm7, %v537_v21, %v7346_v26 }
 0x139   :  { %6561 = vmatmul.msk.bf16.gmra.mxu2 %vm603_vm10, %v595_v19 }
 0x13b   :  { %v539_v25 = vpop.f32.mrf.mxu3 }
 0x13c   :  { %v590_v27 = vsel %vm12385_vm7, %v539_v25, %v7347_v24 }
 0x13d   :  { %v596_v44 = vpack.c.bf16 %v590_v27, %v589_v39 }
 0x149   :  { %6562 = vmatmul.msk.bf16.gmra.mxu2 %vm603_vm10, %v596_v44 }
 0x19c   :  { %v625_v36 = vpop.f32.mrf.mxu2 }
 0x19d   :  { %v6563_v37 = vmul.f32 -1.442695, %v625_v36 }
 0x19f   :  { %7429 = vpow2.f32 %v6563_v37 }
 0x1a4   :  { %v627_v42 = vpop.f32.mrf.mxu2 }
 0x1a5   :  { %v7430_v14 = vpop.eup %7429  ;;  %v6564_v45 = vmul.f32 -1.442695, %v627_v42 }
 0x1a6   :  { %v669_v46 = vadd.f32 1.0, %v7430_v14 }
 0x1a7   :  { %7431 = vpow2.f32 %v6564_v45 }
 0x1a8   :  { %7433 = vrcp.f32 %v669_v46  ;;  %v688_v1 = vand.u32 2147483648, %v669_v46  ;;  %vm682_vm15 = vweird.f32 %v669_v46  ;;  %v686_v2 = vand.u32 2147483647, %v669_v46 }
 0x1aa   :  { %v689_v8 = vor.u32 1.1754944e-38, %v688_v1  ;;  %vm687_vm5 = vcmp.eq.f32.partialorder %v686_v2, 8.507059e+37 }
 0x1ac   :  { %v8001_v47 = vpop.f32.mrf.mxu2 }
 0x1ad   :  { %v7432_v49 = vpop.eup %7431  ;;  %v6565_v50 = vmul.f32 -1.442695, %v8001_v47 }
 0x1ae   :  { %v7434_v51 = vpop.eup %7433  ;;  %v670_v52 = vadd.f32 1.0, %v7432_v49 }
 0x1af   :  { %v678_v55 = vmul.f32 %v7434_v51, %v669_v46  ;;  %7435 = vpow2.f32 %v6565_v50  ;;  %vm683_vm12 = vweird.f32 %v7434_v51 }
 0x1b0   :  { %7437 = vrcp.f32 %v670_v52  ;;  %vm684_vm0 = vmor %vm682_vm15, %vm683_vm12  ;;  %v703_v4 = vand.u32 2147483648, %v670_v52  ;;  %v701_v7 = vand.u32 2147483647, %v670_v52  ;;  %vm697_vm7 = vweird.f32 %v670_v52 }
 0x1b1   :  { %v679_v56 = vsub.f32 1.0, %v678_v55  ;;  %vm841_vm15 = vcmask 523264  }
 0x1b2   :  { %v704_v16 = vor.u32 1.1754944e-38, %v703_v4  ;;  %vm702_vm12 = vcmp.eq.f32.partialorder %v701_v7, 8.507059e+37 }
 0x1b3   :  { %v680_v57 = vmul.f32 %v7434_v51, %v679_v56 }
 0x1b4   :  { %v8004_v58 = vpop.f32.mrf.mxu2 }
 0x1b5   :  { %v7436_v59 = vpop.eup %7435  ;;  %v6566_v60 = vmul.f32 -1.442695, %v8004_v58  ;;  %v681_v63 = vadd.f32 %v7434_v51, %v680_v57 }
 0x1b6   :  { %v7438_v61 = vpop.eup %7437  ;;  %v8007_v62 = vadd.f32 1.0, %v7436_v59 }
 0x1b7   :  { %v693_v0 = vmul.f32 %v7438_v61, %v670_v52  ;;  %7439 = vpow2.f32 %v6566_v60  ;;  %v685_v5 = vsel %vm684_vm0, %v7434_v51, %v681_v63  ;;  %vm698_vm4 = vweird.f32 %v7438_v61 }
 0x1b8   :  { %7441 = vrcp.f32 %v8007_v62  ;;  %v690_v15 = vsel %vm687_vm5, %v689_v8, %v685_v5  ;;  %vm699_vm3 = vmor %vm697_vm7, %vm698_vm4  ;;  %vm712_vm7 = vweird.f32 %v8007_v62  ;;  %v716_v40 = vand.u32 2147483647, %v8007_v62 }
 0x1b9   :  { %v694_v3 = vsub.f32 1.0, %v693_v0  ;;  %v797_v19 = vmul.f32 %v690_v15, %v625_v36  ;;  %v718_v36 = vand.u32 2147483648, %v8007_v62 }
 0x1ba   :  { %vm717_vm5 = vcmp.eq.f32.partialorder %v716_v40, 8.507059e+37 }
 0x1bb   :  { %v695_v6 = vmul.f32 %v7438_v61, %v694_v3  ;;  %v719_v49 = vor.u32 1.1754944e-38, %v718_v36 }
 0x1bc   :  { %v8010_v10 = vpop.f32.mrf.mxu2 }
 0x1bd   :  { %v7440_v11 = vpop.eup %7439  ;;  %v696_v12 = vadd.f32 %v7438_v61, %v695_v6  ;;  %v6567_v20 = vmul.f32 -1.442695, %v8010_v10 }
 0x1be   :  { %v7442_v13 = vpop.eup %7441  ;;  %v672_v17 = vadd.f32 1.0, %v7440_v11 }
 0x1bf   :  { %v700_v23 = vsel %vm699_vm3, %v7438_v61, %v696_v12  ;;  %v708_v18 = vmul.f32 %v7442_v13, %v8007_v62  ;;  %7443 = vpow2.f32 %v6567_v20  ;;  %vm713_vm3 = vweird.f32 %v7442_v13 }
 0x1c0   :  { %v705_v29 = vsel %vm702_vm12, %v704_v16, %v700_v23  ;;  %7445 = vrcp.f32 %v672_v17  ;;  %vm714_vm0 = vmor %vm712_vm7, %vm713_vm3  ;;  %v731_v46 = vand.u32 2147483647, %v672_v17  ;;  %vm727_vm12 = vweird.f32 %v672_v17 }
 0x1c1   :  { %v798_v21 = vmul.f32 %v705_v29, %v627_v42  ;;  %v709_v22 = vsub.f32 1.0, %v708_v18  ;;  %v733_v42 = vand.u32 2147483648, %v672_v17  ;;  %v8037_v12 = vshrl.u32 %v82_v28, 7 }
 0x1c2   :  { %vm732_vm3 = vcmp.eq.f32.partialorder %v731_v46, 8.507059e+37 }
 0x1c3   :  { %v813_v24 = vpack.c.bf16 %v798_v21, %v797_v19  ;;  %v710_v25 = vmul.f32 %v7442_v13, %v709_v22  ;;  %v734_v59 = vor.u32 1.1754944e-38, %v733_v42  ;;  %12502 = vst [vmem:[#allocation3_spill] sm:$0xff] %v8037_v12  ;;  %v219_v16 = vmul.u32 8, %v8037_v12  ;;  %v66_v42 = vld [vmem:[%s12366_s0] sm:$0xff] }
 0x1c4   :  { %v8014_v26 = vpop.f32.mrf.mxu2  ;;  %v221_v23 = vadd.s32 1, %v8037_v12 }
 0x1c5   :  { %v7444_v27 = vpop.eup %7443  ;;  %v6568_v39 = vmul.f32 -1.442695, %v8014_v26  ;;  %6587 = vmatmul.msk.bf16.vlgmr.msrb.gmra.mxu3 %vm841_vm15, %v813_v24  ;;  %v711_v34 = vadd.f32 %v7442_v13, %v710_v25 }
 0x1c6   :  { %v7446_v44 = vpop.eup %7445  ;;  %v8018_v9 = vadd.f32 1.0, %v7444_v27  ;;  %v222_v24 = vmul.u32 8, %v221_v23  ;;  %v8119_v23 = vpop.permute.xlu2 %885 }
 0x1c7   :  { %v723_v37 = vmul.f32 %v7446_v44, %v672_v17  ;;  %7447 = vpow2.f32 %v6568_v39  ;;  %v715_v14 = vsel %vm714_vm0, %v7442_v13, %v711_v34  ;;  %vm728_vm4 = vweird.f32 %v7446_v44  ;;  %v7200_v17 = vld [vmem:[%s12367_s10] sm:$0xff]  ;;  %12509 = vst [vmem:[#allocation4_spill] sm:$0xff] %v8119_v23 }
 0x1c8   :  { %7449 = vrcp.f32 %v8018_v9  ;;  %v720_v57 = vsel %vm717_vm5, %v719_v49, %v715_v14  ;;  %vm729_vm13 = vmor %vm727_vm12, %vm728_vm4  ;;  %vm742_vm7 = vweird.f32 %v8018_v9  ;;  %v746_v13 = vand.u32 2147483647, %v8018_v9 }
 0x1c9   :  { %v724_v41 = vsub.f32 1.0, %v723_v37  ;;  %v799_v0 = vmul.f32 %v720_v57, %v8001_v47  ;;  %vm8052_vm5 = vcmp.ge.s32.totalorder %v7900_v31, %v219_v16  ;;  %v67_v57 = vld [vmem:[%s12366_s0 + $0x8] sm:$0xff]  ;;  %v73_v16 = vld [vmem:[%s12366_s0 + $0x38] sm:$0xff] }
 0x1ca   :  { %vm747_vm12 = vcmp.eq.f32.partialorder %v746_v13, 8.507059e+37  ;;  %v69_v13 = vld [vmem:[%s12366_s0 + $0x18] sm:$0xff] }
 0x1cb   :  { %v725_v45 = vmul.f32 %v7446_v44, %v724_v41 }
 0x1cc   :  { %v8024_v50 = vpop.f32.mrf.mxu2 }
 0x1cd   :  { %v7448_v51 = vpop.eup %7447  ;;  %v726_v52 = vadd.f32 %v7446_v44, %v725_v45  ;;  %v6569_v55 = vmul.f32 -1.442695, %v8024_v50 }
 0x1ce   :  { %v7450_v56 = vpop.eup %7449  ;;  %v674_v60 = vadd.f32 1.0, %v7448_v51 }
 0x1cf   :  { %v730_v61 = vsel %vm729_vm13, %v7446_v44, %v726_v52  ;;  %v738_v62 = vmul.f32 %v7450_v56, %v8018_v9  ;;  %7451 = vpow2.f32 %v6569_v55  ;;  %vm743_vm13 = vweird.f32 %v7450_v56 }
 0x1d0   :  { %v735_v63 = vsel %vm732_vm3, %v734_v59, %v730_v61  ;;  %7453 = vrcp.f32 %v674_v60  ;;  %vm8044_vm0 = vmor %vm742_vm7, %vm743_vm13  ;;  %v763_v28 = vand.u32 2147483648, %v674_v60  ;;  %v761_v19 = vand.u32 2147483647, %v674_v60 }
 0x1d1   :  { %v800_v1 = vmul.f32 %v735_v63, %v8004_v58  ;;  %v739_v2 = vsub.f32 1.0, %v738_v62  ;;  %v748_v58 = vand.u32 2147483648, %v8018_v9  ;;  %vm757_vm3 = vweird.f32 %v674_v60 }
 0x1d2   :  { %v764_v9 = vor.u32 1.1754944e-38, %v763_v28  ;;  %vm8057_vm7 = vcmp.lt.s32.totalorder %v7900_v31, %v222_v24 }
 0x1d3   :  { %v740_v3 = vmul.f32 %v7450_v56, %v739_v2  ;;  %v814_v4 = vpack.c.bf16 %v800_v1, %v799_v0  ;;  %v749_v21 = vor.u32 1.1754944e-38, %v748_v58  ;;  %vm12390_vm6 = vmand %vm8052_vm5, %vm8057_vm7  ;;  %v7201_v58 = vld [vmem:[%s12367_s10 + $0x8] sm:$0xff] }
 0x1d4   :  { %v8030_v5 = vpop.f32.mrf.mxu2  ;;  %v6529_v49 = vsel %vm12390_vm6, 1.0, %v12393_v35 }
 0x1d5   :  { %v7452_v6 = vpop.eup %7451  ;;  %v6570_v7 = vmul.f32 -1.442695, %v8030_v5  ;;  %6588 = vmatmul.msk.bf16.gmra.mxu3 %vm841_vm15, %v814_v4  ;;  %v741_v20 = vadd.f32 %v7450_v56, %v740_v3  ;;  %6534 = vmatpush.msk.msra.mxu0 %vm439_vm9, %v6529_v49 }
 0x1d6   :  { %v7454_v8 = vpop.eup %7453  ;;  %v8034_v11 = vadd.f32 1.0, %v7452_v6 }
 0x1d7   :  { %v753_v47 = vmul.f32 %v7454_v8, %v674_v60  ;;  %7455 = vpow2.f32 %v6570_v7  ;;  %v745_v18 = vsel %vm8044_vm0, %v7450_v56, %v741_v20  ;;  %vm758_vm4 = vweird.f32 %v7454_v8  ;;  %969 = vmatpush.bf16.msrb.mxu0 %v7201_v58 }
 0x1d8   :  { %7457 = vrcp.f32 %v8034_v11  ;;  %v750_v44 = vsel %vm747_vm12, %v749_v21, %v745_v18  ;;  %vm759_vm13 = vmor %vm757_vm3, %vm758_vm4  ;;  %vm762_vm0 = vcmp.eq.f32.partialorder %v761_v19, 8.507059e+37  ;;  %vm414_vm4 = vcmask 31744   ;;  %v8121_v18 = vpop.permute.xlu0 %890 }
 0x1d9   :  { %v754_v15 = vsub.f32 1.0, %v753_v47  ;;  %v801_v14 = vmul.f32 %v750_v44, %v8010_v10  ;;  %6535 = vmatmul.msk.f32.vlgmr.msra.gmra.mxu0 %vm414_vm4, %v66_v42  ;;  %vm772_vm3 = vweird.f32 %v8034_v11  ;;  %v776_v59 = vand.u32 2147483647, %v8034_v11  ;;  %12510 = vst [vmem:[#allocation5_spill] sm:$0xff] %v8121_v18 }
 0x1db   :  { %v755_v29 = vmul.f32 %v7454_v8, %v754_v15  ;;  %v72_v15 = vld [vmem:[%s12366_s0 + $0x30] sm:$0xff]  ;;  %970 = vmatpush.bf16.msrb.mxu0 %v7200_v17 }
 0x1dd   :  { %v7456_v25 = vpop.eup %7455  ;;  %v756_v27 = vadd.f32 %v7454_v8, %v755_v29 }
 0x1de   :  { %v7458_v39 = vpop.eup %7457  ;;  %v676_v34 = vadd.f32 1.0, %v7456_v25 }
 0x1df   :  { %v760_v36 = vsel %vm759_vm13, %v7454_v8, %v756_v27  ;;  %v768_v40 = vmul.f32 %v7458_v39, %v8034_v11  ;;  %vm773_vm12 = vweird.f32 %v7458_v39  ;;  %v68_v8 = vld [vmem:[%s12366_s0 + $0x10] sm:$0xff]  ;;  %v8132_v27 = vpop.permute.xlu2 %900 }
 0x1e0   :  { %v765_v41 = vsel %vm762_vm0, %v764_v9, %v760_v36  ;;  %7459 = vrcp.f32 %v676_v34  ;;  %vm774_vm9 = vmor %vm772_vm3, %vm773_vm12  ;;  %v793_v61 = vand.u32 2147483648, %v676_v34  ;;  %v791_v0 = vand.u32 2147483647, %v676_v34  ;;  %12513 = vst [vmem:[#allocation8_spill] sm:$0xff] %v8132_v27 }
 0x1e1   :  { %v802_v45 = vmul.f32 %v765_v41, %v8014_v26  ;;  %v769_v46 = vsub.f32 1.0, %v768_v40  ;;  %v778_v26 = vand.u32 2147483648, %v8034_v11  ;;  %6536 = vmatmul.msk.f32.gmra.mxu0 %vm414_vm4, %v67_v57  ;;  %vm777_vm0 = vcmp.eq.f32.partialorder %v776_v59, 8.507059e+37  ;;  %v8145_v41 = vpop.permute.xlu0 %905 }
 0x1e2   :  { %vm787_vm6 = vweird.f32 %v676_v34  ;;  %v794_v4 = vor.u32 1.1754944e-38, %v793_v61  ;;  %vm792_vm2 = vcmp.eq.f32.partialorder %v791_v0, 8.507059e+37  ;;  %12517 = vst [vmem:[#allocation12_spill] sm:$0xff] %v8145_v41 }
 0x1e3   :  { %v770_v51 = vmul.f32 %v7458_v39, %v769_v46  ;;  %v815_v52 = vpack.c.bf16 %v802_v45, %v801_v14  ;;  %v779_v1 = vor.u32 1.1754944e-38, %v778_v26 }
 0x1e5   :  { %6589 = vmatmul.msk.bf16.gmra.mxu3 %vm841_vm15, %v815_v52  ;;  %v771_v56 = vadd.f32 %v7458_v39, %v770_v51 }
 0x1e6   :  { %v7460_v55 = vpop.eup %7459 }
 0x1e7   :  { %v783_v10 = vmul.f32 %v7460_v55, %v676_v34  ;;  %v775_v62 = vsel %vm774_vm9, %v7458_v39, %v771_v56  ;;  %vm788_vm13 = vweird.f32 %v7460_v55  ;;  %v8134_v39 = vpop.permute.xlu1 %895  ;;  %v8158_v52 = vpop.permute.xlu2 %915 }
 0x1e8   :  { %v780_v3 = vsel %vm777_vm0, %v779_v1, %v775_v62  ;;  %vm789_vm1 = vmor %vm787_vm6, %vm788_vm13  ;;  %12514 = vst [vmem:[#allocation9_spill] sm:$0xff] %v8134_v39 }
 0x1e9   :  { %v784_v60 = vsub.f32 1.0, %v783_v10  ;;  %v803_v11 = vmul.f32 %v780_v3, %v8024_v50  ;;  %6537 = vmatmul.msk.f32.gmra.mxu0 %vm414_vm4, %v68_v8  ;;  %v70_v50 = vld [vmem:[%s12366_s0 + $0x20] sm:$0xff]  ;;  %12521 = vst [vmem:[#allocation16_spill] sm:$0xff] %v8158_v52  ;;  %v7205_v3 = vld [vmem:[%s12368_s11 + $0x18] sm:$0xff]  ;;  %v7203_v8 = vld [vmem:[%s12368_s11 + $0x8] sm:$0xff] }
 0x1ea   :  { %1204 = vmatpush.bf16.msrb.mxu2 %v7205_v3 }
 0x1eb   :  { %v785_v63 = vmul.f32 %v7460_v55, %v784_v60 }
 0x1ed   :  { %v786_v2 = vadd.f32 %v7460_v55, %v785_v63 }
 0x1ef   :  { %v790_v6 = vsel %vm789_vm1, %v7460_v55, %v786_v2  ;;  %v8147_v42 = vpop.permute.xlu1 %910  ;;  %v8160_v55 = vpop.permute.xlu0 %920 }
 0x1f0   :  { %v795_v7 = vsel %vm792_vm2, %v794_v4, %v790_v6  ;;  %12518 = vst [vmem:[#allocation13_spill] sm:$0xff] %v8147_v42  ;;  %v7204_v4 = vld [vmem:[%s12368_s11 + $0x10] sm:$0xff] }
 0x1f1   :  { %v804_v20 = vmul.f32 %v795_v7, %v8030_v5  ;;  %6538 = vmatmul.msk.f32.gmra.mxu0 %vm414_vm4, %v69_v13  ;;  %v71_v5 = vld [vmem:[%s12366_s0 + $0x28] sm:$0xff]  ;;  %12522 = vst [vmem:[#allocation17_spill] sm:$0xff] %v8160_v55  ;;  %1205 = vmatpush.bf16.msrb.mxu2 %v7204_v4  ;;  %s7613_s0 = smov 32  }
 0x1f3   :  { %v816_v47 = vpack.c.bf16 %v804_v20, %v803_v11  ;;  %v7202_v11 = vld [vmem:[%s12368_s11] sm:$0xff]  ;;  %s7610_s11 = smov 96  }
 0x1f5   :  { %6590 = vmatmul.msk.bf16.gmra.mxu3 %vm841_vm15, %v816_v47  ;;  %1206 = vmatpush.bf16.msrb.mxu2 %v7203_v8 }
 0x1f9   :  { %6539 = vmatmul.msk.f32.gmra.mxu0 %vm414_vm4, %v70_v50  ;;  %1207 = vmatpush.bf16.msrb.mxu2 %v7202_v11 }
 0x201   :  { %6540 = vmatmul.msk.f32.gmra.mxu0 %vm414_vm4, %v71_v5 }
 0x209   :  { %6541 = vmatmul.msk.f32.gmra.mxu0 %vm414_vm4, %v72_v15 }
 0x211   :  { %6542 = vmatmul.msk.f32.gmra.mxu0 %vm414_vm4, %v73_v16 }
 0x248   :  { %v863_v28 = vpop.f32.mrf.mxu3 }
 0x249   :  { %v8124_v19 = vmul.f32 %v8119_v23, %v863_v28 }
 0x24b   :  { %12511 = vst [vmem:[#allocation6_spill] sm:$0xff] %v8124_v19 }
 0x250   :  { %v865_v29 = vpop.f32.mrf.mxu3 }
 0x251   :  { %v8127_v21 = vmul.f32 %v8121_v18, %v865_v29 }
 0x253   :  { %12512 = vst [vmem:[#allocation7_spill] sm:$0xff] %v8127_v21  ;;  %v935_v24 = vpack.c.bf16 %v8127_v21, %v8124_v19 }
 0x255   :  { %6599 = vmatmul.msk.bf16.vlgmr.msrb.gmra.mxu0 %vm500_vm14, %v935_v24 }
 0x256   :  { %v8168_v57 = vpop.f32.mrf.mxu0 }
 0x257   :  { %12525 = vst [vmem:[#allocation20_spill] sm:$0xff] %v8168_v57 }
 0x258   :  { %v868_v25 = vpop.f32.mrf.mxu3 }
 0x259   :  { %v8137_v9 = vmul.f32 %v8134_v39, %v868_v25 }
 0x25b   :  { %12515 = vst [vmem:[#allocation10_spill] sm:$0xff] %v8137_v9 }
 0x25e   :  { %v8173_v60 = vpop.f32.mrf.mxu0 }
 0x25f   :  { %12526 = vst [vmem:[#allocation21_spill] sm:$0xff] %v8173_v60 }
 0x260   :  { %v870_v44 = vpop.f32.mrf.mxu3 }
 0x261   :  { %v8140_v34 = vmul.f32 %v8132_v27, %v870_v44 }
 0x263   :  { %12516 = vst [vmem:[#allocation11_spill] sm:$0xff] %v8140_v34  ;;  %v936_v36 = vpack.c.bf16 %v8140_v34, %v8137_v9 }
 0x265   :  { %6600 = vmatmul.msk.bf16.gmra.mxu0 %vm500_vm14, %v936_v36 }
 0x266   :  { %v8175_v61 = vpop.f32.mrf.mxu0 }
 0x267   :  { %12527 = vst [vmem:[#allocation22_spill] sm:$0xff] %v8175_v61 }
 0x268   :  { %v873_v40 = vpop.f32.mrf.mxu3 }
 0x269   :  { %v8150_v45 = vmul.f32 %v8145_v41, %v873_v40 }
 0x26b   :  { %12519 = vst [vmem:[#allocation14_spill] sm:$0xff] %v8150_v45 }
 0x26e   :  { %v8177_v62 = vpop.f32.mrf.mxu0 }
 0x26f   :  { %12528 = vst [vmem:[#allocation23_spill] sm:$0xff] %v8177_v62 }
 0x270   :  { %v875_v14 = vpop.f32.mrf.mxu3 }
 0x271   :  { %v8153_v46 = vmul.f32 %v8147_v42, %v875_v14 }
 0x273   :  { %12520 = vst [vmem:[#allocation15_spill] sm:$0xff] %v8153_v46  ;;  %v937_v49 = vpack.c.bf16 %v8153_v46, %v8150_v45 }
 0x275   :  { %6601 = vmatmul.msk.bf16.gmra.mxu0 %vm500_vm14, %v937_v49 }
 0x276   :  { %v8179_v63 = vpop.f32.mrf.mxu0 }
 0x277   :  { %12529 = vst [vmem:[#allocation24_spill] sm:$0xff] %v8179_v63 }
 0x278   :  { %v878_v51 = vpop.f32.mrf.mxu3 }
 0x279   :  { %v8163_v10 = vmul.f32 %v8158_v52, %v878_v51 }
 0x27b   :  { %12523 = vst [vmem:[#allocation18_spill] sm:$0xff] %v8163_v10 }
 0x27e   :  { %v8181_v0 = vpop.f32.mrf.mxu0 }
 0x27f   :  { %12530 = vst [vmem:[#allocation25_spill] sm:$0xff] %v8181_v0 }
 0x280   :  { %v880_v56 = vpop.f32.mrf.mxu3 }
 0x281   :  { %v8166_v26 = vmul.f32 %v8160_v55, %v880_v56 }
 0x283   :  { %12524 = vst [vmem:[#allocation19_spill] sm:$0xff] %v8166_v26  ;;  %v938_v59 = vpack.c.bf16 %v8166_v26, %v8163_v10 }
 0x285   :  { %6602 = vmatmul.msk.bf16.gmra.mxu0 %vm500_vm14, %v938_v59 }
 0x286   :  { %v8183_v1 = vpop.f32.mrf.mxu0 }
 0x287   :  { %12531 = vst [vmem:[#allocation26_spill] sm:$0xff] %v8183_v1 }
 0x28e   :  { %v8185_v2 = vpop.f32.mrf.mxu0 }
 0x28f   :  { %12532 = vst [vmem:[#allocation27_spill] sm:$0xff] %v8185_v2 }
 0x2d2   :  { %v972_v6 = vpop.f32.mrf.mxu0 }
 0x2d3   :  { %v6603_v7 = vmul.f32 -1.442695, %v972_v6 }
 0x2d5   :  { %7461 = vpow2.f32 %v6603_v7 }
 0x2da   :  { %v974_v20 = vpop.f32.mrf.mxu0 }
 0x2db   :  { %v7462_v47 = vpop.eup %7461  ;;  %v6604_v58 = vmul.f32 -1.442695, %v974_v20 }
 0x2dc   :  { %v1016_v13 = vadd.f32 1.0, %v7462_v47 }
 0x2dd   :  { %7463 = vpow2.f32 %v6604_v58 }
 0x2de   :  { %7465 = vrcp.f32 %v1016_v13  ;;  %v1035_v56 = vand.u32 2147483648, %v1016_v13  ;;  %vm1029_vm2 = vweird.f32 %v1016_v13  ;;  %v1033_v59 = vand.u32 2147483647, %v1016_v13 }
 0x2e0   :  { %v1036_v47 = vor.u32 1.1754944e-38, %v1035_v56  ;;  %vm1034_vm12 = vcmp.eq.f32.partialorder %v1033_v59, 8.507059e+37 }
 0x2e2   :  { %v8199_v50 = vpop.f32.mrf.mxu0 }
 0x2e3   :  { %v7464_v5 = vpop.eup %7463  ;;  %v6605_v15 = vmul.f32 -1.442695, %v8199_v50 }
 0x2e4   :  { %v7466_v16 = vpop.eup %7465  ;;  %v1017_v17 = vadd.f32 1.0, %v7464_v5 }
 0x2e5   :  { %v1025_v28 = vmul.f32 %v7466_v16, %v1016_v13  ;;  %7467 = vpow2.f32 %v6605_v15  ;;  %vm1030_vm1 = vweird.f32 %v7466_v16 }
 0x2e6   :  { %7469 = vrcp.f32 %v1017_v17  ;;  %vm1031_vm6 = vmor %vm1029_vm2, %vm1030_vm1  ;;  %v1050_v4 = vand.u32 2147483648, %v1017_v17  ;;  %v1048_v11 = vand.u32 2147483647, %v1017_v17  ;;  %vm1044_vm3 = vweird.f32 %v1017_v17 }
 0x2e7   :  { %v1026_v29 = vsub.f32 1.0, %v1025_v28 }
 0x2e8   :  { %v1051_v13 = vor.u32 1.1754944e-38, %v1050_v4  ;;  %vm1049_vm13 = vcmp.eq.f32.partialorder %v1048_v11, 8.507059e+37 }
 0x2e9   :  { %v1027_v24 = vmul.f32 %v7466_v16, %v1026_v29 }
 0x2ea   :  { %v8202_v25 = vpop.f32.mrf.mxu0 }
 0x2eb   :  { %v7468_v44 = vpop.eup %7467  ;;  %v6606_v36 = vmul.f32 -1.442695, %v8202_v25  ;;  %v1028_v49 = vadd.f32 %v7466_v16, %v1027_v24 }
 0x2ec   :  { %v7470_v40 = vpop.eup %7469  ;;  %v8205_v14 = vadd.f32 1.0, %v7468_v44 }
 0x2ed   :  { %v1040_v51 = vmul.f32 %v7470_v40, %v1017_v17  ;;  %7471 = vpow2.f32 %v6606_v36  ;;  %v1032_v7 = vsel %vm1031_vm6, %v7466_v16, %v1028_v49  ;;  %vm1045_vm4 = vweird.f32 %v7470_v40 }
 0x2ee   :  { %7473 = vrcp.f32 %v8205_v14  ;;  %v1037_v24 = vsel %vm1034_vm12, %v1036_v47, %v1032_v7  ;;  %vm1046_vm9 = vmor %vm1044_vm3, %vm1045_vm4  ;;  %vm1059_vm1 = vweird.f32 %v8205_v14 }
 0x2ef   :  { %v1041_v3 = vsub.f32 1.0, %v1040_v51  ;;  %v1144_v51 = vmul.f32 %v1037_v24, %v972_v6  ;;  %v1063_v6 = vand.u32 2147483647, %v8205_v14 }
 0x2f1   :  { %v1042_v8 = vmul.f32 %v7470_v40, %v1041_v3  ;;  %vm1064_vm4 = vcmp.eq.f32.partialorder %v1063_v6, 8.507059e+37 }
 0x2f2   :  { %v8208_v58 = vpop.f32.mrf.mxu0 }
 0x2f3   :  { %v7472_v5 = vpop.eup %7471  ;;  %v1043_v15 = vadd.f32 %v7470_v40, %v1042_v8  ;;  %v6607_v28 = vmul.f32 -1.442695, %v8208_v58 }
 0x2f4   :  { %v7474_v29 = vpop.eup %7473  ;;  %v1019_v44 = vadd.f32 1.0, %v7472_v5  ;;  %v1065_v5 = vand.u32 2147483648, %v8205_v14 }
 0x2f5   :  { %v1047_v36 = vsel %vm1046_vm9, %v7470_v40, %v1043_v15  ;;  %v1055_v16 = vmul.f32 %v7474_v29, %v8205_v14  ;;  %7475 = vpow2.f32 %v6607_v28  ;;  %vm1060_vm0 = vweird.f32 %v7474_v29 }
 0x2f6   :  { %v1052_v49 = vsel %vm1049_vm13, %v1051_v13, %v1047_v36  ;;  %7477 = vrcp.f32 %v1019_v44  ;;  %vm1061_vm2 = vmor %vm1059_vm1, %vm1060_vm0  ;;  %v1080_v15 = vand.u32 2147483648, %v1019_v44  ;;  %v1078_v13 = vand.u32 2147483647, %v1019_v44 }
 0x2f7   :  { %v1145_v56 = vmul.f32 %v1052_v49, %v974_v20  ;;  %v1056_v3 = vsub.f32 1.0, %v1055_v16  ;;  %v1066_v36 = vor.u32 1.1754944e-38, %v1065_v5  ;;  %vm1074_vm12 = vweird.f32 %v1019_v44 }
 0x2f8   :  { %v1081_v14 = vor.u32 1.1754944e-38, %v1080_v15  ;;  %vm1079_vm9 = vcmp.eq.f32.partialorder %v1078_v13, 8.507059e+37 }
 0x2f9   :  { %v1160_v59 = vpack.c.bf16 %v1145_v56, %v1144_v51  ;;  %v1057_v8 = vmul.f32 %v7474_v29, %v1056_v3 }
 0x2fa   :  { %v8212_v17 = vpop.f32.mrf.mxu0 }
 0x2fb   :  { %v7476_v35 = vpop.eup %7475  ;;  %v6608_v7 = vmul.f32 -1.442695, %v8212_v17  ;;  %6627 = vmatmul.msk.bf16.vlgmr.msrb.gmra.mxu2 %vm841_vm15, %v1160_v59  ;;  %v1058_v11 = vadd.f32 %v7474_v29, %v1057_v8 }
 0x2fc   :  { %v7478_v4 = vpop.eup %7477  ;;  %v1020_v40 = vadd.f32 1.0, %v7476_v35 }
 0x2fd   :  { %v1070_v47 = vmul.f32 %v7478_v4, %v1019_v44  ;;  %7479 = vpow2.f32 %v6608_v7  ;;  %v1062_v28 = vsel %vm1061_vm2, %v7474_v29, %v1058_v11  ;;  %vm1075_vm6 = vweird.f32 %v7478_v4 }
 0x2fe   :  { %7481 = vrcp.f32 %v1020_v40  ;;  %v1067_v3 = vsel %vm1064_vm4, %v1066_v36, %v1062_v28  ;;  %vm1076_vm3 = vmor %vm1074_vm12, %vm1075_vm6  ;;  %vm1089_vm0 = vweird.f32 %v1020_v40 }
 0x2ff   :  { %v1071_v20 = vsub.f32 1.0, %v1070_v47  ;;  %v1146_v11 = vmul.f32 %v1067_v3, %v8199_v50  ;;  %v1093_v50 = vand.u32 2147483647, %v1020_v40 }
 0x301   :  { %v1072_v24 = vmul.f32 %v7478_v4, %v1071_v20  ;;  %vm1094_vm6 = vcmp.eq.f32.partialorder %v1093_v50, 8.507059e+37 }
 0x302   :  { %v8219_v35 = vpop.f32.mrf.mxu0 }
 0x303   :  { %v7480_v16 = vpop.eup %7479  ;;  %v1073_v49 = vadd.f32 %v7478_v4, %v1072_v24  ;;  %v6609_v51 = vmul.f32 -1.442695, %v8219_v35 }
 0x304   :  { %v7482_v56 = vpop.eup %7481  ;;  %v1021_v59 = vadd.f32 1.0, %v7480_v16  ;;  %v1095_v16 = vand.u32 2147483648, %v1020_v40 }
 0x305   :  { %v1077_v8 = vsel %vm1076_vm3, %v7478_v4, %v1073_v49  ;;  %v1085_v29 = vmul.f32 %v7482_v56, %v1020_v40  ;;  %7483 = vpow2.f32 %v6609_v51  ;;  %vm1090_vm13 = vweird.f32 %v7482_v56 }
 0x306   :  { %v1082_v7 = vsel %vm1079_vm9, %v1081_v14, %v1077_v8  ;;  %7485 = vrcp.f32 %v1021_v59  ;;  %vm1091_vm1 = vmor %vm1089_vm0, %vm1090_vm13  ;;  %v1110_v49 = vand.u32 2147483648, %v1021_v59  ;;  %v1108_v14 = vand.u32 2147483647, %v1021_v59 }
 0x307   :  { %v1147_v47 = vmul.f32 %v1082_v7, %v8202_v25  ;;  %v1086_v5 = vsub.f32 1.0, %v1085_v29  ;;  %v1096_v8 = vor.u32 1.1754944e-38, %v1095_v16  ;;  %vm1104_vm4 = vweird.f32 %v1021_v59 }
 0x308   :  { %vm1109_vm3 = vcmp.eq.f32.partialorder %v1108_v14, 8.507059e+37 }
 0x309   :  { %v1087_v6 = vmul.f32 %v7482_v56, %v1086_v5  ;;  %v1161_v44 = vpack.c.bf16 %v1147_v47, %v1146_v11  ;;  %v1111_v5 = vor.u32 1.1754944e-38, %v1110_v49 }
 0x30a   :  { %v8224_v20 = vpop.f32.mrf.mxu0 }
 0x30b   :  { %v7484_v24 = vpop.eup %7483  ;;  %v6610_v28 = vmul.f32 -1.442695, %v8224_v20  ;;  %6628 = vmatmul.msk.bf16.gmra.mxu2 %vm841_vm15, %v1161_v44  ;;  %v1088_v13 = vadd.f32 %v7482_v56, %v1087_v6 }
 0x30c   :  { %v7486_v4 = vpop.eup %7485  ;;  %v1022_v15 = vadd.f32 1.0, %v7484_v24 }
 0x30d   :  { %v1100_v36 = vmul.f32 %v7486_v4, %v1021_v59  ;;  %7487 = vpow2.f32 %v6610_v28  ;;  %v1092_v51 = vsel %vm1091_vm1, %v7482_v56, %v1088_v13  ;;  %vm1105_vm2 = vweird.f32 %v7486_v4 }
 0x30e   :  { %7489 = vrcp.f32 %v1022_v15  ;;  %v1097_v47 = vsel %vm1094_vm6, %v1096_v8, %v1092_v51  ;;  %vm1106_vm12 = vmor %vm1104_vm4, %vm1105_vm2  ;;  %v1125_v49 = vand.u32 2147483648, %v1022_v15  ;;  %vm1119_vm13 = vweird.f32 %v1022_v15 }
 0x30f   :  { %v1101_v25 = vsub.f32 1.0, %v1100_v36  ;;  %v1148_v56 = vmul.f32 %v1097_v47, %v8208_v58 }
 0x311   :  { %v1102_v3 = vmul.f32 %v7486_v4, %v1101_v25 }
 0x313   :  { %v7488_v29 = vpop.eup %7487  ;;  %v1103_v7 = vadd.f32 %v7486_v4, %v1102_v3 }
 0x314   :  { %v7490_v11 = vpop.eup %7489  ;;  %v1023_v6 = vadd.f32 1.0, %v7488_v29 }
 0x315   :  { %v1107_v44 = vsel %vm1106_vm12, %v7486_v4, %v1103_v7  ;;  %v1115_v40 = vmul.f32 %v7490_v11, %v1022_v15  ;;  %vm1120_vm9 = vweird.f32 %v7490_v11  ;;  %v1123_v4 = vand.u32 2147483647, %v1022_v15 }
 0x316   :  { %v1112_v24 = vsel %vm1109_vm3, %v1111_v5, %v1107_v44  ;;  %7491 = vrcp.f32 %v1023_v6  ;;  %vm1121_vm0 = vmor %vm1119_vm13, %vm1120_vm9  ;;  %v1140_v3 = vand.u32 2147483648, %v1023_v6  ;;  %v1138_v58 = vand.u32 2147483647, %v1023_v6 }
 0x317   :  { %v1149_v28 = vmul.f32 %v1112_v24, %v8212_v17  ;;  %v1116_v13 = vsub.f32 1.0, %v1115_v40  ;;  %v1126_v17 = vor.u32 1.1754944e-38, %v1125_v49  ;;  %vm1124_vm2 = vcmp.eq.f32.partialorder %v1123_v4, 8.507059e+37  ;;  %v1307_v4 = vld [vmem:[%s12370_s18 + $0x8] sm:$0xff] }
 0x318   :  { %vm1134_vm6 = vweird.f32 %v1023_v6  ;;  %v1141_v47 = vor.u32 1.1754944e-38, %v1140_v3  ;;  %vm1139_vm12 = vcmp.eq.f32.partialorder %v1138_v58, 8.507059e+37  ;;  %vm12539_vm13 = vcmp.eq.s32.totalorder %v7900_v31, %v7895_v48 }
 0x319   :  { %v1117_v36 = vmul.f32 %v7490_v11, %v1116_v13  ;;  %v1162_v16 = vpack.c.bf16 %v1149_v28, %v1148_v56 }
 0x31b   :  { %6629 = vmatmul.msk.bf16.gmra.mxu2 %vm841_vm15, %v1162_v16  ;;  %v1118_v50 = vadd.f32 %v7490_v11, %v1117_v36 }
 0x31c   :  { %v7492_v59 = vpop.eup %7491 }
 0x31d   :  { %v1130_v25 = vmul.f32 %v7492_v59, %v1023_v6  ;;  %v1122_v14 = vsel %vm1121_vm0, %v7490_v11, %v1118_v50  ;;  %vm1135_vm1 = vweird.f32 %v7492_v59  ;;  %v1308_v50 = vld [vmem:[%s12370_s18 + $0x10] sm:$0xff]  ;;  %vm12545_vm0 = vcmp.eq.s32.totalorder %v7900_v31, %v7932_v43 }
 0x31e   :  { %v1127_v7 = vsel %vm1124_vm2, %v1126_v17, %v1122_v14  ;;  %vm1136_vm4 = vmor %vm1134_vm6, %vm1135_vm1  ;;  %vm12547_vm1 = vcmp.eq.s32.totalorder %v7900_v31, %v7955_v53  ;;  %vm12549_vm2 = vcmp.eq.s32.totalorder %v7900_v31, %v7959_v54  ;;  %vm2036_vm6 = vcmask 326656  }
 0x31f   :  { %v1131_v51 = vsub.f32 1.0, %v1130_v25  ;;  %v1150_v40 = vmul.f32 %v1127_v7, %v8219_v35 }
 0x321   :  { %v1132_v8 = vmul.f32 %v7492_v59, %v1131_v51 }
 0x323   :  { %v1133_v29 = vadd.f32 %v7492_v59, %v1132_v8 }
 0x325   :  { %v1137_v5 = vsel %vm1136_vm4, %v7492_v59, %v1133_v29  ;;  %v1309_v59 = vld [vmem:[%s12370_s18 + $0x18] sm:$0xff]  ;;  %vm2073_vm4 = vcmask 392192  }
 0x326   :  { %v1142_v44 = vsel %vm1139_vm12, %v1141_v47, %v1137_v5  ;;  %1328 = vmatpush.msra.mxu3 %v1309_v59  ;;  %v7428_v47 = vld [vmem:[%s12369_s4] ss:$0 sm:$0xff]  ;;  %s7621_s4 = smov 24  }
 0x327   :  { %v1151_v15 = vmul.f32 %v1142_v44, %v8224_v20  ;;  %vm213_vm3 = vcmp.eq.s32.totalorder %v8037_v12, %v7428_v47 }
 0x328   :  { %1329 = vmatpush.msra.mxu3 %v1308_v50  ;;  %v8291_v50 = vadd.s32 8, %v8037_v12 }
 0x329   :  { %v1163_v24 = vpack.c.bf16 %v1151_v15, %v1150_v40 }
 0x32a   :  { %1330 = vmatpush.msra.mxu3 %v1307_v4  ;;  %12535 = vst [vmem:[#allocation29_spill] sm:$0xff] %v8291_v50  ;;  %vm214_vm9 = vcmp.eq.s32.totalorder %v8291_v50, %v7428_v47 }
 0x32b   :  { %6630 = vmatmul.msk.bf16.gmra.mxu2 %vm841_vm15, %v1163_v24 }
 0x37e   :  { %v8234_v11 = vpop.f32.mrf.mxu2 }
 0x37f   :  { %v8372_v43 = vmul.f32 %v8234_v11, %v8168_v57 }
 0x386   :  { %v8236_v56 = vpop.f32.mrf.mxu2 }
 0x387   :  { %v8386_v54 = vmul.f32 %v8236_v56, %v8173_v60 }
 0x38e   :  { %v8238_v28 = vpop.f32.mrf.mxu2 }
 0x38f   :  { %v8400_v47 = vmul.f32 %v8238_v28, %v8175_v61 }
 0x396   :  { %v8240_v6 = vpop.f32.mrf.mxu2 }
 0x39e   :  { %v8242_v13 = vpop.f32.mrf.mxu2 }
 0x3a6   :  { %v8244_v36 = vpop.f32.mrf.mxu2 }
 0x3a7   :  { %1255 = vrot.lane.b32.xlu0 %v8244_v36, %s7610_s11 }
 0x3ae   :  { %v8248_v35 = vpop.f32.mrf.mxu2 }
 0x3af   :  { %1249 = vrot.lane.b32.xlu0 %v8238_v28, %s7610_s11  ;;  %1257 = vrot.lane.b32.xlu2 %v8248_v35, %s7610_s11 }
 0x3b6   :  { %v8254_v20 = vpop.f32.mrf.mxu2 }
 0x3b7   :  { %1251 = vrot.lane.b32.xlu2 %v8240_v6, %s7610_s11  ;;  %1259 = vrot.lane.b32.xlu1 %v8254_v20, %s7610_s11 }
 0x3bf   :  { %1245 = vrot.lane.b32.xlu2 %v8234_v11, %s7610_s11  ;;  %1253 = vrot.lane.b32.xlu1 %v8242_v13, %s7610_s11 }
 0x3c7   :  { %1247 = vrot.lane.b32.xlu1 %v8236_v56, %s7610_s11 }
 0x409   :  { %v1258_v16 = vpop.permute.xlu2 %1257 }
 0x40a   :  { %v1275_v3 = vmul.f32 %v1258_v16, %v8183_v1  ;;  %v12533_v16 = vmov 0.0  }
 0x40b   :  { %v8288_v59 = vsel %vm213_vm3, 1.0, %v12533_v16  ;;  %v8326_v30 = vsel %vm12539_vm13, 1.0, %v12533_v16  ;;  %v8350_v48 = vsel %vm12545_vm0, 1.0, %v12533_v16 }
 0x40c   :  { %12534 = vst [vmem:[#allocation28_spill] sm:$0xff] %v8288_v59 }
 0x40d   :  { %12540 = vst [vmem:[#allocation33_spill] sm:$0xff] %v8326_v30 }
 0x40e   :  { %12546 = vst [vmem:[#allocation36_spill] sm:$0xff] %v8350_v48 }
 0x411   :  { %v1252_v8 = vpop.permute.xlu2 %1251 }
 0x412   :  { %v1272_v7 = vmul.f32 %v1252_v8, %v8177_v62  ;;  %v8310_v8 = vsel %vm116_vm8, 1.0, %v12533_v16  ;;  %vm12541_vm8 = vcmp.eq.s32.totalorder %v7900_v31, %v7902_v32  ;;  %v8358_v32 = vsel %vm12547_vm1, 1.0, %v12533_v16 }
 0x413   :  { %12537 = vst [vmem:[#allocation31_spill] sm:$0xff] %v8310_v8 }
 0x414   :  { %12548 = vst [vmem:[#allocation37_spill] sm:$0xff] %v8358_v32 }
 0x419   :  { %v1256_v25 = vpop.permute.xlu0 %1255  ;;  %v1246_v44 = vpop.permute.xlu2 %1245 }
 0x41a   :  { %v1274_v14 = vmul.f32 %v1256_v25, %v8181_v0  ;;  %v1269_v24 = vmul.f32 %v1246_v44, %v8168_v57  ;;  %v8297_v25 = vsel %vm214_vm9, 1.0, %v12533_v16  ;;  %v8414_v44 = vmul.f32 %v8240_v6, %v8177_v62 }
 0x41b   :  { %12536 = vst [vmem:[#allocation30_spill] sm:$0xff] %v8297_v25 }
 0x421   :  { %v1250_v29 = vpop.permute.xlu0 %1249 }
 0x422   :  { %v1271_v5 = vmul.f32 %v1250_v29, %v8175_v61 }
 0x429   :  { %v1260_v49 = vpop.permute.xlu1 %1259 }
 0x42a   :  { %v1276_v51 = vmul.f32 %v1260_v49, %v8185_v2  ;;  %v1306_v49 = vld [vmem:[%s12370_s18] sm:$0xff]  ;;  %s7611_s18 = smov 112  }
 0x42b   :  { %1331 = vmatpush.msra.mxu3 %v1306_v49  ;;  %v8442_v49 = vmul.f32 %v8244_v36, %v8181_v0 }
 0x42c   :  { %1291 = vmatpush.msrb.mxu1 %v1276_v51 }
 0x42e   :  { %1292 = vmatpush.msrb.mxu1 %v1275_v3 }
 0x430   :  { %1293 = vmatpush.msrb.mxu1 %v1274_v14 }
 0x431   :  { %v1254_v58 = vpop.permute.xlu1 %1253 }
 0x432   :  { %v1273_v17 = vmul.f32 %v1254_v58, %v8179_v63  ;;  %v8318_v58 = vsel %vm117_vm11, 1.0, %v12533_v16  ;;  %vm12543_vm11 = vcmp.eq.s32.totalorder %v7900_v31, %v7920_v38  ;;  %v8366_v38 = vsel %vm12549_vm2, 1.0, %v12533_v16 }
 0x433   :  { %12538 = vst [vmem:[#allocation32_spill] sm:$0xff] %v8318_v58  ;;  %v8342_v33 = vsel %vm12543_vm11, 1.0, %v12533_v16 }
 0x434   :  { %1294 = vmatpush.msrb.mxu1 %v1273_v17  ;;  %v8334_v17 = vsel %vm12541_vm8, 1.0, %v12533_v16  ;;  %12544 = vst [vmem:[#allocation35_spill] sm:$0xff] %v8342_v33  ;;  %v8471_v16 = vmul.f32 %v8254_v20, %v8185_v2 }
 0x435   :  { %12542 = vst [vmem:[#allocation34_spill] sm:$0xff] %v8334_v17 }
 0x436   :  { %1295 = vmatpush.msrb.mxu1 %v1272_v7  ;;  %12550 = vst [vmem:[#allocation38_spill] sm:$0xff] %v8366_v38 }
 0x438   :  { %1296 = vmatpush.msrb.mxu1 %v1271_v5 }
 0x439   :  { %v1248_v40 = vpop.permute.xlu1 %1247 }
 0x43a   :  { %v1270_v15 = vmul.f32 %v1248_v40, %v8173_v60 }
 0x43c   :  { %1297 = vmatpush.msrb.mxu1 %v1270_v15  ;;  %v8428_v15 = vmul.f32 %v8242_v13, %v8179_v63 }
 0x43e   :  { %1298 = vmatpush.msrb.mxu1 %v1269_v24 }
 0x43f   :  { %6631 = vmatmul.msk.f32.vlgmr.msrb.gmra.mxu1 %vm841_vm15, %v8288_v59 }
 0x447   :  { %6632 = vmatmul.msk.f32.gmra.mxu1 %vm841_vm15, %v8297_v25 }
 0x4bc   :  { %v1300_v4 = vpop.f32.mrf.mxu1 }
 0x4bd   :  { %6633 = vmatmul.msk.f32.vlgmr.msra.gmra.mxu3 %vm500_vm14, %v1300_v4 }
 0x4c4   :  { %v1303_v51 = vpop.f32.mrf.mxu1 }
 0x4c5   :  { %6634 = vmatmul.msk.f32.gmra.mxu3 %vm500_vm14, %v1303_v51  ;;  %v8456_v51 = vmul.f32 %v8248_v35, %v8183_v1 }
 0x540   :  { %v1333_v3 = vpop.f32.mrf.mxu3 }
 0x548   :  { %v1336_v14 = vpop.f32.mrf.mxu3 }
 0x549   :  { %1377 = vmatpush.msra.mxu1 %v1336_v14 }
 0x54b   :  { %1378 = vmatpush.msra.mxu1 %v1333_v3 }
 0x54c   :  { %6635 = vmatmul.msk.f32.vlgmr.msra.gmra.mxu1 %vm603_vm10, %v8310_v8 }
 0x554   :  { %6636 = vmatmul.msk.f32.gmra.mxu1 %vm603_vm10, %v8318_v58 }
 0x55c   :  { %6637 = vmatmul.msk.f32.gmra.mxu1 %vm603_vm10, %v8326_v30 }
 0x564   :  { %6638 = vmatmul.msk.f32.gmra.mxu1 %vm603_vm10, %v8334_v17 }
 0x56c   :  { %6639 = vmatmul.msk.f32.gmra.mxu1 %vm603_vm10, %v8342_v33 }
 0x574   :  { %6640 = vmatmul.msk.f32.gmra.mxu1 %vm603_vm10, %v8350_v48 }
 0x57c   :  { %6641 = vmatmul.msk.f32.gmra.mxu1 %vm603_vm10, %v8358_v32 }
 0x584   :  { %6642 = vmatmul.msk.f32.gmra.mxu1 %vm603_vm10, %v8366_v38 }
 0x5c9   :  { %v8374_v29 = vpop.f32.mrf.mxu1 }
 0x5ca   :  { %12551 = vst [vmem:[#allocation39_spill] sm:$0xff] %v8374_v29  ;;  %v8378_v53 = vmul.f32 %v8374_v29, %v8372_v43 }
 0x5cc   :  { %1452 = vrot.lane.b32.xlu2 %v8378_v53, %s7611_s18  ;;  %1420 = vrot.lane.b32.xlu0 %v8378_v53, %s7612_s25 }
 0x5d1   :  { %v8388_v11 = vpop.f32.mrf.mxu1 }
 0x5d2   :  { %12552 = vst [vmem:[#allocation40_spill] sm:$0xff] %v8388_v11  ;;  %v8392_v7 = vmul.f32 %v8388_v11, %v8386_v54 }
 0x5d4   :  { %1454 = vrot.lane.b32.xlu0 %v8392_v7, %s7611_s18  ;;  %1422 = vrot.lane.b32.xlu1 %v8392_v7, %s7612_s25  ;;  %v7348_v36 = vpack.i.bf16 %v8392_v7, %v8378_v53 }
 0x5d9   :  { %v8402_v5 = vpop.f32.mrf.mxu1 }
 0x5da   :  { %12553 = vst [vmem:[#allocation41_spill] sm:$0xff] %v8402_v5  ;;  %v8406_v56 = vmul.f32 %v8402_v5, %v8400_v47 }
 0x5dc   :  { %1456 = vrot.lane.b32.xlu0 %v8406_v56, %s7611_s18  ;;  %1424 = vrot.lane.b32.xlu1 %v8406_v56, %s7612_s25 }
 0x5e1   :  { %v8416_v40 = vpop.f32.mrf.mxu1 }
 0x5e2   :  { %12554 = vst [vmem:[#allocation42_spill] sm:$0xff] %v8416_v40  ;;  %v8420_v28 = vmul.f32 %v8416_v40, %v8414_v44 }
 0x5e4   :  { %1458 = vrot.lane.b32.xlu1 %v8420_v28, %s7611_s18  ;;  %1426 = vrot.lane.b32.xlu2 %v8420_v28, %s7612_s25  ;;  %v7358_v38 = vpack.i.bf16 %v8420_v28, %v8406_v56 }
 0x5e9   :  { %v8430_v24 = vpop.f32.mrf.mxu1 }
 0x5ea   :  { %12555 = vst [vmem:[#allocation43_spill] sm:$0xff] %v8430_v24  ;;  %v8434_v6 = vmul.f32 %v8430_v24, %v8428_v15 }
 0x5ec   :  { %1460 = vrot.lane.b32.xlu1 %v8434_v6, %s7611_s18  ;;  %1428 = vrot.lane.b32.xlu2 %v8434_v6, %s7612_s25 }
 0x5f1   :  { %v8444_v4 = vpop.f32.mrf.mxu1 }
 0x5f2   :  { %12556 = vst [vmem:[#allocation44_spill] sm:$0xff] %v8444_v4  ;;  %v8448_v13 = vmul.f32 %v8444_v4, %v8442_v49 }
 0x5f4   :  { %1462 = vrot.lane.b32.xlu2 %v8448_v13, %s7611_s18  ;;  %1430 = vrot.lane.b32.xlu0 %v8448_v13, %s7612_s25 }
 0x5f9   :  { %v8458_v3 = vpop.f32.mrf.mxu1 }
 0x5fa   :  { %12557 = vst [vmem:[#allocation45_spill] sm:$0xff] %v8458_v3  ;;  %v8464_v14 = vmul.f32 %v8458_v3, %v8456_v51 }
 0x5fc   :  { %7349 = vrot.lane.b32.xlu0 %v7348_v36, %s7613_s0  ;;  %1432 = vrot.lane.b32.xlu2 %v8464_v14, %s7612_s25  ;;  %v7368_v36 = vpack.i.bf16 %v8448_v13, %v8434_v6 }
 0x601   :  { %v8473_v35 = vpop.f32.mrf.mxu1 }
 0x602   :  { %12558 = vst [vmem:[#allocation46_spill] sm:$0xff] %v8473_v35  ;;  %v8477_v12 = vmul.f32 %v8473_v35, %v8471_v16 }
 0x604   :  { %1466 = vrot.lane.b32.xlu2 %v8477_v12, %s7611_s18  ;;  %1434 = vrot.lane.b32.xlu0 %v8477_v12, %s7612_s25 }
 0x60c   :  { %7369 = vrot.lane.b32.xlu2 %v7368_v36, %s7613_s0  ;;  %7359 = vrot.lane.b32.xlu0 %v7358_v38, %s7613_s0 }
 0x626   :  { %v1453_v48 = vpop.permute.xlu2 %1452 }
 0x63e   :  { %v1421_v20 = vpop.permute.xlu0 %1420  ;;  %v1427_v38 = vpop.permute.xlu2 %1426 }
 0x63f   :  { %v1444_v32 = vadd.f32 %v1421_v20, %v8378_v53  ;;  %v1447_v60 = vadd.f32 %v1427_v38, %v8420_v28  ;;  %v7378_v38 = vpack.i.bf16 %v8477_v12, %v8464_v14 }
 0x641   :  { %v1476_v17 = vadd.f32 %v1453_v48, %v1444_v32 }
 0x643   :  { %v8491_v25 = vmul.f32 0.57735026, %v1476_v17 }
 0x646   :  { %v1423_v33 = vpop.permute.xlu1 %1422  ;;  %v1455_v58 = vpop.permute.xlu0 %1454 }
 0x647   :  { %v1445_v30 = vadd.f32 %v1423_v33, %v8392_v7 }
 0x649   :  { %v1477_v8 = vadd.f32 %v1455_v58, %v1445_v30 }
 0x64b   :  { %v8493_v59 = vmul.f32 0.57735026, %v1477_v8 }
 0x64d   :  { %v7353_v57 = vpack.i.bf16 %v8493_v59, %v8491_v25 }
 0x64e   :  { %v1425_v36 = vpop.permute.xlu1 %1424  ;;  %v1457_v48 = vpop.permute.xlu0 %1456 }
 0x64f   :  { %7354 = vrot.lane.b32.xlu1 %v7353_v57, %s7613_s0  ;;  %v1446_v20 = vadd.f32 %v1425_v36, %v8406_v56  ;;  %v1429_v57 = vpop.permute.xlu2 %1428 }
 0x650   :  { %v1448_v36 = vadd.f32 %v1429_v57, %v8434_v6  ;;  %v7208_v57 = vld [vmem:[%s12371_s12 + $0x10] sm:$0xff] }
 0x651   :  { %v1478_v33 = vadd.f32 %v1457_v48, %v1446_v20  ;;  %2091 = vmatpush.bf16.msrb.mxu3 %v7208_v57 }
 0x653   :  { %v8504_v58 = vmul.f32 0.57735026, %v1478_v33 }
 0x656   :  { %v1459_v32 = vpop.permute.xlu1 %1458 }
 0x657   :  { %v1479_v61 = vadd.f32 %v1459_v32, %v1447_v60  ;;  %1464 = vrot.lane.b32.xlu1 %v8464_v14, %s7611_s18 }
 0x659   :  { %v8502_v8 = vmul.f32 0.57735026, %v1479_v61  ;;  %v1463_v61 = vpop.permute.xlu2 %1462 }
 0x65b   :  { %v7363_v30 = vpack.i.bf16 %v8502_v8, %v8504_v58 }
 0x65e   :  { %v1461_v17 = vpop.permute.xlu1 %1460 }
 0x65f   :  { %7364 = vrot.lane.b32.xlu1 %v7363_v30, %s7613_s0  ;;  %v1480_v20 = vadd.f32 %v1461_v17, %v1448_v36  ;;  %v7207_v17 = vld [vmem:[%s12371_s12 + $0x8] sm:$0xff]  ;;  %v7206_v36 = vld [vmem:[%s12371_s12] sm:$0xff]  ;;  %s7614_s12 = smov 16  }
 0x660   :  { %2092 = vmatpush.bf16.msrb.mxu3 %v7207_v17 }
 0x661   :  { %v8514_v33 = vmul.f32 0.57735026, %v1480_v20 }
 0x664   :  { %2093 = vmatpush.bf16.msrb.mxu3 %v7206_v36 }
 0x666   :  { %v1431_v60 = vpop.permute.xlu0 %1430 }
 0x667   :  { %v1449_v48 = vadd.f32 %v1431_v60, %v8448_v13  ;;  %7379 = vrot.lane.b32.xlu1 %v7378_v38, %s7613_s0  ;;  %v1433_v60 = vpop.permute.xlu2 %1432 }
 0x668   :  { %v1450_v55 = vadd.f32 %v1433_v60, %v8464_v14 }
 0x669   :  { %v1481_v32 = vadd.f32 %v1463_v61, %v1449_v48 }
 0x66b   :  { %v8516_v62 = vmul.f32 0.57735026, %v1481_v32 }
 0x66d   :  { %v7373_v30 = vpack.i.bf16 %v8516_v62, %v8514_v33 }
 0x66e   :  { %v7350_v38 = vpop.permute.xlu0 %7349 }
 0x66f   :  { %1636 = vrot.lane.b32.xlu1 %v8374_v29, %s7611_s18  ;;  %7374 = vrot.lane.b32.xlu0 %v7373_v30, %s7613_s0  ;;  %v7352_v20 = vunpack.i.h.bf16 %v7350_v38  ;;  %v7351_v48 = vunpack.i.l.bf16 %v7350_v38  ;;  %v1467_v38 = vpop.permute.xlu2 %1466 }
 0x671   :  { %v2029_v17 = vsel %vm500_vm14, %v8127_v21, %v7352_v20  ;;  %v2028_v36 = vsel %vm500_vm14, %v8124_v19, %v7351_v48 }
 0x676   :  { %v1435_v61 = vpop.permute.xlu0 %1434 }
 0x677   :  { %1536 = vrot.lane.b32.xlu1 %v8402_v5, %s7608_s2  ;;  %1532 = vrot.lane.b32.xlu0 %v8374_v29, %s7608_s2  ;;  %v1451_v63 = vadd.f32 %v1435_v61, %v8477_v12 }
 0x67e   :  { %v7360_v21 = vpop.permute.xlu0 %7359 }
 0x67f   :  { %1642 = vrot.lane.b32.xlu1 %v8416_v40, %s7611_s18  ;;  %1638 = vrot.lane.b32.xlu0 %v8388_v11, %s7611_s18 }
 0x687   :  { %1500 = vrot.lane.b32.xlu1 %v8374_v29, %s7612_s25  ;;  %1538 = vrot.lane.b32.xlu0 %v8416_v40, %s7608_s2 }
 0x68f   :  { %1646 = vrot.lane.b32.xlu1 %v8444_v4, %s7611_s18  ;;  %1644 = vrot.lane.b32.xlu0 %v8430_v24, %s7611_s18 }
 0x697   :  { %1502 = vrot.lane.b32.xlu1 %v8388_v11, %s7612_s25  ;;  %1542 = vrot.lane.b32.xlu0 %v8444_v4, %s7608_s2 }
 0x69f   :  { %1648 = vrot.lane.b32.xlu1 %v8458_v3, %s7611_s18 }
 0x6a7   :  { %1504 = vrot.lane.b32.xlu1 %v8402_v5, %s7612_s25 }
 0x6af   :  { %1650 = vrot.lane.b32.xlu1 %v8473_v35, %s7611_s18 }
 0x6b7   :  { %1506 = vrot.lane.b32.xlu1 %v8416_v40, %s7612_s25 }
 0x6c1   :  { %v7355_v32 = vpop.permute.xlu1 %7354 }
 0x6c2   :  { %v7357_v30 = vunpack.i.h.bf16 %v7355_v32  ;;  %v7356_v57 = vunpack.i.l.bf16 %v7355_v32  ;;  %v1483_v32 = vadd.f32 %v1467_v38, %v1451_v63 }
 0x6c4   :  { %v2037_v0 = vsel %vm2036_vm6, %v2028_v36, %v7356_v57  ;;  %v2038_v1 = vsel %vm2036_vm6, %v2029_v17, %v7357_v30  ;;  %v8569_v20 = vmul.f32 0.57735026, %v1483_v32  ;;  %v7362_v57 = vunpack.i.h.bf16 %v7360_v21  ;;  %v7370_v17 = vpop.permute.xlu2 %7369 }
 0x6c5   :  { %v2051_v2 = vpack.c.bf16 %v2038_v1, %v2037_v0  ;;  %v7361_v30 = vunpack.i.l.bf16 %v7360_v21  ;;  %v7372_v36 = vunpack.i.h.bf16 %v7370_v17  ;;  %v7371_v38 = vunpack.i.l.bf16 %v7370_v17 }
 0x6c7   :  { %6655 = vmatmul.msk.bf16.vlgmr.msrb.gmra.mxu3 %vm2073_vm4, %v2051_v2  ;;  %v2030_v63 = vsel %vm500_vm14, %v8137_v9, %v7361_v30 }
 0x6c9   :  { %v1465_v52 = vpop.permute.xlu1 %1464 }
 0x6ca   :  { %v1482_v42 = vadd.f32 %v1465_v52, %v1450_v55  ;;  %v2031_v52 = vsel %vm500_vm14, %v8140_v34, %v7362_v57 }
 0x6cc   :  { %v8571_v48 = vmul.f32 0.57735026, %v1482_v42 }
 0x6ce   :  { %v7383_v61 = vpack.i.bf16 %v8569_v20, %v8571_v48 }
 0x6d0   :  { %7384 = vrot.lane.b32.xlu2 %v7383_v61, %s7613_s0 }
 0x6d1   :  { %v7365_v0 = vpop.permute.xlu1 %7364 }
 0x6d2   :  { %v7367_v1 = vunpack.i.h.bf16 %v7365_v0  ;;  %v7366_v2 = vunpack.i.l.bf16 %v7365_v0 }
 0x6d4   :  { %v2039_v55 = vsel %vm2036_vm6, %v2030_v63, %v7366_v2  ;;  %v2040_v42 = vsel %vm2036_vm6, %v2031_v52, %v7367_v1  ;;  %v2032_v1 = vsel %vm500_vm14, %v8150_v45, %v7371_v38  ;;  %v2033_v2 = vsel %vm500_vm14, %v8153_v46, %v7372_v36  ;;  %v6751_v45 = vld [vmem:[%s12372_s13 + $0xb0] sm:$0xf0] }
 0x6d5   :  { %v2052_v60 = vpack.c.bf16 %v2040_v42, %v2039_v55 }
 0x6d7   :  { %6656 = vmatmul.msk.bf16.gmra.mxu3 %vm2073_vm4, %v2052_v60 }
 0x6d8   :  { %1534 = vrot.lane.b32.xlu2 %v8388_v11, %s7608_s2 }
 0x6d9   :  { %v7380_v21 = vpop.permute.xlu1 %7379 }
 0x6e0   :  { %1640 = vrot.lane.b32.xlu2 %v8402_v5, %s7611_s18 }
 0x6e1   :  { %v1637_v32 = vpop.permute.xlu1 %1636  ;;  %v7375_v61 = vpop.permute.xlu0 %7374 }
 0x6e2   :  { %v1660_v57 = vmul.f32 %v1637_v32, %v8372_v43  ;;  %v7377_v30 = vunpack.i.h.bf16 %v7375_v61  ;;  %v7376_v0 = vunpack.i.l.bf16 %v7375_v61 }
 0x6e4   :  { %1676 = vrot.lane.b32.xlu0 %v1660_v57, %s7614_s12  ;;  %v2041_v63 = vsel %vm2036_vm6, %v2032_v1, %v7376_v0  ;;  %v2042_v52 = vsel %vm2036_vm6, %v2033_v2, %v7377_v30  ;;  %v7382_v57 = vunpack.i.h.bf16 %v7380_v21  ;;  %v7381_v30 = vunpack.i.l.bf16 %v7380_v21  ;;  %v6837_v21 = vld [vmem:[%s12372_s13 + $0x150] sm:$0xf] }
 0x6e5   :  { %v2053_v55 = vpack.c.bf16 %v2042_v52, %v2041_v63 }
 0x6e6   :  { %v2034_v63 = vsel %vm500_vm14, %v8163_v10, %v7381_v30  ;;  %v2035_v52 = vsel %vm500_vm14, %v8166_v26, %v7382_v57 }
 0x6e7   :  { %6657 = vmatmul.msk.bf16.gmra.mxu3 %vm2073_vm4, %v2053_v55 }
 0x6e8   :  { %1540 = vrot.lane.b32.xlu2 %v8430_v24, %s7608_s2 }
 0x6e9   :  { %v8598_v42 = vpop.permute.xlu1 %1536  ;;  %v8600_v60 = vpop.permute.xlu0 %1532 }
 0x6ea   :  { %12559 = vst [vmem:[#allocation47_spill] sm:$0xff] %v8598_v42  ;;  %v1556_v61 = vmul.f32 %v8600_v60, %v8372_v43 }
 0x6eb   :  { %12560 = vst [vmem:[#allocation48_spill] sm:$0xff] %v8600_v60 }
 0x6ec   :  { %1544 = vrot.lane.b32.xlu0 %v8458_v3, %s7608_s2 }
 0x6f0   :  { %1604 = vrot.lane.b32.xlu2 %v8374_v29, %s7614_s12 }
 0x6f1   :  { %v1643_v17 = vpop.permute.xlu1 %1642  ;;  %v1639_v36 = vpop.permute.xlu0 %1638 }
 0x6f2   :  { %v1663_v38 = vmul.f32 %v1643_v17, %v8414_v44  ;;  %v1661_v32 = vmul.f32 %v1639_v36, %v8386_v54 }
 0x6f4   :  { %1682 = vrot.lane.b32.xlu1 %v1663_v38, %s7614_s12  ;;  %1678 = vrot.lane.b32.xlu0 %v1661_v32, %s7614_s12  ;;  %v7254_v32 = vld [vmem:[%s12372_s13 + $0x164] sm:$0xf0] }
 0x6f5   :  { %v6838_v30 = vor.u32 %v7254_v32, %v6837_v21  ;;  %v6813_v21 = vld [vmem:[%s12372_s13 + $0x120] sm:$0xf]  ;;  %v7248_v32 = vld [vmem:[%s12372_s13 + $0x134] sm:$0xf0] }
 0x6f7   :  { %2567 = vmatpush.bf16.msra.mxu0 %v6838_v30  ;;  %v6821_v30 = vld [vmem:[%s12372_s13 + $0x128] sm:$0xf] }
 0x6f8   :  { %1572 = vrot.lane.b32.xlu2 %v1556_v61, %s7612_s25  ;;  %v7251_v61 = vld [vmem:[%s12372_s13 + $0x154] sm:$0xf] }
 0x6fc   :  { %1546 = vrot.lane.b32.xlu0 %v8473_v35, %s7608_s2 }
 0x700   :  { %1606 = vrot.lane.b32.xlu2 %v8388_v11, %s7614_s12 }
 0x72a   :  { %v7385_v0 = vpop.permute.xlu2 %7384 }
 0x72b   :  { %v7387_v1 = vunpack.i.h.bf16 %v7385_v0  ;;  %v7386_v2 = vunpack.i.l.bf16 %v7385_v0  ;;  %v6839_v0 = vld [vmem:[%s12372_s13 + $0x168] sm:$0xf0] }
 0x72d   :  { %v2043_v55 = vsel %vm2036_vm6, %v2034_v63, %v7386_v2  ;;  %v2044_v17 = vsel %vm2036_vm6, %v2035_v52, %v7387_v1  ;;  %v6845_v1 = vld [vmem:[%s12372_s13 + $0x158] sm:$0xf]  ;;  %v7255_v2 = vld [vmem:[%s12372_s13 + $0x16c] sm:$0xf0]  ;;  %v6842_v63 = vor.u32 %v7251_v61, %v6839_v0  ;;  %v7245_v61 = vld [vmem:[%s12372_s13 + $0x124] sm:$0xf]  ;;  %v6814_v0 = vor.u32 %v7248_v32, %v6813_v21  ;;  %v8679_v21 = vpop.permute.xlu0 %1538 }
 0x72e   :  { %v2054_v36 = vpack.c.bf16 %v2044_v17, %v2043_v55  ;;  %v6846_v52 = vor.u32 %v7255_v2, %v6845_v1  ;;  %v7252_v55 = vld [vmem:[%s12372_s13 + $0x15c] sm:$0xf]  ;;  %v6847_v17 = vld [vmem:[%s12372_s13 + $0x170] sm:$0xf0]  ;;  %v7249_v1 = vld [vmem:[%s12372_s13 + $0x13c] sm:$0xf0]  ;;  %v1559_v10 = vmul.f32 %v8679_v21, %v8414_v44 }
 0x72f   :  { %2596 = vmatpush.bf16.msra.mxu2 %v6842_v63  ;;  %v6822_v63 = vor.u32 %v7249_v1, %v6821_v30  ;;  %2568 = vmatpush.bf16.msra.mxu0 %v6814_v0  ;;  %12563 = vst [vmem:[#allocation51_spill] sm:$0xff] %v8679_v21  ;;  %v7239_v30 = vld [vmem:[%s12372_s13 + $0xf4] sm:$0xf] }
 0x730   :  { %6658 = vmatmul.msk.bf16.gmra.mxu3 %vm2073_vm4, %v2054_v36  ;;  %v6850_v36 = vor.u32 %v7252_v55, %v6847_v17  ;;  %2625 = vmatpush.bf16.msrb.mxu1 %v6846_v52  ;;  %v7246_v52 = vld [vmem:[%s12372_s13 + $0x12c] sm:$0xf]  ;;  %v6823_v55 = vld [vmem:[%s12372_s13 + $0x140] sm:$0xf0]  ;;  %v8677_v17 = vpop.permute.xlu1 %1500 }
 0x731   :  { %12562 = vst [vmem:[#allocation50_spill] sm:$0xff] %v8677_v17 }
 0x732   :  { %v8624_v38 = vpop.permute.xlu2 %1534  ;;  %2654 = vmatpush.bf16.msra.mxu3 %v6850_v36  ;;  %v6826_v36 = vor.u32 %v7246_v52, %v6823_v55  ;;  %v7243_v52 = vld [vmem:[%s12372_s13 + $0x10c] sm:$0xf0] }
 0x733   :  { %12561 = vst [vmem:[#allocation49_spill] sm:$0xff] %v8624_v38  ;;  %v1557_v57 = vmul.f32 %v8624_v38, %v8386_v54 }
 0x734   :  { %2626 = vmatpush.bf16.msrb.mxu1 %v6822_v63  ;;  %v6797_v63 = vld [vmem:[%s12372_s13 + $0xf8] sm:$0xf] }
 0x735   :  { %1574 = vrot.lane.b32.xlu2 %v1557_v57, %s7612_s25  ;;  %v6815_v57 = vld [vmem:[%s12372_s13 + $0x138] sm:$0xf0]  ;;  %v6798_v26 = vor.u32 %v7243_v52, %v6797_v63  ;;  %v7237_v52 = vld [vmem:[%s12372_s13 + $0xdc] sm:$0xf0] }
 0x736   :  { %v6818_v2 = vor.u32 %v7245_v61, %v6815_v57  ;;  %v6789_v61 = vld [vmem:[%s12372_s13 + $0xf0] sm:$0xf]  ;;  %v7242_v57 = vld [vmem:[%s12372_s13 + $0x104] sm:$0xf0]  ;;  %2655 = vmatpush.bf16.msra.mxu3 %v6826_v36  ;;  %v6799_v36 = vld [vmem:[%s12372_s13 + $0x110] sm:$0xf0] }
 0x737   :  { %v6790_v1 = vor.u32 %v7242_v57, %v6789_v61  ;;  %v6765_v57 = vld [vmem:[%s12372_s13 + $0xc0] sm:$0xf] }
 0x738   :  { %2597 = vmatpush.bf16.msra.mxu2 %v6818_v2  ;;  %v6791_v2 = vld [vmem:[%s12372_s13 + $0x108] sm:$0xf0]  ;;  %2627 = vmatpush.bf16.msrb.mxu1 %v6798_v26  ;;  %v8759_v46 = vpop.permute.xlu1 %1646 }
 0x739   :  { %v6794_v55 = vor.u32 %v7239_v30, %v6791_v2  ;;  %2569 = vmatpush.bf16.msra.mxu0 %v6790_v1  ;;  %v7236_v30 = vld [vmem:[%s12372_s13 + $0xd4] sm:$0xf0]  ;;  %v7233_v2 = vld [vmem:[%s12372_s13 + $0xc4] sm:$0xf]  ;;  %v6773_v1 = vld [vmem:[%s12372_s13 + $0xc8] sm:$0xf] }
 0x73a   :  { %v1641_v32 = vpop.permute.xlu2 %1640  ;;  %v6766_v63 = vor.u32 %v7236_v30, %v6765_v57  ;;  %v7234_v26 = vld [vmem:[%s12372_s13 + $0xcc] sm:$0xf]  ;;  %v6741_v30 = vld [vmem:[%s12372_s13 + $0x90] sm:$0xf] }
 0x73b   :  { %v1662_v0 = vmul.f32 %v1641_v32, %v8400_v47  ;;  %v7240_v32 = vld [vmem:[%s12372_s13 + $0xfc] sm:$0xf] }
 0x73c   :  { %v6802_v61 = vor.u32 %v7240_v32, %v6799_v36  ;;  %2598 = vmatpush.bf16.msra.mxu2 %v6794_v55  ;;  %v6774_v32 = vor.u32 %v7237_v52, %v6773_v1  ;;  %v6775_v36 = vld [vmem:[%s12372_s13 + $0xe0] sm:$0xf0]  ;;  %v1558_v1 = vmul.f32 %v8598_v42, %v8400_v47 }
 0x73d   :  { %1608 = vrot.lane.b32.xlu2 %v8402_v5, %s7614_s12  ;;  %1680 = vrot.lane.b32.xlu0 %v1662_v0, %s7614_s12  ;;  %v6767_v0 = vld [vmem:[%s12372_s13 + $0xd8] sm:$0xf0] }
 0x73e   :  { %2656 = vmatpush.bf16.msra.mxu3 %v6802_v61  ;;  %v6770_v55 = vor.u32 %v7233_v2, %v6767_v0  ;;  %v6778_v61 = vor.u32 %v7234_v26, %v6775_v36  ;;  %2570 = vmatpush.bf16.msra.mxu0 %v6766_v63  ;;  %v7230_v2 = vld [vmem:[%s12372_s13 + $0xa4] sm:$0xf0]  ;;  %v7227_v0 = vld [vmem:[%s12372_s13 + $0x94] sm:$0xf]  ;;  %v6749_v26 = vld [vmem:[%s12372_s13 + $0x98] sm:$0xf] }
 0x73f   :  { %2628 = vmatpush.bf16.msrb.mxu1 %v6774_v32  ;;  %v6742_v63 = vor.u32 %v7230_v2, %v6741_v30  ;;  %v7231_v36 = vld [vmem:[%s12372_s13 + $0xac] sm:$0xf0]  ;;  %v8761_v32 = vpop.permute.xlu0 %1644  ;;  %v7228_v2 = vld [vmem:[%s12372_s13 + $0x9c] sm:$0xf] }
 0x740   :  { %2599 = vmatpush.bf16.msra.mxu2 %v6770_v55  ;;  %v6743_v55 = vld [vmem:[%s12372_s13 + $0xa8] sm:$0xf0]  ;;  %v6750_v30 = vor.u32 %v7231_v36, %v6749_v26  ;;  %v6754_v34 = vor.u32 %v7228_v2, %v6751_v45  ;;  %v7221_v26 = vld [vmem:[%s12372_s13 + $0x64] sm:$0xf]  ;;  %v6719_v45 = vld [vmem:[%s12372_s13 + $0x78] sm:$0xf0] }
 0x742   :  { %v8733_v57 = vpop.permute.xlu2 %1540  ;;  %2657 = vmatpush.bf16.msra.mxu3 %v6778_v61  ;;  %v6746_v61 = vor.u32 %v7227_v0, %v6743_v55  ;;  %2571 = vmatpush.bf16.msra.mxu0 %v6742_v63  ;;  %v6717_v0 = vld [vmem:[%s12372_s13 + $0x60] sm:$0xf]  ;;  %v7224_v55 = vld [vmem:[%s12372_s13 + $0x74] sm:$0xf0]  ;;  %v6722_v63 = vor.u32 %v7221_v26, %v6719_v45  ;;  %v7215_v26 = vld [vmem:[%s12372_s13 + $0x34] sm:$0xf] }
 0x743   :  { %12564 = vst [vmem:[#allocation52_spill] sm:$0xff] %v8733_v57  ;;  %v1560_v52 = vmul.f32 %v8733_v57, %v8428_v15  ;;  %2629 = vmatpush.bf16.msrb.mxu1 %v6750_v30  ;;  %v6727_v30 = vld [vmem:[%s12372_s13 + $0x80] sm:$0xf0] }
 0x744   :  { %2600 = vmatpush.bf16.msra.mxu2 %v6746_v61  ;;  %v7222_v61 = vld [vmem:[%s12372_s13 + $0x6c] sm:$0xf] }
 0x745   :  { %1580 = vrot.lane.b32.xlu1 %v1560_v52, %s7612_s25  ;;  %1576 = vrot.lane.b32.xlu2 %v1558_v1, %s7612_s25  ;;  %v6718_v52 = vor.u32 %v7224_v55, %v6717_v0  ;;  %v7225_v1 = vld [vmem:[%s12372_s13 + $0x7c] sm:$0xf0]  ;;  %v6730_v2 = vor.u32 %v7222_v61, %v6727_v30  ;;  %v6693_v55 = vld [vmem:[%s12372_s13 + $0x30] sm:$0xf] }
 0x746   :  { %1578 = vrot.lane.b32.xlu0 %v1559_v10, %s7612_s25  ;;  %v6725_v10 = vld [vmem:[%s12372_s13 + $0x68] sm:$0xf]  ;;  %2658 = vmatpush.bf16.msra.mxu3 %v6754_v34  ;;  %v7219_v30 = vld [vmem:[%s12372_s13 + $0x4c] sm:$0xf0] }
 0x747   :  { %v6726_v36 = vor.u32 %v7225_v1, %v6725_v10  ;;  %2572 = vmatpush.bf16.msra.mxu0 %v6718_v52  ;;  %v7218_v34 = vld [vmem:[%s12372_s13 + $0x44] sm:$0xf0]  ;;  %v6695_v52 = vld [vmem:[%s12372_s13 + $0x48] sm:$0xf0]  ;;  %v6701_v1 = vld [vmem:[%s12372_s13 + $0x38] sm:$0xf] }
 0x748   :  { %2601 = vmatpush.bf16.msra.mxu2 %v6722_v63  ;;  %v6694_v10 = vor.u32 %v7218_v34, %v6693_v55  ;;  %v6698_v61 = vor.u32 %v7215_v26, %v6695_v52  ;;  %v7216_v63 = vld [vmem:[%s12372_s13 + $0x3c] sm:$0xf]  ;;  %v8827_v34 = vpop.permute.xlu1 %1502  ;;  %v8829_v26 = vpop.permute.xlu0 %1542  ;;  %v7212_v52 = vld [vmem:[%s12372_s13 + $0x14] sm:$0xf0] }
 0x749   :  { %2630 = vmatpush.bf16.msrb.mxu1 %v6726_v36  ;;  %v6703_v36 = vld [vmem:[%s12372_s13 + $0x50] sm:$0xf0]  ;;  %12565 = vst [vmem:[#allocation53_spill] sm:$0xff] %v8829_v26 }
 0x74a   :  { %v8796_v0 = vpop.f32.mrf.mxu3  ;;  %2659 = vmatpush.bf16.msra.mxu3 %v6730_v2  ;;  %v6702_v2 = vor.u32 %v7219_v30, %v6701_v1  ;;  %v6706_v55 = vor.u32 %v7216_v63, %v6703_v36  ;;  %v7209_v1 = vld [vmem:[%s12372_s13 + $0x4] sm:$0xf]  ;;  %v6671_v63 = vld [vmem:[%s12372_s13 + $0x18] sm:$0xf0]  ;;  %v7213_v36 = vld [vmem:[%s12372_s13 + $0x1c] sm:$0xf0] }
 0x74b   :  { %v6659_v45 = vmul.f32 -1.442695, %v8796_v0  ;;  %2573 = vmatpush.bf16.msra.mxu0 %v6694_v10  ;;  %v6677_v10 = vld [vmem:[%s12372_s13 + $0x8] sm:$0xf]  ;;  %v6674_v9 = vor.u32 %v7209_v1, %v6671_v63 }
 0x74c   :  { %2602 = vmatpush.bf16.msra.mxu2 %v6698_v61  ;;  %v6678_v19 = vor.u32 %v7213_v36, %v6677_v10  ;;  %v7210_v61 = vld [vmem:[%s12372_s13 + $0xc] sm:$0xf]  ;;  %v1665_v36 = vmul.f32 %v8759_v46, %v8442_v49  ;;  %v1561_v46 = vmul.f32 %v8829_v26, %v8442_v49 }
 0x74d   :  { %7493 = vpow2.f32 %v6659_v45  ;;  %1614 = vrot.lane.b32.xlu1 %v8444_v4, %s7614_s12  ;;  %1610 = vrot.lane.b32.xlu2 %v8416_v40, %s7614_s12  ;;  %v6669_v45 = vld [vmem:[%s12372_s13] sm:$0xf] }
 0x74e   :  { %1612 = vrot.lane.b32.xlu0 %v8430_v24, %s7614_s12  ;;  %2631 = vmatpush.bf16.msrb.mxu1 %v6702_v2  ;;  %v6670_v30 = vor.u32 %v7212_v52, %v6669_v45  ;;  %v6679_v2 = vld [vmem:[%s12372_s13 + $0x20] sm:$0xf0] }
 0x74f   :  { %2660 = vmatpush.bf16.msra.mxu3 %v6706_v55  ;;  %v6682_v45 = vor.u32 %v7210_v61, %v6679_v2 }
 0x750   :  { %2574 = vmatpush.bf16.msra.mxu0 %v6670_v30  ;;  %2603 = vmatpush.bf16.msra.mxu2 %v6674_v9  ;;  %v1649_v30 = vpop.permute.xlu1 %1648 }
 0x752   :  { %v8857_v52 = vpop.f32.mrf.mxu3  ;;  %2632 = vmatpush.bf16.msrb.mxu1 %v6678_v19  ;;  %v1664_v19 = vmul.f32 %v8761_v32, %v8428_v15 }
 0x753   :  { %v7494_v5 = vpop.eup %7493  ;;  %v6660_v42 = vmul.f32 -1.442695, %v8857_v52  ;;  %2661 = vmatpush.bf16.msra.mxu3 %v6682_v45 }
 0x754   :  { %v2139_v55 = vadd.f32 1.0, %v7494_v5  ;;  %v1666_v5 = vmul.f32 %v1649_v30, %v8456_v51 }
 0x755   :  { %7495 = vpow2.f32 %v6660_v42  ;;  %1512 = vrot.lane.b32.xlu1 %v8458_v3, %s7612_s25  ;;  %1508 = vrot.lane.b32.xlu2 %v8430_v24, %s7612_s25 }
 0x756   :  { %7497 = vrcp.f32 %v2139_v55  ;;  %1510 = vrot.lane.b32.xlu0 %v8444_v4, %s7612_s25  ;;  %v8866_v1 = vpop.permute.xlu0 %1676  ;;  %vm2152_vm3 = vweird.f32 %v2139_v55  ;;  %v2156_v11 = vand.u32 2147483647, %v2139_v55 }
 0x758   :  { %vm2157_vm8 = vcmp.eq.f32.partialorder %v2156_v11, 8.507059e+37 }
 0x75a   :  { %v8868_v63 = vpop.f32.mrf.mxu3 }
 0x75b   :  { %v7496_v9 = vpop.eup %7495  ;;  %v6661_v42 = vmul.f32 -1.442695, %v8868_v63 }
 0x75c   :  { %v7498_v10 = vpop.eup %7497  ;;  %v2140_v61 = vadd.f32 1.0, %v7496_v9  ;;  %v8885_v9 = vpop.permute.xlu2 %1604 }
 0x75d   :  { %v2148_v2 = vmul.f32 %v7498_v10, %v2139_v55  ;;  %7499 = vpow2.f32 %v6661_v42  ;;  %1688 = vrot.lane.b32.xlu1 %v1666_v5, %s7614_s12  ;;  %1684 = vrot.lane.b32.xlu2 %v1664_v19, %s7614_s12  ;;  %vm2153_vm12 = vweird.f32 %v7498_v10 }
 0x75e   :  { %7501 = vrcp.f32 %v2140_v61  ;;  %1686 = vrot.lane.b32.xlu0 %v1665_v36, %s7614_s12  ;;  %v8879_v45 = vpop.permute.xlu0 %1544  ;;  %vm2154_vm9 = vmor %vm2152_vm3, %vm2153_vm12  ;;  %v2173_v38 = vand.u32 2147483648, %v2140_v61  ;;  %vm2167_vm11 = vweird.f32 %v2140_v61 }
 0x75f   :  { %12566 = vst [vmem:[#allocation54_spill] sm:$0xff] %v8879_v45  ;;  %v2149_v32 = vsub.f32 1.0, %v2148_v2  ;;  %v1562_v19 = vmul.f32 %v8879_v45, %v8456_v51 }
 0x761   :  { %v2150_v30 = vmul.f32 %v7498_v10, %v2149_v32  ;;  %v2158_v32 = vand.u32 2147483648, %v2139_v55  ;;  %v2174_v55 = vor.u32 1.1754944e-38, %v2173_v38 }
 0x762   :  { %v8881_v4 = vpop.f32.mrf.mxu3 }
 0x763   :  { %v7500_v24 = vpop.eup %7499  ;;  %v6662_v42 = vmul.f32 -1.442695, %v8881_v4  ;;  %v2151_v36 = vadd.f32 %v7498_v10, %v2150_v30  ;;  %v2171_v30 = vand.u32 2147483647, %v2140_v61  ;;  %v2159_v21 = vor.u32 1.1754944e-38, %v2158_v32 }
 0x764   :  { %v7502_v5 = vpop.eup %7501  ;;  %v8888_v57 = vadd.f32 1.0, %v7500_v24 }
 0x765   :  { %v2163_v2 = vmul.f32 %v7502_v5, %v2140_v61  ;;  %7503 = vpow2.f32 %v6662_v42  ;;  %1582 = vrot.lane.b32.xlu2 %v1561_v46, %s7612_s25  ;;  %v2155_v40 = vsel %vm2154_vm9, %v7498_v10, %v2151_v36  ;;  %vm2168_vm13 = vweird.f32 %v7502_v5  ;;  %v1573_v36 = vpop.permute.xlu2 %1572 }
 0x766   :  { %7505 = vrcp.f32 %v8888_v57  ;;  %1584 = vrot.lane.b32.xlu0 %v1562_v19, %s7612_s25  ;;  %v8895_v26 = vpop.permute.xlu0 %1678  ;;  %v2160_v41 = vsel %vm2157_vm8, %v2159_v21, %v2155_v40  ;;  %vm2169_vm0 = vmor %vm2167_vm11, %vm2168_vm13  ;;  %vm2172_vm1 = vcmp.eq.f32.partialorder %v2171_v30, 8.507059e+37  ;;  %vm2182_vm12 = vweird.f32 %v8888_v57 }
 0x767   :  { %v2164_v24 = vsub.f32 1.0, %v2163_v2  ;;  %v2267_v38 = vmul.f32 %v2160_v41, %v8796_v0 }
 0x769   :  { %v2165_v45 = vmul.f32 %v7502_v5, %v2164_v24  ;;  %v1524_v24 = vmul.f32 %v8677_v17, %v8372_v43 }
 0x76a   :  { %v8897_v42 = vpop.f32.mrf.mxu3 }
 0x76b   :  { %v7504_v46 = vpop.eup %7503  ;;  %v2166_v29 = vadd.f32 %v7502_v5, %v2165_v45  ;;  %v6663_v19 = vmul.f32 -1.442695, %v8897_v42 }
 0x76c   :  { %v8900_v60 = vpop.eup %7505  ;;  %v8902_v2 = vadd.f32 1.0, %v7504_v46 }
 0x76d   :  { %v2170_v10 = vsel %vm2169_vm0, %v7502_v5, %v2166_v29  ;;  %v2178_v32 = vmul.f32 %v8900_v60, %v8888_v57  ;;  %7507 = vpow2.f32 %v6663_v19  ;;  %1616 = vrot.lane.b32.xlu2 %v8458_v3, %s7614_s12  ;;  %vm2183_vm2 = vweird.f32 %v8900_v60 }
 0x76e   :  { %v2175_v11 = vsel %vm2172_vm1, %v2174_v55, %v2170_v10  ;;  %7509 = vrcp.f32 %v8902_v2  ;;  %1618 = vrot.lane.b32.xlu0 %v8473_v35, %s7614_s12  ;;  %v8911_v40 = vpop.permute.xlu0 %1546  ;;  %vm8946_vm3 = vmor %vm2182_vm12, %vm2183_vm2  ;;  %vm2197_vm8 = vweird.f32 %v8902_v2 }
 0x76f   :  { %12567 = vst [vmem:[#allocation55_spill] sm:$0xff] %v8911_v40  ;;  %v2268_v29 = vmul.f32 %v2175_v11, %v8857_v52  ;;  %v2179_v21 = vsub.f32 1.0, %v2178_v32  ;;  %v1563_v61 = vmul.f32 %v8911_v40, %v8471_v16  ;;  %v1596_v52 = vsub.f32 %v1524_v24, %v1573_v36  ;;  %v8940_v36 = vpop.permute.xlu2 %1606 }
 0x770   :  { %v2188_v32 = vand.u32 2147483648, %v8888_v57  ;;  %v2186_v11 = vand.u32 2147483647, %v8888_v57  ;;  %v1629_v57 = vmul.f32 %v8940_v36, %v8386_v54 }
 0x771   :  { %v8917_v45 = vpack.c.bf16 %v2268_v29, %v2267_v38  ;;  %v2180_v5 = vmul.f32 %v8900_v60, %v2179_v21  ;;  %1586 = vrot.lane.b32.xlu1 %v1563_v61, %s7612_s25  ;;  %v1628_v29 = vmul.f32 %v8885_v9, %v8372_v43  ;;  %v2203_v61 = vand.u32 2147483648, %v8902_v2 }
 0x772   :  { %v8923_v30 = vpop.f32.mrf.mxu3  ;;  %vm2187_vm13 = vcmp.eq.f32.partialorder %v2186_v11, 8.507059e+37 }
 0x773   :  { %v7508_v46 = vpop.eup %7507  ;;  %v6664_v41 = vmul.f32 -1.442695, %v8923_v30  ;;  %2575 = vmatmul.bf16.vlgmr.msra.gmra.mxu0 %v8917_v45  ;;  %2604 = vmatmul.bf16.vlgmr.msra.gmra.mxu2 %v8917_v45  ;;  %v2181_v55 = vadd.f32 %v8900_v60, %v2180_v5  ;;  %v1700_v17 = vsub.f32 %v1628_v29, %v8866_v1 }
 0x774   :  { %v7510_v0 = vpop.eup %7509  ;;  %v8928_v19 = vadd.f32 1.0, %v7508_v46  ;;  %2633 = vmatmul.bf16.vlgmr.msrb.gmra.mxu1 %v8917_v45  ;;  %2662 = vmatmul.bf16.vlgmr.msra.gmra.mxu3 %v8917_v45  ;;  %v2201_v46 = vand.u32 2147483647, %v8902_v2 }
 0x775   :  { %v2193_v10 = vmul.f32 %v7510_v0, %v8902_v2  ;;  %7511 = vpow2.f32 %v6664_v41  ;;  %1514 = vrot.lane.b32.xlu2 %v8473_v35, %s7612_s25  ;;  %v2185_v5 = vsel %vm8946_vm3, %v8900_v60, %v2181_v55  ;;  %vm2198_vm9 = vweird.f32 %v7510_v0 }
 0x776   :  { %7513 = vrcp.f32 %v8928_v19  ;;  %1772 = vrot.lane.b32.xlu0 %v1596_v52, %s7608_s2  ;;  %v2189_v41 = vor.u32 1.1754944e-38, %v2188_v32  ;;  %vm2199_vm11 = vmor %vm2197_vm8, %vm2198_vm9  ;;  %v2204_v60 = vor.u32 1.1754944e-38, %v2203_v61  ;;  %v1701_v55 = vsub.f32 %v1629_v57, %v8895_v26 }
 0x777   :  { %v2194_v38 = vsub.f32 1.0, %v2193_v10  ;;  %vm2202_vm0 = vcmp.eq.f32.partialorder %v2201_v46, 8.507059e+37  ;;  %v2218_v26 = vand.u32 2147483648, %v8928_v19  ;;  %vm2212_vm2 = vweird.f32 %v8928_v19 }
 0x778   :  { %v2190_v21 = vsel %vm2187_vm13, %v2189_v41, %v2185_v5  ;;  %v8975_v41 = vpop.permute.xlu1 %1504 }
 0x779   :  { %v2195_v24 = vmul.f32 %v7510_v0, %v2194_v38  ;;  %1716 = vrot.lane.b32.xlu1 %v1596_v52, %s7611_s18  ;;  %v2269_v1 = vmul.f32 %v2190_v21, %v8868_v63  ;;  %v2219_v57 = vor.u32 1.1754944e-38, %v2218_v26  ;;  %12570 = vst [vmem:[#allocation56_spill] sm:$0xff] %v8975_v41 }
 0x77b   :  { %v7512_v10 = vpop.eup %7511  ;;  %v2196_v35 = vadd.f32 %v7510_v0, %v2195_v24 }
 0x77c   :  { %v7514_v40 = vpop.eup %7513  ;;  %v2144_v38 = vadd.f32 1.0, %v7512_v10 }
 0x77d   :  { %v2200_v3 = vsel %vm2199_vm11, %v7510_v0, %v2196_v35  ;;  %v2208_v52 = vmul.f32 %v7514_v40, %v8928_v19  ;;  %1748 = vrot.lane.b32.xlu2 %v1700_v17, %s7611_s18  ;;  %vm2213_vm1 = vweird.f32 %v7514_v40 }
 0x77e   :  { %v2205_v32 = vsel %vm2202_vm0, %v2204_v60, %v2200_v3  ;;  %7515 = vrcp.f32 %v2144_v38  ;;  %1750 = vrot.lane.b32.xlu0 %v1701_v55, %s7611_s18  ;;  %vm2214_vm12 = vmor %vm2212_vm2, %vm2213_vm1  ;;  %v2233_v0 = vand.u32 2147483648, %v2144_v38  ;;  %v2231_v46 = vand.u32 2147483647, %v2144_v38 }
 0x77f   :  { %v2270_v2 = vmul.f32 %v2205_v32, %v8881_v4  ;;  %v2209_v11 = vsub.f32 1.0, %v2208_v52  ;;  %v2216_v4 = vand.u32 2147483647, %v8928_v19  ;;  %vm2227_vm13 = vweird.f32 %v2144_v38 }
 0x780   :  { %v2234_v60 = vor.u32 1.1754944e-38, %v2233_v0  ;;  %vm2232_vm11 = vcmp.eq.f32.partialorder %v2231_v46, 8.507059e+37  ;;  %v1525_v19 = vmul.f32 %v8827_v34, %v8386_v54  ;;  %v7253_v0 = vld [vmem:[%s12372_s13 + $0x164] sm:$0xf] }
 0x781   :  { %v8966_v29 = vpack.c.bf16 %v2270_v2, %v2269_v1  ;;  %v2210_v61 = vmul.f32 %v7514_v40, %v2209_v11  ;;  %vm2217_vm9 = vcmp.eq.f32.partialorder %v2216_v4, 8.507059e+37  ;;  %v6853_v4 = vld [vmem:[%s12372_s13 + $0x160] sm:$0xf] }
 0x783   :  { %2580 = vmatmul.bf16.gmra.mxu0 %v8966_v29  ;;  %2609 = vmatmul.bf16.gmra.mxu2 %v8966_v29  ;;  %v2211_v3 = vadd.f32 %v7514_v40, %v2210_v61  ;;  %v1526_v61 = vmul.f32 %v8975_v41, %v8400_v47 }
 0x784   :  { %v7516_v35 = vpop.eup %7515  ;;  %2638 = vmatmul.bf16.gmra.mxu1 %v8966_v29  ;;  %2667 = vmatmul.bf16.gmra.mxu3 %v8966_v29 }
 0x785   :  { %v2223_v17 = vmul.f32 %v7516_v35, %v2144_v38  ;;  %v2215_v5 = vsel %vm2214_vm12, %v7514_v40, %v2211_v3  ;;  %vm2228_vm3 = vweird.f32 %v7516_v35  ;;  %v1651_v38 = vpop.permute.xlu1 %1650 }
 0x786   :  { %v2220_v21 = vsel %vm2217_vm9, %v2219_v57, %v2215_v5  ;;  %vm2229_vm8 = vmor %vm2227_vm13, %vm2228_vm3 }
 0x787   :  { %v2224_v63 = vsub.f32 1.0, %v2223_v17  ;;  %v2271_v40 = vmul.f32 %v2220_v21, %v8897_v42  ;;  %v6829_v21 = vld [vmem:[%s12372_s13 + $0x130] sm:$0xf]  ;;  %vm12576_vm9 = vmand %vm8052_vm5, %vm8057_vm7 }
 0x789   :  { %v2225_v24 = vmul.f32 %v7516_v35, %v2224_v63  ;;  %v7256_v63 = vld [vmem:[%s12372_s13 + $0x174] sm:$0xf0] }
 0x78a   :  { %v6854_v5 = vor.u32 %v7256_v63, %v6853_v4 }
 0x78b   :  { %v2226_v10 = vadd.f32 %v7516_v35, %v2225_v24  ;;  %v6855_v24 = vld [vmem:[%s12372_s13 + $0x178] sm:$0xf0] }
 0x78c   :  { %v6858_v46 = vor.u32 %v7253_v0, %v6855_v24  ;;  %2683 = vmatpush.bf16.msrb.mxu0 %v6854_v5  ;;  %v6807_v0 = vld [vmem:[%s12372_s13 + $0x118] sm:$0xf0] }
 0x78d   :  { %v2230_v55 = vsel %vm2229_vm8, %v7516_v35, %v2226_v10  ;;  %v8997_v17 = vpop.permute.xlu1 %1506 }
 0x78e   :  { %v2235_v52 = vsel %vm2232_vm11, %v2234_v60, %v2230_v55  ;;  %12571 = vst [vmem:[#allocation57_spill] sm:$0xff] %v8997_v17  ;;  %2712 = vmatpush.bf16.msrb.mxu2 %v6858_v46  ;;  %v7250_v60 = vld [vmem:[%s12372_s13 + $0x144] sm:$0xf0]  ;;  %v7247_v55 = vld [vmem:[%s12372_s13 + $0x134] sm:$0xf]  ;;  %v1527_v24 = vmul.f32 %v8997_v17, %v8414_v44 }
 0x78f   :  { %v2272_v32 = vmul.f32 %v2235_v52, %v8923_v30  ;;  %v1575_v1 = vpop.permute.xlu2 %1574  ;;  %v1667_v30 = vmul.f32 %v1651_v38, %v8471_v16  ;;  %v6781_v46 = vld [vmem:[%s12372_s13 + $0xd0] sm:$0xf] }
 0x790   :  { %v1597_v2 = vsub.f32 %v1525_v19, %v1575_v1 }
 0x791   :  { %v8981_v11 = vpack.c.bf16 %v2272_v32, %v2271_v40  ;;  %v6830_v40 = vor.u32 %v7250_v60, %v6829_v21  ;;  %v6831_v32 = vld [vmem:[%s12372_s13 + $0x148] sm:$0xf0] }
 0x792   :  { %1718 = vrot.lane.b32.xlu2 %v1597_v2, %s7611_s18  ;;  %1774 = vrot.lane.b32.xlu1 %v1597_v2, %s7608_s2  ;;  %v6834_v1 = vor.u32 %v7247_v55, %v6831_v32 }
 0x793   :  { %2585 = vmatmul.bf16.gmra.mxu0 %v8981_v11  ;;  %2614 = vmatmul.bf16.gmra.mxu2 %v8981_v11 }
 0x794   :  { %2643 = vmatmul.bf16.gmra.mxu1 %v8981_v11  ;;  %2672 = vmatmul.bf16.gmra.mxu3 %v8981_v11 }
 0x795   :  { %v1683_v19 = vpop.permute.xlu1 %1682  ;;  %2684 = vmatpush.bf16.msrb.mxu0 %v6830_v40  ;;  %2713 = vmatpush.bf16.msrb.mxu2 %v6834_v1  ;;  %v6783_v40 = vld [vmem:[%s12372_s13 + $0xe8] sm:$0xf0] }
 0x797   :  { %v8989_v42 = vpop.permute.xlu2 %1608 }
 0x798   :  { %v1630_v57 = vmul.f32 %v8989_v42, %v8400_v47 }
 0x79a   :  { %1690 = vrot.lane.b32.xlu2 %v1667_v30, %s7614_s12  ;;  %v6805_v30 = vld [vmem:[%s12372_s13 + $0x100] sm:$0xf] }
 0x79f   :  { %v1577_v35 = vpop.permute.xlu2 %1576 }
 0x7a0   :  { %v1598_v3 = vsub.f32 %v1526_v61, %v1577_v35  ;;  %v7244_v61 = vld [vmem:[%s12372_s13 + $0x114] sm:$0xf0]  ;;  %v7241_v35 = vld [vmem:[%s12372_s13 + $0x104] sm:$0xf] }
 0x7a1   :  { %v6806_v63 = vor.u32 %v7244_v61, %v6805_v30  ;;  %v6810_v5 = vor.u32 %v7241_v35, %v6807_v0 }
 0x7a2   :  { %1776 = vrot.lane.b32.xlu2 %v1598_v3, %s7608_s2  ;;  %1720 = vrot.lane.b32.xlu0 %v1598_v3, %s7611_s18 }
 0x7a3   :  { %2685 = vmatpush.bf16.msrb.mxu0 %v6806_v63  ;;  %2714 = vmatpush.bf16.msrb.mxu2 %v6810_v5  ;;  %v7229_v5 = vld [vmem:[%s12372_s13 + $0xa4] sm:$0xf] }
 0x7a7   :  { %v8999_v26 = vpop.permute.xlu2 %1610 }
 0x7a8   :  { %v1631_v3 = vmul.f32 %v8999_v26, %v8414_v44 }
 0x7aa   :  { %v1703_v55 = vsub.f32 %v1631_v3, %v1683_v19  ;;  %v6757_v3 = vld [vmem:[%s12372_s13 + $0xa0] sm:$0xf] }
 0x7af   :  { %v1681_v10 = vpop.permute.xlu0 %1680  ;;  %v9027_v2 = vpop.permute.xlu2 %1508 }
 0x7b0   :  { %v1702_v52 = vsub.f32 %v1630_v57, %v1681_v10  ;;  %12572 = vst [vmem:[#allocation58_spill] sm:$0xff] %v9027_v2  ;;  %v7238_v57 = vld [vmem:[%s12372_s13 + $0xe4] sm:$0xf0]  ;;  %v7235_v10 = vld [vmem:[%s12372_s13 + $0xd4] sm:$0xf] }
 0x7b1   :  { %v6786_v1 = vor.u32 %v7235_v10, %v6783_v40 }
 0x7b2   :  { %1752 = vrot.lane.b32.xlu1 %v1702_v52, %s7611_s18  ;;  %v6782_v52 = vor.u32 %v7238_v57, %v6781_v46  ;;  %v1528_v57 = vmul.f32 %v9027_v2, %v8428_v15 }
 0x7b3   :  { %v9030_v38 = vpop.f32.mrf.mxu3  ;;  %2715 = vmatpush.bf16.msrb.mxu2 %v6786_v1 }
 0x7b4   :  { %v6665_v4 = vmul.f32 -1.442695, %v9030_v38  ;;  %2686 = vmatpush.bf16.msrb.mxu0 %v6782_v52  ;;  %v7223_v52 = vld [vmem:[%s12372_s13 + $0x74] sm:$0xf] }
 0x7b6   :  { %7517 = vpow2.f32 %v6665_v4  ;;  %v7232_v4 = vld [vmem:[%s12372_s13 + $0xb4] sm:$0xf0] }
 0x7b7   :  { %v1581_v21 = vpop.permute.xlu1 %1580  ;;  %v1685_v35 = vpop.permute.xlu2 %1684  ;;  %v6758_v0 = vor.u32 %v7232_v4, %v6757_v3 }
 0x7b8   :  { %v1579_v60 = vpop.permute.xlu0 %1578  ;;  %v1600_v40 = vsub.f32 %v1528_v57, %v1581_v21  ;;  %v6709_v21 = vld [vmem:[%s12372_s13 + $0x40] sm:$0xf] }
 0x7b9   :  { %v1599_v32 = vsub.f32 %v1527_v24, %v1579_v60  ;;  %v6759_v24 = vld [vmem:[%s12372_s13 + $0xb8] sm:$0xf0]  ;;  %2687 = vmatpush.bf16.msrb.mxu0 %v6758_v0  ;;  %v6733_v60 = vld [vmem:[%s12372_s13 + $0x70] sm:$0xf] }
 0x7ba   :  { %1754 = vrot.lane.b32.xlu1 %v1703_v55, %s7611_s18  ;;  %v6762_v46 = vor.u32 %v7229_v5, %v6759_v24  ;;  %v7226_v55 = vld [vmem:[%s12372_s13 + $0x84] sm:$0xf0]  ;;  %v7220_v5 = vld [vmem:[%s12372_s13 + $0x54] sm:$0xf0]  ;;  %v7217_v24 = vld [vmem:[%s12372_s13 + $0x44] sm:$0xf] }
 0x7bb   :  { %1778 = vrot.lane.b32.xlu2 %v1599_v32, %s7608_s2  ;;  %1722 = vrot.lane.b32.xlu0 %v1599_v32, %s7611_s18  ;;  %v9064_v30 = vpop.f32.mrf.mxu3  ;;  %v6734_v1 = vor.u32 %v7226_v55, %v6733_v60  ;;  %v6711_v60 = vld [vmem:[%s12372_s13 + $0x58] sm:$0xf0] }
 0x7bc   :  { %v7518_v61 = vpop.eup %7517  ;;  %v6666_v19 = vmul.f32 -1.442695, %v9064_v30  ;;  %2716 = vmatpush.bf16.msrb.mxu2 %v6762_v46 }
 0x7bd   :  { %v9073_v63 = vadd.f32 1.0, %v7518_v61  ;;  %v6735_v61 = vld [vmem:[%s12372_s13 + $0x88] sm:$0xf0]  ;;  %2688 = vmatpush.bf16.msrb.mxu0 %v6734_v1 }
 0x7be   :  { %7519 = vpow2.f32 %v6666_v19  ;;  %v6738_v3 = vor.u32 %v7223_v52, %v6735_v61 }
 0x7bf   :  { %7521 = vrcp.f32 %v9073_v63  ;;  %v9100_v19 = vpop.permute.xlu1 %1614  ;;  %v1583_v52 = vpop.permute.xlu2 %1582  ;;  %vm2242_vm3 = vweird.f32 %v9073_v63 }
 0x7c0   :  { %v9084_v10 = vpop.permute.xlu0 %1612  ;;  %2717 = vmatpush.bf16.msrb.mxu2 %v6738_v3  ;;  %v6685_v3 = vld [vmem:[%s12372_s13 + $0x10] sm:$0xf] }
 0x7c1   :  { %v1632_v32 = vmul.f32 %v9084_v10, %v8428_v15 }
 0x7c3   :  { %1780 = vrot.lane.b32.xlu2 %v1600_v40, %s7608_s2  ;;  %1724 = vrot.lane.b32.xlu0 %v1600_v40, %s7611_s18  ;;  %v1704_v4 = vsub.f32 %v1632_v32, %v1685_v35  ;;  %v6710_v35 = vor.u32 %v7220_v5, %v6709_v21  ;;  %v6714_v40 = vor.u32 %v7217_v24, %v6711_v60  ;;  %v229_v32 = vadd.s32 1, %v8291_v50  ;;  %v7211_v24 = vld [vmem:[%s12372_s13 + $0x14] sm:$0xf] }
 0x7c4   :  { %v7520_v0 = vpop.eup %7519 }
 0x7c5   :  { %v9113_v46 = vpop.eup %7521  ;;  %v9115_v57 = vadd.f32 1.0, %v7520_v0  ;;  %1756 = vrot.lane.b32.xlu1 %v1704_v4, %s7611_s18  ;;  %2689 = vmatpush.bf16.msrb.mxu0 %v6710_v35  ;;  %v7214_v4 = vld [vmem:[%s12372_s13 + $0x24] sm:$0xf0]  ;;  %v227_v0 = vmul.u32 8, %v8291_v50  ;;  %v6687_v35 = vld [vmem:[%s12372_s13 + $0x28] sm:$0xf0] }
 0x7c6   :  { %v2238_v55 = vmul.f32 %v9113_v46, %v9073_v63  ;;  %2718 = vmatpush.bf16.msrb.mxu2 %v6714_v40  ;;  %v6686_v5 = vor.u32 %v7214_v4, %v6685_v3  ;;  %v230_v50 = vmul.u32 8, %v229_v32  ;;  %v9151_v3 = vld [vmem:[%s12373_s7 + $0x50] sm:$0xff]  ;;  %vm2243_vm12 = vweird.f32 %v9113_v46 }
 0x7c7   :  { %7523 = vrcp.f32 %v9115_v57  ;;  %vm9144_vm0 = vcmp.ge.s32.totalorder %v7900_v31, %v227_v0  ;;  %3084 = vmatpush.msrb.mxu3 %v9151_v3  ;;  %v7615_v0 = vmov 1.0   ;;  %vm2244_vm13 = vmor %vm2242_vm3, %vm2243_vm12  ;;  %v2261_v2 = vand.u32 2147483647, %v9115_v57 }
 0x7c8   :  { %v2239_v1 = vsub.f32 1.0, %v2238_v55  ;;  %v9125_v61 = vpop.permute.xlu0 %1510  ;;  %v6690_v55 = vor.u32 %v7211_v24, %v6687_v35  ;;  %vm231_vm1 = vcmp.lt.s32.totalorder %v7900_v31, %v230_v50  ;;  %v9167_v50 = vld [vmem:[%s12373_s7 + $0x28] sm:$0xff]  ;;  %v1633_v24 = vmul.f32 %v9100_v19, %v8442_v49 }
 0x7c9   :  { %12573 = vst [vmem:[#allocation59_spill] sm:$0xff] %v9125_v61  ;;  %v1529_v21 = vmul.f32 %v9125_v61, %v8442_v49  ;;  %v9154_v61 = vpop.permute.xlu1 %1512  ;;  %2690 = vmatpush.bf16.msrb.mxu0 %v6686_v5  ;;  %vm232_vm2 = vmand %vm9144_vm0, %vm231_vm1  ;;  %v2248_v5 = vand.u32 2147483648, %v9073_v63  ;;  %3085 = vmatpush.msrb.mxu3 %v9167_v50  ;;  %v2246_v35 = vand.u32 2147483647, %v9073_v63  ;;  %vm2257_vm5 = vweird.f32 %v9115_v57 }
 0x7ca   :  { %v2240_v60 = vmul.f32 %v9113_v46, %v2239_v1  ;;  %2719 = vmatpush.bf16.msrb.mxu2 %v6690_v55  ;;  %6859 = vmatpush.msk.msra.mxu1 %vm232_vm2, %v7615_v0  ;;  %v9180_v55 = vpop.permute.xlu2 %1616  ;;  %vm2262_vm0 = vcmp.eq.f32.partialorder %v2261_v2, 8.507059e+37  ;;  %vm12577_vm1 = vcmask 64512   ;;  %vm3046_vm12 = vcmask 195584  }
 0x7cb   :  { %v1601_v4 = vsub.f32 %v1529_v21, %v1583_v52  ;;  %v9172_v21 = vld [vmem:[%s12373_s7] sm:$0xff]  ;;  %v2249_v17 = vor.u32 1.1754944e-38, %v2248_v5  ;;  %vm2247_vm11 = vcmp.eq.f32.partialorder %v2246_v35, 8.507059e+37  ;;  %vm12578_vm2 = vmmov %vm12577_vm1 }
 0x7cc   :  { %v2241_v32 = vadd.f32 %v9113_v46, %v2240_v60  ;;  %6860 = vmatpush.msk.msra.mxu1 %vm12576_vm9, %v7615_v0  ;;  %3086 = vmatpush.msrb.mxu3 %v9172_v21  ;;  %vm12579_vm3 = vmmov %vm12577_vm1 }
 0x7cd   :  { %v7524_v1 = vpop.eup %7523  ;;  %1782 = vrot.lane.b32.xlu2 %v1601_v4, %s7608_s2  ;;  %1726 = vrot.lane.b32.xlu0 %v1601_v4, %s7611_s18  ;;  %v2263_v4 = vand.u32 2147483648, %v9115_v57  ;;  %vm12580_vm9 = vmmov %vm12577_vm1 }
 0x7ce   :  { %v2253_v52 = vmul.f32 %v7524_v1, %v9115_v57  ;;  %v2245_v63 = vsel %vm2244_vm13, %v9113_v46, %v2241_v32  ;;  %vm2258_vm8 = vweird.f32 %v7524_v1  ;;  %v1530_v46 = vmul.f32 %v9154_v61, %v8456_v51  ;;  %vm12581_vm13 = vmmov %vm12577_vm1 }
 0x7cf   :  { %v2250_v37 = vsel %vm2247_vm11, %v2249_v17, %v2245_v63  ;;  %vm2259_vm7 = vmor %vm2257_vm5, %vm2258_vm8  ;;  %v2264_v0 = vor.u32 1.1754944e-38, %v2263_v4  ;;  %v1634_v32 = vmul.f32 %v9180_v55, %v8456_v51 }
 0x7d0   :  { %v2254_v60 = vsub.f32 1.0, %v2253_v52  ;;  %v1687_v40 = vpop.permute.xlu0 %1686  ;;  %v2273_v5 = vmul.f32 %v2250_v37, %v9030_v38  ;;  %vm12582_vm8 = vmmov %vm12577_vm1 }
 0x7d1   :  { %v1705_v31 = vsub.f32 %v1633_v24, %v1687_v40  ;;  %v1689_v24 = vpop.permute.xlu1 %1688  ;;  %vm12583_vm11 = vmmov %vm12577_vm1 }
 0x7d2   :  { %v2255_v52 = vmul.f32 %v7524_v1, %v2254_v60  ;;  %v1706_v60 = vsub.f32 %v1634_v32, %v1689_v24  ;;  %v9201_v63 = vpop.permute.xlu2 %1514  ;;  %vm12584_vm5 = vmmov %vm12577_vm1 }
 0x7d3   :  { %1758 = vrot.lane.b32.xlu1 %v1705_v31, %s7611_s18 }
 0x7d4   :  { %v2256_v22 = vadd.f32 %v7524_v1, %v2255_v52 }
 0x7d6   :  { %v2260_v41 = vsel %vm2259_vm7, %v7524_v1, %v2256_v22  ;;  %vm12585_vm7 = vmmov %vm12577_vm1 }
 0x7d7   :  { %v2265_v40 = vsel %vm2262_vm0, %v2264_v0, %v2260_v41  ;;  %v1531_v41 = vmul.f32 %v9201_v63, %v8471_v16  ;;  %v2805_v0 = vsel %vm12578_vm2, %v8378_v53, %v8491_v25  ;;  %v2807_v25 = vsel %vm12580_vm9, %v8406_v56, %v8504_v58  ;;  %v9243_v56 = vld [vmem:[%s12373_s7 + $0x58] sm:$0xff]  ;;  %v9250_v58 = vld [vmem:[%s12373_s7 + $0x30] sm:$0xff]  ;;  %vm12586_vm0 = vmmov %vm12577_vm1 }
 0x7d8   :  { %v2274_v31 = vmul.f32 %v2265_v40, %v9064_v30  ;;  %v1585_v35 = vpop.permute.xlu0 %1584  ;;  %3125 = vmatpush.msra.mxu0 %v9243_v56  ;;  %vm12589_vm2 = vmmov %vm12586_vm0 }
 0x7d9   :  { %v1602_v57 = vsub.f32 %v1530_v46, %v1585_v35  ;;  %vm12592_vm9 = vmmov %vm12586_vm0 }
 0x7da   :  { %v2326_v17 = vpack.c.bf16 %v2274_v31, %v2273_v5  ;;  %v1749_v30 = vpop.permute.xlu2 %1748  ;;  %v2806_v5 = vsel %vm12579_vm3, %v8392_v7, %v8493_v59  ;;  %v2808_v59 = vsel %vm12582_vm8, %v8420_v28, %v8502_v8  ;;  %3126 = vmatpush.msra.mxu0 %v9250_v58  ;;  %v9256_v28 = vld [vmem:[%s12373_s7 + $0x8] sm:$0xff]  ;;  %v2809_v8 = vsel %vm12583_vm11, %v8434_v6, %v8514_v33  ;;  %vm12590_vm3 = vmmov %vm12586_vm0 }
 0x7db   :  { %1760 = vrot.lane.b32.xlu1 %v1706_v60, %s7611_s18  ;;  %1784 = vrot.lane.b32.xlu2 %v1602_v57, %s7608_s2  ;;  %vm12595_vm8 = vmmov %vm12586_vm0 }
 0x7dc   :  { %1728 = vrot.lane.b32.xlu0 %v1602_v57, %s7611_s18  ;;  %2590 = vmatmul.bf16.gmra.mxu0 %v2326_v17  ;;  %v2811_v57 = vsel %vm12585_vm7, %v8464_v14, %v8571_v48  ;;  %vm12601_vm11 = vmmov %vm12586_vm0 }
 0x7dd   :  { %2619 = vmatmul.bf16.gmra.mxu2 %v2326_v17  ;;  %2648 = vmatmul.bf16.gmra.mxu1 %v2326_v17  ;;  %vm12608_vm7 = vmmov %vm12586_vm0 }
 0x7de   :  { %2677 = vmatmul.bf16.gmra.mxu3 %v2326_v17  ;;  %3127 = vmatpush.msra.mxu0 %v9256_v28 }
 0x7e0   :  { %v9208_v2 = vpop.permute.xlu0 %1618 }
 0x7e1   :  { %v1635_v46 = vmul.f32 %v9208_v2, %v8471_v16 }
 0x7e3   :  { %v1587_v38 = vpop.permute.xlu1 %1586 }
 0x7e4   :  { %v1603_v1 = vsub.f32 %v1531_v41, %v1587_v38 }
 0x7e6   :  { %1786 = vrot.lane.b32.xlu2 %v1603_v1, %s7608_s2  ;;  %1730 = vrot.lane.b32.xlu0 %v1603_v1, %s7611_s18 }
 0x7e8   :  { %v1773_v52 = vpop.permute.xlu0 %1772 }
 0x7eb   :  { %v1717_v4 = vpop.permute.xlu1 %1716 }
 0x7ec   :  { %v1796_v22 = vsel %vm12577_vm1, %v1717_v4, %v1749_v30  ;;  %v1719_v37 = vpop.permute.xlu2 %1718  ;;  %2691 = vmatmul.bf16.vlgmr.msrb.gmra.mxu0 %v8917_v45  ;;  %vm12587_vm1 = vmmov %vm12586_vm0 }
 0x7ed   :  { %v1804_v24 = vsel %vm603_vm10, %v1796_v22, %v1773_v52  ;;  %2720 = vmatmul.bf16.vlgmr.msrb.gmra.mxu2 %v8917_v45  ;;  %6861 = vmatmul.msk.f32.vlgmr.msra.gmra.mxu1 %vm603_vm10, %v2805_v0 }
 0x7ee   :  { %v1812_v40 = vmul.f32 0.4082483, %v1804_v24 }
 0x7f0   :  { %6869 = vmatmul.msk.f32.vlgmr.msrb.gmra.mxu3 %vm3046_vm12, %v1812_v40  ;;  %v1751_v53 = vpop.permute.xlu0 %1750 }
 0x7f1   :  { %v1797_v45 = vsel %vm12581_vm13, %v1719_v37, %v1751_v53  ;;  %vm12594_vm13 = vmmov %vm12586_vm0 }
 0x7f4   :  { %v1691_v32 = vpop.permute.xlu2 %1690 }
 0x7f5   :  { %v1707_v31 = vsub.f32 %v1635_v46, %v1691_v32  ;;  %6862 = vmatmul.msk.f32.gmra.mxu1 %vm603_vm10, %v2806_v5 }
 0x7f7   :  { %1762 = vrot.lane.b32.xlu1 %v1707_v31, %s7611_s18 }
 0x7fc   :  { %2696 = vmatmul.bf16.gmra.mxu0 %v8966_v29  ;;  %v1777_v41 = vpop.permute.xlu2 %1776 }
 0x7fd   :  { %2725 = vmatmul.bf16.gmra.mxu2 %v8966_v29  ;;  %6863 = vmatmul.msk.f32.gmra.mxu1 %vm603_vm10, %v2807_v25  ;;  %v2810_v29 = vsel %vm12584_vm5, %v8448_v13, %v8516_v62  ;;  %v9278_v62 = vpop.f32.mrf.mxu2  ;;  %vm12605_vm5 = vmmov %vm12586_vm0 }
 0x7fe   :  { %12588 = vst [vmem:[#allocation60_spill] sm:$0xff] %v9278_v62 }
 0x804   :  { %v1775_v35 = vpop.permute.xlu1 %1774 }
 0x805   :  { %v1805_v7 = vsel %vm603_vm10, %v1797_v45, %v1775_v35  ;;  %6864 = vmatmul.msk.f32.gmra.mxu1 %vm603_vm10, %v2808_v59 }
 0x806   :  { %v1813_v60 = vmul.f32 0.4082483, %v1805_v7 }
 0x808   :  { %6870 = vmatmul.msk.f32.gmra.mxu3 %vm3046_vm12, %v1813_v60 }
 0x80c   :  { %2701 = vmatmul.bf16.gmra.mxu0 %v8981_v11 }
 0x80d   :  { %2730 = vmatmul.bf16.gmra.mxu2 %v8981_v11  ;;  %6865 = vmatmul.msk.f32.gmra.mxu1 %vm603_vm10, %v2809_v8  ;;  %v2812_v11 = vsel %vm12586_vm0, %v8477_v12, %v8569_v20  ;;  %v9285_v20 = vpop.f32.mrf.mxu2 }
 0x814   :  { %v1721_v6 = vpop.permute.xlu0 %1720 }
 0x815   :  { %6866 = vmatmul.msk.f32.gmra.mxu1 %vm603_vm10, %v2810_v29 }
 0x81c   :  { %2706 = vmatmul.bf16.gmra.mxu0 %v2326_v17 }
 0x81d   :  { %2735 = vmatmul.bf16.gmra.mxu2 %v2326_v17  ;;  %6867 = vmatmul.msk.f32.gmra.mxu1 %vm603_vm10, %v2811_v57  ;;  %v1779_v17 = vpop.permute.xlu2 %1778 }
 0x824   :  { %v1753_v33 = vpop.permute.xlu1 %1752 }
 0x825   :  { %v1798_v38 = vsel %vm12587_vm1, %v1721_v6, %v1753_v33  ;;  %6868 = vmatmul.msk.f32.gmra.mxu1 %vm603_vm10, %v2812_v11  ;;  %v1781_v37 = vpop.permute.xlu2 %1780  ;;  %vm12613_vm1 = vmmov %vm12586_vm0 }
 0x826   :  { %v1806_v13 = vsel %vm603_vm10, %v1798_v38, %v1777_v41 }
 0x827   :  { %v1814_v30 = vmul.f32 0.4082483, %v1806_v13 }
 0x829   :  { %6871 = vmatmul.msk.f32.gmra.mxu3 %vm3046_vm12, %v1814_v30 }
 0x82c   :  { %v1755_v14 = vpop.permute.xlu1 %1754  ;;  %6877 = vmatmul.msk.f32.vlgmr.msra.gmra.mxu0 %vm3046_vm12, %v1812_v40  ;;  %v9291_v40 = vpop.f32.mrf.mxu2 }
 0x82d   :  { %v1723_v48 = vpop.permute.xlu0 %1722  ;;  %12591 = vst [vmem:[#allocation61_spill] sm:$0xff] %v9291_v40  ;;  %v1783_v25 = vpop.permute.xlu2 %1782 }
 0x82e   :  { %v1799_v1 = vsel %vm12589_vm2, %v1723_v48, %v1755_v14  ;;  %vm12616_vm2 = vmmov %vm12586_vm0 }
 0x82f   :  { %v1807_v12 = vsel %vm603_vm10, %v1799_v1, %v1779_v17 }
 0x830   :  { %v1815_v4 = vmul.f32 0.4082483, %v1807_v12 }
 0x832   :  { %6872 = vmatmul.msk.f32.gmra.mxu3 %vm3046_vm12, %v1815_v4 }
 0x834   :  { %6878 = vmatmul.msk.f32.gmra.mxu0 %vm3046_vm12, %v1813_v60  ;;  %v9295_v32 = vpop.f32.mrf.mxu2 }
 0x835   :  { %v1725_v52 = vpop.permute.xlu0 %1724  ;;  %v1785_v8 = vpop.permute.xlu2 %1784 }
 0x837   :  { %v1757_v22 = vpop.permute.xlu1 %1756 }
 0x838   :  { %v1800_v0 = vsel %vm12590_vm3, %v1725_v52, %v1757_v22  ;;  %vm12628_vm3 = vmmov %vm12586_vm0 }
 0x839   :  { %v1808_v24 = vsel %vm603_vm10, %v1800_v0, %v1781_v37 }
 0x83a   :  { %v1816_v46 = vmul.f32 0.4082483, %v1808_v24 }
 0x83c   :  { %6873 = vmatmul.msk.f32.gmra.mxu3 %vm3046_vm12, %v1816_v46  ;;  %6879 = vmatmul.msk.f32.gmra.mxu0 %vm3046_vm12, %v1814_v30  ;;  %v9302_v7 = vpop.f32.mrf.mxu2 }
 0x83d   :  { %12593 = vst [vmem:[#allocation62_spill] sm:$0xff] %v9302_v7 }
 0x83f   :  { %v1727_v5 = vpop.permute.xlu0 %1726 }
 0x840   :  { %v1787_v30 = vpop.permute.xlu2 %1786 }
 0x844   :  { %6880 = vmatmul.msk.f32.gmra.mxu0 %vm3046_vm12, %v1815_v4  ;;  %v9308_v33 = vpop.f32.mrf.mxu2 }
 0x845   :  { %v1759_v31 = vpop.permute.xlu1 %1758 }
 0x846   :  { %v1801_v53 = vsel %vm12592_vm9, %v1727_v5, %v1759_v31  ;;  %vm12639_vm9 = vmmov %vm12586_vm0 }
 0x847   :  { %v1809_v45 = vsel %vm603_vm10, %v1801_v53, %v1783_v25 }
 0x848   :  { %v1817_v35 = vmul.f32 0.4082483, %v1809_v45  ;;  %v12596_v45 = vld [vmem:[#allocation12_spill] sm:$0xff] }
 0x84a   :  { %6874 = vmatmul.msk.f32.gmra.mxu3 %vm3046_vm12, %v1817_v35 }
 0x84c   :  { %6881 = vmatmul.msk.f32.gmra.mxu0 %vm3046_vm12, %v1816_v46 }
 0x84d   :  { %v1761_v59 = vpop.permute.xlu1 %1760 }
 0x84e   :  { %v1729_v60 = vpop.permute.xlu0 %1728 }
 0x84f   :  { %v1802_v29 = vsel %vm12594_vm13, %v1729_v60, %v1761_v59  ;;  %vm12642_vm13 = vmmov %vm12586_vm0 }
 0x850   :  { %v1810_v57 = vsel %vm603_vm10, %v1802_v29, %v1785_v8  ;;  %v12597_v8 = vld [vmem:[#allocation13_spill] sm:$0xff] }
 0x851   :  { %v1818_v6 = vmul.f32 0.4082483, %v1810_v57 }
 0x853   :  { %6875 = vmatmul.msk.f32.gmra.mxu3 %vm3046_vm12, %v1818_v6 }
 0x854   :  { %6882 = vmatmul.msk.f32.gmra.mxu0 %vm3046_vm12, %v1817_v35 }
 0x858   :  { %v1731_v38 = vpop.permute.xlu0 %1730 }
 0x85c   :  { %6883 = vmatmul.msk.f32.gmra.mxu0 %vm3046_vm12, %v1818_v6 }
 0x860   :  { %v9311_v11 = vpop.f32.mrf.mxu2 }
 0x868   :  { %v9313_v41 = vpop.f32.mrf.mxu2 }
 0x869   :  { %v1763_v13 = vpop.permute.xlu1 %1762 }
 0x86a   :  { %v1803_v14 = vsel %vm12595_vm8, %v1731_v38, %v1763_v13  ;;  %v12598_v38 = vld [vmem:[#allocation16_spill] sm:$0xff]  ;;  %vm12644_vm8 = vmmov %vm12586_vm0 }
 0x86b   :  { %v1811_v48 = vsel %vm603_vm10, %v1803_v14, %v1787_v30  ;;  %v12599_v30 = vld [vmem:[#allocation48_spill] sm:$0xff]  ;;  %v12600_v14 = vld [vmem:[#allocation39_spill] sm:$0xff] }
 0x86c   :  { %v1819_v17 = vmul.f32 0.4082483, %v1811_v48  ;;  %v1908_v48 = vsel %vm12601_vm11, %v12600_v14, %v12599_v30  ;;  %v12610_v30 = vld [vmem:[#allocation43_spill] sm:$0xff]  ;;  %vm12645_vm11 = vmmov %vm12586_vm0 }
 0x86e   :  { %6876 = vmatmul.msk.f32.gmra.mxu3 %vm3046_vm12, %v1819_v17  ;;  %6884 = vmatmul.msk.f32.gmra.mxu0 %vm3046_vm12, %v1819_v17 }
 0x870   :  { %v9319_v1 = vpop.f32.mrf.mxu2 }
 0x871   :  { %v2741_v12 = vmul.f32 %v9319_v1, %v8119_v23  ;;  %v12626_v23 = vld [vmem:[#allocation54_spill] sm:$0xff] }
 0x873   :  { %v2757_v4 = vmul.f32 0.4472136, %v2741_v12  ;;  %v1916_v12 = vsel %vm603_vm10, %v1908_v48, %v8885_v9  ;;  %v12611_v48 = vld [vmem:[#allocation47_spill] sm:$0xff] }
 0x875   :  { %2773 = vrot.lane.b32.xlu0 %v2757_v4, %s7616_s8 }
 0x878   :  { %v9324_v52 = vpop.f32.mrf.mxu2 }
 0x879   :  { %v2742_v22 = vmul.f32 %v9324_v52, %v8121_v18 }
 0x87b   :  { %v2758_v37 = vmul.f32 0.4472136, %v2742_v22  ;;  %v12602_v22 = vld [vmem:[#allocation17_spill] sm:$0xff] }
 0x87d   :  { %2775 = vrot.lane.b32.xlu1 %v2758_v37, %s7616_s8 }
 0x880   :  { %v9329_v0 = vpop.f32.mrf.mxu2 }
 0x881   :  { %v2743_v24 = vmul.f32 %v9329_v0, %v8134_v39 }
 0x883   :  { %v2759_v46 = vmul.f32 0.4472136, %v2743_v24  ;;  %v12603_v24 = vld [vmem:[#allocation51_spill] sm:$0xff] }
 0x885   :  { %2777 = vrot.lane.b32.xlu2 %v2759_v46, %s7616_s8  ;;  %v12604_v46 = vld [vmem:[#allocation42_spill] sm:$0xff] }
 0x888   :  { %v9334_v5 = vpop.f32.mrf.mxu2 }
 0x889   :  { %v2744_v31 = vmul.f32 %v9334_v5, %v8132_v27 }
 0x88b   :  { %v2760_v25 = vmul.f32 0.4472136, %v2744_v31  ;;  %v1911_v31 = vsel %vm12605_vm5, %v12604_v46, %v12603_v24  ;;  %v12615_v24 = vld [vmem:[#allocation44_spill] sm:$0xff]  ;;  %vm12647_vm5 = vmmov %vm12586_vm0 }
 0x88c   :  { %v1919_v9 = vsel %vm603_vm10, %v1911_v31, %v8999_v26 }
 0x88d   :  { %2779 = vrot.lane.b32.xlu0 %v2760_v25, %s7616_s8  ;;  %v12606_v25 = vld [vmem:[#allocation49_spill] sm:$0xff] }
 0x890   :  { %v9339_v53 = vpop.f32.mrf.mxu2 }
 0x891   :  { %v2745_v35 = vmul.f32 %v9339_v53, %v12596_v45 }
 0x893   :  { %v2761_v59 = vmul.f32 0.4472136, %v2745_v35  ;;  %v12607_v35 = vld [vmem:[#allocation40_spill] sm:$0xff] }
 0x895   :  { %2781 = vrot.lane.b32.xlu1 %v2761_v59, %s7616_s8  ;;  %v1909_v59 = vsel %vm12608_vm7, %v12607_v35, %v12606_v25  ;;  %v7257_v35 = vld [vmem:[%s12374_s14] sm:$0xff]  ;;  %vm12649_vm7 = vmmov %vm12586_vm0 }
 0x898   :  { %v9344_v60 = vpop.f32.mrf.mxu2 }
 0x899   :  { %v2746_v29 = vmul.f32 %v9344_v60, %v12597_v8  ;;  %v12623_v8 = vld [vmem:[#allocation11_spill] sm:$0xff] }
 0x89a   :  { %v2752_v45 = vmul.f32 0.8944272, %v12623_v8 }
 0x89b   :  { %v2762_v57 = vmul.f32 0.4472136, %v2746_v29 }
 0x89d   :  { %2783 = vrot.lane.b32.xlu2 %v2762_v57, %s7616_s8  ;;  %v1917_v57 = vsel %vm603_vm10, %v1909_v59, %v8940_v36 }
 0x8a0   :  { %v9349_v6 = vpop.f32.mrf.mxu2 }
 0x8a1   :  { %v2747_v13 = vmul.f32 %v9349_v6, %v12598_v38 }
 0x8a3   :  { %v2763_v17 = vmul.f32 0.4472136, %v2747_v13  ;;  %v12609_v13 = vld [vmem:[#allocation52_spill] sm:$0xff] }
 0x8a4   :  { %v1912_v14 = vsel %vm12586_vm0, %v12610_v30, %v12609_v13 }
 0x8a5   :  { %1932 = vrot.lane.b32.xlu2 %v1916_v12, %s7608_s2  ;;  %2785 = vrot.lane.b32.xlu0 %v2763_v17, %s7616_s8  ;;  %v12612_v17 = vld [vmem:[#allocation41_spill] sm:$0xff]  ;;  %v1920_v26 = vsel %vm603_vm10, %v1912_v14, %v9084_v10  ;;  %v9401_v10 = vpop.f32.mrf.mxu1 }
 0x8a6   :  { %v1910_v12 = vsel %vm12613_vm1, %v12612_v17, %v12611_v48  ;;  %v12617_v48 = vld [vmem:[#allocation6_spill] sm:$0xff]  ;;  %vm12655_vm1 = vmmov %vm12586_vm0 }
 0x8a7   :  { %v1918_v36 = vsel %vm603_vm10, %v1910_v12, %v8989_v42  ;;  %v7258_v42 = vld [vmem:[%s12374_s14 + $0x8] sm:$0xff]  ;;  %v2749_v17 = vmul.f32 0.8944272, %v12617_v48  ;;  %v12622_v48 = vld [vmem:[#allocation10_spill] sm:$0xff] }
 0x8a8   :  { %v9360_v4 = vpop.f32.mrf.mxu2  ;;  %3954 = vmatpush.bf16.msrb.mxu0 %v7258_v42  ;;  %v12618_v12 = vld [vmem:[#allocation7_spill] sm:$0xff] }
 0x8a9   :  { %v2748_v37 = vmul.f32 %v9360_v4, %v12602_v22 }
 0x8ab   :  { %v2764_v29 = vmul.f32 0.4472136, %v2748_v37  ;;  %v12614_v37 = vld [vmem:[#allocation53_spill] sm:$0xff] }
 0x8ac   :  { %v1913_v46 = vsel %vm12616_vm2, %v12615_v24, %v12614_v37  ;;  %3955 = vmatpush.bf16.msrb.mxu0 %v7257_v35  ;;  %vm12656_vm2 = vmmov %vm12586_vm0 }
 0x8ad   :  { %1938 = vrot.lane.b32.xlu2 %v1919_v9, %s7608_s2  ;;  %1934 = vrot.lane.b32.xlu0 %v1917_v57, %s7608_s2  ;;  %v1921_v31 = vsel %vm603_vm10, %v1913_v46, %v9100_v19  ;;  %v9410_v19 = vpop.f32.mrf.mxu0  ;;  %v9412_v25 = vpop.f32.mrf.mxu1 }
 0x8ae   :  { %2787 = vrot.lane.b32.xlu1 %v2764_v29, %s7616_s8 }
 0x8b5   :  { %1852 = vrot.lane.b32.xlu2 %v8372_v43, %s7614_s12  ;;  %1940 = vrot.lane.b32.xlu0 %v1920_v26, %s7608_s2  ;;  %v9417_v59 = vpop.f32.mrf.mxu0  ;;  %v9419_v29 = vpop.f32.mrf.mxu1  ;;  %v2750_v26 = vmul.f32 0.8944272, %v12618_v12  ;;  %v2751_v12 = vmul.f32 0.8944272, %v12622_v48 }
 0x8b6   :  { %1936 = vrot.lane.b32.xlu1 %v1918_v36, %s7608_s2 }
 0x8bd   :  { %1830 = vrot.lane.b32.xlu2 %v8386_v54, %s7608_s2  ;;  %1942 = vrot.lane.b32.xlu0 %v1921_v31, %s7608_s2  ;;  %v9421_v9 = vpop.f32.mrf.mxu0  ;;  %v9423_v57 = vpop.f32.mrf.mxu1 }
 0x8be   :  { %1828 = vrot.lane.b32.xlu1 %v8372_v43, %s7608_s2 }
 0x8c5   :  { %1854 = vrot.lane.b32.xlu0 %v8386_v54, %s7614_s12  ;;  %v9425_v13 = vpop.f32.mrf.mxu0  ;;  %v9427_v30 = vpop.f32.mrf.mxu1 }
 0x8cd   :  { %1832 = vrot.lane.b32.xlu0 %v8400_v47, %s7608_s2  ;;  %v9438_v42 = vpop.f32.mrf.mxu0  ;;  %v9440_v35 = vpop.f32.mrf.mxu1 }
 0x8d5   :  { %v9442_v38 = vpop.f32.mrf.mxu1 }
 0x8d6   :  { %12621 = vst [vmem:[#allocation51_spill] sm:$0xff] %v9442_v38 }
 0x8dd   :  { %v9459_v8 = vpop.f32.mrf.mxu1 }
 0x8df   :  { %v2778_v36 = vpop.permute.xlu2 %2777 }
 0x8e7   :  { %v2774_v14 = vpop.permute.xlu0 %2773 }
 0x8e8   :  { %v9431_v24 = vadd.f32 %v2774_v14, %v2749_v17 }
 0x8ea   :  { %12619 = vst [vmem:[#allocation48_spill] sm:$0xff] %v9431_v24 }
 0x8ef   :  { %v2776_v37 = vpop.permute.xlu1 %2775 }
 0x8f0   :  { %v9433_v46 = vadd.f32 %v2776_v37, %v2750_v26  ;;  %v9446_v26 = vpop.f32.mrf.mxu0  ;;  %v9448_v37 = vadd.f32 %v2778_v36, %v2751_v12 }
 0x8f2   :  { %12620 = vst [vmem:[#allocation39_spill] sm:$0xff] %v9433_v46  ;;  %v3920_v31 = vpack.c.bf16 %v9433_v46, %v9431_v24  ;;  %v12627_v24 = vld [vmem:[#allocation45_spill] sm:$0xff] }
 0x8f3   :  { %12624 = vst [vmem:[#allocation42_spill] sm:$0xff] %v9448_v37  ;;  %v1914_v36 = vsel %vm12628_vm3, %v12627_v24, %v12626_v23  ;;  %v2854_v23 = vpop.f32.mrf.mxu1 }
 0x8f4   :  { %6917 = vmatmul.msk.bf16.vlgmr.msrb.gmra.mxu0 %vm500_vm14, %v3920_v31  ;;  %v1922_v12 = vsel %vm603_vm10, %v1914_v36, %v9180_v55 }
 0x8f7   :  { %v2784_v22 = vpop.permute.xlu2 %2783 }
 0x8f8   :  { %v9457_v48 = vpop.f32.mrf.mxu0 }
 0x8fb   :  { %v9484_v36 = vpop.f32.mrf.mxu1 }
 0x8ff   :  { %v2780_v14 = vpop.permute.xlu0 %2779  ;;  %v1933_v17 = vpop.permute.xlu2 %1932 }
 0x900   :  { %v9450_v27 = vadd.f32 %v2780_v14, %v2752_v45  ;;  %v1956_v31 = vmul.f32 %v1933_v17, %v8372_v43  ;;  %v12629_v14 = vld [vmem:[#allocation14_spill] sm:$0xff] }
 0x901   :  { %v2753_v17 = vmul.f32 0.8944272, %v12629_v14  ;;  %v12634_v14 = vld [vmem:[#allocation19_spill] sm:$0xff] }
 0x902   :  { %12625 = vst [vmem:[#allocation49_spill] sm:$0xff] %v9450_v27  ;;  %v3921_v39 = vpack.c.bf16 %v9450_v27, %v9448_v37  ;;  %v1964_v18 = vmul.f32 0.57735026, %v1956_v31  ;;  %v12630_v31 = vld [vmem:[#allocation15_spill] sm:$0xff]  ;;  %v9473_v27 = vpop.f32.mrf.mxu0 }
 0x904   :  { %3329 = vrot.lane.b32.xlu1 %v1964_v18, %s7614_s12  ;;  %6918 = vmatmul.msk.bf16.gmra.mxu0 %vm500_vm14, %v3921_v39  ;;  %v2754_v18 = vmul.f32 0.8944272, %v12630_v31 }
 0x906   :  { %v9471_v39 = vadd.f32 %v2784_v22, %v2754_v18  ;;  %v12633_v22 = vld [vmem:[#allocation18_spill] sm:$0xff] }
 0x907   :  { %v2782_v45 = vpop.permute.xlu1 %2781 }
 0x908   :  { %v9469_v37 = vadd.f32 %v2782_v45, %v2753_v17  ;;  %12632 = vst [vmem:[#allocation52_spill] sm:$0xff] %v9471_v39  ;;  %v2755_v45 = vmul.f32 0.8944272, %v12633_v22  ;;  %v2756_v17 = vmul.f32 0.8944272, %v12634_v14  ;;  %v9501_v14 = vpop.f32.mrf.mxu1 }
 0x90a   :  { %12631 = vst [vmem:[#allocation40_spill] sm:$0xff] %v9469_v37  ;;  %v3922_v46 = vpack.c.bf16 %v9471_v39, %v9469_v37  ;;  %v9480_v24 = vpop.f32.mrf.mxu0 }
 0x90c   :  { %1944 = vrot.lane.b32.xlu1 %v1922_v12, %s7608_s2 }
 0x912   :  { %v9499_v22 = vpop.f32.mrf.mxu0 }
 0x914   :  { %1856 = vrot.lane.b32.xlu1 %v8400_v47, %s7614_s12  ;;  %6919 = vmatmul.msk.bf16.gmra.mxu0 %vm500_vm14, %v3922_v46 }
 0x917   :  { %v2786_v55 = vpop.permute.xlu0 %2785 }
 0x918   :  { %v9489_v37 = vadd.f32 %v2786_v55, %v2755_v45  ;;  %v12637_v45 = vld [vmem:[#allocation55_spill] sm:$0xff] }
 0x91a   :  { %12635 = vst [vmem:[#allocation43_spill] sm:$0xff] %v9489_v37 }
 0x91c   :  { %1834 = vrot.lane.b32.xlu1 %v8414_v44, %s7608_s2 }
 0x91f   :  { %v1935_v12 = vpop.permute.xlu0 %1934 }
 0x920   :  { %v1957_v31 = vmul.f32 %v1935_v12, %v8386_v54  ;;  %v2788_v18 = vpop.permute.xlu1 %2787 }
 0x921   :  { %v9491_v39 = vadd.f32 %v2788_v18, %v2756_v17  ;;  %v12638_v17 = vld [vmem:[#allocation46_spill] sm:$0xff] }
 0x922   :  { %v1965_v46 = vmul.f32 0.57735026, %v1957_v31  ;;  %v1915_v31 = vsel %vm12639_vm9, %v12638_v17, %v12637_v45 }
 0x923   :  { %12636 = vst [vmem:[#allocation47_spill] sm:$0xff] %v9491_v39  ;;  %v3923_v7 = vpack.c.bf16 %v9491_v39, %v9489_v37  ;;  %v1939_v37 = vpop.permute.xlu2 %1938  ;;  %v9514_v39 = vpop.f32.mrf.mxu0 }
 0x924   :  { %3331 = vrot.lane.b32.xlu2 %v1965_v46, %s7614_s12  ;;  %1836 = vrot.lane.b32.xlu1 %v8428_v15, %s7608_s2  ;;  %v1923_v46 = vsel %vm603_vm10, %v1915_v31, %v9208_v2  ;;  %v9529_v31 = vpop.f32.mrf.mxu3 }
 0x925   :  { %6920 = vmatmul.msk.bf16.gmra.mxu0 %vm500_vm14, %v3923_v7  ;;  %v1959_v7 = vmul.f32 %v1939_v37, %v8414_v44 }
 0x927   :  { %v1941_v40 = vpop.permute.xlu0 %1940  ;;  %v1967_v62 = vmul.f32 0.57735026, %v1959_v7 }
 0x928   :  { %v1937_v12 = vpop.permute.xlu1 %1936  ;;  %v1960_v2 = vmul.f32 %v1941_v40, %v8428_v15 }
 0x929   :  { %v1958_v55 = vmul.f32 %v1937_v12, %v8400_v47  ;;  %v2863_v12 = vpop.f32.mrf.mxu1 }
 0x92a   :  { %v1968_v17 = vmul.f32 0.57735026, %v1960_v2 }
 0x92b   :  { %v1966_v18 = vmul.f32 0.57735026, %v1958_v55  ;;  %v9522_v55 = vpop.f32.mrf.mxu0 }
 0x92c   :  { %1946 = vrot.lane.b32.xlu2 %v1923_v46, %s7608_s2  ;;  %1838 = vrot.lane.b32.xlu1 %v8442_v49, %s7608_s2  ;;  %v9544_v2 = vpop.f32.mrf.mxu3 }
 0x92d   :  { %3333 = vrot.lane.b32.xlu0 %v1966_v18, %s7614_s12 }
 0x92f   :  { %v1943_v37 = vpop.permute.xlu0 %1942 }
 0x930   :  { %v1961_v18 = vmul.f32 %v1943_v37, %v8442_v49  ;;  %v278_v37 = vld [vmem:[%s12373_s7 + $0xa8] sm:$0xff] }
 0x931   :  { %v2866_v45 = vpop.f32.mrf.mxu1 }
 0x932   :  { %v1969_v40 = vmul.f32 0.57735026, %v1961_v18 }
 0x933   :  { %v9535_v46 = vpop.f32.mrf.mxu0 }
 0x934   :  { %1858 = vrot.lane.b32.xlu2 %v8414_v44, %s7614_s12  ;;  %1840 = vrot.lane.b32.xlu1 %v8456_v51, %s7608_s2  ;;  %v9585_v38 = vpop.f32.mrf.mxu3 }
 0x935   :  { %3335 = vrot.lane.b32.xlu0 %v1967_v62, %s7614_s12  ;;  %v9533_v62 = vmul.f32 %v2854_v23, %v9410_v19  ;;  %v282_v19 = vld [vmem:[%s12373_s7 + $0xc8] sm:$0xff]  ;;  %v283_v23 = vld [vmem:[%s12373_s7 + $0xd0] sm:$0xff] }
 0x936   :  { %3395 = vmatpush.msra.mxu2 %v282_v19  ;;  %3436 = vmatpush.msrb.mxu1 %v283_v23  ;;  %v272_v19 = vld [vmem:[%s12373_s7 + $0x78] sm:$0xff]  ;;  %v273_v23 = vld [vmem:[%s12373_s7 + $0x80] sm:$0xff] }
 0x937   :  { %12640 = vst [vmem:[#allocation41_spill] sm:$0xff] %v9533_v62 }
 0x938   :  { %3437 = vmatpush.msrb.mxu1 %v278_v37 }
 0x939   :  { %v9541_v7 = vpop.f32.mrf.mxu1 }
 0x93a   :  { %3438 = vmatpush.msrb.mxu1 %v273_v23 }
 0x93b   :  { %v9568_v18 = vpop.f32.mrf.mxu0 }
 0x93c   :  { %1860 = vrot.lane.b32.xlu2 %v8428_v15, %s7614_s12  ;;  %1842 = vrot.lane.b32.xlu1 %v8471_v16, %s7608_s2 }
 0x93d   :  { %3337 = vrot.lane.b32.xlu0 %v1968_v17, %s7614_s12  ;;  %v9547_v17 = vmul.f32 %v2863_v12, %v9425_v13  ;;  %v284_v13 = vld [vmem:[%s12373_s7 + $0xd8] sm:$0xff]  ;;  %v277_v12 = vld [vmem:[%s12373_s7 + $0xa0] sm:$0xff]  ;;  %3439 = vmatpush.msrb.mxu1 %v9243_v56 }
 0x93e   :  { %3477 = vmatpush.msra.mxu3 %v284_v13  ;;  %3396 = vmatpush.msra.mxu2 %v277_v12  ;;  %v269_v12 = vld [vmem:[%s12373_s7 + $0x60] sm:$0xff] }
 0x93f   :  { %12641 = vst [vmem:[#allocation53_spill] sm:$0xff] %v9547_v17  ;;  %3440 = vmatpush.msrb.mxu1 %v9250_v58  ;;  %v9617_v58 = vmul.f32 %v2866_v45, %v9438_v42  ;;  %v12643_v45 = vld [vmem:[#allocation50_spill] sm:$0xff] }
 0x940   :  { %3397 = vmatpush.msra.mxu2 %v272_v19 }
 0x941   :  { %3441 = vmatpush.msrb.mxu1 %v9256_v28 }
 0x942   :  { %3398 = vmatpush.msra.mxu2 %v9151_v3  ;;  %v264_v3 = vld [vmem:[%s12373_s7 + $0x38] sm:$0xff] }
 0x943   :  { %v9602_v56 = vpop.f32.mrf.mxu0 }
 0x944   :  { %1862 = vrot.lane.b32.xlu2 %v8442_v49, %s7614_s12  ;;  %2894 = vrot.lane.b32.xlu1 %v9533_v62, %s7616_s8  ;;  %v274_v62 = vld [vmem:[%s12373_s7 + $0x88] sm:$0xff] }
 0x945   :  { %3339 = vrot.lane.b32.xlu0 %v1969_v40, %s7614_s12  ;;  %v279_v40 = vld [vmem:[%s12373_s7 + $0xb0] sm:$0xff]  ;;  %3399 = vmatpush.msra.mxu2 %v9167_v50  ;;  %v9610_v50 = vmul.f32 %v9484_v36, %v9417_v59 }
 0x946   :  { %3478 = vmatpush.msra.mxu3 %v279_v40 }
 0x947   :  { %3400 = vmatpush.msra.mxu2 %v9172_v21  ;;  %v2670_v21 = vpop.f32.mrf.mxu3 }
 0x948   :  { %3479 = vmatpush.msra.mxu3 %v274_v62  ;;  %v1853_v62 = vpop.permute.xlu2 %1852 }
 0x94a   :  { %3480 = vmatpush.msra.mxu3 %v269_v12  ;;  %v1855_v12 = vpop.permute.xlu0 %1854 }
 0x94b   :  { %v9619_v28 = vpop.f32.mrf.mxu0 }
 0x94c   :  { %1864 = vrot.lane.b32.xlu2 %v8456_v51, %s7614_s12  ;;  %2900 = vrot.lane.b32.xlu1 %v9547_v17, %s7616_s8  ;;  %v2872_v17 = vpop.f32.mrf.mxu1 }
 0x94d   :  { %v9583_v13 = vmul.f32 %v2872_v17, %v9457_v48  ;;  %3481 = vmatpush.msra.mxu3 %v264_v3  ;;  %v259_v48 = vld [vmem:[%s12373_s7 + $0x10] sm:$0xff]  ;;  %v1829_v17 = vpop.permute.xlu1 %1828 }
 0x94f   :  { %3482 = vmatpush.msra.mxu3 %v259_v48  ;;  %v2673_v59 = vpop.f32.mrf.mxu3 }
 0x950   :  { %v1831_v23 = vpop.permute.xlu2 %1830 }
 0x953   :  { %v9630_v42 = vpop.f32.mrf.mxu0 }
 0x954   :  { %1866 = vrot.lane.b32.xlu2 %v8471_v16, %s7614_s12  ;;  %2906 = vrot.lane.b32.xlu1 %v9583_v13, %s7616_s8  ;;  %v2875_v36 = vpop.f32.mrf.mxu1 }
 0x955   :  { %v9626_v37 = vmul.f32 %v2875_v36, %v9473_v27  ;;  %v1877_v27 = vsel %vm12644_vm8, %v8386_v54, %v1831_v23 }
 0x956   :  { %v1885_v3 = vsel %vm603_vm10, %v1877_v27, %v1855_v12 }
 0x957   :  { %v2675_v19 = vpop.f32.mrf.mxu3 }
 0x95c   :  { %2896 = vrot.lane.b32.xlu2 %v9610_v50, %s7616_s8  ;;  %3546 = vrot.lane.b32.xlu1 %v9319_v1, %s7616_s8  ;;  %v1876_v1 = vsel %vm12642_vm13, %v8372_v43, %v1829_v17 }
 0x964   :  { %2902 = vrot.lane.b32.xlu2 %v9617_v58, %s7616_s8  ;;  %3554 = vrot.lane.b32.xlu1 %v9324_v52, %s7616_s8  ;;  %v1884_v52 = vsel %vm603_vm10, %v1876_v1, %v1853_v62 }
 0x965   :  { %v1892_v40 = vmul.f32 %v1884_v52, %v12643_v45 }
 0x967   :  { %v1900_v43 = vmul.f32 0.57735026, %v1892_v40 }
 0x96c   :  { %3562 = vrot.lane.b32.xlu1 %v9329_v0, %s7616_s8  ;;  %2908 = vrot.lane.b32.xlu2 %v9626_v37, %s7616_s8  ;;  %v9644_v0 = vpop.f32.mrf.mxu0 }
 0x974   :  { %3570 = vrot.lane.b32.xlu1 %v9334_v5, %s7616_s8  ;;  %3542 = vrot.lane.b32.xlu2 %v9529_v31, %s7616_s8  ;;  %v1893_v5 = vmul.f32 %v1885_v3, %v8827_v34  ;;  %v9652_v31 = vpop.f32.mrf.mxu3  ;;  %v9660_v45 = vpop.f32.mrf.mxu0 }
 0x976   :  { %v3330_v48 = vpop.permute.xlu1 %3329  ;;  %v1901_v54 = vmul.f32 0.57735026, %v1893_v5  ;;  %v12646_v5 = vld [vmem:[#allocation56_spill] sm:$0xff] }
 0x977   :  { %v3353_v36 = vsel %vm3046_vm12, %v1900_v43, %v3330_v48 }
 0x978   :  { %6885 = vmatmul.msk.f32.vlgmr.msra.gmra.mxu2 %vm2073_vm4, %v3353_v36  ;;  %6893 = vmatmul.msk.f32.vlgmr.msrb.gmra.mxu1 %vm2073_vm4, %v3353_v36 }
 0x979   :  { %6901 = vmatmul.msk.f32.vlgmr.msra.gmra.mxu3 %vm2073_vm4, %v3353_v36 }
 0x97c   :  { %3578 = vrot.lane.b32.xlu1 %v9339_v53, %s7616_s8  ;;  %3550 = vrot.lane.b32.xlu2 %v9544_v2, %s7616_s8  ;;  %v9666_v53 = vpop.f32.mrf.mxu3  ;;  %v9673_v12 = vpop.f32.mrf.mxu0 }
 0x97e   :  { %v3332_v62 = vpop.permute.xlu2 %3331  ;;  %v1945_v17 = vpop.permute.xlu1 %1944 }
 0x97f   :  { %v3354_v1 = vsel %vm3046_vm12, %v1901_v54, %v3332_v62  ;;  %v1962_v52 = vmul.f32 %v1945_v17, %v8456_v51 }
 0x980   :  { %6886 = vmatmul.msk.f32.gmra.mxu2 %vm2073_vm4, %v3354_v1  ;;  %6894 = vmatmul.msk.f32.gmra.mxu1 %vm2073_vm4, %v3354_v1 }
 0x981   :  { %v1970_v34 = vmul.f32 0.57735026, %v1962_v52  ;;  %6902 = vmatmul.msk.f32.gmra.mxu3 %vm2073_vm4, %v3354_v1 }
 0x983   :  { %3341 = vrot.lane.b32.xlu0 %v1970_v34, %s7614_s12  ;;  %v12648_v34 = vld [vmem:[#allocation57_spill] sm:$0xff] }
 0x984   :  { %3586 = vrot.lane.b32.xlu1 %v9344_v60, %s7616_s8  ;;  %3558 = vrot.lane.b32.xlu2 %v9585_v38, %s7616_s8  ;;  %v9676_v43 = vpop.f32.mrf.mxu3  ;;  %v9683_v60 = vmul.f32 %v9501_v14, %v9421_v9  ;;  %v1833_v38 = vpop.permute.xlu0 %1832  ;;  %v9697_v14 = vmul.f32 %v9541_v7, %v9446_v26 }
 0x985   :  { %v9687_v36 = vpop.f32.mrf.mxu0 }
 0x986   :  { %v1947_v2 = vpop.permute.xlu2 %1946  ;;  %v1857_v27 = vpop.permute.xlu1 %1856 }
 0x987   :  { %v1963_v40 = vmul.f32 %v1947_v2, %v8471_v16 }
 0x989   :  { %v1971_v23 = vmul.f32 0.57735026, %v1963_v40 }
 0x98b   :  { %3343 = vrot.lane.b32.xlu0 %v1971_v23, %s7614_s12 }
 0x98c   :  { %3594 = vrot.lane.b32.xlu1 %v9349_v6, %s7616_s8  ;;  %3566 = vrot.lane.b32.xlu2 %v2670_v21, %s7616_s8  ;;  %v3091_v48 = vpop.f32.mrf.mxu3  ;;  %v1878_v21 = vsel %vm12645_vm11, %v8400_v47, %v1833_v38 }
 0x98d   :  { %v1886_v9 = vsel %vm603_vm10, %v1878_v21, %v1857_v27 }
 0x98e   :  { %v1859_v3 = vpop.permute.xlu2 %1858  ;;  %v1835_v6 = vpop.permute.xlu1 %1834  ;;  %v1894_v54 = vmul.f32 %v1886_v9, %v12646_v5 }
 0x990   :  { %v1902_v26 = vmul.f32 0.57735026, %v1894_v54 }
 0x993   :  { %2898 = vrot.lane.b32.xlu0 %v9683_v60, %s7616_s8 }
 0x994   :  { %3602 = vrot.lane.b32.xlu1 %v9360_v4, %s7616_s8  ;;  %3574 = vrot.lane.b32.xlu2 %v2673_v59, %s7616_s8  ;;  %v9702_v62 = vpop.f32.mrf.mxu3  ;;  %v1879_v4 = vsel %vm12647_vm5, %v8414_v44, %v1835_v6  ;;  %v9709_v59 = vpop.f32.mrf.mxu0  ;;  %v9716_v44 = vmul.f32 %v3091_v48, %v9285_v20  ;;  %v12650_v6 = vld [vmem:[#allocation58_spill] sm:$0xff] }
 0x995   :  { %v1887_v7 = vsel %vm603_vm10, %v1879_v4, %v1859_v3 }
 0x996   :  { %v1861_v47 = vpop.permute.xlu2 %1860  ;;  %v1837_v17 = vpop.permute.xlu1 %1836  ;;  %v1895_v2 = vmul.f32 %v1887_v7, %v12648_v34 }
 0x998   :  { %v1903_v23 = vmul.f32 0.57735026, %v1895_v2 }
 0x99b   :  { %2904 = vrot.lane.b32.xlu0 %v9697_v14, %s7616_s8 }
 0x99c   :  { %3596 = vrot.lane.b32.xlu1 %v9459_v8, %s7616_s8  ;;  %3582 = vrot.lane.b32.xlu2 %v2675_v19, %s7616_s8  ;;  %v1880_v19 = vsel %vm12649_vm7, %v8428_v15, %v1837_v17  ;;  %v3097_v40 = vpop.f32.mrf.mxu3  ;;  %v9729_v3 = vpop.f32.mrf.mxu0 }
 0x99d   :  { %v1888_v20 = vsel %vm603_vm10, %v1880_v19, %v1861_v47  ;;  %v9735_v15 = vmul.f32 %v3097_v40, %v9295_v32 }
 0x99e   :  { %v1863_v27 = vpop.permute.xlu2 %1862  ;;  %v1896_v21 = vmul.f32 %v1888_v20, %v12650_v6 }
 0x99f   :  { %v3334_v1 = vpop.permute.xlu0 %3333 }
 0x9a0   :  { %v3355_v52 = vsel %vm3046_vm12, %v1902_v26, %v3334_v1  ;;  %v1904_v5 = vmul.f32 0.57735026, %v1896_v21 }
 0x9a1   :  { %6887 = vmatmul.msk.f32.gmra.mxu2 %vm2073_vm4, %v3355_v52  ;;  %6895 = vmatmul.msk.f32.gmra.mxu1 %vm2073_vm4, %v3355_v52 }
 0x9a2   :  { %6903 = vmatmul.msk.f32.gmra.mxu3 %vm2073_vm4, %v3355_v52 }
 0x9a3   :  { %3544 = vrot.lane.b32.xlu0 %v9480_v24, %s7616_s8  ;;  %v1839_v24 = vpop.permute.xlu1 %1838 }
 0x9a4   :  { %3189 = vrot.lane.b32.xlu1 %v9716_v44, %s7613_s0  ;;  %3540 = vrot.lane.b32.xlu2 %v9401_v10, %s7616_s8  ;;  %v1881_v9 = vsel %vm12586_vm0, %v8442_v49, %v1839_v24  ;;  %v9748_v4 = vpop.f32.mrf.mxu0  ;;  %v3154_v49 = vmul.f32 %v9630_v42, %v9401_v10  ;;  %v3158_v10 = vmul.f32 %v9660_v45, %v9419_v29  ;;  %v9779_v42 = vpop.f32.mrf.mxu3  ;;  %v7261_v24 = vld [vmem:[%s12375_s15 + $0x10] sm:$0xff] }
 0x9a5   :  { %v1889_v32 = vsel %vm603_vm10, %v1881_v9, %v1863_v27  ;;  %v7262_v27 = vld [vmem:[%s12375_s15 + $0x18] sm:$0xff] }
 0x9a6   :  { %v9751_v26 = vpop.permute.xlu2 %1864  ;;  %4189 = vmatpush.bf16.msrb.mxu2 %v7262_v27 }
 0x9a7   :  { %v3336_v38 = vpop.permute.xlu0 %3335 }
 0x9a8   :  { %v3356_v48 = vsel %vm3046_vm12, %v1903_v23, %v3336_v38 }
 0x9a9   :  { %6888 = vmatmul.msk.f32.gmra.mxu2 %vm2073_vm4, %v3356_v48  ;;  %6896 = vmatmul.msk.f32.gmra.mxu1 %vm2073_vm4, %v3356_v48 }
 0x9aa   :  { %6904 = vmatmul.msk.f32.gmra.mxu3 %vm2073_vm4, %v3356_v48  ;;  %4190 = vmatpush.bf16.msrb.mxu2 %v7261_v24 }
 0x9ab   :  { %3552 = vrot.lane.b32.xlu0 %v9499_v22, %s7616_s8  ;;  %v12651_v22 = vld [vmem:[#allocation59_spill] sm:$0xff] }
 0x9ac   :  { %3197 = vrot.lane.b32.xlu1 %v9735_v15, %s7613_s0  ;;  %3590 = vrot.lane.b32.xlu2 %v9652_v31, %s7616_s8  ;;  %v1897_v7 = vmul.f32 %v1889_v32, %v12651_v22  ;;  %v9764_v1 = vpop.f32.mrf.mxu0  ;;  %v3156_v32 = vmul.f32 %v9644_v0, %v9412_v25 }
 0x9ae   :  { %v1905_v31 = vmul.f32 0.57735026, %v1897_v7  ;;  %v3160_v7 = vmul.f32 %v9673_v12, %v9423_v57 }
 0x9af   :  { %v3338_v54 = vpop.permute.xlu0 %3337 }
 0x9b0   :  { %v3357_v47 = vsel %vm3046_vm12, %v1904_v5, %v3338_v54  ;;  %v7260_v5 = vld [vmem:[%s12375_s15 + $0x8] sm:$0xff] }
 0x9b1   :  { %6889 = vmatmul.msk.f32.gmra.mxu2 %vm2073_vm4, %v3357_v47  ;;  %6897 = vmatmul.msk.f32.gmra.mxu1 %vm2073_vm4, %v3357_v47 }
 0x9b2   :  { %6905 = vmatmul.msk.f32.gmra.mxu3 %vm2073_vm4, %v3357_v47  ;;  %4191 = vmatpush.bf16.msrb.mxu2 %v7260_v5 }
 0x9b3   :  { %3560 = vrot.lane.b32.xlu0 %v9514_v39, %s7616_s8  ;;  %v9772_v39 = vpop.permute.xlu2 %1866 }
 0x9b4   :  { %3598 = vrot.lane.b32.xlu2 %v9666_v53, %s7616_s8  ;;  %3187 = vrot.lane.b32.xlu1 %v3154_v49, %s7613_s0  ;;  %v3162_v53 = vmul.f32 %v9687_v36, %v9427_v30  ;;  %v9783_v34 = vpop.f32.mrf.mxu0 }
 0x9b7   :  { %v3340_v17 = vpop.permute.xlu0 %3339 }
 0x9b8   :  { %v3358_v52 = vsel %vm3046_vm12, %v1905_v31, %v3340_v17 }
 0x9b9   :  { %6890 = vmatmul.msk.f32.gmra.mxu2 %vm2073_vm4, %v3358_v52  ;;  %6898 = vmatmul.msk.f32.gmra.mxu1 %vm2073_vm4, %v3358_v52 }
 0x9ba   :  { %6906 = vmatmul.msk.f32.gmra.mxu3 %vm2073_vm4, %v3358_v52 }
 0x9bb   :  { %3568 = vrot.lane.b32.xlu0 %v9522_v55, %s7616_s8  ;;  %v3103_v55 = vpop.f32.mrf.mxu3  ;;  %v9790_v45 = vpop.permute.xlu2 %2896 }
 0x9bc   :  { %3556 = vrot.lane.b32.xlu2 %v9419_v29, %s7616_s8  ;;  %3195 = vrot.lane.b32.xlu1 %v3158_v10, %s7613_s0  ;;  %v9793_v29 = vmul.f32 %v3103_v55, %v9308_v33  ;;  %v9797_v36 = vpop.f32.mrf.mxu0  ;;  %v6921_v33 = vmul.f32 -1.442695, %v9764_v1 }
 0x9bd   :  { %v6923_v47 = vmul.f32 -1.442695, %v9797_v36 }
 0x9be   :  { %12652 = vst [vmem:[#allocation44_spill] sm:$0xff] %v9793_v29 }
 0x9c3   :  { %3576 = vrot.lane.b32.xlu0 %v9535_v46, %s7616_s8  ;;  %v1841_v46 = vpop.permute.xlu1 %1840  ;;  %v3106_v2 = vpop.f32.mrf.mxu3 }
 0x9c4   :  { %3572 = vrot.lane.b32.xlu2 %v9427_v30, %s7616_s8  ;;  %3203 = vrot.lane.b32.xlu1 %v3162_v53, %s7613_s0  ;;  %v9801_v19 = vpop.permute.xlu2 %2902  ;;  %v6922_v30 = vmul.f32 -1.442695, %v9783_v34  ;;  %v9805_v40 = vmul.f32 %v3106_v2, %v9311_v11 }
 0x9c6   :  { %12653 = vst [vmem:[#allocation6_spill] sm:$0xff] %v9805_v40  ;;  %7525 = vpow2.f32 %v6922_v30 }
 0x9c7   :  { %7527 = vpow2.f32 %v6921_v33 }
 0x9cb   :  { %3584 = vrot.lane.b32.xlu0 %v9568_v18, %s7616_s8  ;;  %v9812_v18 = vpop.f32.mrf.mxu0  ;;  %v3109_v23 = vpop.f32.mrf.mxu3 }
 0x9cc   :  { %3205 = vrot.lane.b32.xlu2 %v9793_v29, %s7613_s0  ;;  %v1843_v20 = vpop.permute.xlu1 %1842  ;;  %v9817_v11 = vpop.permute.xlu2 %2908  ;;  %v9820_v38 = vmul.f32 %v3109_v23, %v9313_v41 }
 0x9cd   :  { %v7526_v48 = vpop.eup %7525  ;;  %v1883_v27 = vsel %vm12656_vm2, %v8471_v16, %v1843_v20 }
 0x9ce   :  { %12654 = vst [vmem:[#allocation7_spill] sm:$0xff] %v9820_v38  ;;  %v7528_v6 = vpop.eup %7527  ;;  %v9829_v21 = vadd.f32 1.0, %v7526_v48  ;;  %v1891_v5 = vsel %vm603_vm10, %v1883_v27, %v9772_v39 }
 0x9cf   :  { %v9831_v9 = vadd.f32 1.0, %v7528_v6 }
 0x9d0   :  { %7529 = vrcp.f32 %v9829_v21  ;;  %v4035_v39 = vand.u32 2147483648, %v9829_v21  ;;  %vm4029_vm13 = vweird.f32 %v9829_v21 }
 0x9d1   :  { %7531 = vrcp.f32 %v9831_v9  ;;  %vm4014_vm11 = vweird.f32 %v9831_v9 }
 0x9d3   :  { %3548 = vrot.lane.b32.xlu0 %v9412_v25, %s7616_s8  ;;  %v9833_v41 = vpop.f32.mrf.mxu0  ;;  %v7259_v25 = vld [vmem:[%s12375_s15] sm:$0xff]  ;;  %s7617_s15 = smov 80  }
 0x9d4   :  { %3209 = vrot.lane.b32.xlu2 %v9805_v40, %s7613_s0  ;;  %v9842_v54 = vpop.permute.xlu1 %2894  ;;  %v9845_v49 = vpop.permute.xlu2 %3542  ;;  %4192 = vmatpush.bf16.msrb.mxu2 %v7259_v25 }
 0x9d6   :  { %v9854_v0 = vpop.eup %7529 }
 0x9d7   :  { %v9856_v22 = vpop.eup %7531  ;;  %v4025_v52 = vmul.f32 %v9854_v0, %v9829_v21  ;;  %vm4030_vm3 = vweird.f32 %v9854_v0 }
 0x9d8   :  { %v4010_v12 = vmul.f32 %v9856_v22, %v9831_v9  ;;  %vm4015_vm9 = vweird.f32 %v9856_v22  ;;  %vm9919_vm8 = vmor %vm4029_vm13, %vm4030_vm3 }
 0x9d9   :  { %vm9932_vm5 = vmor %vm4014_vm11, %vm4015_vm9 }
 0x9da   :  { %v4011_v33 = vsub.f32 1.0, %v4010_v12 }
 0x9db   :  { %3592 = vrot.lane.b32.xlu0 %v9602_v56, %s7616_s8  ;;  %v6924_v56 = vmul.f32 -1.442695, %v9812_v18  ;;  %v9860_v31 = vpop.f32.mrf.mxu0 }
 0x9dc   :  { %3213 = vrot.lane.b32.xlu2 %v9820_v38, %s7613_s0  ;;  %v9868_v10 = vpop.permute.xlu1 %2900  ;;  %v9875_v2 = vpop.permute.xlu2 %3550  ;;  %v6926_v23 = vmul.f32 -1.442695, %v9860_v31  ;;  %v4012_v6 = vmul.f32 %v9856_v22, %v4011_v33  ;;  %v12667_v38 = vld [vmem:[#allocation62_spill] sm:$0xff] }
 0x9dd   :  { %7533 = vpow2.f32 %v6924_v56 }
 0x9de   :  { %7535 = vpow2.f32 %v6923_v47 }
 0x9e3   :  { %3600 = vrot.lane.b32.xlu0 %v9619_v28, %s7616_s8  ;;  %v1882_v28 = vsel %vm12655_vm1, %v8456_v51, %v1841_v46  ;;  %v7534_v17 = vpop.eup %7533  ;;  %v4026_v46 = vsub.f32 1.0, %v4025_v52  ;;  %v9891_v24 = vpop.f32.mrf.mxu0 }
 0x9e4   :  { %3191 = vrot.lane.b32.xlu2 %v3156_v32, %s7613_s0  ;;  %v7536_v53 = vpop.eup %7535  ;;  %v1890_v55 = vsel %vm603_vm10, %v1882_v28, %v9751_v26  ;;  %v9877_v51 = vadd.f32 1.0, %v7534_v17  ;;  %v6925_v26 = vmul.f32 -1.442695, %v9833_v41  ;;  %v9896_v16 = vpop.permute.xlu1 %2906  ;;  %v4013_v28 = vadd.f32 %v9856_v22, %v4012_v6 }
 0x9e5   :  { %v9879_v30 = vadd.f32 1.0, %v7536_v53  ;;  %v4027_v48 = vmul.f32 %v9854_v0, %v4026_v46  ;;  %v9901_v47 = vpop.permute.xlu2 %3558  ;;  %v4033_v17 = vand.u32 2147483647, %v9829_v21  ;;  %v4020_v53 = vand.u32 2147483648, %v9831_v9 }
 0x9e6   :  { %7537 = vrcp.f32 %v9877_v51  ;;  %v6927_v33 = vmul.f32 -1.442695, %v9891_v24  ;;  %vm4059_vm3 = vweird.f32 %v9877_v51 }
 0x9e7   :  { %7539 = vrcp.f32 %v9879_v30  ;;  %v4028_v32 = vadd.f32 %v9854_v0, %v4027_v48  ;;  %vm4034_vm7 = vcmp.eq.f32.partialorder %v4033_v17, 8.507059e+37  ;;  %vm4044_vm13 = vweird.f32 %v9879_v30 }
 0x9e8   :  { %7541 = vpow2.f32 %v6926_v23  ;;  %v4036_v23 = vor.u32 1.1754944e-38, %v4035_v39 }
 0x9e9   :  { %7543 = vpow2.f32 %v6925_v26  ;;  %v4032_v46 = vsel %vm9919_vm8, %v9854_v0, %v4028_v32 }
 0x9ea   :  { %v4037_v6 = vsel %vm4034_vm7, %v4036_v23, %v4032_v46 }
 0x9eb   :  { %3564 = vrot.lane.b32.xlu0 %v9423_v57, %s7616_s8  ;;  %v1898_v57 = vmul.f32 %v1890_v55, %v9154_v61  ;;  %v4018_v55 = vand.u32 2147483647, %v9831_v9  ;;  %v4017_v9 = vsel %vm9932_vm5, %v9856_v22, %v4013_v28  ;;  %v12662_v28 = vld [vmem:[#allocation60_spill] sm:$0xff] }
 0x9ec   :  { %3199 = vrot.lane.b32.xlu2 %v3160_v7, %s7613_s0  ;;  %v9905_v25 = vpop.eup %7537  ;;  %v1899_v7 = vmul.f32 %v1891_v5, %v9201_v63  ;;  %v9955_v17 = vmul.f32 %v9676_v43, %v12662_v28  ;;  %v4048_v28 = vand.u32 2147483647, %v9879_v30 }
 0x9ed   :  { %v1906_v61 = vmul.f32 0.57735026, %v1898_v57  ;;  %v9914_v52 = vpop.eup %7539  ;;  %v4055_v21 = vmul.f32 %v9905_v25, %v9877_v51  ;;  %v12659_v57 = vld [vmem:[#allocation51_spill] sm:$0xff]  ;;  %vm4019_vm0 = vcmp.eq.f32.partialorder %v4018_v55, 8.507059e+37  ;;  %v9959_v55 = vpop.permute.xlu2 %3566  ;;  %vm4060_vm1 = vweird.f32 %v9905_v25 }
 0x9ee   :  { %v7542_v63 = vpop.eup %7541  ;;  %v1907_v27 = vmul.f32 0.57735026, %v1899_v7  ;;  %v4040_v0 = vmul.f32 %v9914_v52, %v9879_v30  ;;  %v9950_v7 = vpop.permute.xlu1 %3546  ;;  %vm4045_vm2 = vweird.f32 %v9914_v52  ;;  %vm9988_vm9 = vmor %vm4059_vm3, %vm4060_vm1  ;;  %vm4049_vm5 = vcmp.eq.f32.partialorder %v4048_v28, 8.507059e+37 }
 0x9ef   :  { %v7544_v48 = vpop.eup %7543  ;;  %v9941_v5 = vadd.f32 1.0, %v7542_v63  ;;  %v4056_v32 = vsub.f32 1.0, %v4055_v21  ;;  %vm4046_vm8 = vmor %vm4044_vm13, %vm4045_vm2 }
 0x9f0   :  { %v9948_v39 = vadd.f32 1.0, %v7544_v48  ;;  %v4041_v12 = vsub.f32 1.0, %v4040_v0  ;;  %v12663_v48 = vld [vmem:[#allocation61_spill] sm:$0xff]  ;;  %v4065_v0 = vand.u32 2147483648, %v9877_v51 }
 0x9f1   :  { %7545 = vrcp.f32 %v9941_v5  ;;  %v4057_v21 = vmul.f32 %v9905_v25, %v4056_v32  ;;  %vm4089_vm1 = vweird.f32 %v9941_v5 }
 0x9f2   :  { %7547 = vrcp.f32 %v9948_v39  ;;  %vm4074_vm3 = vweird.f32 %v9948_v39 }
 0x9f3   :  { %3580 = vrot.lane.b32.xlu0 %v9440_v35, %s7616_s8 }
 0x9f5   :  { %v3342_v56 = vpop.permute.xlu0 %3341 }
 0x9f6   :  { %v3359_v20 = vsel %vm3046_vm12, %v1906_v61, %v3342_v56  ;;  %v4021_v61 = vor.u32 1.1754944e-38, %v4020_v53  ;;  %v9943_v56 = vpop.f32.mrf.mxu0  ;;  %v4130_v53 = vmul.f32 %v4037_v6, %v9783_v34  ;;  %v4042_v34 = vmul.f32 %v9914_v52, %v4041_v12  ;;  %v10001_v12 = vpop.permute.xlu2 %3574 }
 0x9f7   :  { %6891 = vmatmul.msk.f32.gmra.mxu2 %vm2073_vm4, %v3359_v20  ;;  %6899 = vmatmul.msk.f32.gmra.mxu1 %vm2073_vm4, %v3359_v20  ;;  %v6928_v63 = vmul.f32 -1.442695, %v9943_v56 }
 0x9f8   :  { %6907 = vmatmul.msk.f32.gmra.mxu3 %vm2073_vm4, %v3359_v20  ;;  %v4022_v22 = vsel %vm4019_vm0, %v4021_v61, %v4017_v9  ;;  %v9978_v9 = vmul.f32 %v9702_v62, %v12663_v48  ;;  %v4063_v61 = vand.u32 2147483647, %v9877_v51  ;;  %v9992_v62 = vpop.permute.xlu1 %3554 }
 0x9f9   :  { %v4129_v46 = vmul.f32 %v4022_v22, %v9764_v1  ;;  %7549 = vpow2.f32 %v6928_v63  ;;  %v9974_v1 = vpop.eup %7545  ;;  %v4066_v63 = vor.u32 1.1754944e-38, %v4065_v0  ;;  %v10016_v0 = vmul.f32 %v9779_v42, %v12667_v38 }
 0x9fa   :  { %7551 = vpow2.f32 %v6927_v33  ;;  %12664 = vst [vmem:[#allocation10_spill] sm:$0xff] %v9978_v9  ;;  %v9985_v6 = vpop.eup %7547  ;;  %v4085_v51 = vmul.f32 %v9974_v1, %v9941_v5  ;;  %vm4064_vm11 = vcmp.eq.f32.partialorder %v4063_v61, 8.507059e+37  ;;  %vm4090_vm7 = vweird.f32 %v9974_v1 }
 0x9fb   :  { %3588 = vrot.lane.b32.xlu0 %v12659_v57, %s7616_s8  ;;  %v4145_v43 = vpack.c.bf16 %v4130_v53, %v4129_v46  ;;  %12668 = vst [vmem:[#allocation11_spill] sm:$0xff] %v10016_v0  ;;  %vm4075_vm0 = vweird.f32 %v9985_v6  ;;  %vm4091_vm2 = vmor %vm4089_vm1, %vm4090_vm7 }
 0x9fd   :  { %v3344_v26 = vpop.permute.xlu0 %3343 }
 0x9fe   :  { %v3360_v20 = vsel %vm3046_vm12, %v1907_v27, %v3344_v26  ;;  %v4058_v27 = vadd.f32 %v9905_v25, %v4057_v21  ;;  %v4043_v26 = vadd.f32 %v9914_v52, %v4042_v34  ;;  %v10026_v38 = vpop.permute.xlu2 %3582 }
 0x9ff   :  { %6892 = vmatmul.msk.f32.gmra.mxu2 %vm2073_vm4, %v3360_v20  ;;  %6900 = vmatmul.msk.f32.gmra.mxu1 %vm2073_vm4, %v3360_v20  ;;  %v7550_v22 = vpop.eup %7549 }
 0xa00   :  { %6908 = vmatmul.msk.f32.gmra.mxu3 %vm2073_vm4, %v3360_v20  ;;  %v4050_v20 = vand.u32 2147483648, %v9879_v30  ;;  %v4062_v53 = vsel %vm9988_vm9, %v9905_v25, %v4058_v27  ;;  %v7552_v46 = vpop.eup %7551  ;;  %v4047_v21 = vsel %vm4046_vm8, %v9914_v52, %v4043_v26  ;;  %v4070_v30 = vmul.f32 %v9985_v6, %v9948_v39  ;;  %v3563_v28 = vpop.permute.xlu1 %3562  ;;  %vm10060_vm9 = vmor %vm4074_vm3, %vm4075_vm0 }
 0xa01   :  { %v10010_v34 = vadd.f32 1.0, %v7550_v22  ;;  %v4086_v27 = vsub.f32 1.0, %v4085_v51  ;;  %v10012_v32 = vadd.f32 1.0, %v7552_v46  ;;  %v3484_v22 = vpop.f32.mrf.mxu3  ;;  %v3443_v51 = vpop.f32.mrf.mxu1 }
 0xa02   :  { %v4051_v25 = vor.u32 1.1754944e-38, %v4050_v20  ;;  %v4071_v26 = vsub.f32 1.0, %v4070_v30 }
 0xa03   :  { %3185 = vrot.lane.b32.xlu0 %v9955_v17, %s7613_s0  ;;  %7553 = vrcp.f32 %v10010_v34  ;;  %v4087_v20 = vmul.f32 %v9974_v1, %v4086_v27  ;;  %v4095_v27 = vand.u32 2147483648, %v9941_v5  ;;  %vm4119_vm7 = vweird.f32 %v10010_v34 }
 0xa04   :  { %v4052_v48 = vsel %vm4049_vm5, %v4051_v25, %v4047_v21  ;;  %7555 = vrcp.f32 %v10012_v32  ;;  %v4072_v42 = vmul.f32 %v9985_v6, %v4071_v26  ;;  %v4080_v26 = vand.u32 2147483648, %v9948_v39 }
 0xa05   :  { %v9969_v23 = vpop.permute.xlu0 %2898  ;;  %v4131_v61 = vmul.f32 %v4052_v48, %v9797_v36  ;;  %v4088_v46 = vadd.f32 %v9974_v1, %v4087_v20  ;;  %v4096_v20 = vor.u32 1.1754944e-38, %v4095_v27  ;;  %vm4104_vm1 = vweird.f32 %v10012_v32 }
 0xa06   :  { %v4073_v48 = vadd.f32 %v9985_v6, %v4072_v42  ;;  %v4081_v42 = vor.u32 1.1754944e-38, %v4080_v26 }
 0xa07   :  { %6945 = vmatmul.msk.bf16.vlgmr.msrb.gmra.mxu2 %vm841_vm15, %v4145_v43  ;;  %v4067_v43 = vsel %vm4064_vm11, %v4066_v63, %v4062_v53 }
 0xa08   :  { %v4132_v52 = vmul.f32 %v4067_v43, %v9812_v18  ;;  %v3164_v43 = vmul.f32 %v9709_v59, %v9440_v35  ;;  %v4078_v35 = vand.u32 2147483647, %v9948_v39  ;;  %v4092_v59 = vsel %vm4091_vm2, %v9974_v1, %v4088_v46  ;;  %v10077_v46 = vpop.permute.xlu2 %3540 }
 0xa09   :  { %v10037_v25 = vpop.eup %7553 }
 0xa0a   :  { %v4146_v53 = vpack.c.bf16 %v4132_v52, %v4131_v61  ;;  %v10049_v52 = vpop.eup %7555  ;;  %vm4079_vm8 = vcmp.eq.f32.partialorder %v4078_v35, 8.507059e+37  ;;  %vm4120_vm11 = vweird.f32 %v10037_v25 }
 0xa0b   :  { %3193 = vrot.lane.b32.xlu0 %v9978_v9, %s7613_s0  ;;  %v4100_v39 = vmul.f32 %v10049_v52, %v10012_v32  ;;  %vm4105_vm5 = vweird.f32 %v10049_v52  ;;  %vm4121_vm0 = vmor %vm4119_vm7, %vm4120_vm11 }
 0xa0c   :  { %vm4106_vm2 = vmor %vm4104_vm1, %vm4105_vm5 }
 0xa0d   :  { %v10008_v33 = vpop.permute.xlu0 %2904 }
 0xa13   :  { %3201 = vrot.lane.b32.xlu0 %v10016_v0, %s7613_s0 }
 0xa15   :  { %v3545_v18 = vpop.permute.xlu0 %3544 }
 0xa16   :  { %v3605_v63 = vsel %vm841_vm15, %v9845_v49, %v3545_v18  ;;  %v3606_v36 = vsel %vm841_vm15, %v3545_v18, %v9950_v7  ;;  %v4093_v7 = vand.u32 2147483647, %v9941_v5  ;;  %v4115_v5 = vmul.f32 %v10037_v25, %v10010_v34 }
 0xa17   :  { %v10034_v21 = vmul.f32 %v3605_v63, %v3443_v51  ;;  %v3654_v30 = vmul.f32 %v3606_v36, %v3484_v22  ;;  %6946 = vmatmul.msk.bf16.gmra.mxu2 %vm841_vm15, %v4146_v53  ;;  %v4077_v22 = vsel %vm10060_vm9, %v9985_v6, %v4073_v48  ;;  %v3487_v53 = vpop.f32.mrf.mxu3  ;;  %v10071_v51 = vpop.permute.xlu1 %3570  ;;  %v10075_v36 = vadd.f32 %v9790_v45, %v9610_v50 }
 0xa18   :  { %vm4094_vm13 = vcmp.eq.f32.partialorder %v4093_v7, 8.507059e+37  ;;  %v4116_v63 = vsub.f32 1.0, %v4115_v5  ;;  %v10081_v6 = vadd.f32 %v9969_v23, %v9683_v60  ;;  %v4101_v48 = vsub.f32 1.0, %v4100_v39  ;;  %v3446_v50 = vpop.f32.mrf.mxu1  ;;  %v10110_v39 = vpop.permute.xlu2 %3590 }
 0xa19   :  { %3694 = vrot.lane.b32.xlu2 %v3654_v30, %s7616_s8  ;;  %3692 = vrot.lane.b32.xlu1 %v10034_v21, %s7616_s8  ;;  %v4097_v18 = vsel %vm4094_vm13, %v4096_v20, %v4092_v59  ;;  %v4082_v30 = vsel %vm4079_vm8, %v4081_v42, %v4077_v22  ;;  %v4125_v5 = vand.u32 2147483648, %v10010_v34  ;;  %v4123_v20 = vand.u32 2147483647, %v10010_v34 }
 0xa1a   :  { %v4134_v27 = vmul.f32 %v4097_v18, %v9860_v31  ;;  %v4133_v45 = vmul.f32 %v4082_v30, %v9833_v41  ;;  %v4117_v7 = vmul.f32 %v10037_v25, %v4116_v63  ;;  %v4102_v31 = vmul.f32 %v10049_v52, %v4101_v48 }
 0xa1b   :  { %3207 = vrot.lane.b32.xlu0 %v3164_v43, %s7613_s0  ;;  %v3166_v43 = vmul.f32 %v9729_v3, %v12659_v57  ;;  %v4108_v34 = vand.u32 2147483647, %v10012_v32  ;;  %vm4124_vm3 = vcmp.eq.f32.partialorder %v4123_v20, 8.507059e+37 }
 0xa1c   :  { %v4147_v3 = vpack.c.bf16 %v4134_v27, %v4133_v45  ;;  %v4118_v35 = vadd.f32 %v10037_v25, %v4117_v7  ;;  %v4103_v61 = vadd.f32 %v10049_v52, %v4102_v31  ;;  %v3168_v7 = vmul.f32 %v9748_v4, %v9459_v8 }
 0xa1d   :  { %v10069_v1 = vpop.permute.xlu0 %3552  ;;  %vm4109_vm9 = vcmp.eq.f32.partialorder %v4108_v34, 8.507059e+37 }
 0xa1e   :  { %v3609_v60 = vsel %vm841_vm15, %v10069_v1, %v9992_v62  ;;  %v4122_v18 = vsel %vm4121_vm0, %v10037_v25, %v4118_v35  ;;  %v4107_v30 = vsel %vm4106_vm2, %v10049_v52, %v4103_v61  ;;  %v3608_v8 = vsel %vm841_vm15, %v9875_v2, %v10069_v1 }
 0xa1f   :  { %v3657_v41 = vmul.f32 %v3609_v60, %v3487_v53  ;;  %v3579_v62 = vpop.permute.xlu1 %3578  ;;  %v4110_v53 = vand.u32 2147483648, %v10012_v32 }
 0xa20   :  { %v3449_v42 = vpop.f32.mrf.mxu1  ;;  %v10135_v31 = vpop.permute.xlu2 %3598 }
 0xa21   :  { %2938 = vrot.lane.b32.xlu2 %v10081_v6, %s7610_s11  ;;  %2936 = vrot.lane.b32.xlu1 %v10075_v36, %s7610_s11  ;;  %v4111_v48 = vor.u32 1.1754944e-38, %v4110_v53 }
 0xa23   :  { %3211 = vrot.lane.b32.xlu0 %v3166_v43, %s7613_s0  ;;  %v4112_v25 = vsel %vm4109_vm9, %v4111_v48, %v4107_v30 }
 0xa24   :  { %v4135_v52 = vmul.f32 %v4112_v25, %v9891_v24  ;;  %v10145_v24 = vmul.f32 %v3608_v8, %v3446_v50  ;;  %v10159_v50 = vadd.f32 %v10008_v33, %v9697_v14  ;;  %v10177_v14 = vadd.f32 %v9801_v19, %v9617_v58 }
 0xa25   :  { %v3490_v57 = vpop.f32.mrf.mxu3  ;;  %v3561_v23 = vpop.permute.xlu0 %3560 }
 0xa26   :  { %v3612_v26 = vsel %vm841_vm15, %v3561_v23, %v3563_v28  ;;  %v12671_v28 = vld [vmem:[#allocation41_spill] sm:$0xff]  ;;  %v3611_v63 = vsel %vm841_vm15, %v9901_v47, %v3561_v23 }
 0xa27   :  { %v3660_v59 = vmul.f32 %v3612_v26, %v3490_v57  ;;  %6947 = vmatmul.msk.bf16.gmra.mxu2 %vm841_vm15, %v4147_v3  ;;  %v10108_v22 = vadd.f32 %v9842_v54, %v12671_v28  ;;  %v4126_v54 = vor.u32 1.1754944e-38, %v4125_v5  ;;  %v10127_v32 = vmul.f32 %v3611_v63, %v3449_v42  ;;  %v3587_v3 = vpop.permute.xlu1 %3586  ;;  %v10169_v42 = vpop.f32.mrf.mxu2 }
 0xa28   :  { %v3452_v57 = vpop.f32.mrf.mxu1  ;;  %v10153_v5 = vpop.permute.xlu2 %3556 }
 0xa29   :  { %3702 = vrot.lane.b32.xlu2 %v3660_v59, %s7616_s8  ;;  %3698 = vrot.lane.b32.xlu1 %v3657_v41, %s7616_s8  ;;  %v4127_v45 = vsel %vm4124_vm3, %v4126_v54, %v4122_v18  ;;  %v12672_v54 = vld [vmem:[#allocation53_spill] sm:$0xff] }
 0xa2a   :  { %v4136_v60 = vmul.f32 %v4127_v45, %v9943_v56  ;;  %v10183_v63 = vadd.f32 %v9868_v10, %v12672_v54 }
 0xa2b   :  { %2934 = vrot.lane.b32.xlu0 %v10108_v22, %s7610_s11 }
 0xa2c   :  { %v4148_v26 = vpack.c.bf16 %v4136_v60, %v4135_v52  ;;  %v10207_v52 = vadd.f32 %v9896_v16, %v9583_v13 }
 0xa2d   :  { %v3493_v43 = vpop.f32.mrf.mxu3  ;;  %v3569_v27 = vpop.permute.xlu0 %3568 }
 0xa2e   :  { %v3615_v23 = vsel %vm841_vm15, %v3569_v27, %v10071_v51  ;;  %v3614_v20 = vsel %vm841_vm15, %v9959_v55, %v3569_v27 }
 0xa2f   :  { %v3663_v41 = vmul.f32 %v3615_v23, %v3493_v43  ;;  %v3595_v51 = vpop.permute.xlu1 %3594  ;;  %v10163_v53 = vmul.f32 %v3614_v20, %v3452_v57  ;;  %v10189_v30 = vpop.f32.mrf.mxu2 }
 0xa30   :  { %v3455_v61 = vpop.f32.mrf.mxu1  ;;  %v10179_v33 = vpop.permute.xlu2 %3572 }
 0xa31   :  { %3700 = vrot.lane.b32.xlu1 %v10127_v32, %s7616_s8 }
 0xa33   :  { %3215 = vrot.lane.b32.xlu0 %v3168_v7, %s7613_s0 }
 0xa35   :  { %v3577_v35 = vpop.permute.xlu0 %3576  ;;  %v3496_v4 = vpop.f32.mrf.mxu3 }
 0xa36   :  { %v3618_v56 = vsel %vm841_vm15, %v3577_v35, %v3579_v62  ;;  %v3617_v1 = vsel %vm841_vm15, %v10001_v12, %v3577_v35 }
 0xa37   :  { %v3666_v59 = vmul.f32 %v3618_v56, %v3496_v4  ;;  %6948 = vmatmul.msk.bf16.gmra.mxu2 %vm841_vm15, %v4148_v26  ;;  %v10161_v28 = vmul.f32 %v3617_v1, %v3455_v61  ;;  %v3603_v18 = vpop.permute.xlu1 %3602  ;;  %v10203_v60 = vpop.f32.mrf.mxu2 }
 0xa38   :  { %v3458_v10 = vpop.f32.mrf.mxu1  ;;  %v10196_v25 = vpop.permute.xlu2 %3205 }
 0xa39   :  { %3710 = vrot.lane.b32.xlu2 %v3666_v59, %s7616_s8  ;;  %3706 = vrot.lane.b32.xlu1 %v3663_v41, %s7616_s8  ;;  %12673 = vst [vmem:[#allocation54_spill] sm:$0xff] %v10196_v25 }
 0xa3b   :  { %3696 = vrot.lane.b32.xlu0 %v10145_v24, %s7616_s8 }
 0xa3d   :  { %v3585_v62 = vpop.permute.xlu0 %3584  ;;  %v3499_v48 = vpop.f32.mrf.mxu3 }
 0xa3e   :  { %v3621_v43 = vsel %vm841_vm15, %v3585_v62, %v3587_v3  ;;  %v3620_v58 = vsel %vm841_vm15, %v10026_v38, %v3585_v62 }
 0xa3f   :  { %v3669_v19 = vmul.f32 %v3621_v43, %v3499_v48  ;;  %v10194_v45 = vpop.permute.xlu1 %3596  ;;  %v10198_v7 = vmul.f32 %v3620_v58, %v3458_v10  ;;  %v10215_v35 = vpop.f32.mrf.mxu2 }
 0xa40   :  { %v10209_v23 = vpop.permute.xlu2 %3209 }
 0xa41   :  { %2944 = vrot.lane.b32.xlu2 %v10159_v50, %s7610_s11  ;;  %3708 = vrot.lane.b32.xlu1 %v10161_v28, %s7616_s8  ;;  %12674 = vst [vmem:[#allocation45_spill] sm:$0xff] %v10209_v23 }
 0xa43   :  { %3704 = vrot.lane.b32.xlu0 %v10163_v53, %s7616_s8 }
 0xa45   :  { %v10173_v34 = vpop.permute.xlu0 %3548 }
 0xa47   :  { %v3190_v57 = vpop.permute.xlu1 %3189  ;;  %v10223_v41 = vpop.f32.mrf.mxu2 }
 0xa48   :  { %v10219_v4 = vpop.permute.xlu2 %3213 }
 0xa49   :  { %2942 = vrot.lane.b32.xlu1 %v10177_v14, %s7610_s11  ;;  %12675 = vst [vmem:[#allocation14_spill] sm:$0xff] %v10219_v4 }
 0xa4b   :  { %2940 = vrot.lane.b32.xlu0 %v10183_v63, %s7610_s11 }
 0xa4d   :  { %v3593_v27 = vpop.permute.xlu0 %3592 }
 0xa4e   :  { %v3623_v61 = vsel %vm841_vm15, %v10110_v39, %v3593_v27  ;;  %v3624_v10 = vsel %vm841_vm15, %v3593_v27, %v3595_v51 }
 0xa4f   :  { %v10217_v8 = vpop.permute.xlu1 %3197  ;;  %v10227_v1 = vpop.f32.mrf.mxu2 }
 0xa50   :  { %v3192_v59 = vpop.permute.xlu2 %3191 }
 0xa51   :  { %3714 = vrot.lane.b32.xlu1 %v3669_v19, %s7616_s8 }
 0xa53   :  { %3712 = vrot.lane.b32.xlu0 %v10198_v7, %s7616_s8 }
 0xa55   :  { %v3601_v3 = vpop.permute.xlu0 %3600 }
 0xa56   :  { %v3626_v23 = vsel %vm841_vm15, %v10135_v31, %v3601_v3  ;;  %v3627_v27 = vsel %vm841_vm15, %v3601_v3, %v3603_v18 }
 0xa57   :  { %v3188_v16 = vpop.permute.xlu1 %3187 }
 0xa58   :  { %v10237_v48 = vpop.permute.xlu2 %3199 }
 0xa5b   :  { %2946 = vrot.lane.b32.xlu0 %v10207_v52, %s7610_s11 }
 0xa5d   :  { %v10213_v26 = vpop.permute.xlu0 %3564 }
 0xa5f   :  { %v10235_v43 = vpop.permute.xlu1 %3195 }
 0xa65   :  { %v10221_v56 = vpop.permute.xlu0 %3580 }
 0xa67   :  { %v10253_v0 = vpop.permute.xlu1 %3203 }
 0xa6d   :  { %v10225_v13 = vpop.permute.xlu0 %3588 }
 0xa73   :  { %v3695_v29 = vpop.permute.xlu2 %3694 }
 0xa74   :  { %v3461_v62 = vpop.f32.mrf.mxu1 }
 0xa75   :  { %v10231_v20 = vmul.f32 %v3623_v61, %v3461_v62  ;;  %v3186_v54 = vpop.permute.xlu0 %3185 }
 0xa77   :  { %3716 = vrot.lane.b32.xlu2 %v10231_v20, %s7616_s8 }
 0xa7a   :  { %v10239_v58 = vpop.f32.mrf.mxu2 }
 0xa7b   :  { %v3502_v19 = vpop.f32.mrf.mxu3 }
 0xa7c   :  { %v3672_v4 = vmul.f32 %v3624_v10, %v3502_v19  ;;  %v3464_v40 = vpop.f32.mrf.mxu1  ;;  %v3749_v19 = vadd.f32 %v3695_v29, %v10034_v21 }
 0xa7d   :  { %v10244_v62 = vmul.f32 %v3626_v23, %v3464_v40  ;;  %v10246_v61 = vpop.permute.xlu0 %3193  ;;  %v10259_v40 = vadd.f32 %v9817_v11, %v9626_v37  ;;  %v3218_v37 = vsel %vm500_vm14, %v3190_v57, %v3192_v59 }
 0xa7e   :  { %3718 = vrot.lane.b32.xlu0 %v3672_v4, %s7616_s8  ;;  %v3217_v4 = vsel %vm500_vm14, %v3186_v54, %v3188_v16  ;;  %v10284_v16 = vadd.f32 %v3218_v37, %v9716_v44  ;;  %v3604_v44 = vsel %vm841_vm15, %v10077_v46, %v9845_v49 }
 0xa7f   :  { %3720 = vrot.lane.b32.xlu1 %v10244_v62, %s7616_s8  ;;  %v10271_v21 = vadd.f32 %v3217_v4, %v9955_v17  ;;  %v2939_v17 = vpop.permute.xlu2 %2938 }
 0xa80   :  { %12678 = vst [vmem:[#allocation19_spill] sm:$0xff] %v10284_v16 }
 0xa82   :  { %v10251_v25 = vpop.f32.mrf.mxu2 }
 0xa83   :  { %v3505_v51 = vpop.f32.mrf.mxu3 }
 0xa84   :  { %v3675_v10 = vmul.f32 %v3627_v27, %v3505_v51 }
 0xa85   :  { %v10261_v23 = vpop.permute.xlu0 %3201 }
 0xa86   :  { %12676 = vst [vmem:[#allocation15_spill] sm:$0xff] %v10261_v23  ;;  %3722 = vrot.lane.b32.xlu2 %v3675_v10, %s7616_s8  ;;  %3782 = vrot.lane.b32.xlu0 %v3749_v19, %s7613_s0 }
 0xa87   :  { %2948 = vrot.lane.b32.xlu1 %v10259_v40, %s7610_s11 }
 0xa8a   :  { %v10268_v9 = vpop.f32.mrf.mxu2 }
 0xa8b   :  { %v3693_v18 = vpop.permute.xlu1 %3692 }
 0xa8d   :  { %v10273_v3 = vpop.permute.xlu0 %3207 }
 0xa8e   :  { %12677 = vst [vmem:[#allocation18_spill] sm:$0xff] %v10273_v3 }
 0xa8f   :  { %3249 = vrot.lane.b32.xlu1 %v10271_v21, %s7617_s15 }
 0xa92   :  { %v10278_v11 = vpop.f32.mrf.mxu2 }
 0xa93   :  { %v2937_v51 = vpop.permute.xlu1 %2936 }
 0xa94   :  { %v10281_v27 = vadd.f32 %v2937_v51, %v10075_v36  ;;  %v3610_v36 = vsel %vm841_vm15, %v10153_v5, %v9901_v47  ;;  %v3703_v51 = vpop.permute.xlu2 %3702 }
 0xa95   :  { %v10286_v54 = vpop.permute.xlu0 %3211  ;;  %v3658_v37 = vmul.f32 %v3610_v36, %v10203_v60 }
 0xa96   :  { %12679 = vst [vmem:[#allocation55_spill] sm:$0xff] %v10286_v54  ;;  %2976 = vrot.lane.b32.xlu0 %v10281_v27, %s7611_s18  ;;  %v3724_v54 = vsel %vm841_vm15, %v3693_v18, %v3695_v29  ;;  %v3607_v29 = vsel %vm841_vm15, %v10173_v34, %v9875_v2 }
 0xa97   :  { %3251 = vrot.lane.b32.xlu1 %v10284_v16, %s7617_s15 }
 0xa9a   :  { %v10292_v19 = vpop.f32.mrf.mxu2 }
 0xa9b   :  { %v3699_v57 = vpop.permute.xlu1 %3698 }
 0xa9c   :  { %v3751_v18 = vadd.f32 %v3699_v57, %v10145_v24 }
 0xa9d   :  { %v2935_v59 = vpop.permute.xlu0 %2934 }
 0xa9e   :  { %v10295_v10 = vadd.f32 %v2935_v59, %v10108_v22  ;;  %v3652_v59 = vmul.f32 %v3604_v44, %v10169_v42  ;;  %v3655_v42 = vmul.f32 %v3607_v29, %v10189_v30  ;;  %v12680_v29 = vld [vmem:[#allocation27_spill] sm:$0xff] }
 0xaa0   :  { %2974 = vrot.lane.b32.xlu2 %v10295_v10, %s7611_s18  ;;  %v10315_v49 = vadd.f32 %v3724_v54, %v3652_v59 }
 0xaa2   :  { %v10305_v4 = vpop.f32.mrf.mxu2 }
 0xaa3   :  { %v3701_v22 = vpop.permute.xlu1 %3700 }
 0xaa4   :  { %v3726_v16 = vsel %vm841_vm15, %v3701_v22, %v3703_v51  ;;  %v3753_v22 = vadd.f32 %v3703_v51, %v10127_v32  ;;  %v3616_v32 = vsel %vm841_vm15, %v10179_v33, %v10001_v12 }
 0xaa5   :  { %v10311_v3 = vadd.f32 %v3726_v16, %v3658_v37  ;;  %v10313_v23 = vpop.permute.xlu0 %3215 }
 0xaa7   :  { %3788 = vrot.lane.b32.xlu0 %v10311_v3, %s7613_s0 }
 0xaa8   :  { %3780 = vrot.lane.b32.xlu2 %v10315_v49, %s7613_s0 }
 0xaaa   :  { %v4204_v47 = vpop.f32.mrf.mxu2 }
 0xaab   :  { %v3707_v46 = vpop.permute.xlu1 %3706 }
 0xaac   :  { %v3755_v5 = vadd.f32 %v3707_v46, %v10163_v53  ;;  %v10335_v53 = vadd.f32 %v2939_v17, %v10081_v6  ;;  %v3613_v6 = vsel %vm841_vm15, %v10213_v26, %v9959_v55  ;;  %v3664_v26 = vmul.f32 %v3616_v32, %v10223_v41 }
 0xaad   :  { %v3697_v60 = vpop.permute.xlu0 %3696  ;;  %v3661_v51 = vmul.f32 %v3613_v6, %v10215_v35  ;;  %v12683_v35 = vld [vmem:[#allocation24_spill] sm:$0xff] }
 0xaae   :  { %v3725_v16 = vsel %vm841_vm15, %v3697_v60, %v3699_v57  ;;  %v12681_v60 = vld [vmem:[#allocation26_spill] sm:$0xff]  ;;  %v4218_v41 = vmul.f32 %v4204_v47, %v12683_v35 }
 0xaaf   :  { %v10328_v54 = vadd.f32 %v3725_v16, %v3655_v42  ;;  %3794 = vrot.lane.b32.xlu0 %v3755_v5, %s7613_s0 }
 0xab0   :  { %3786 = vrot.lane.b32.xlu2 %v3751_v18, %s7613_s0 }
 0xab1   :  { %3784 = vrot.lane.b32.xlu1 %v10328_v54, %s7613_s0 }
 0xab2   :  { %v4206_v2 = vpop.f32.mrf.mxu2 }
 0xab3   :  { %v3709_v34 = vpop.permute.xlu1 %3708 }
 0xab5   :  { %v3705_v44 = vpop.permute.xlu0 %3704 }
 0xab6   :  { %v3727_v59 = vsel %vm841_vm15, %v3705_v44, %v3707_v46  ;;  %v12682_v44 = vld [vmem:[#allocation25_spill] sm:$0xff] }
 0xab7   :  { %v10367_v46 = vadd.f32 %v3727_v59, %v3661_v51 }
 0xab9   :  { %2978 = vrot.lane.b32.xlu1 %v10335_v53, %s7611_s18 }
 0xaba   :  { %v4209_v24 = vpop.f32.mrf.mxu2 }
 0xabb   :  { %v2943_v30 = vpop.permute.xlu1 %2942 }
 0xabc   :  { %v10340_v57 = vadd.f32 %v2943_v30, %v10177_v14  ;;  %v3619_v14 = vsel %vm841_vm15, %v10221_v56, %v10026_v38  ;;  %v4220_v38 = vmul.f32 %v4209_v24, %v12681_v60  ;;  %v4219_v30 = vmul.f32 %v4206_v2, %v12682_v44  ;;  %v12685_v24 = vld [vmem:[#allocation22_spill] sm:$0xff] }
 0xabd   :  { %v2941_v36 = vpop.permute.xlu0 %2940  ;;  %v3667_v42 = vmul.f32 %v3619_v14, %v10227_v1  ;;  %v12684_v1 = vld [vmem:[#allocation23_spill] sm:$0xff]  ;;  %v12686_v14 = vld [vmem:[#allocation21_spill] sm:$0xff] }
 0xabe   :  { %v10343_v37 = vadd.f32 %v2941_v36, %v10183_v63  ;;  %2982 = vrot.lane.b32.xlu0 %v10340_v57, %s7611_s18  ;;  %v3711_v63 = vpop.permute.xlu2 %3710  ;;  %v4217_v2 = vmul.f32 %v10305_v4, %v12684_v1  ;;  %v4216_v36 = vmul.f32 %v10292_v19, %v12685_v24  ;;  %v12687_v4 = vld [vmem:[#allocation20_spill] sm:$0xff] }
 0xabf   :  { %v3728_v55 = vsel %vm841_vm15, %v3709_v34, %v3711_v63  ;;  %v3757_v6 = vadd.f32 %v3711_v63, %v10161_v28  ;;  %v12688_v28 = vld [vmem:[#allocation28_spill] sm:$0xff]  ;;  %v3625_v63 = vsel %vm841_vm15, %v10194_v45, %v10135_v31 }
 0xac0   :  { %2980 = vrot.lane.b32.xlu2 %v10343_v37, %s7611_s18  ;;  %v10371_v12 = vadd.f32 %v3728_v55, %v3664_v26  ;;  %v3673_v32 = vmul.f32 %v3625_v63, %v10251_v25 }
 0xac1   :  { %3790 = vrot.lane.b32.xlu1 %v3753_v22, %s7613_s0 }
 0xac2   :  { %v4211_v17 = vpop.f32.mrf.mxu2 }
 0xac3   :  { %v4221_v5 = vmul.f32 %v4211_v17, %v12680_v29  ;;  %v3715_v56 = vpop.permute.xlu1 %3714  ;;  %v4215_v17 = vmul.f32 %v10278_v11, %v12686_v14  ;;  %v4214_v29 = vmul.f32 %v10268_v9, %v12687_v4  ;;  %v3622_v9 = vsel %vm841_vm15, %v10225_v13, %v10110_v39  ;;  %v4247_v14 = vld [vmem:[%s12376_s19 + $0x10] sm:$0xff] }
 0xac4   :  { %v3670_v19 = vmul.f32 %v3622_v9, %v10239_v58 }
 0xac5   :  { %4230 = vmatpush.msra.mxu1 %v4221_v5  ;;  %v3713_v18 = vpop.permute.xlu0 %3712 }
 0xac6   :  { %v3729_v16 = vsel %vm841_vm15, %v3713_v18, %v3715_v56  ;;  %v2945_v34 = vpop.permute.xlu2 %2944 }
 0xac7   :  { %v10373_v33 = vadd.f32 %v3729_v16, %v3667_v42  ;;  %4231 = vmatpush.msra.mxu1 %v4220_v38  ;;  %v10393_v59 = vadd.f32 %v2945_v34, %v10159_v50  ;;  %v3759_v50 = vadd.f32 %v3715_v56, %v10198_v7 }
 0xac8   :  { %3792 = vrot.lane.b32.xlu2 %v10367_v46, %s7613_s0 }
 0xac9   :  { %4232 = vmatpush.msra.mxu1 %v4219_v30  ;;  %3796 = vrot.lane.b32.xlu1 %v10371_v12, %s7613_s0 }
 0xaca   :  { %3800 = vrot.lane.b32.xlu0 %v10373_v33, %s7613_s0 }
 0xacb   :  { %4233 = vmatpush.msra.mxu1 %v4218_v41 }
 0xacd   :  { %4234 = vmatpush.msra.mxu1 %v4217_v2  ;;  %v2947_v22 = vpop.permute.xlu0 %2946 }
 0xace   :  { %v10388_v47 = vadd.f32 %v2947_v22, %v10207_v52  ;;  %v12689_v52 = vld [vmem:[#allocation30_spill] sm:$0xff] }
 0xacf   :  { %4235 = vmatpush.msra.mxu1 %v4216_v36 }
 0xad0   :  { %3798 = vrot.lane.b32.xlu2 %v3757_v6, %s7613_s0 }
 0xad1   :  { %4236 = vmatpush.msra.mxu1 %v4215_v17  ;;  %2984 = vrot.lane.b32.xlu1 %v10393_v59, %s7611_s18  ;;  %v3717_v11 = vpop.permute.xlu2 %3716 }
 0xad2   :  { %2986 = vrot.lane.b32.xlu0 %v10388_v47, %s7611_s18 }
 0xad3   :  { %4237 = vmatpush.msra.mxu1 %v4214_v29 }
 0xad4   :  { %6949 = vmatmul.msk.f32.vlgmr.msra.gmra.mxu1 %vm841_vm15, %v12688_v28 }
 0xad9   :  { %3802 = vrot.lane.b32.xlu1 %v3759_v50, %s7613_s0 }
 0xadc   :  { %6950 = vmatmul.msk.f32.gmra.mxu1 %vm841_vm15, %v12689_v52 }
 0xae0   :  { %v3723_v7 = vpop.permute.xlu2 %3722 }
 0xaf0   :  { %v3719_v5 = vpop.permute.xlu0 %3718 }
 0xaf1   :  { %v3730_v51 = vsel %vm841_vm15, %v3717_v11, %v3719_v5  ;;  %v3761_v55 = vadd.f32 %v3719_v5, %v10231_v20  ;;  %v3721_v26 = vpop.permute.xlu1 %3720  ;;  %v3763_v20 = vadd.f32 %v3723_v7, %v10244_v62 }
 0xaf2   :  { %v10418_v42 = vadd.f32 %v3730_v51, %v3670_v19  ;;  %v3731_v60 = vsel %vm841_vm15, %v3721_v26, %v3723_v7 }
 0xaf3   :  { %v10421_v39 = vadd.f32 %v3731_v60, %v3673_v32  ;;  %3806 = vrot.lane.b32.xlu2 %v3761_v55, %s7613_s0 }
 0xaf4   :  { %3804 = vrot.lane.b32.xlu1 %v10418_v42, %s7613_s0 }
 0xaf5   :  { %3808 = vrot.lane.b32.xlu0 %v10421_v39, %s7613_s0 }
 0xaf8   :  { %v3783_v13 = vpop.permute.xlu0 %3782 }
 0xaf9   :  { %v2949_v31 = vpop.permute.xlu1 %2948 }
 0xafa   :  { %v10429_v45 = vadd.f32 %v2949_v31, %v10259_v40  ;;  %v2975_v25 = vpop.permute.xlu2 %2974 }
 0xafb   :  { %v10442_v18 = vadd.f32 %v2975_v25, %v10295_v10  ;;  %v4248_v10 = vld [vmem:[%s12376_s19 + $0x18] sm:$0xff] }
 0xafc   :  { %2988 = vrot.lane.b32.xlu1 %v10429_v45, %s7611_s18  ;;  %4267 = vmatpush.msrb.mxu3 %v4248_v10 }
 0xafe   :  { %4268 = vmatpush.msrb.mxu3 %v4247_v14 }
 0xb01   :  { %v10451_v62 = vpop.permute.xlu1 %3249 }
 0xb02   :  { %v3781_v58 = vpop.permute.xlu2 %3780 }
 0xb03   :  { %v3812_v38 = vsel %vm500_vm14, %v3781_v58, %v3783_v13 }
 0xb04   :  { %v10436_v56 = vadd.f32 %v3812_v38, %v10315_v49  ;;  %3810 = vrot.lane.b32.xlu1 %v3763_v20, %s7613_s0 }
 0xb06   :  { %3844 = vrot.lane.b32.xlu2 %v10436_v56, %s7617_s15 }
 0xb08   :  { %v2977_v40 = vpop.permute.xlu0 %2976 }
 0xb09   :  { %v10445_v16 = vadd.f32 %v2977_v40, %v10281_v27  ;;  %v10453_v44 = vpop.permute.xlu1 %3251 }
 0xb0a   :  { %v3787_v49 = vpop.permute.xlu2 %3786 }
 0xb0c   :  { %3014 = vrot.lane.b32.xlu1 %v10442_v18, %s7612_s25 }
 0xb0e   :  { %3016 = vrot.lane.b32.xlu2 %v10445_v16, %s7612_s25 }
 0xb19   :  { %v3789_v30 = vpop.permute.xlu0 %3788 }
 0xb1a   :  { %v2981_v35 = vpop.permute.xlu2 %2980 }
 0xb1b   :  { %v10494_v19 = vadd.f32 %v2981_v35, %v10343_v37 }
 0xb21   :  { %v3795_v2 = vpop.permute.xlu0 %3794 }
 0xb22   :  { %v3793_v34 = vpop.permute.xlu2 %3792 }
 0xb23   :  { %v3785_v27 = vpop.permute.xlu1 %3784  ;;  %v3815_v24 = vsel %vm500_vm14, %v3793_v34, %v3795_v2 }
 0xb24   :  { %v3813_v41 = vsel %vm500_vm14, %v3785_v27, %v3787_v49  ;;  %v10469_v6 = vadd.f32 %v3815_v24, %v10367_v46  ;;  %v4245_v46 = vld [vmem:[%s12376_s19] sm:$0xff] }
 0xb25   :  { %v10460_v1 = vadd.f32 %v3813_v41, %v10328_v54  ;;  %v4246_v54 = vld [vmem:[%s12376_s19 + $0x8] sm:$0xff]  ;;  %s7618_s19 = smov 104  }
 0xb26   :  { %4269 = vmatpush.msrb.mxu3 %v4246_v54 }
 0xb27   :  { %3846 = vrot.lane.b32.xlu0 %v10460_v1, %s7617_s15 }
 0xb28   :  { %4270 = vmatpush.msrb.mxu3 %v4245_v46 }
 0xb2a   :  { %v3799_v50 = vpop.permute.xlu2 %3798 }
 0xb2b   :  { %v2979_v36 = vpop.permute.xlu1 %2978 }
 0xb2c   :  { %v10466_v22 = vadd.f32 %v2979_v36, %v10335_v53 }
 0xb2e   :  { %3018 = vrot.lane.b32.xlu1 %v10466_v22, %s7612_s25 }
 0xb2f   :  { %3850 = vrot.lane.b32.xlu0 %v10469_v6, %s7617_s15 }
 0xb30   :  { %v2983_v53 = vpop.permute.xlu0 %2982 }
 0xb31   :  { %v10485_v4 = vadd.f32 %v2983_v53, %v10340_v57 }
 0xb33   :  { %v3791_v17 = vpop.permute.xlu1 %3790 }
 0xb34   :  { %v3814_v29 = vsel %vm500_vm14, %v3789_v30, %v3791_v17 }
 0xb35   :  { %v3830_v28 = vadd.f32 %v3814_v29, %v10311_v3 }
 0xb36   :  { %3022 = vrot.lane.b32.xlu1 %v10485_v4, %s7612_s25 }
 0xb37   :  { %3848 = vrot.lane.b32.xlu2 %v3830_v28, %s7617_s15 }
 0xb3b   :  { %v3797_v52 = vpop.permute.xlu1 %3796 }
 0xb3c   :  { %v3816_v11 = vsel %vm500_vm14, %v3797_v52, %v3799_v50  ;;  %v3801_v9 = vpop.permute.xlu0 %3800  ;;  %v12691_v50 = vld [vmem:[#allocation32_spill] sm:$0xff]  ;;  %v12692_v52 = vld [vmem:[#allocation33_spill] sm:$0xff] }
 0xb3d   :  { %v3832_v57 = vadd.f32 %v3816_v11, %v10371_v12  ;;  %v12693_v11 = vld [vmem:[#allocation34_spill] sm:$0xff] }
 0xb3f   :  { %3020 = vrot.lane.b32.xlu2 %v10494_v19, %s7612_s25  ;;  %3852 = vrot.lane.b32.xlu1 %v3832_v57, %s7617_s15 }
 0xb43   :  { %v2985_v3 = vpop.permute.xlu1 %2984 }
 0xb44   :  { %v10501_v63 = vadd.f32 %v2985_v3, %v10393_v59  ;;  %v2987_v5 = vpop.permute.xlu0 %2986  ;;  %v12696_v3 = vld [vmem:[#allocation37_spill] sm:$0xff] }
 0xb45   :  { %v10504_v32 = vadd.f32 %v2987_v5, %v10388_v47  ;;  %v12697_v5 = vld [vmem:[#allocation38_spill] sm:$0xff] }
 0xb47   :  { %3026 = vrot.lane.b32.xlu0 %v10504_v32, %s7612_s25  ;;  %3024 = vrot.lane.b32.xlu2 %v10501_v63, %s7612_s25 }
 0xb4b   :  { %v3803_v37 = vpop.permute.xlu1 %3802 }
 0xb4c   :  { %v3817_v12 = vsel %vm500_vm14, %v3801_v9, %v3803_v37  ;;  %v12694_v9 = vld [vmem:[#allocation35_spill] sm:$0xff] }
 0xb4d   :  { %v3833_v7 = vadd.f32 %v3817_v12, %v10373_v33  ;;  %v3807_v59 = vpop.permute.xlu2 %3806 }
 0xb4f   :  { %3854 = vrot.lane.b32.xlu2 %v3833_v7, %s7617_s15 }
 0xb51   :  { %v4239_v51 = vpop.f32.mrf.mxu1 }
 0xb52   :  { %6951 = vmatmul.msk.f32.vlgmr.msrb.gmra.mxu3 %vm500_vm14, %v4239_v51 }
 0xb59   :  { %v4242_v55 = vpop.f32.mrf.mxu1 }
 0xb5a   :  { %6952 = vmatmul.msk.f32.gmra.mxu3 %vm500_vm14, %v4242_v55 }
 0xb60   :  { %v3845_v47 = vpop.permute.xlu2 %3844 }
 0xb61   :  { %v10516_v26 = vadd.f32 %v3845_v47, %v10436_v56 }
 0xb63   :  { %3884 = vrot.lane.b32.xlu0 %v10516_v26, %s7618_s19 }
 0xb66   :  { %v3805_v60 = vpop.permute.xlu1 %3804 }
 0xb67   :  { %v3818_v33 = vsel %vm500_vm14, %v3805_v60, %v3807_v59  ;;  %v3809_v20 = vpop.permute.xlu0 %3808 }
 0xb68   :  { %v3834_v31 = vadd.f32 %v3818_v33, %v10418_v42  ;;  %v3017_v40 = vpop.permute.xlu2 %3016 }
 0xb69   :  { %v10582_v12 = vadd.f32 %v3017_v40, %v10445_v16 }
 0xb6a   :  { %3856 = vrot.lane.b32.xlu1 %v3834_v31, %s7617_s15 }
 0xb6e   :  { %v2989_v25 = vpop.permute.xlu1 %2988 }
 0xb6f   :  { %v10524_v13 = vadd.f32 %v2989_v25, %v10429_v45 }
 0xb72   :  { %3028 = vrot.lane.b32.xlu1 %v10524_v13, %s7612_s25 }
 0xb76   :  { %v3811_v58 = vpop.permute.xlu1 %3810 }
 0xb77   :  { %v3819_v38 = vsel %vm500_vm14, %v3809_v20, %v3811_v58 }
 0xb78   :  { %v3835_v56 = vadd.f32 %v3819_v38, %v10421_v39 }
 0xb7a   :  { %3858 = vrot.lane.b32.xlu2 %v3835_v56, %s7617_s15 }
 0xb7e   :  { %v3015_v45 = vpop.permute.xlu1 %3014 }
 0xb91   :  { %v3849_v49 = vpop.permute.xlu2 %3848 }
 0xb92   :  { %v10531_v42 = vadd.f32 %v3849_v49, %v3830_v28  ;;  %v12690_v28 = vld [vmem:[#allocation31_spill] sm:$0xff] }
 0xb94   :  { %3888 = vrot.lane.b32.xlu0 %v10531_v42, %s7618_s19 }
 0xb99   :  { %v3021_v30 = vpop.permute.xlu2 %3020  ;;  %v3847_v35 = vpop.permute.xlu0 %3846 }
 0xb9a   :  { %v10536_v10 = vadd.f32 %v3847_v35, %v10460_v1 }
 0xb9c   :  { %3886 = vrot.lane.b32.xlu1 %v10536_v10, %s7618_s19 }
 0xba0   :  { %v3019_v27 = vpop.permute.xlu1 %3018 }
 0xba1   :  { %v3025_v39 = vpop.permute.xlu2 %3024  ;;  %v3851_v41 = vpop.permute.xlu0 %3850  ;;  %v10604_v16 = vadd.f32 %v3019_v27, %v10466_v22 }
 0xba2   :  { %v10541_v2 = vadd.f32 %v3851_v41, %v10469_v6  ;;  %v10620_v22 = vadd.f32 %v3025_v39, %v10501_v63 }
 0xba4   :  { %3890 = vrot.lane.b32.xlu1 %v10541_v2, %s7618_s19 }
 0xba8   :  { %v3023_v34 = vpop.permute.xlu1 %3022 }
 0xba9   :  { %v3855_v24 = vpop.permute.xlu2 %3854 }
 0xbaa   :  { %v10545_v36 = vadd.f32 %v3855_v24, %v3833_v7  ;;  %v10585_v7 = vadd.f32 %v3015_v45, %v10442_v18  ;;  %v10601_v18 = vadd.f32 %v3021_v30, %v10494_v19  ;;  %v10623_v19 = vadd.f32 %v3023_v34, %v10485_v4 }
 0xbac   :  { %3894 = vrot.lane.b32.xlu2 %v10545_v36, %s7618_s19 }
 0xbb1   :  { %v3853_v1 = vpop.permute.xlu1 %3852 }
 0xbb2   :  { %v10549_v14 = vadd.f32 %v3853_v1, %v3832_v57  ;;  %v12695_v57 = vld [vmem:[#allocation36_spill] sm:$0xff] }
 0xbb4   :  { %3892 = vrot.lane.b32.xlu1 %v10549_v14, %s7618_s19 }
 0xbb9   :  { %v3027_v63 = vpop.permute.xlu0 %3026 }
 0xbba   :  { %v10646_v27 = vadd.f32 %v3027_v63, %v10504_v32 }
 0xbd4   :  { %v3859_v54 = vpop.permute.xlu2 %3858 }
 0xbd5   :  { %v10553_v53 = vadd.f32 %v3859_v54, %v3835_v56  ;;  %v4272_v6 = vpop.f32.mrf.mxu3  ;;  %v3885_v54 = vpop.permute.xlu0 %3884 }
 0xbd7   :  { %3898 = vrot.lane.b32.xlu0 %v10553_v53, %s7618_s19 }
 0xbdc   :  { %v3857_v46 = vpop.permute.xlu1 %3856 }
 0xbdd   :  { %v10557_v17 = vadd.f32 %v3857_v46, %v3834_v31  ;;  %v4275_v29 = vpop.f32.mrf.mxu3  ;;  %v3220_v46 = vsel %vm500_vm14, %v10217_v8, %v10237_v48  ;;  %v10689_v48 = vadd.f32 %v10451_v62, %v10271_v21  ;;  %v3219_v21 = vsel %vm500_vm14, %v10246_v61, %v10235_v43  ;;  %v12699_v62 = vld [vmem:[#allocation15_spill] sm:$0xff] }
 0xbde   :  { %4292 = vmatpush.msrb.mxu1 %v4275_v29  ;;  %v10670_v29 = vadd.f32 %v3220_v46, %v9735_v15 }
 0xbdf   :  { %3896 = vrot.lane.b32.xlu2 %v10557_v17, %s7618_s19 }
 0xbe0   :  { %4293 = vmatpush.msrb.mxu1 %v4272_v6 }
 0xbe1   :  { %6953 = vmatmul.msk.f32.vlgmr.msrb.gmra.mxu1 %vm603_vm10, %v12690_v28 }
 0xbe4   :  { %v3029_v4 = vpop.permute.xlu1 %3028 }
 0xbe5   :  { %v10641_v35 = vadd.f32 %v3029_v4, %v10524_v13  ;;  %v10654_v13 = vadd.f32 %v3885_v54, %v10516_v26  ;;  %v12706_v4 = vld [vmem:[#allocation44_spill] sm:$0xff]  ;;  %v12708_v54 = vld [vmem:[#allocation19_spill] sm:$0xff] }
 0xbe6   :  { %v10769_v46 = vadd.f32 %v10453_v44, %v12708_v54 }
 0xbe9   :  { %6954 = vmatmul.msk.f32.gmra.mxu1 %vm603_vm10, %v12691_v50 }
 0xbf1   :  { %6955 = vmatmul.msk.f32.gmra.mxu1 %vm603_vm10, %v12692_v52 }
 0xbf9   :  { %6956 = vmatmul.msk.f32.gmra.mxu1 %vm603_vm10, %v12693_v11 }
 0xc01   :  { %6957 = vmatmul.msk.f32.gmra.mxu1 %vm603_vm10, %v12694_v9 }
 0xc06   :  { %v3895_v24 = vpop.permute.xlu2 %3894  ;;  %v3889_v28 = vpop.permute.xlu0 %3888 }
 0xc07   :  { %v10677_v50 = vadd.f32 %v3889_v28, %v10531_v42 }
 0xc09   :  { %6958 = vmatmul.msk.f32.gmra.mxu1 %vm603_vm10, %v12695_v57 }
 0xc0e   :  { %v3887_v8 = vpop.permute.xlu1 %3886 }
 0xc0f   :  { %v10692_v9 = vadd.f32 %v3887_v8, %v10536_v10  ;;  %v3221_v10 = vsel %vm500_vm14, %v12699_v62, %v10253_v0 }
 0xc11   :  { %6959 = vmatmul.msk.f32.gmra.mxu1 %vm603_vm10, %v12696_v3 }
 0xc16   :  { %v3891_v3 = vpop.permute.xlu1 %3890 }
 0xc19   :  { %6960 = vmatmul.msk.f32.gmra.mxu1 %vm603_vm10, %v12697_v5  ;;  %v12700_v5 = vld [vmem:[#allocation10_spill] sm:$0xff] }
 0xc26   :  { %v3893_v43 = vpop.permute.xlu1 %3892 }
 0xc39   :  { %v3897_v1 = vpop.permute.xlu2 %3896 }
 0xc49   :  { %v3899_v15 = vpop.permute.xlu0 %3898 }
 0xc4a   :  { %v10822_v54 = vadd.f32 %v3899_v15, %v10553_v53 }
 0xc5e   :  { %v10577_v37 = vpop.f32.mrf.mxu1 }
 0xc5f   :  { %4335 = vrot.lane.b32.xlu2 %v10577_v37, %s7612_s25  ;;  %v4319_v59 = vmul.f32 %v10577_v37, %v10585_v7 }
 0xc66   :  { %v10587_v51 = vpop.f32.mrf.mxu1 }
 0xc67   :  { %4337 = vrot.lane.b32.xlu0 %v10587_v51, %s7612_s25  ;;  %v4320_v55 = vmul.f32 %v10587_v51, %v10582_v12 }
 0xc69   :  { %v7388_v47 = vpack.i.bf16 %v4320_v55, %v4319_v59  ;;  %v10713_v59 = vadd.f32 %v3219_v21, %v12700_v5  ;;  %v12701_v55 = vld [vmem:[#allocation11_spill] sm:$0xff]  ;;  %v12711_v21 = vld [vmem:[#allocation6_spill] sm:$0xff] }
 0xc6b   :  { %7389 = vrot.lane.b32.xlu2 %v7388_v47, %s7613_s0  ;;  %v10716_v47 = vadd.f32 %v3221_v10, %v12701_v55 }
 0xc6e   :  { %v10596_v60 = vpop.f32.mrf.mxu1 }
 0xc6f   :  { %v4321_v31 = vmul.f32 %v10596_v60, %v10604_v16 }
 0xc73   :  { %4339 = vrot.lane.b32.xlu2 %v10596_v60, %s7612_s25 }
 0xc76   :  { %v10606_v33 = vpop.f32.mrf.mxu1 }
 0xc77   :  { %4341 = vrot.lane.b32.xlu0 %v10606_v33, %s7612_s25  ;;  %v4322_v25 = vmul.f32 %v10606_v33, %v10601_v18 }
 0xc79   :  { %v7393_v20 = vpack.i.bf16 %v4322_v25, %v4321_v31  ;;  %v10723_v31 = vadd.f32 %v3891_v3, %v10541_v2  ;;  %v12703_v25 = vld [vmem:[#allocation18_spill] sm:$0xff]  ;;  %v10739_v2 = vadd.f32 %v3893_v43, %v10549_v14  ;;  %v10759_v14 = vadd.f32 %v3895_v24, %v10545_v36  ;;  %v12709_v36 = vld [vmem:[#allocation55_spill] sm:$0xff]  ;;  %v12710_v24 = vld [vmem:[#allocation45_spill] sm:$0xff] }
 0xc7a   :  { %v3223_v8 = vsel %vm500_vm14, %v12710_v24, %v12709_v36  ;;  %v10794_v3 = vadd.f32 %v3897_v1, %v10557_v17  ;;  %v12714_v43 = vld [vmem:[#allocation14_spill] sm:$0xff] }
 0xc7b   :  { %7394 = vrot.lane.b32.xlu1 %v7393_v20, %s7613_s0  ;;  %v12704_v20 = vld [vmem:[#allocation54_spill] sm:$0xff]  ;;  %v10783_v62 = vadd.f32 %v3223_v8, %v12711_v21 }
 0xc7e   :  { %v10615_v58 = vpop.f32.mrf.mxu1 }
 0xc7f   :  { %4343 = vrot.lane.b32.xlu0 %v10615_v58, %s7612_s25  ;;  %v4323_v56 = vmul.f32 %v10615_v58, %v10623_v19 }
 0xc86   :  { %v10625_v38 = vpop.f32.mrf.mxu1 }
 0xc87   :  { %4345 = vrot.lane.b32.xlu1 %v10625_v38, %s7612_s25  ;;  %v4324_v40 = vmul.f32 %v10625_v38, %v10620_v22 }
 0xc89   :  { %v7398_v49 = vpack.i.bf16 %v4324_v40, %v4323_v56  ;;  %v3222_v56 = vsel %vm500_vm14, %v12704_v20, %v12703_v25  ;;  %v3224_v25 = vsel %vm500_vm14, %v12714_v43, %v10313_v23  ;;  %v12715_v20 = vld [vmem:[#allocation7_spill] sm:$0xff] }
 0xc8a   :  { %v10746_v63 = vadd.f32 %v3222_v56, %v12706_v4  ;;  %v10810_v56 = vadd.f32 %v3224_v25, %v12715_v20 }
 0xc8b   :  { %7399 = vrot.lane.b32.xlu2 %v7398_v49, %s7613_s0 }
 0xc8e   :  { %v10634_v45 = vpop.f32.mrf.mxu1 }
 0xc8f   :  { %4347 = vrot.lane.b32.xlu1 %v10634_v45, %s7612_s25  ;;  %v4325_v41 = vmul.f32 %v10634_v45, %v10646_v27 }
 0xc96   :  { %v10638_v30 = vpop.f32.mrf.mxu1 }
 0xc97   :  { %4349 = vrot.lane.b32.xlu2 %v10638_v30, %s7612_s25  ;;  %v4326_v39 = vmul.f32 %v10638_v30, %v10641_v35 }
 0xc99   :  { %v7403_v34 = vpack.i.bf16 %v4326_v39, %v4325_v41 }
 0xc9f   :  { %7404 = vrot.lane.b32.xlu2 %v7403_v34, %s7613_s0  ;;  %s7619_s0 = smov 40  }
 0xcb9   :  { %v10656_v6 = vpop.permute.xlu2 %4335 }
 0xcba   :  { %v10660_v32 = vmul.f32 %v10656_v6, %v10654_v13 }
 0xcbc   :  { %4407 = vrot.lane.b32.xlu0 %v10660_v32, %s7611_s18  ;;  %4375 = vrot.lane.b32.xlu2 %v10660_v32, %s7612_s25 }
 0xcc4   :  { %3255 = vrot.lane.b32.xlu2 %v10670_v29, %s7617_s15 }
 0xcc5   :  { %v10674_v26 = vpop.permute.xlu2 %7389 }
 0xccd   :  { %v10679_v52 = vpop.permute.xlu2 %4339 }
 0xcce   :  { %12698 = vst [vmem:[#allocation46_spill] sm:$0xff] %v10679_v52  ;;  %v10683_v11 = vmul.f32 %v10679_v52, %v10677_v50 }
 0xcd0   :  { %4379 = vrot.lane.b32.xlu2 %v10683_v11, %s7612_s25 }
 0xcd8   :  { %3289 = vrot.lane.b32.xlu2 %v10689_v48, %s7618_s19 }
 0xcd9   :  { %v10696_v42 = vpop.permute.xlu0 %4337 }
 0xcda   :  { %v10700_v57 = vmul.f32 %v10696_v42, %v10692_v9 }
 0xcdc   :  { %4409 = vrot.lane.b32.xlu1 %v10700_v57, %s7611_s18  ;;  %4377 = vrot.lane.b32.xlu0 %v10700_v57, %s7612_s25 }
 0xce4   :  { %3253 = vrot.lane.b32.xlu1 %v10713_v59, %s7617_s15  ;;  %3257 = vrot.lane.b32.xlu0 %v10716_v47, %s7617_s15 }
 0xce5   :  { %v10771_v28 = vpop.permute.xlu2 %7399 }
 0xce9   :  { %v10725_v61 = vpop.permute.xlu0 %4341 }
 0xcea   :  { %12702 = vst [vmem:[#allocation50_spill] sm:$0xff] %v10725_v61  ;;  %v10729_v0 = vmul.f32 %v10725_v61, %v10723_v31 }
 0xcec   :  { %4411 = vrot.lane.b32.xlu0 %v10683_v11, %s7611_s18  ;;  %4413 = vrot.lane.b32.xlu1 %v10729_v0, %s7611_s18 }
 0xced   :  { %v10741_v40 = vpop.permute.xlu1 %7394 }
 0xcf1   :  { %v10743_v49 = vpop.permute.xlu0 %4343  ;;  %v10785_v44 = vpop.permute.xlu2 %4349 }
 0xcf2   :  { %12705 = vst [vmem:[#allocation56_spill] sm:$0xff] %v10743_v49  ;;  %v10750_v39 = vmul.f32 %v10743_v49, %v10739_v2  ;;  %v10828_v23 = vmul.f32 %v10785_v44, %v10822_v54 }
 0xcf3   :  { %12712 = vst [vmem:[#allocation58_spill] sm:$0xff] %v10785_v44 }
 0xcf4   :  { %3259 = vrot.lane.b32.xlu1 %v10746_v63, %s7617_s15  ;;  %4381 = vrot.lane.b32.xlu0 %v10729_v0, %s7612_s25 }
 0xcf5   :  { %4383 = vrot.lane.b32.xlu2 %v10750_v39, %s7612_s25 }
 0xcf9   :  { %v10761_v41 = vpop.permute.xlu1 %4345  ;;  %v10804_v55 = vpop.permute.xlu2 %7404 }
 0xcfa   :  { %12707 = vst [vmem:[#allocation57_spill] sm:$0xff] %v10761_v41  ;;  %v10765_v34 = vmul.f32 %v10761_v41, %v10759_v14 }
 0xcfc   :  { %4417 = vrot.lane.b32.xlu1 %v10765_v34, %s7611_s18  ;;  %4647 = vrot.lane.b32.xlu0 %v10577_v37, %s7618_s19 }
 0xcfd   :  { %3291 = vrot.lane.b32.xlu2 %v10769_v46, %s7618_s19 }
 0xd01   :  { %v10791_v10 = vpop.permute.xlu1 %4347 }
 0xd02   :  { %12713 = vst [vmem:[#allocation59_spill] sm:$0xff] %v10791_v10  ;;  %v10798_v5 = vmul.f32 %v10791_v10, %v10794_v3 }
 0xd04   :  { %3261 = vrot.lane.b32.xlu1 %v10783_v62, %s7617_s15  ;;  %4415 = vrot.lane.b32.xlu0 %v10750_v39, %s7611_s18 }
 0xd0c   :  { %4387 = vrot.lane.b32.xlu1 %v10798_v5, %s7612_s25  ;;  %4385 = vrot.lane.b32.xlu0 %v10765_v34, %s7612_s25 }
 0xd14   :  { %3263 = vrot.lane.b32.xlu1 %v10810_v56, %s7617_s15  ;;  %4649 = vrot.lane.b32.xlu0 %v10587_v51, %s7618_s19 }
 0xd16   :  { %v4376_v17 = vpop.permute.xlu2 %4375 }
 0xd17   :  { %v4399_v53 = vadd.f32 %v4376_v17, %v10660_v32 }
 0xd1c   :  { %4651 = vrot.lane.b32.xlu0 %v10596_v60, %s7618_s19 }
 0xd1e   :  { %v3256_v1 = vpop.permute.xlu2 %3255 }
 0xd1f   :  { %v10819_v4 = vadd.f32 %v3256_v1, %v10670_v29 }
 0xd21   :  { %3295 = vrot.lane.b32.xlu1 %v10819_v4, %s7618_s19 }
 0xd24   :  { %4421 = vrot.lane.b32.xlu0 %v10828_v23, %s7611_s18 }
 0xd29   :  { %4655 = vrot.lane.b32.xlu1 %v10615_v58, %s7618_s19 }
 0xd2a   :  { %v4380_v32 = vpop.permute.xlu2 %4379 }
 0xd2e   :  { %v4408_v29 = vpop.permute.xlu0 %4407 }
 0xd2f   :  { %v4431_v24 = vadd.f32 %v4408_v29, %v4399_v53 }
 0xd31   :  { %4615 = vrot.lane.b32.xlu1 %v10577_v37, %s7608_s2  ;;  %v4439_v43 = vmul.f32 0.57735026, %v4431_v24  ;;  %v4401_v24 = vadd.f32 %v4380_v32, %v10683_v11 }
 0xd32   :  { %v3290_v29 = vpop.permute.xlu2 %3289 }
 0xd33   :  { %v10854_v53 = vadd.f32 %v3290_v29, %v10689_v48 }
 0xd4e   :  { %v4410_v15 = vpop.permute.xlu1 %4409  ;;  %v4378_v36 = vpop.permute.xlu0 %4377 }
 0xd4f   :  { %v4400_v8 = vadd.f32 %v4378_v36, %v10700_v57  ;;  %v4384_v29 = vpop.permute.xlu2 %4383 }
 0xd50   :  { %v4403_v11 = vadd.f32 %v4384_v29, %v10750_v39 }
 0xd51   :  { %v4432_v21 = vadd.f32 %v4410_v15, %v4400_v8  ;;  %v4567_v15 = vmul.f32 %v10577_v37, %v10854_v53 }
 0xd53   :  { %v4440_v25 = vmul.f32 0.57735026, %v4432_v21 }
 0xd55   :  { %v7408_v20 = vpack.i.bf16 %v4440_v25, %v4439_v43 }
 0xd56   :  { %v3254_v1 = vpop.permute.xlu1 %3253  ;;  %v3258_v44 = vpop.permute.xlu0 %3257 }
 0xd57   :  { %v10839_v10 = vadd.f32 %v3254_v1, %v10713_v59  ;;  %7409 = vrot.lane.b32.xlu0 %v7408_v20, %s7619_s0  ;;  %v10845_v17 = vadd.f32 %v3258_v44, %v10716_v47 }
 0xd59   :  { %3293 = vrot.lane.b32.xlu2 %v10839_v10, %s7618_s19 }
 0xd5e   :  { %v4412_v57 = vpop.permute.xlu0 %4411  ;;  %v4414_v47 = vpop.permute.xlu1 %4413 }
 0xd5f   :  { %3297 = vrot.lane.b32.xlu0 %v10845_v17, %s7618_s19  ;;  %v4433_v43 = vadd.f32 %v4412_v57, %v4401_v24 }
 0xd61   :  { %4419 = vrot.lane.b32.xlu2 %v10798_v5, %s7611_s18 }
 0xd66   :  { %v4382_v59 = vpop.permute.xlu0 %4381  ;;  %v3260_v25 = vpop.permute.xlu1 %3259 }
 0xd67   :  { %4535 = vrot.lane.b32.xlu0 %v10577_v37, %s7611_s18  ;;  %v4402_v44 = vadd.f32 %v4382_v59, %v10729_v0  ;;  %v4441_v0 = vmul.f32 0.57735026, %v4433_v43  ;;  %v10872_v59 = vadd.f32 %v3260_v25, %v10746_v63 }
 0xd69   :  { %4389 = vrot.lane.b32.xlu2 %v10828_v23, %s7612_s25  ;;  %v4434_v8 = vadd.f32 %v4414_v47, %v4402_v44 }
 0xd6b   :  { %v4442_v48 = vmul.f32 0.57735026, %v4434_v8 }
 0xd6d   :  { %v7413_v1 = vpack.i.bf16 %v4442_v48, %v4441_v0 }
 0xd6e   :  { %v4648_v36 = vpop.permute.xlu0 %4647  ;;  %v4418_v32 = vpop.permute.xlu1 %4417 }
 0xd6f   :  { %v4671_v21 = vmul.f32 %v4648_v36, %v10854_v53  ;;  %4583 = vrot.lane.b32.xlu0 %v4567_v15, %s7612_s25  ;;  %v3292_v36 = vpop.permute.xlu2 %3291 }
 0xd71   :  { %4653 = vrot.lane.b32.xlu2 %v10606_v33, %s7618_s19  ;;  %4687 = vrot.lane.b32.xlu1 %v4671_v21, %s7614_s12  ;;  %v10878_v21 = vadd.f32 %v3292_v36, %v10769_v46 }
 0xd76   :  { %v4416_v20 = vpop.permute.xlu0 %4415  ;;  %v3262_v63 = vpop.permute.xlu1 %3261 }
 0xd77   :  { %v4435_v47 = vadd.f32 %v4416_v20, %v4403_v11  ;;  %v7264_v20 = vld [vmem:[%s12377_s16 + $0x8] sm:$0xff] }
 0xd79   :  { %7414 = vrot.lane.b32.xlu2 %v7413_v1, %s7619_s0  ;;  %4617 = vrot.lane.b32.xlu1 %v10587_v51, %s7608_s2  ;;  %v4443_v24 = vmul.f32 0.57735026, %v4435_v47 }
 0xd7e   :  { %v4386_v57 = vpop.permute.xlu0 %4385  ;;  %v4388_v46 = vpop.permute.xlu1 %4387 }
 0xd7f   :  { %v4404_v44 = vadd.f32 %v4386_v57, %v10765_v34  ;;  %v10886_v34 = vadd.f32 %v3262_v63, %v10783_v62  ;;  %v7265_v62 = vld [vmem:[%s12377_s16 + $0x10] sm:$0xff]  ;;  %v7391_v63 = vunpack.i.l.bf16 %v10674_v26 }
 0xd80   :  { %5012 = vmatpush.bf16.msra.mxu3 %v7265_v62 }
 0xd81   :  { %v4436_v15 = vadd.f32 %v4418_v32, %v4404_v44  ;;  %3299 = vrot.lane.b32.xlu2 %v10872_v59, %s7618_s19 }
 0xd83   :  { %v4444_v8 = vmul.f32 0.57735026, %v4436_v15 }
 0xd84   :  { %5013 = vmatpush.bf16.msra.mxu3 %v7264_v20 }
 0xd85   :  { %v7418_v43 = vpack.i.bf16 %v4444_v8, %v4443_v24  ;;  %v4405_v24 = vadd.f32 %v4388_v46, %v10798_v5  ;;  %v12717_v46 = vld [vmem:[#allocation48_spill] sm:$0xff] }
 0xd86   :  { %v4650_v39 = vpop.permute.xlu0 %4649  ;;  %v3264_v25 = vpop.permute.xlu1 %3263 }
 0xd87   :  { %v4672_v48 = vmul.f32 %v4650_v39, %v10878_v21  ;;  %7419 = vrot.lane.b32.xlu0 %v7418_v43, %s7619_s0  ;;  %v10897_v0 = vadd.f32 %v3264_v25, %v10810_v56  ;;  %v7263_v56 = vld [vmem:[%s12377_s16] sm:$0xff] }
 0xd88   :  { %5014 = vmatpush.bf16.msra.mxu3 %v7263_v56 }
 0xd89   :  { %4657 = vrot.lane.b32.xlu2 %v10625_v38, %s7618_s19  ;;  %4689 = vrot.lane.b32.xlu1 %v4672_v48, %s7614_s12  ;;  %v7392_v48 = vunpack.i.h.bf16 %v10674_v26 }
 0xd8e   :  { %v4652_v11 = vpop.permute.xlu0 %4651 }
 0xd8f   :  { %4537 = vrot.lane.b32.xlu0 %v10587_v51, %s7611_s18 }
 0xd91   :  { %3301 = vrot.lane.b32.xlu2 %v10886_v34, %s7618_s19  ;;  %4619 = vrot.lane.b32.xlu1 %v10596_v60, %s7608_s2 }
 0xd93   :  { %v3296_v57 = vpop.permute.xlu1 %3295 }
 0xd94   :  { %v10920_v47 = vadd.f32 %v3296_v57, %v10819_v4 }
 0xd96   :  { %v4570_v15 = vmul.f32 %v10606_v33, %v10920_v47  ;;  %v4422_v36 = vpop.permute.xlu0 %4421 }
 0xd99   :  { %4659 = vrot.lane.b32.xlu2 %v10634_v45, %s7618_s19 }
 0xda1   :  { %3303 = vrot.lane.b32.xlu2 %v10897_v0, %s7618_s19 }
 0xda9   :  { %4661 = vrot.lane.b32.xlu2 %v10638_v30, %s7618_s19 }
 0xdb1   :  { %4541 = vrot.lane.b32.xlu2 %v10606_v33, %s7611_s18 }
 0xdb3   :  { %v3294_v1 = vpop.permute.xlu2 %3293 }
 0xdb4   :  { %v10915_v29 = vadd.f32 %v3294_v1, %v10839_v10 }
 0xdb6   :  { %v4673_v32 = vmul.f32 %v4652_v11, %v10915_v29  ;;  %v12716_v11 = vld [vmem:[#allocation39_spill] sm:$0xff] }
 0xdb7   :  { %v4952_v5 = vsel %vm500_vm14, %v12716_v11, %v7392_v48  ;;  %v7396_v48 = vunpack.i.l.bf16 %v10741_v40 }
 0xdb8   :  { %4691 = vrot.lane.b32.xlu1 %v4673_v32, %s7614_s12 }
 0xdbb   :  { %v4420_v44 = vpop.permute.xlu2 %4419 }
 0xdbc   :  { %v4437_v8 = vadd.f32 %v4420_v44, %v4405_v24 }
 0xdbe   :  { %v4445_v4 = vmul.f32 0.57735026, %v4437_v8 }
 0xdc0   :  { %4589 = vrot.lane.b32.xlu1 %v4570_v15, %s7612_s25 }
 0xdc3   :  { %v4390_v10 = vpop.permute.xlu2 %4389 }
 0xdc4   :  { %v4406_v43 = vadd.f32 %v4390_v10, %v10828_v23  ;;  %v4951_v23 = vsel %vm500_vm14, %v12717_v46, %v7391_v63  ;;  %v4568_v10 = vmul.f32 %v10587_v51, %v10878_v21 }
 0xdc6   :  { %v4438_v39 = vadd.f32 %v4422_v36, %v4406_v43 }
 0xdc8   :  { %v4446_v25 = vmul.f32 0.57735026, %v4438_v39  ;;  %4623 = vrot.lane.b32.xlu1 %v10615_v58, %s7608_s2  ;;  %v7397_v39 = vunpack.i.h.bf16 %v10741_v40 }
 0xdc9   :  { %v7410_v62 = vpop.permute.xlu0 %7409 }
 0xdca   :  { %v7423_v20 = vpack.i.bf16 %v4446_v25, %v4445_v4  ;;  %v7412_v56 = vunpack.i.h.bf16 %v7410_v62  ;;  %v7411_v1 = vunpack.i.l.bf16 %v7410_v62  ;;  %v4656_v25 = vpop.permute.xlu1 %4655 }
 0xdcb   :  { %v4654_v32 = vpop.permute.xlu2 %4653 }
 0xdcc   :  { %v4960_v57 = vsel %vm2036_vm6, %v4952_v5, %v7412_v56  ;;  %v4959_v26 = vsel %vm2036_vm6, %v4951_v23, %v7411_v1  ;;  %v4674_v44 = vmul.f32 %v4654_v32, %v10920_v47  ;;  %7424 = vrot.lane.b32.xlu0 %v7423_v20, %s7619_s0  ;;  %v12719_v20 = vld [vmem:[#allocation42_spill] sm:$0xff] }
 0xdcd   :  { %v4973_v15 = vpack.c.bf16 %v4960_v57, %v4959_v26  ;;  %v4953_v56 = vsel %vm500_vm14, %v12719_v20, %v7396_v48 }
 0xdce   :  { %4693 = vrot.lane.b32.xlu2 %v4674_v44, %s7614_s12  ;;  %v4569_v44 = vmul.f32 %v10596_v60, %v10915_v29 }
 0xdcf   :  { %6973 = vmatmul.msk.bf16.vlgmr.msra.gmra.mxu3 %vm2073_vm4, %v4973_v15 }
 0xdd0   :  { %4545 = vrot.lane.b32.xlu1 %v10625_v38, %s7611_s18 }
 0xdd1   :  { %v3298_v36 = vpop.permute.xlu0 %3297 }
 0xdd2   :  { %v10944_v24 = vadd.f32 %v3298_v36, %v10845_v17  ;;  %v12718_v17 = vld [vmem:[#allocation49_spill] sm:$0xff]  ;;  %v10965_v23 = vpop.permute.xlu1 %4615 }
 0xdd3   :  { %v7415_v8 = vpop.permute.xlu2 %7414  ;;  %v4954_v62 = vsel %vm500_vm14, %v12718_v17, %v7397_v39  ;;  %v7401_v17 = vunpack.i.l.bf16 %v10771_v28 }
 0xdd4   :  { %4585 = vrot.lane.b32.xlu0 %v4568_v10, %s7612_s25  ;;  %v4571_v43 = vmul.f32 %v10615_v58, %v10944_v24  ;;  %v7417_v63 = vunpack.i.h.bf16 %v7415_v8  ;;  %v7416_v4 = vunpack.i.l.bf16 %v7415_v8 }
 0xdd6   :  { %4591 = vrot.lane.b32.xlu2 %v4571_v43, %s7612_s25  ;;  %v4962_v11 = vsel %vm2036_vm6, %v4954_v62, %v7417_v63  ;;  %v4961_v5 = vsel %vm2036_vm6, %v4953_v56, %v7416_v4  ;;  %v7402_v4 = vunpack.i.h.bf16 %v10771_v28 }
 0xdd7   :  { %v4974_v40 = vpack.c.bf16 %v4962_v11, %v4961_v5  ;;  %v12720_v11 = vld [vmem:[#allocation52_spill] sm:$0xff] }
 0xdd8   :  { %v4956_v5 = vsel %vm500_vm14, %v12720_v11, %v7402_v4  ;;  %v7135_v11 = vld [vmem:[%s12378_s17 + $0x120] sm:$0xf] }
 0xdd9   :  { %v4536_v1 = vpop.permute.xlu0 %4535 }
 0xdda   :  { %v4559_v57 = vmul.f32 %v4536_v1, %v10854_v53  ;;  %v4675_v1 = vmul.f32 %v4656_v25, %v10944_v24 }
 0xddb   :  { %v3300_v46 = vpop.permute.xlu2 %3299 }
 0xddc   :  { %4539 = vrot.lane.b32.xlu0 %v10596_v60, %s7611_s18  ;;  %v10969_v26 = vadd.f32 %v3300_v46, %v10872_v59  ;;  %v12721_v46 = vld [vmem:[#allocation40_spill] sm:$0xff] }
 0xdde   :  { %4625 = vrot.lane.b32.xlu2 %v10625_v38, %s7608_s2  ;;  %v4572_v25 = vmul.f32 %v10625_v38, %v10969_v26 }
 0xddf   :  { %6974 = vmatmul.msk.bf16.gmra.mxu3 %vm2073_vm4, %v4974_v40  ;;  %v4955_v40 = vsel %vm500_vm14, %v12721_v46, %v7401_v17 }
 0xde1   :  { %v4584_v32 = vpop.permute.xlu0 %4583 }
 0xde2   :  { %v4607_v36 = vsub.f32 %v4559_v57, %v4584_v32 }
 0xde3   :  { %v4658_v15 = vpop.permute.xlu2 %4657  ;;  %v4688_v8 = vpop.permute.xlu1 %4687 }
 0xde4   :  { %v4676_v10 = vmul.f32 %v4658_v15, %v10969_v26  ;;  %4587 = vrot.lane.b32.xlu0 %v4569_v44, %s7612_s25 }
 0xde6   :  { %4697 = vrot.lane.b32.xlu1 %v4676_v10, %s7614_s12  ;;  %4727 = vrot.lane.b32.xlu2 %v4607_v36, %s7612_s25  ;;  %v4639_v10 = vmul.f32 %v10965_v23, %v10854_v53 }
 0xdeb   :  { %v3302_v43 = vpop.permute.xlu2 %3301  ;;  %v10985_v39 = vpop.permute.xlu1 %4617 }
 0xdec   :  { %4621 = vrot.lane.b32.xlu0 %v10606_v33, %s7608_s2  ;;  %v10983_v59 = vadd.f32 %v3302_v43, %v10886_v34  ;;  %v4640_v62 = vmul.f32 %v10985_v39, %v10878_v21 }
 0xdee   :  { %4831 = vrot.lane.b32.xlu1 %v10577_v37, %s7614_s12  ;;  %4783 = vrot.lane.b32.xlu2 %v4607_v36, %s7614_s12  ;;  %v4573_v48 = vmul.f32 %v10634_v45, %v10983_v59 }
 0xdf3   :  { %v4660_v63 = vpop.permute.xlu2 %4659 }
 0xdf4   :  { %4543 = vrot.lane.b32.xlu0 %v10615_v58, %s7611_s18 }
 0xdf6   :  { %4627 = vrot.lane.b32.xlu1 %v10634_v45, %s7608_s2  ;;  %4595 = vrot.lane.b32.xlu2 %v4573_v48, %s7612_s25  ;;  %v4711_v48 = vsub.f32 %v4639_v10, %v4688_v8  ;;  %v7303_v8 = vld [vmem:[%s12378_s17 + $0x128] sm:$0xf0]  ;;  %v7298_v10 = vld [vmem:[%s12378_s17 + $0x100] sm:$0xf0] }
 0xdf9   :  { %v7420_v34 = vpop.permute.xlu0 %7419 }
 0xdfa   :  { %v7422_v20 = vunpack.i.h.bf16 %v7420_v34  ;;  %v7421_v56 = vunpack.i.l.bf16 %v7420_v34  ;;  %v4677_v34 = vmul.f32 %v4660_v63, %v10983_v59  ;;  %v7301_v63 = vld [vmem:[%s12378_s17 + $0x11c] sm:$0xf] }
 0xdfb   :  { %v4690_v32 = vpop.permute.xlu1 %4689  ;;  %v3304_v36 = vpop.permute.xlu2 %3303 }
 0xdfc   :  { %v4964_v57 = vsel %vm2036_vm6, %v4956_v5, %v7422_v20  ;;  %v4963_v44 = vsel %vm2036_vm6, %v4955_v40, %v7421_v56  ;;  %v4712_v28 = vsub.f32 %v4640_v62, %v4690_v32  ;;  %4695 = vrot.lane.b32.xlu0 %v4675_v1, %s7614_s12  ;;  %v11016_v4 = vadd.f32 %v3304_v36, %v10897_v0  ;;  %v7127_v0 = vld [vmem:[%s12378_s17 + $0x118] sm:$0xf]  ;;  %v7129_v1 = vld [vmem:[%s12378_s17 + $0x12c] sm:$0xf0]  ;;  %v7304_v5 = vld [vmem:[%s12378_s17 + $0x130] sm:$0xf0] }
 0xdfd   :  { %v4975_v15 = vpack.c.bf16 %v4964_v57, %v4963_v44  ;;  %v7407_v62 = vunpack.i.h.bf16 %v10804_v55  ;;  %v7406_v20 = vunpack.i.l.bf16 %v10804_v55  ;;  %v7128_v56 = vor.u32 %v7303_v8, %v7127_v0  ;;  %v7302_v55 = vld [vmem:[%s12378_s17 + $0x124] sm:$0xf]  ;;  %v7137_v57 = vld [vmem:[%s12378_s17 + $0x134] sm:$0xf0] }
 0xdfe   :  { %4761 = vrot.lane.b32.xlu2 %v4712_v28, %s7612_s25  ;;  %v7132_v40 = vor.u32 %v7301_v63, %v7129_v1  ;;  %v7136_v32 = vor.u32 %v7304_v5, %v7135_v11  ;;  %v7140_v28 = vor.u32 %v7302_v55, %v7137_v57  ;;  %v7109_v63 = vld [vmem:[%s12378_s17 + $0x104] sm:$0xf0]  ;;  %v7299_v1 = vld [vmem:[%s12378_s17 + $0x108] sm:$0xf0] }
 0xdff   :  { %6975 = vmatmul.msk.bf16.gmra.mxu3 %vm2073_vm4, %v4975_v15  ;;  %5456 = vmatpush.bf16.msra.mxu0 %v7128_v56  ;;  %v7115_v56 = vld [vmem:[%s12378_s17 + $0xf8] sm:$0xf] }
 0xe00   :  { %5485 = vmatpush.bf16.msra.mxu2 %v7132_v40  ;;  %5514 = vmatpush.bf16.msra.mxu1 %v7136_v32  ;;  %v7297_v40 = vld [vmem:[%s12378_s17 + $0xfc] sm:$0xf]  ;;  %v7117_v32 = vld [vmem:[%s12378_s17 + $0x10c] sm:$0xf0] }
 0xe01   :  { %v4538_v53 = vpop.permute.xlu0 %4537  ;;  %5543 = vmatpush.bf16.msrb.mxu3 %v7140_v28  ;;  %v7120_v57 = vor.u32 %v7297_v40, %v7117_v32  ;;  %v7293_v28 = vld [vmem:[%s12378_s17 + $0xd8] sm:$0xf0]  ;;  %v7075_v40 = vld [vmem:[%s12378_s17 + $0xa8] sm:$0xf] }
 0xe02   :  { %v7289_v32 = vld [vmem:[%s12378_s17 + $0xb8] sm:$0xf0] }
 0xe03   :  { %v4662_v43 = vpop.permute.xlu2 %4661 }
 0xe04   :  { %4593 = vrot.lane.b32.xlu0 %v4572_v25, %s7612_s25  ;;  %v4678_v17 = vmul.f32 %v4662_v43, %v11016_v4  ;;  %v7107_v25 = vld [vmem:[%s12378_s17 + $0xf0] sm:$0xf]  ;;  %v7296_v43 = vld [vmem:[%s12378_s17 + $0xf4] sm:$0xf] }
 0xe05   :  { %v7108_v8 = vor.u32 %v7298_v10, %v7107_v25  ;;  %v7112_v5 = vor.u32 %v7296_v43, %v7109_v63  ;;  %v7089_v25 = vld [vmem:[%s12378_s17 + $0xdc] sm:$0xf0]  ;;  %v7095_v10 = vld [vmem:[%s12378_s17 + $0xd0] sm:$0xf]  ;;  %v7294_v43 = vld [vmem:[%s12378_s17 + $0xe0] sm:$0xf0]  ;;  %5544 = vmatpush.bf16.msrb.mxu3 %v7120_v57  ;;  %v7076_v57 = vor.u32 %v7289_v32, %v7075_v40 }
 0xe06   :  { %4549 = vrot.lane.b32.xlu2 %v10638_v30, %s7611_s18  ;;  %v7097_v63 = vld [vmem:[%s12378_s17 + $0xe4] sm:$0xf0]  ;;  %v7278_v40 = vld [vmem:[%s12378_s17 + $0x60] sm:$0xf0]  ;;  %v7276_v32 = vld [vmem:[%s12378_s17 + $0x54] sm:$0xf] }
 0xe07   :  { %5457 = vmatpush.bf16.msra.mxu0 %v7108_v8  ;;  %5486 = vmatpush.bf16.msra.mxu2 %v7112_v5  ;;  %v7292_v8 = vld [vmem:[%s12378_s17 + $0xd4] sm:$0xf] }
 0xe0b   :  { %v11051_v46 = vpop.permute.xlu2 %4541 }
 0xe0c   :  { %4759 = vrot.lane.b32.xlu0 %v4711_v48, %s7612_s25  ;;  %v12722_v48 = vld [vmem:[#allocation47_spill] sm:$0xff] }
 0xe0e   :  { %4701 = vrot.lane.b32.xlu2 %v4678_v17, %s7614_s12  ;;  %v4958_v17 = vsel %vm500_vm14, %v12722_v48, %v7407_v62  ;;  %v4560_v48 = vmul.f32 %v4538_v53, %v10878_v21  ;;  %v7067_v21 = vld [vmem:[%s12378_s17 + $0xa0] sm:$0xf]  ;;  %v7288_v53 = vld [vmem:[%s12378_s17 + $0xb0] sm:$0xf0] }
 0xe0f   :  { %v7068_v5 = vor.u32 %v7288_v53, %v7067_v21  ;;  %v7057_v21 = vld [vmem:[%s12378_s17 + $0x94] sm:$0xf0] }
 0xe14   :  { %4547 = vrot.lane.b32.xlu0 %v10634_v45, %s7611_s18 }
 0xe16   :  { %4835 = vrot.lane.b32.xlu2 %v10596_v60, %s7614_s12 }
 0xe1c   :  { %4699 = vrot.lane.b32.xlu0 %v4677_v34, %s7614_s12  ;;  %v12723_v34 = vld [vmem:[#allocation43_spill] sm:$0xff] }
 0xe1d   :  { %v4957_v0 = vsel %vm500_vm14, %v12723_v34, %v7406_v20  ;;  %v7116_v20 = vor.u32 %v7299_v1, %v7115_v56  ;;  %v7100_v1 = vor.u32 %v7292_v8, %v7097_v63  ;;  %v7284_v8 = vld [vmem:[%s12378_s17 + $0x90] sm:$0xf0] }
 0xe1f   :  { %5515 = vmatpush.bf16.msra.mxu1 %v7116_v20  ;;  %v7069_v20 = vld [vmem:[%s12378_s17 + $0xb4] sm:$0xf0]  ;;  %5545 = vmatpush.bf16.msrb.mxu3 %v7100_v1  ;;  %v7282_v1 = vld [vmem:[%s12378_s17 + $0x84] sm:$0xf] }
 0xe24   :  { %4833 = vrot.lane.b32.xlu0 %v10587_v51, %s7614_s12 }
 0xe2c   :  { %4629 = vrot.lane.b32.xlu0 %v10638_v30, %s7608_s2 }
 0xe3e   :  { %v7425_v44 = vpop.permute.xlu0 %7424 }
 0xe3f   :  { %v7427_v15 = vunpack.i.h.bf16 %v7425_v44  ;;  %v7426_v36 = vunpack.i.l.bf16 %v7425_v44  ;;  %v7087_v44 = vld [vmem:[%s12378_s17 + $0xc8] sm:$0xf] }
 0xe41   :  { %v4966_v11 = vsel %vm2036_vm6, %v4958_v17, %v7427_v15  ;;  %v4965_v62 = vsel %vm2036_vm6, %v4957_v0, %v7426_v36  ;;  %v7291_v15 = vld [vmem:[%s12378_s17 + $0xcc] sm:$0xf]  ;;  %v7088_v36 = vor.u32 %v7293_v28, %v7087_v44  ;;  %v11109_v17 = vpop.permute.xlu2 %4693  ;;  %v7096_v0 = vor.u32 %v7294_v43, %v7095_v10  ;;  %v7077_v28 = vld [vmem:[%s12378_s17 + $0xbc] sm:$0xf0]  ;;  %v7281_v43 = vld [vmem:[%s12378_s17 + $0x7c] sm:$0xf] }
 0xe42   :  { %v4976_v55 = vpack.c.bf16 %v4966_v11, %v4965_v62  ;;  %v7092_v34 = vor.u32 %v7291_v15, %v7089_v25  ;;  %v7286_v62 = vld [vmem:[%s12378_s17 + $0xa4] sm:$0xf]  ;;  %v7287_v44 = vld [vmem:[%s12378_s17 + $0xac] sm:$0xf]  ;;  %v11142_v15 = vpop.permute.xlu1 %4619  ;;  %v7047_v25 = vld [vmem:[%s12378_s17 + $0x78] sm:$0xf] }
 0xe43   :  { %5458 = vmatpush.bf16.msra.mxu0 %v7088_v36  ;;  %5516 = vmatpush.bf16.msra.mxu1 %v7096_v0  ;;  %v7080_v36 = vor.u32 %v7287_v44, %v7077_v28  ;;  %v7283_v10 = vld [vmem:[%s12378_s17 + $0x88] sm:$0xf0]  ;;  %v7055_v0 = vld [vmem:[%s12378_s17 + $0x80] sm:$0xf]  ;;  %v7035_v44 = vld [vmem:[%s12378_s17 + $0x58] sm:$0xf] }
 0xe44   :  { %6976 = vmatmul.msk.bf16.gmra.mxu3 %vm2073_vm4, %v4976_v55  ;;  %5487 = vmatpush.bf16.msra.mxu2 %v7092_v34  ;;  %v7072_v55 = vor.u32 %v7286_v62, %v7069_v20  ;;  %v7049_v34 = vld [vmem:[%s12378_s17 + $0x8c] sm:$0xf0]  ;;  %v7060_v62 = vor.u32 %v7282_v1, %v7057_v21  ;;  %v7279_v28 = vld [vmem:[%s12378_s17 + $0x68] sm:$0xf0]  ;;  %v7009_v21 = vld [vmem:[%s12378_s17 + $0x3c] sm:$0xf0] }
 0xe45   :  { %5546 = vmatpush.bf16.msrb.mxu3 %v7080_v36  ;;  %v7052_v63 = vor.u32 %v7281_v43, %v7049_v34  ;;  %v7027_v20 = vld [vmem:[%s12378_s17 + $0x50] sm:$0xf]  ;;  %v7271_v1 = vld [vmem:[%s12378_s17 + $0x2c] sm:$0xf] }
 0xe46   :  { %v4586_v56 = vpop.permute.xlu0 %4585  ;;  %v7037_v43 = vld [vmem:[%s12378_s17 + $0x6c] sm:$0xf0] }
 0xe47   :  { %v4608_v11 = vsub.f32 %v4560_v48, %v4586_v56  ;;  %5459 = vmatpush.bf16.msra.mxu0 %v7068_v5  ;;  %5517 = vmatpush.bf16.msra.mxu1 %v7076_v57  ;;  %v7048_v48 = vor.u32 %v7283_v10, %v7047_v25  ;;  %v7056_v56 = vor.u32 %v7284_v8, %v7055_v0  ;;  %v7029_v57 = vld [vmem:[%s12378_s17 + $0x64] sm:$0xf0]  ;;  %v7277_v10 = vld [vmem:[%s12378_s17 + $0x5c] sm:$0xf] }
 0xe48   :  { %5488 = vmatpush.bf16.msra.mxu2 %v7072_v55  ;;  %v7028_v55 = vor.u32 %v7278_v40, %v7027_v20  ;;  %v7032_v36 = vor.u32 %v7276_v32, %v7029_v57  ;;  %v7036_v25 = vor.u32 %v7279_v28, %v7035_v44  ;;  %v7040_v0 = vor.u32 %v7277_v10, %v7037_v43  ;;  %v7274_v32 = vld [vmem:[%s12378_s17 + $0x40] sm:$0xf0]  ;;  %v7017_v57 = vld [vmem:[%s12378_s17 + $0x44] sm:$0xf0]  ;;  %v6987_v10 = vld [vmem:[%s12378_s17] sm:$0xf] }
 0xe49   :  { %4729 = vrot.lane.b32.xlu1 %v4608_v11, %s7612_s25  ;;  %v11168_v5 = vpop.permute.xlu2 %4591  ;;  %5547 = vmatpush.bf16.msrb.mxu3 %v7060_v62  ;;  %v7015_v62 = vld [vmem:[%s12378_s17 + $0x30] sm:$0xf]  ;;  %v7012_v40 = vor.u32 %v7271_v1, %v7009_v21  ;;  %v7268_v43 = vld [vmem:[%s12378_s17 + $0x10] sm:$0xf0] }
 0xe4a   :  { %v7016_v28 = vor.u32 %v7274_v32, %v7015_v62 }
 0xe4b   :  { %5460 = vmatpush.bf16.msra.mxu0 %v7048_v48  ;;  %5518 = vmatpush.bf16.msra.mxu1 %v7056_v56  ;;  %v4692_v48 = vpop.permute.xlu1 %4691 }
 0xe4c   :  { %5489 = vmatpush.bf16.msra.mxu2 %v7052_v63  ;;  %v7273_v63 = vld [vmem:[%s12378_s17 + $0x38] sm:$0xf0] }
 0xe4d   :  { %5548 = vmatpush.bf16.msrb.mxu3 %v7040_v0  ;;  %v7266_v0 = vld [vmem:[%s12378_s17 + $0x4] sm:$0xf] }
 0xe4e   :  { %v4540_v53 = vpop.permute.xlu0 %4539 }
 0xe4f   :  { %5461 = vmatpush.bf16.msra.mxu0 %v7028_v55  ;;  %5519 = vmatpush.bf16.msra.mxu1 %v7036_v25  ;;  %v4561_v20 = vmul.f32 %v4540_v53, %v10915_v29  ;;  %v7272_v55 = vld [vmem:[%s12378_s17 + $0x34] sm:$0xf]  ;;  %v4574_v25 = vmul.f32 %v10638_v30, %v11016_v4 }
 0xe50   :  { %5490 = vmatpush.bf16.msra.mxu2 %v7032_v36  ;;  %v7020_v36 = vor.u32 %v7272_v55, %v7017_v57 }
 0xe51   :  { %4785 = vrot.lane.b32.xlu1 %v4608_v11, %s7614_s12  ;;  %v7007_v11 = vld [vmem:[%s12378_s17 + $0x28] sm:$0xf]  ;;  %v11243_v1 = vpop.permute.xlu2 %4625 }
 0xe52   :  { %v11195_v34 = vpop.f32.mrf.mxu3  ;;  %v7008_v56 = vor.u32 %v7273_v63, %v7007_v11  ;;  %v6989_v11 = vld [vmem:[%s12378_s17 + $0x14] sm:$0xf0]  ;;  %v6995_v63 = vld [vmem:[%s12378_s17 + $0x8] sm:$0xf]  ;;  %5549 = vmatpush.bf16.msrb.mxu3 %v7020_v36 }
 0xe53   :  { %v6977_v8 = vmul.f32 -1.442695, %v11195_v34  ;;  %5520 = vmatpush.bf16.msra.mxu1 %v7016_v28  ;;  %v6992_v21 = vor.u32 %v7266_v0, %v6989_v11  ;;  %v4590_v28 = vpop.permute.xlu1 %4589 }
 0xe54   :  { %5462 = vmatpush.bf16.msra.mxu0 %v7008_v56  ;;  %5491 = vmatpush.bf16.msra.mxu2 %v7012_v40  ;;  %v7269_v56 = vld [vmem:[%s12378_s17 + $0x18] sm:$0xf0]  ;;  %v6997_v40 = vld [vmem:[%s12378_s17 + $0x1c] sm:$0xf0] }
 0xe55   :  { %7557 = vpow2.f32 %v6977_v8  ;;  %v6988_v8 = vor.u32 %v7268_v43, %v6987_v10  ;;  %v6996_v62 = vor.u32 %v7269_v56, %v6995_v63  ;;  %v4641_v10 = vmul.f32 %v11142_v15, %v10915_v29 }
 0xe56   :  { %v4588_v44 = vpop.permute.xlu0 %4587 }
 0xe57   :  { %v4609_v53 = vsub.f32 %v4561_v20, %v4588_v44  ;;  %v7267_v20 = vld [vmem:[%s12378_s17 + $0xc] sm:$0xf]  ;;  %5521 = vmatpush.bf16.msra.mxu1 %v6996_v62  ;;  %v4713_v0 = vsub.f32 %v4641_v10, %v4692_v48  ;;  %v4562_v62 = vmul.f32 %v11051_v46, %v10920_v47 }
 0xe58   :  { %5463 = vmatpush.bf16.msra.mxu0 %v6988_v8  ;;  %v7000_v55 = vor.u32 %v7267_v20, %v6997_v40  ;;  %5492 = vmatpush.bf16.msra.mxu2 %v6992_v21 }
 0xe59   :  { %4597 = vrot.lane.b32.xlu1 %v4574_v25, %s7612_s25  ;;  %4731 = vrot.lane.b32.xlu0 %v4609_v53, %s7612_s25  ;;  %v11267_v56 = vpop.permute.xlu2 %4727  ;;  %v4610_v40 = vsub.f32 %v4562_v62, %v4590_v28 }
 0xe5a   :  { %v11253_v32 = vpop.f32.mrf.mxu3  ;;  %5550 = vmatpush.bf16.msrb.mxu3 %v7000_v55 }
 0xe5b   :  { %v7558_v57 = vpop.eup %7557  ;;  %v6978_v44 = vmul.f32 -1.442695, %v11253_v32 }
 0xe5c   :  { %v5060_v25 = vadd.f32 1.0, %v7558_v57 }
 0xe5d   :  { %7559 = vpow2.f32 %v6978_v44 }
 0xe5e   :  { %7561 = vrcp.f32 %v5060_v25  ;;  %v11258_v43 = vpop.permute.xlu0 %4621  ;;  %v5079_v62 = vand.u32 2147483648, %v5060_v25  ;;  %vm5073_vm15 = vweird.f32 %v5060_v25 }
 0xe5f   :  { %v4642_v36 = vmul.f32 %v11258_v43, %v10920_v47 }
 0xe60   :  { %v5080_v61 = vor.u32 1.1754944e-38, %v5079_v62 }
 0xe61   :  { %v4714_v8 = vsub.f32 %v4642_v36, %v11109_v17  ;;  %4763 = vrot.lane.b32.xlu1 %v4713_v0, %s7612_s25  ;;  %4787 = vrot.lane.b32.xlu0 %v4609_v53, %s7614_s12  ;;  %v11273_v17 = vpop.permute.xlu1 %4623 }
 0xe62   :  { %v11265_v11 = vpop.f32.mrf.mxu3  ;;  %v4643_v28 = vmul.f32 %v11273_v17, %v10944_v24 }
 0xe63   :  { %v7560_v63 = vpop.eup %7559  ;;  %v6979_v29 = vmul.f32 -1.442695, %v11265_v11  ;;  %4765 = vrot.lane.b32.xlu2 %v4714_v8, %s7612_s25 }
 0xe64   :  { %v7562_v21 = vpop.eup %7561  ;;  %v5061_v48 = vadd.f32 1.0, %v7560_v63  ;;  %v11288_v63 = vpop.permute.xlu2 %4783 }
 0xe65   :  { %v5069_v20 = vmul.f32 %v7562_v21, %v5060_v25  ;;  %7563 = vpow2.f32 %v6979_v29  ;;  %vm5074_vm14 = vweird.f32 %v7562_v21 }
 0xe66   :  { %7565 = vrcp.f32 %v5061_v48  ;;  %v4544_v53 = vpop.permute.xlu0 %4543  ;;  %vm11291_vm6 = vmor %vm5073_vm15, %vm5074_vm14  ;;  %vm5088_vm11 = vweird.f32 %v5061_v48 }
 0xe67   :  { %v5070_v55 = vsub.f32 1.0, %v5069_v20  ;;  %v4563_v57 = vmul.f32 %v4544_v53, %v10944_v24  ;;  %v5077_v53 = vand.u32 2147483647, %v5060_v25  ;;  %v5094_v24 = vand.u32 2147483648, %v5061_v48 }
 0xe69   :  { %v5071_v44 = vmul.f32 %v7562_v21, %v5070_v55  ;;  %v4611_v10 = vsub.f32 %v4563_v57, %v11168_v5  ;;  %4733 = vrot.lane.b32.xlu1 %v4610_v40, %s7612_s25  ;;  %4837 = vrot.lane.b32.xlu0 %v10606_v33, %s7614_s12  ;;  %v4546_v41 = vpop.permute.xlu1 %4545  ;;  %vm5078_vm8 = vcmp.eq.f32.partialorder %v5077_v53, 8.507059e+37  ;;  %v5095_v52 = vor.u32 1.1754944e-38, %v5094_v24 }
 0xe6a   :  { %v11280_v0 = vpop.f32.mrf.mxu3  ;;  %v4564_v62 = vmul.f32 %v4546_v41, %v10969_v26 }
 0xe6b   :  { %v7564_v47 = vpop.eup %7563  ;;  %v6980_v46 = vmul.f32 -1.442695, %v11280_v0  ;;  %4735 = vrot.lane.b32.xlu2 %v4611_v10, %s7612_s25  ;;  %v5072_v5 = vadd.f32 %v7562_v21, %v5071_v44 }
 0xe6c   :  { %v7566_v36 = vpop.eup %7565  ;;  %v11286_v8 = vadd.f32 1.0, %v7564_v47 }
 0xe6d   :  { %v5084_v29 = vmul.f32 %v7566_v36, %v5061_v48  ;;  %7567 = vpow2.f32 %v6980_v46  ;;  %v5076_v44 = vsel %vm11291_vm6, %v7562_v21, %v5072_v5  ;;  %vm5089_vm13 = vweird.f32 %v7566_v36 }
 0xe6e   :  { %7569 = vrcp.f32 %v11286_v8  ;;  %v4696_v20 = vpop.permute.xlu0 %4695  ;;  %v5092_v46 = vand.u32 2147483647, %v5061_v48  ;;  %vm5090_vm5 = vmor %vm5088_vm11, %vm5089_vm13  ;;  %vm5103_vm1 = vweird.f32 %v11286_v8  ;;  %vm12728_vm13 = vcmask 64512  }
 0xe6f   :  { %v5085_v55 = vsub.f32 1.0, %v5084_v29  ;;  %v4715_v57 = vsub.f32 %v4643_v28, %v4696_v20  ;;  %v5081_v20 = vsel %vm5078_vm8, %v5080_v61, %v5076_v44  ;;  %vm12729_vm8 = vmmov %vm12728_vm13 }
 0xe70   :  { %vm5093_vm7 = vcmp.eq.f32.partialorder %v5092_v46, 8.507059e+37  ;;  %v5188_v48 = vmul.f32 %v5081_v20, %v11195_v34 }
 0xe71   :  { %v5086_v47 = vmul.f32 %v7566_v36, %v5085_v55  ;;  %4789 = vrot.lane.b32.xlu1 %v4610_v40, %s7614_s12  ;;  %4767 = vrot.lane.b32.xlu0 %v4715_v57, %s7612_s25  ;;  %v11302_v57 = vpop.permute.xlu2 %4595  ;;  %v4698_v61 = vpop.permute.xlu1 %4697 }
 0xe73   :  { %v7568_v25 = vpop.eup %7567  ;;  %v5087_v28 = vadd.f32 %v7566_v36, %v5086_v47  ;;  %4791 = vrot.lane.b32.xlu2 %v4611_v10, %s7614_s12  ;;  %v5109_v47 = vand.u32 2147483648, %v11286_v8 }
 0xe74   :  { %v7570_v29 = vpop.eup %7569  ;;  %v5063_v49 = vadd.f32 1.0, %v7568_v25  ;;  %v5107_v25 = vand.u32 2147483647, %v11286_v8 }
 0xe75   :  { %v5091_v21 = vsel %vm5090_vm5, %v7566_v36, %v5087_v28  ;;  %v5099_v5 = vmul.f32 %v7570_v29, %v11286_v8  ;;  %vm5104_vm0 = vweird.f32 %v7570_v29  ;;  %v5110_v8 = vor.u32 1.1754944e-38, %v5109_v47 }
 0xe76   :  { %v5096_v55 = vsel %vm5093_vm7, %v5095_v52, %v5091_v21  ;;  %7571 = vrcp.f32 %v5063_v49  ;;  %v4594_v40 = vpop.permute.xlu0 %4593  ;;  %vm11324_vm2 = vmor %vm5103_vm1, %vm5104_vm0  ;;  %vm5108_vm9 = vcmp.eq.f32.partialorder %v5107_v25, 8.507059e+37  ;;  %vm5118_vm14 = vweird.f32 %v5063_v49 }
 0xe77   :  { %v5189_v10 = vmul.f32 %v5096_v55, %v11253_v32  ;;  %v5100_v53 = vsub.f32 1.0, %v5099_v5  ;;  %v4612_v36 = vsub.f32 %v4564_v62, %v4594_v40  ;;  %v4644_v32 = vmul.f32 %v11243_v1, %v10969_v26  ;;  %vm12730_vm7 = vmmov %vm12729_vm8 }
 0xe78   :  { %v5124_v5 = vand.u32 2147483648, %v5063_v49  ;;  %v5122_v62 = vand.u32 2147483647, %v5063_v49  ;;  %v4855_v47 = vsel %vm12728_vm13, %v10577_v37, %v10965_v23 }
 0xe79   :  { %v11306_v44 = vpack.c.bf16 %v5189_v10, %v5188_v48  ;;  %v5101_v24 = vmul.f32 %v7570_v29, %v5100_v53  ;;  %4839 = vrot.lane.b32.xlu1 %v10615_v58, %s7614_s12  ;;  %4455 = vrot.lane.b32.xlu0 %v10585_v7, %s7608_s2  ;;  %v4716_v20 = vsub.f32 %v4644_v32, %v4698_v61  ;;  %v11328_v55 = vpop.permute.xlu2 %4761  ;;  %v4832_v48 = vpop.permute.xlu1 %4831 }
 0xe7a   :  { %vm5123_vm6 = vcmp.eq.f32.partialorder %v5122_v62, 8.507059e+37 }
 0xe7b   :  { %4737 = vrot.lane.b32.xlu2 %v4612_v36, %s7612_s25  ;;  %5464 = vmatmul.bf16.vlgmr.msra.gmra.mxu0 %v11306_v44  ;;  %v5102_v41 = vadd.f32 %v7570_v29, %v5101_v24  ;;  %v5125_v24 = vor.u32 1.1754944e-38, %v5124_v5 }
 0xe7c   :  { %v7572_v52 = vpop.eup %7571  ;;  %5493 = vmatmul.bf16.vlgmr.msra.gmra.mxu2 %v11306_v44  ;;  %5522 = vmatmul.bf16.vlgmr.msra.gmra.mxu1 %v11306_v44 }
 0xe7d   :  { %v5114_v34 = vmul.f32 %v7572_v52, %v5063_v49  ;;  %5551 = vmatmul.bf16.vlgmr.msrb.gmra.mxu3 %v11306_v44  ;;  %v5106_v26 = vsel %vm11324_vm2, %v7570_v29, %v5102_v41  ;;  %vm5119_vm3 = vweird.f32 %v7572_v52 }
 0xe7e   :  { %v11320_v46 = vpop.permute.xlu0 %4759  ;;  %v5111_v29 = vsel %vm5108_vm9, %v5110_v8, %v5106_v26  ;;  %vm5120_vm15 = vmor %vm5118_vm14, %vm5119_vm3 }
 0xe7f   :  { %v5115_v28 = vsub.f32 1.0, %v5114_v34  ;;  %v5190_v25 = vmul.f32 %v5111_v29, %v11265_v11 }
 0xe81   :  { %v5116_v40 = vmul.f32 %v7572_v52, %v5115_v28  ;;  %4479 = vrot.lane.b32.xlu1 %v10585_v7, %s7614_s12  ;;  %4769 = vrot.lane.b32.xlu0 %v4716_v20, %s7612_s25  ;;  %v4863_v28 = vsel %vm603_vm10, %v4855_v47, %v4832_v48  ;;  %v11354_v37 = vpop.permute.xlu2 %4549  ;;  %v11360_v11 = vpop.permute.xlu1 %4627 }
 0xe82   :  { %v11335_v10 = vpop.f32.mrf.mxu3  ;;  %v4871_v21 = vmul.f32 %v4863_v28, %v10654_v13  ;;  %v4645_v26 = vmul.f32 %v11360_v11, %v10983_v59 }
 0xe83   :  { %v5117_v53 = vadd.f32 %v7572_v52, %v5116_v40  ;;  %v6981_v61 = vmul.f32 -1.442695, %v11335_v10  ;;  %4793 = vrot.lane.b32.xlu2 %v4612_v36, %s7614_s12 }
 0xe84   :  { %v4879_v5 = vmul.f32 0.57735026, %v4871_v21 }
 0xe85   :  { %v5121_v41 = vsel %vm5120_vm15, %v7572_v52, %v5117_v53  ;;  %7573 = vpow2.f32 %v6981_v61  ;;  %vm12731_vm15 = vmmov %vm12730_vm7 }
 0xe86   :  { %v5126_v34 = vsel %vm5123_vm6, %v5125_v24, %v5121_v41  ;;  %v4548_v32 = vpop.permute.xlu0 %4547  ;;  %v4856_v24 = vsel %vm12729_vm8, %v10587_v51, %v10985_v39  ;;  %vm12732_vm6 = vmmov %vm12730_vm7 }
 0xe87   :  { %v5191_v49 = vmul.f32 %v5126_v34, %v11280_v0  ;;  %v4565_v48 = vmul.f32 %v4548_v32, %v10983_v59  ;;  %vm12733_vm13 = vmmov %vm12732_vm6 }
 0xe89   :  { %v11345_v20 = vpack.c.bf16 %v5191_v49, %v5190_v25  ;;  %4841 = vrot.lane.b32.xlu1 %v10625_v38, %s7614_s12  ;;  %4481 = vrot.lane.b32.xlu0 %v10582_v12, %s7614_s12  ;;  %v4702_v61 = vpop.permute.xlu2 %4701  ;;  %v4613_v47 = vsub.f32 %v4565_v48, %v11302_v57 }
 0xe8a   :  { %v11351_v36 = vpop.f32.mrf.mxu3 }
 0xe8b   :  { %v7574_v52 = vpop.eup %7573  ;;  %v6982_v23 = vmul.f32 -1.442695, %v11351_v36  ;;  %4457 = vrot.lane.b32.xlu2 %v10582_v12, %s7608_s2  ;;  %5469 = vmatmul.bf16.gmra.mxu0 %v11345_v20 }
 0xe8c   :  { %v5064_v0 = vadd.f32 1.0, %v7574_v52  ;;  %5498 = vmatmul.bf16.gmra.mxu2 %v11345_v20  ;;  %5527 = vmatmul.bf16.gmra.mxu1 %v11345_v20 }
 0xe8d   :  { %7575 = vpow2.f32 %v6982_v23  ;;  %5556 = vmatmul.bf16.gmra.mxu3 %v11345_v20 }
 0xe8e   :  { %7577 = vrcp.f32 %v5064_v0  ;;  %v4700_v13 = vpop.permute.xlu0 %4699  ;;  %v5139_v52 = vand.u32 2147483648, %v5064_v0  ;;  %vm5133_vm5 = vweird.f32 %v5064_v0  ;;  %v5137_v57 = vand.u32 2147483647, %v5064_v0 }
 0xe8f   :  { %v4717_v40 = vsub.f32 %v4645_v26, %v4700_v13 }
 0xe90   :  { %v5140_v48 = vor.u32 1.1754944e-38, %v5139_v52  ;;  %vm5138_vm2 = vcmp.eq.f32.partialorder %v5137_v57, 8.507059e+37  ;;  %v7123_v52 = vld [vmem:[%s12378_s17 + $0x100] sm:$0xf] }
 0xe91   :  { %5649 = vrot.lane.b32.xlu1 %v4879_v5, %s7620_s21  ;;  %4843 = vrot.lane.b32.xlu0 %v10634_v45, %s7614_s12  ;;  %v4836_v21 = vpop.permute.xlu2 %4835 }
 0xe93   :  { %v7576_v62 = vpop.eup %7575  ;;  %4771 = vrot.lane.b32.xlu2 %v4717_v40, %s7612_s25 }
 0xe94   :  { %v7578_v8 = vpop.eup %7577  ;;  %v5065_v53 = vadd.f32 1.0, %v7576_v62 }
 0xe95   :  { %v5129_v29 = vmul.f32 %v7578_v8, %v5064_v0  ;;  %vm5134_vm11 = vweird.f32 %v7578_v8 }
 0xe96   :  { %7579 = vrcp.f32 %v5065_v53  ;;  %v4834_v41 = vpop.permute.xlu0 %4833  ;;  %vm5135_vm0 = vmor %vm5133_vm5, %vm5134_vm11  ;;  %v5154_v13 = vand.u32 2147483648, %v5065_v53  ;;  %v5152_v40 = vand.u32 2147483647, %v5065_v53  ;;  %vm5148_vm3 = vweird.f32 %v5065_v53 }
 0xe97   :  { %v5130_v34 = vsub.f32 1.0, %v5129_v29  ;;  %v4864_v25 = vsel %vm603_vm10, %v4856_v24, %v4834_v41  ;;  %vm12734_vm11 = vmmov %vm12732_vm6 }
 0xe98   :  { %v4872_v49 = vmul.f32 %v4864_v25, %v10692_v9  ;;  %v4857_v9 = vsel %vm12730_vm7, %v10596_v60, %v11142_v15  ;;  %v5155_v60 = vor.u32 1.1754944e-38, %v5154_v13  ;;  %vm5153_vm14 = vcmp.eq.f32.partialorder %v5152_v40, 8.507059e+37  ;;  %vm12735_vm5 = vmmov %vm12732_vm6 }
 0xe99   :  { %v5131_v59 = vmul.f32 %v7578_v8, %v5130_v34  ;;  %4739 = vrot.lane.b32.xlu1 %v4613_v47, %s7612_s25  ;;  %v4865_v62 = vsel %vm603_vm10, %v4857_v9, %v4836_v21  ;;  %v7300_v21 = vld [vmem:[%s12378_s17 + $0x110] sm:$0xf0] }
 0xe9a   :  { %v4880_v32 = vmul.f32 0.57735026, %v4872_v49  ;;  %v4873_v15 = vmul.f32 %v4865_v62, %v10677_v50  ;;  %v7124_v9 = vor.u32 %v7300_v21, %v7123_v52  ;;  %v4566_v62 = vmul.f32 %v11354_v37, %v11016_v4 }
 0xe9b   :  { %4483 = vrot.lane.b32.xlu2 %v10604_v16, %s7614_s12  ;;  %v5132_v51 = vadd.f32 %v7578_v8, %v5131_v59  ;;  %v7143_v59 = vld [vmem:[%s12378_s17 + $0x128] sm:$0xf] }
 0xe9c   :  { %v7580_v28 = vpop.eup %7579  ;;  %5651 = vrot.lane.b32.xlu0 %v4880_v32, %s7620_s21  ;;  %v4881_v25 = vmul.f32 0.57735026, %v4873_v15  ;;  %v7305_v32 = vld [vmem:[%s12378_s17 + $0x138] sm:$0xf0]  ;;  %v7290_v15 = vld [vmem:[%s12378_s17 + $0xc0] sm:$0xf0] }
 0xe9d   :  { %v5144_v39 = vmul.f32 %v7580_v28, %v5065_v53  ;;  %v5136_v5 = vsel %vm5135_vm0, %v7578_v8, %v5132_v51  ;;  %vm5149_vm1 = vweird.f32 %v7580_v28 }
 0xe9e   :  { %v5141_v0 = vsel %vm5138_vm2, %v5140_v48, %v5136_v5  ;;  %vm5150_vm9 = vmor %vm5148_vm3, %vm5149_vm1  ;;  %v7103_v5 = vld [vmem:[%s12378_s17 + $0xd8] sm:$0xf] }
 0xe9f   :  { %v5145_v23 = vsub.f32 1.0, %v5144_v39  ;;  %v5192_v41 = vmul.f32 %v5141_v0, %v11335_v10 }
 0xea1   :  { %v5146_v26 = vmul.f32 %v7580_v28, %v5145_v23  ;;  %4795 = vrot.lane.b32.xlu1 %v4613_v47, %s7614_s12  ;;  %v11392_v47 = vpop.permute.xlu0 %4629 }
 0xea2   :  { %v4646_v53 = vmul.f32 %v11392_v47, %v11016_v4 }
 0xea3   :  { %v5147_v29 = vadd.f32 %v7580_v28, %v5146_v26  ;;  %4845 = vrot.lane.b32.xlu2 %v10638_v30, %s7614_s12  ;;  %v7295_v26 = vld [vmem:[%s12378_s17 + $0xe8] sm:$0xf0] }
 0xea4   :  { %v4718_v50 = vsub.f32 %v4646_v53, %v4702_v61  ;;  %v7104_v40 = vor.u32 %v7295_v26, %v7103_v5  ;;  %v7023_v5 = vld [vmem:[%s12378_s17 + $0x38] sm:$0xf] }
 0xea5   :  { %v5151_v8 = vsel %vm5150_vm9, %v7580_v28, %v5147_v29  ;;  %v7144_v28 = vor.u32 %v7305_v32, %v7143_v59 }
 0xea6   :  { %v5156_v24 = vsel %vm5153_vm14, %v5155_v60, %v5151_v8  ;;  %v7083_v60 = vld [vmem:[%s12378_s17 + $0xb0] sm:$0xf] }
 0xea7   :  { %v5193_v34 = vmul.f32 %v5156_v24, %v11351_v36  ;;  %5572 = vmatpush.bf16.msrb.mxu0 %v7144_v28  ;;  %v7084_v24 = vor.u32 %v7290_v15, %v7083_v60  ;;  %v7043_v28 = vld [vmem:[%s12378_s17 + $0x60] sm:$0xf]  ;;  %v7003_v60 = vld [vmem:[%s12378_s17 + $0x10] sm:$0xf]  ;;  %v7270_v15 = vld [vmem:[%s12378_s17 + $0x20] sm:$0xf0] }
 0xea9   :  { %v11394_v49 = vpack.c.bf16 %v5193_v34, %v5192_v41  ;;  %4459 = vrot.lane.b32.xlu1 %v10604_v16, %s7608_s2  ;;  %v7063_v34 = vld [vmem:[%s12378_s17 + $0x88] sm:$0xf] }
 0xeab   :  { %5653 = vrot.lane.b32.xlu2 %v4881_v25, %s7620_s21  ;;  %5474 = vmatmul.bf16.gmra.mxu0 %v11394_v49  ;;  %v7285_v25 = vld [vmem:[%s12378_s17 + $0x98] sm:$0xf0] }
 0xeac   :  { %5503 = vmatmul.bf16.gmra.mxu2 %v11394_v49  ;;  %5532 = vmatmul.bf16.gmra.mxu1 %v11394_v49 }
 0xead   :  { %5561 = vmatmul.bf16.gmra.mxu3 %v11394_v49  ;;  %5573 = vmatpush.bf16.msrb.mxu0 %v7124_v9 }
 0xeb1   :  { %4773 = vrot.lane.b32.xlu1 %v4718_v50, %s7612_s25  ;;  %5574 = vmatpush.bf16.msrb.mxu0 %v7104_v40  ;;  %v7064_v50 = vor.u32 %v7285_v25, %v7063_v34 }
 0xeb5   :  { %5575 = vmatpush.bf16.msrb.mxu0 %v7084_v24  ;;  %v7004_v24 = vor.u32 %v7270_v15, %v7003_v60 }
 0xeb9   :  { %4485 = vrot.lane.b32.xlu1 %v10601_v18, %s7614_s12  ;;  %5576 = vmatpush.bf16.msrb.mxu0 %v7064_v50 }
 0xebb   :  { %v4730_v10 = vpop.permute.xlu1 %4729 }
 0xebc   :  { %v4808_v61 = vsel %vm12731_vm15, %v4730_v10, %v11328_v55  ;;  %vm12738_vm15 = vmmov %vm12735_vm5 }
 0xebd   :  { %v11408_v36 = vpop.permute.xlu2 %4765 }
 0xec3   :  { %v4786_v51 = vpop.permute.xlu1 %4785 }
 0xec4   :  { %v4816_v39 = vsel %vm603_vm10, %v4808_v61, %v4786_v51  ;;  %v7280_v61 = vld [vmem:[%s12378_s17 + $0x70] sm:$0xf0]  ;;  %v4807_v51 = vsel %vm12733_vm13, %v11267_v56, %v11320_v46  ;;  %v7275_v56 = vld [vmem:[%s12378_s17 + $0x48] sm:$0xf0]  ;;  %vm12740_vm13 = vmmov %vm12735_vm5 }
 0xec5   :  { %v4824_v57 = vmul.f32 0.4082483, %v4816_v39  ;;  %v11425_v23 = vpop.permute.xlu2 %4735  ;;  %v7044_v21 = vor.u32 %v7280_v61, %v7043_v28  ;;  %v7024_v40 = vor.u32 %v7275_v56, %v7023_v5 }
 0xec7   :  { %5619 = vrot.lane.b32.xlu2 %v4824_v57, %s7621_s4  ;;  %v11428_v55 = vpop.f32.mrf.mxu3  ;;  %5577 = vmatpush.bf16.msrb.mxu0 %v7044_v21 }
 0xec8   :  { %v6983_v13 = vmul.f32 -1.442695, %v11428_v55 }
 0xeca   :  { %7581 = vpow2.f32 %v6983_v13  ;;  %v4815_v13 = vsel %vm603_vm10, %v4807_v51, %v11288_v63 }
 0xecb   :  { %v4598_v48 = vpop.permute.xlu1 %4597  ;;  %v4732_v29 = vpop.permute.xlu0 %4731  ;;  %5578 = vmatpush.bf16.msrb.mxu0 %v7024_v40 }
 0xecc   :  { %v4614_v0 = vsub.f32 %v4566_v62, %v4598_v48  ;;  %v4823_v48 = vmul.f32 0.4082483, %v4815_v13 }
 0xecd   :  { %v11445_v8 = vpop.permute.xlu2 %4791 }
 0xece   :  { %4741 = vrot.lane.b32.xlu0 %v4614_v0, %s7612_s25 }
 0xecf   :  { %4487 = vrot.lane.b32.xlu2 %v10623_v19, %s7614_s12  ;;  %v11450_v4 = vpop.f32.mrf.mxu3  ;;  %5579 = vmatpush.bf16.msrb.mxu0 %v7004_v24 }
 0xed0   :  { %v7582_v37 = vpop.eup %7581  ;;  %v6984_v41 = vmul.f32 -1.442695, %v11450_v4 }
 0xed1   :  { %v11459_v53 = vadd.f32 1.0, %v7582_v37 }
 0xed2   :  { %7583 = vpow2.f32 %v6984_v41 }
 0xed3   :  { %7585 = vrcp.f32 %v11459_v53  ;;  %v4764_v10 = vpop.permute.xlu1 %4763  ;;  %v4788_v59 = vpop.permute.xlu0 %4787  ;;  %vm5163_vm7 = vweird.f32 %v11459_v53  ;;  %v5167_v61 = vand.u32 2147483647, %v11459_v53 }
 0xed4   :  { %v4809_v32 = vsel %vm12732_vm6, %v4732_v29, %v4764_v10  ;;  %v4858_v10 = vsel %vm12734_vm11, %v10606_v33, %v11258_v43  ;;  %vm12739_vm6 = vmmov %vm12735_vm5 }
 0xed5   :  { %v4817_v39 = vsel %vm603_vm10, %v4809_v32, %v4788_v59  ;;  %v11473_v52 = vpop.permute.xlu2 %4737  ;;  %v5169_v59 = vand.u32 2147483648, %v11459_v53  ;;  %vm5168_vm2 = vcmp.eq.f32.partialorder %v5167_v61, 8.507059e+37  ;;  %vm12742_vm11 = vmmov %vm12735_vm5 }
 0xed6   :  { %v4825_v57 = vmul.f32 0.4082483, %v4817_v39  ;;  %4797 = vrot.lane.b32.xlu0 %v4614_v0, %s7614_s12  ;;  %v4860_v61 = vsel %vm12742_vm11, %v10625_v38, %v11243_v1 }
 0xed8   :  { %v7584_v9 = vpop.eup %7583  ;;  %5621 = vrot.lane.b32.xlu1 %v4825_v57, %s7621_s4 }
 0xed9   :  { %v7586_v46 = vpop.eup %7585  ;;  %v5067_v26 = vadd.f32 1.0, %v7584_v9 }
 0xeda   :  { %v5159_v62 = vmul.f32 %v7586_v46, %v11459_v53  ;;  %vm5164_vm8 = vweird.f32 %v7586_v46  ;;  %v5170_v53 = vor.u32 1.1754944e-38, %v5169_v59 }
 0xedb   :  { %7587 = vrcp.f32 %v5067_v26  ;;  %v4734_v29 = vpop.permute.xlu1 %4733  ;;  %v4838_v0 = vpop.permute.xlu0 %4837  ;;  %vm11506_vm0 = vmor %vm5163_vm7, %vm5164_vm8  ;;  %v5184_v9 = vand.u32 2147483648, %v5067_v26  ;;  %v5182_v5 = vand.u32 2147483647, %v5067_v26  ;;  %vm5178_vm3 = vweird.f32 %v5067_v26 }
 0xedc   :  { %v5160_v63 = vsub.f32 1.0, %v5159_v62  ;;  %v4810_v32 = vsel %vm12735_vm5, %v4734_v29, %v11408_v36  ;;  %v4866_v33 = vsel %vm603_vm10, %v4858_v10, %v4838_v0  ;;  %vm12741_vm8 = vmmov %vm12735_vm5 }
 0xedd   :  { %v11492_v41 = vpop.permute.xlu2 %4793  ;;  %v4874_v40 = vmul.f32 %v4866_v33, %v10723_v31  ;;  %v5185_v29 = vor.u32 1.1754944e-38, %v5184_v9  ;;  %vm5183_vm14 = vcmp.eq.f32.partialorder %v5182_v5, 8.507059e+37  ;;  %vm12743_vm7 = vmmov %vm12735_vm5 }
 0xede   :  { %v5161_v37 = vmul.f32 %v7586_v46, %v5160_v63  ;;  %5617 = vrot.lane.b32.xlu0 %v4823_v48, %s7621_s4  ;;  %v4861_v38 = vsel %vm12743_vm7, %v10634_v45, %v11360_v11 }
 0xee0   :  { %4463 = vrot.lane.b32.xlu1 %v10623_v19, %s7608_s2  ;;  %v5162_v25 = vadd.f32 %v7586_v46, %v5161_v37  ;;  %v4882_v37 = vmul.f32 0.57735026, %v4874_v40  ;;  %v300_v40 = vld [vmem:[%s12373_s7 + $0x158] sm:$0xff] }
 0xee1   :  { %v7588_v34 = vpop.eup %7587  ;;  %5844 = vmatpush.msra.mxu0 %v300_v40 }
 0xee2   :  { %v5174_v50 = vmul.f32 %v7588_v34, %v5067_v26  ;;  %v5166_v36 = vsel %vm11506_vm0, %v7586_v46, %v5162_v25  ;;  %vm5179_vm1 = vweird.f32 %v7588_v34  ;;  %v4859_v46 = vsel %vm12738_vm15, %v10615_v58, %v11273_v17  ;;  %vm12744_vm0 = vmmov %vm12735_vm5 }
 0xee3   :  { %v4790_v28 = vpop.permute.xlu1 %4789  ;;  %v4768_v21 = vpop.permute.xlu0 %4767  ;;  %v5171_v48 = vsel %vm5168_vm2, %v5170_v53, %v5166_v36  ;;  %vm5180_vm9 = vmor %vm5178_vm3, %vm5179_vm1  ;;  %vm5689_vm3 = vcmask 588800  }
 0xee4   :  { %v5175_v51 = vsub.f32 1.0, %v5174_v50  ;;  %v4818_v39 = vsel %vm603_vm10, %v4810_v32, %v4790_v28  ;;  %v5194_v15 = vmul.f32 %v5171_v48, %v11428_v55  ;;  %v4811_v59 = vsel %vm12741_vm8, %v11425_v23, %v4768_v21  ;;  %vm12745_vm1 = vmmov %vm12744_vm0  ;;  %v294_v48 = vld [vmem:[%s12373_s7 + $0x128] sm:$0xff] }
 0xee5   :  { %v4826_v43 = vmul.f32 0.4082483, %v4818_v39  ;;  %v4458_v62 = vpop.permute.xlu2 %4457  ;;  %vm12746_vm2 = vmmov %vm12744_vm0 }
 0xee6   :  { %v5176_v13 = vmul.f32 %v7588_v34, %v5175_v51  ;;  %4461 = vrot.lane.b32.xlu0 %v10601_v18, %s7608_s2  ;;  %v4504_v23 = vsel %vm12735_vm5, %v10582_v12, %v4458_v62  ;;  %v293_v62 = vld [vmem:[%s12373_s7 + $0x120] sm:$0xff]  ;;  %vm12751_vm15 = vmmov %vm12744_vm0 }
 0xee7   :  { %5623 = vrot.lane.b32.xlu2 %v4826_v43, %s7621_s4  ;;  %vm12760_vm8 = vmmov %vm12744_vm0 }
 0xee8   :  { %v5177_v56 = vadd.f32 %v7588_v34, %v5176_v13  ;;  %vm12767_vm11 = vmmov %vm12744_vm0 }
 0xee9   :  { %vm12769_vm5 = vmmov %vm12744_vm0 }
 0xeea   :  { %v5181_v63 = vsel %vm5180_vm9, %v7588_v34, %v5177_v56  ;;  %v299_v56 = vld [vmem:[%s12373_s7 + $0x150] sm:$0xff]  ;;  %vm12747_vm9 = vmmov %vm12744_vm0 }
 0xeeb   :  { %v5186_v0 = vsel %vm5183_vm14, %v5185_v29, %v5181_v63  ;;  %v4840_v60 = vpop.permute.xlu1 %4839  ;;  %v4456_v31 = vpop.permute.xlu0 %4455  ;;  %5803 = vmatpush.msra.mxu3 %v299_v56  ;;  %v295_v29 = vld [vmem:[%s12373_s7 + $0x130] sm:$0xff]  ;;  %vm12749_vm14 = vmmov %vm12744_vm0 }
 0xeec   :  { %v5195_v24 = vmul.f32 %v5186_v0, %v11450_v4  ;;  %v4867_v26 = vsel %vm603_vm10, %v4859_v46, %v4840_v60  ;;  %v287_v63 = vld [vmem:[%s12373_s7 + $0xf0] sm:$0xff]  ;;  %v288_v46 = vld [vmem:[%s12373_s7 + $0xf8] sm:$0xff]  ;;  %v289_v0 = vld [vmem:[%s12373_s7 + $0x100] sm:$0xff]  ;;  %5845 = vmatpush.msra.mxu0 %v295_v29 }
 0xeed   :  { %v4875_v25 = vmul.f32 %v4867_v26, %v10739_v2  ;;  %v4772_v58 = vpop.permute.xlu2 %4771  ;;  %v4503_v2 = vsel %vm12739_vm6, %v10585_v7, %v4456_v31  ;;  %v4819_v7 = vsel %vm603_vm10, %v4811_v59, %v11445_v8  ;;  %v290_v60 = vld [vmem:[%s12373_s7 + $0x108] sm:$0xff]  ;;  %5804 = vmatpush.msra.mxu3 %v294_v48  ;;  %v285_v26 = vld [vmem:[%s12373_s7 + $0xe0] sm:$0xff]  ;;  %v7598_v59 = vld [vmem:[%s12373_s7 + $0x50] sm:$0xff] }
 0xeee   :  { %v11524_v50 = vpack.c.bf16 %v5195_v24, %v5194_v15  ;;  %5655 = vrot.lane.b32.xlu0 %v4882_v37, %s7620_s21  ;;  %v4827_v51 = vmul.f32 0.4082483, %v4819_v7  ;;  %5846 = vmatpush.msra.mxu0 %v290_v60  ;;  %v7589_v15 = vld [vmem:[%s12373_s7 + $0xc8] sm:$0xff]  ;;  %v7590_v24 = vld [vmem:[%s12373_s7 + $0xd0] sm:$0xff]  ;;  %v7591_v37 = vld [vmem:[%s12373_s7 + $0xd8] sm:$0xff] }
 0xeef   :  { %v4883_v34 = vmul.f32 0.57735026, %v4875_v25  ;;  %4465 = vrot.lane.b32.xlu2 %v10620_v22, %s7608_s2  ;;  %5805 = vmatpush.msra.mxu3 %v289_v0  ;;  %v7592_v31 = vld [vmem:[%s12373_s7 + $0xa0] sm:$0xff]  ;;  %v7593_v25 = vld [vmem:[%s12373_s7 + $0xa8] sm:$0xff]  ;;  %vm12752_vm6 = vmmov %vm12744_vm0 }
 0xef0   :  { %5479 = vmatmul.bf16.gmra.mxu0 %v11524_v50  ;;  %5508 = vmatmul.bf16.gmra.mxu2 %v11524_v50  ;;  %v7600_v7 = vld [vmem:[%s12373_s7 + $0x60] sm:$0xff]  ;;  %vm12770_vm7 = vmmov %vm12744_vm0 }
 0xef1   :  { %5537 = vmatmul.bf16.gmra.mxu1 %v11524_v50  ;;  %5566 = vmatmul.bf16.gmra.mxu3 %v11524_v50  ;;  %v12748_v48 = vld [vmem:[#allocation46_spill] sm:$0xff] }
 0xef2   :  { %5657 = vrot.lane.b32.xlu1 %v4883_v34, %s7620_s21  ;;  %5806 = vmatpush.msra.mxu3 %v7591_v37  ;;  %v7594_v34 = vld [vmem:[%s12373_s7 + $0xb0] sm:$0xff]  ;;  %v12750_v37 = vld [vmem:[#allocation50_spill] sm:$0xff] }
 0xef3   :  { %v4480_v17 = vpop.permute.xlu1 %4479  ;;  %v4770_v4 = vpop.permute.xlu0 %4769  ;;  %5847 = vmatpush.msra.mxu0 %v285_v26 }
 0xef4   :  { %v11537_v55 = vsel %vm603_vm10, %v4503_v2, %v4480_v17  ;;  %v4812_v10 = vsel %vm12740_vm13, %v11473_v52, %v4770_v4  ;;  %5807 = vmatpush.msra.mxu3 %v7594_v34  ;;  %v7595_v2 = vld [vmem:[%s12373_s7 + $0x78] sm:$0xff]  ;;  %v275_v17 = vld [vmem:[%s12373_s7 + $0x90] sm:$0xff]  ;;  %v7596_v4 = vld [vmem:[%s12373_s7 + $0x80] sm:$0xff] }
 0xef5   :  { %v4820_v32 = vsel %vm603_vm10, %v4812_v10, %v11492_v41  ;;  %v11555_v39 = vpop.permute.xlu2 %4483  ;;  %v7597_v10 = vld [vmem:[%s12373_s7 + $0x88] sm:$0xff]  ;;  %vm12755_vm13 = vmmov %vm12744_vm0 }
 0xef6   :  { %4489 = vrot.lane.b32.xlu0 %v10620_v22, %s7614_s12  ;;  %v4828_v28 = vmul.f32 0.4082483, %v4820_v32  ;;  %5808 = vmatpush.msra.mxu3 %v7597_v10  ;;  %v270_v32 = vld [vmem:[%s12373_s7 + $0x68] sm:$0xff] }
 0xef8   :  { %5809 = vmatpush.msra.mxu3 %v7600_v7 }
 0xefa   :  { %5627 = vrot.lane.b32.xlu1 %v4828_v28, %s7621_s4  ;;  %v7599_v28 = vld [vmem:[%s12373_s7 + $0x58] sm:$0xff] }
 0xefb   :  { %v4842_v52 = vpop.permute.xlu1 %4841  ;;  %v4482_v21 = vpop.permute.xlu0 %4481 }
 0xefc   :  { %v4868_v41 = vsel %vm603_vm10, %v4860_v61, %v4842_v52  ;;  %v11560_v8 = vsel %vm603_vm10, %v4504_v23, %v4482_v21  ;;  %v7601_v61 = vld [vmem:[%s12373_s7 + $0x28] sm:$0xff]  ;;  %v7602_v52 = vld [vmem:[%s12373_s7 + $0x30] sm:$0xff]  ;;  %v7603_v23 = vld [vmem:[%s12373_s7 + $0x38] sm:$0xff] }
 0xefd   :  { %v4876_v57 = vmul.f32 %v4868_v41, %v10759_v14  ;;  %v4846_v33 = vpop.permute.xlu2 %4845  ;;  %5810 = vmatpush.msra.mxu3 %v7603_v23  ;;  %v7605_v41 = vld [vmem:[%s12373_s7 + $0x8] sm:$0xff]  ;;  %v260_v21 = vld [vmem:[%s12373_s7 + $0x18] sm:$0xff] }
 0xefe   :  { %5625 = vrot.lane.b32.xlu0 %v4827_v51, %s7621_s4  ;;  %v265_v51 = vld [vmem:[%s12373_s7 + $0x40] sm:$0xff] }
 0xeff   :  { %v4884_v9 = vmul.f32 0.57735026, %v4876_v57  ;;  %v7606_v57 = vld [vmem:[%s12373_s7 + $0x10] sm:$0xff] }
 0xf00   :  { %5580 = vmatmul.bf16.vlgmr.msrb.gmra.mxu0 %v11306_v44  ;;  %v4862_v44 = vsel %vm12744_vm0, %v10638_v30, %v11392_v47  ;;  %5811 = vmatpush.msra.mxu3 %v7606_v57 }
 0xf01   :  { %5659 = vrot.lane.b32.xlu2 %v4884_v9, %s7620_s21  ;;  %v4870_v36 = vsel %vm603_vm10, %v4862_v44, %v4846_v33  ;;  %v11701_v9 = vpop.f32.mrf.mxu0 }
 0xf02   :  { %4491 = vrot.lane.b32.xlu1 %v10646_v27, %s7614_s12  ;;  %v4878_v45 = vmul.f32 %v4870_v36, %v10822_v54  ;;  %v297_v54 = vld [vmem:[%s12373_s7 + $0x140] sm:$0xff] }
 0xf03   :  { %v11567_v12 = vpop.permute.xlu1 %5649  ;;  %v4844_v14 = vpop.permute.xlu0 %4843  ;;  %5721 = vmatpush.msrb.mxu2 %v297_v54 }
 0xf04   :  { %v4869_v1 = vsel %vm603_vm10, %v4861_v38, %v4844_v14  ;;  %v4886_v5 = vmul.f32 0.57735026, %v4878_v45 }
 0xf05   :  { %v4877_v43 = vmul.f32 %v4869_v1, %v10794_v3 }
 0xf06   :  { %4467 = vrot.lane.b32.xlu0 %v10646_v27, %s7608_s2 }
 0xf07   :  { %v4885_v11 = vmul.f32 0.57735026, %v4877_v43  ;;  %v5654_v43 = vpop.permute.xlu2 %5653 }
 0xf09   :  { %v11703_v1 = vpop.f32.mrf.mxu0 }
 0xf0a   :  { %4469 = vrot.lane.b32.xlu1 %v10641_v35, %s7608_s2 }
 0xf0b   :  { %v4740_v13 = vpop.permute.xlu1 %4739 }
 0xf0c   :  { %v4813_v30 = vsel %vm12745_vm1, %v4740_v13, %v4772_v58  ;;  %v280_v58 = vld [vmem:[%s12373_s7 + $0xb8] sm:$0xff]  ;;  %vm6144_vm1 = vcmask 916480  }
 0xf0d   :  { %5848 = vmatpush.msra.mxu0 %v280_v58 }
 0xf0e   :  { %5661 = vrot.lane.b32.xlu0 %v4885_v11, %s7620_s21  ;;  %v5652_v14 = vpop.permute.xlu0 %5651 }
 0xf0f   :  { %5849 = vmatpush.msra.mxu0 %v275_v17 }
 0xf10   :  { %5585 = vmatmul.bf16.gmra.mxu0 %v11345_v20  ;;  %v298_v20 = vld [vmem:[%s12373_s7 + $0x148] sm:$0xff] }
 0xf11   :  { %5762 = vmatpush.msrb.mxu1 %v298_v20  ;;  %5850 = vmatpush.msra.mxu0 %v270_v32  ;;  %v11706_v45 = vpop.f32.mrf.mxu0  ;;  %v4520_v20 = vmul.f32 %v11560_v8, %v10696_v42 }
 0xf12   :  { %5663 = vrot.lane.b32.xlu1 %v4886_v5, %s7620_s21 }
 0xf13   :  { %v4796_v47 = vpop.permute.xlu1 %4795  ;;  %5763 = vmatpush.msrb.mxu1 %v293_v62  ;;  %5851 = vmatpush.msra.mxu0 %v265_v51  ;;  %v4528_v42 = vmul.f32 0.57735026, %v4520_v20  ;;  %v12757_v20 = vld [vmem:[#allocation4_spill] sm:$0xff] }
 0xf14   :  { %v4821_v3 = vsel %vm603_vm10, %v4813_v30, %v4796_v47  ;;  %v4519_v30 = vmul.f32 %v11537_v55, %v10656_v6 }
 0xf15   :  { %v4829_v53 = vmul.f32 0.4082483, %v4821_v3  ;;  %5764 = vmatpush.msrb.mxu1 %v288_v46  ;;  %5852 = vmatpush.msra.mxu0 %v260_v21 }
 0xf17   :  { %5629 = vrot.lane.b32.xlu2 %v4829_v53, %s7621_s4  ;;  %5765 = vmatpush.msrb.mxu1 %v7590_v24  ;;  %v4527_v53 = vmul.f32 0.57735026, %v4519_v30 }
 0xf19   :  { %5766 = vmatpush.msrb.mxu1 %v7593_v25 }
 0xf1b   :  { %5767 = vmatpush.msrb.mxu1 %v7596_v4  ;;  %v4460_v38 = vpop.permute.xlu1 %4459 }
 0xf1c   :  { %v4505_v6 = vsel %vm12747_vm9, %v10604_v16, %v4460_v38 }
 0xf1d   :  { %5768 = vmatpush.msrb.mxu1 %v7599_v28  ;;  %v4513_v8 = vsel %vm603_vm10, %v4505_v6, %v11555_v39 }
 0xf1e   :  { %v4521_v29 = vmul.f32 %v4513_v8, %v12748_v48 }
 0xf1f   :  { %4493 = vrot.lane.b32.xlu2 %v10641_v35, %s7614_s12  ;;  %5769 = vmatpush.msrb.mxu1 %v7602_v52 }
 0xf20   :  { %5590 = vmatmul.bf16.gmra.mxu0 %v11394_v49  ;;  %v292_v49 = vld [vmem:[%s12373_s7 + $0x118] sm:$0xff] }
 0xf21   :  { %5722 = vmatpush.msrb.mxu2 %v292_v49  ;;  %5770 = vmatpush.msrb.mxu1 %v7605_v41  ;;  %v5620_v3 = vpop.permute.xlu2 %5619  ;;  %v11719_v49 = vpop.f32.mrf.mxu0 }
 0xf22   :  { %v5674_v16 = vsel %vm3046_vm12, %v4528_v42, %v5620_v3 }
 0xf23   :  { %5723 = vmatpush.msrb.mxu2 %v287_v63  ;;  %v4774_v44 = vpop.permute.xlu1 %4773  ;;  %v11738_v46 = vsel %vm2073_vm4, %v5674_v16, %v5652_v14 }
 0xf25   :  { %5724 = vmatpush.msrb.mxu2 %v7589_v15 }
 0xf27   :  { %5725 = vmatpush.msrb.mxu2 %v7592_v31 }
 0xf29   :  { %5726 = vmatpush.msrb.mxu2 %v7595_v2  ;;  %v11740_v0 = vpop.f32.mrf.mxu0 }
 0xf2b   :  { %5727 = vmatpush.msrb.mxu2 %v7598_v59  ;;  %v4486_v47 = vpop.permute.xlu1 %4485 }
 0xf2d   :  { %5728 = vmatpush.msrb.mxu2 %v7601_v61  ;;  %v12753_v61 = vld [vmem:[#allocation56_spill] sm:$0xff] }
 0xf30   :  { %5595 = vmatmul.bf16.gmra.mxu0 %v11524_v50  ;;  %v7604_v50 = vld [vmem:[%s12373_s7] sm:$0xff] }
 0xf31   :  { %5729 = vmatpush.msrb.mxu2 %v7604_v50  ;;  %v11764_v58 = vpop.f32.mrf.mxu0 }
 0xf40   :  { %v4742_v33 = vpop.permute.xlu0 %4741 }
 0xf41   :  { %v4814_v36 = vsel %vm12746_vm2, %v4742_v33, %v4774_v44  ;;  %vm6233_vm2 = vcmask 457728  }
 0xf48   :  { %v4798_v13 = vpop.permute.xlu0 %4797 }
 0xf49   :  { %v4822_v11 = vsel %vm603_vm10, %v4814_v36, %v4798_v13 }
 0xf4a   :  { %v4830_v5 = vmul.f32 0.4082483, %v4822_v11  ;;  %v5622_v55 = vpop.permute.xlu1 %5621 }
 0xf4c   :  { %5631 = vrot.lane.b32.xlu0 %v4830_v5, %s7621_s4  ;;  %s7622_s4 = smov 72  }
 0xf50   :  { %v5618_v54 = vpop.permute.xlu0 %5617 }
 0xf51   :  { %v5673_v56 = vsel %vm3046_vm12, %v4527_v53, %v5618_v54 }
 0xf52   :  { %v11717_v40 = vsel %vm2073_vm4, %v5673_v56, %v11567_v12  ;;  %v4488_v12 = vpop.permute.xlu2 %4487  ;;  %v4464_v60 = vpop.permute.xlu1 %4463 }
 0xf53   :  { %7145 = vmatmul.msk.f32.vlgmr.msrb.gmra.mxu2 %vm5689_vm3, %v11717_v40  ;;  %7153 = vmatmul.msk.f32.vlgmr.msrb.gmra.mxu1 %vm5689_vm3, %v11717_v40  ;;  %v4507_v2 = vsel %vm12751_vm15, %v10623_v19, %v4464_v60 }
 0xf54   :  { %7161 = vmatmul.msk.f32.vlgmr.msra.gmra.mxu3 %vm5689_vm3, %v11717_v40  ;;  %7169 = vmatmul.msk.f32.vlgmr.msra.gmra.mxu0 %vm5689_vm3, %v11717_v40  ;;  %v4515_v59 = vsel %vm603_vm10, %v4507_v2, %v4488_v12  ;;  %v12758_v12 = vld [vmem:[#allocation5_spill] sm:$0xff]  ;;  %v266_v2 = vld [vmem:[%s12373_s7 + $0x48] sm:$0xff] }
 0xf55   :  { %v4523_v52 = vmul.f32 %v4515_v59, %v12753_v61  ;;  %v11894_v61 = vpop.f32.mrf.mxu2 }
 0xf57   :  { %v4531_v23 = vmul.f32 0.57735026, %v4523_v52 }
 0xf58   :  { %v4462_v62 = vpop.permute.xlu0 %4461 }
 0xf59   :  { %v4506_v63 = vsel %vm12749_vm14, %v10601_v18, %v4462_v62  ;;  %v4529_v18 = vmul.f32 0.57735026, %v4521_v29  ;;  %v11847_v62 = vpop.f32.mrf.mxu3  ;;  %v12759_v29 = vld [vmem:[#allocation9_spill] sm:$0xff] }
 0xf5a   :  { %v4514_v39 = vsel %vm603_vm10, %v4506_v63, %v4486_v47  ;;  %v5624_v15 = vpop.permute.xlu2 %5623  ;;  %v12756_v47 = vld [vmem:[#allocation59_spill] sm:$0xff] }
 0xf5b   :  { %7146 = vmatmul.msk.f32.gmra.mxu2 %vm5689_vm3, %v11738_v46  ;;  %7154 = vmatmul.msk.f32.gmra.mxu1 %vm5689_vm3, %v11738_v46  ;;  %v5675_v24 = vsel %vm3046_vm12, %v4529_v18, %v5622_v55  ;;  %v4522_v26 = vmul.f32 %v4514_v39, %v12750_v37  ;;  %v301_v39 = vld [vmem:[%s12373_s7 + $0x160] sm:$0xff]  ;;  %v296_v18 = vld [vmem:[%s12373_s7 + $0x138] sm:$0xff] }
 0xf5c   :  { %7162 = vmatmul.msk.f32.gmra.mxu3 %vm5689_vm3, %v11738_v46  ;;  %7170 = vmatmul.msk.f32.gmra.mxu0 %vm5689_vm3, %v11738_v46  ;;  %v11754_v25 = vsel %vm2073_vm4, %v5675_v24, %v5654_v43  ;;  %v286_v24 = vld [vmem:[%s12373_s7 + $0xe8] sm:$0xff]  ;;  %v281_v37 = vld [vmem:[%s12373_s7 + $0xc0] sm:$0xff] }
 0xf5d   :  { %v4530_v34 = vmul.f32 0.57735026, %v4522_v26  ;;  %5885 = vmatpush.msra.mxu2 %v301_v39 }
 0xf5f   :  { %v5676_v4 = vsel %vm3046_vm12, %v4530_v34, %v5624_v15  ;;  %v291_v15 = vld [vmem:[%s12373_s7 + $0x110] sm:$0xff]  ;;  %5886 = vmatpush.msra.mxu2 %v296_v18 }
 0xf60   :  { %v5656_v31 = vpop.permute.xlu0 %5655  ;;  %v271_v34 = vld [vmem:[%s12373_s7 + $0x70] sm:$0xff] }
 0xf61   :  { %v11771_v28 = vsel %vm2073_vm4, %v5676_v4, %v5656_v31  ;;  %v11863_v60 = vpop.f32.mrf.mxu3  ;;  %5887 = vmatpush.msra.mxu2 %v291_v15  ;;  %v276_v31 = vld [vmem:[%s12373_s7 + $0x98] sm:$0xff]  ;;  %v12762_v15 = vld [vmem:[#allocation8_spill] sm:$0xff] }
 0xf62   :  { %v4466_v10 = vpop.permute.xlu2 %4465 }
 0xf63   :  { %7147 = vmatmul.msk.f32.gmra.mxu2 %vm5689_vm3, %v11754_v25  ;;  %7155 = vmatmul.msk.f32.gmra.mxu1 %vm5689_vm3, %v11754_v25  ;;  %v4508_v7 = vsel %vm12752_vm6, %v10620_v22, %v4466_v10  ;;  %v12754_v22 = vld [vmem:[#allocation57_spill] sm:$0xff] }
 0xf64   :  { %7163 = vmatmul.msk.f32.gmra.mxu3 %vm5689_vm3, %v11754_v25  ;;  %7171 = vmatmul.msk.f32.gmra.mxu0 %vm5689_vm3, %v11754_v25  ;;  %v5658_v17 = vpop.permute.xlu1 %5657 }
 0xf65   :  { %5888 = vmatpush.msra.mxu2 %v286_v24 }
 0xf67   :  { %5889 = vmatpush.msra.mxu2 %v281_v37 }
 0xf68   :  { %v4490_v32 = vpop.permute.xlu0 %4489 }
 0xf69   :  { %v4516_v19 = vsel %vm603_vm10, %v4508_v7, %v4490_v32  ;;  %v11874_v26 = vpop.f32.mrf.mxu3  ;;  %5890 = vmatpush.msra.mxu2 %v276_v31 }
 0xf6a   :  { %v4524_v50 = vmul.f32 %v4516_v19, %v12754_v22  ;;  %v5660_v44 = vpop.permute.xlu2 %5659  ;;  %v12761_v19 = vld [vmem:[#allocation58_spill] sm:$0xff] }
 0xf6b   :  { %7148 = vmatmul.msk.f32.gmra.mxu2 %vm5689_vm3, %v11771_v28  ;;  %7156 = vmatmul.msk.f32.gmra.mxu1 %vm5689_vm3, %v11771_v28 }
 0xf6c   :  { %7164 = vmatmul.msk.f32.gmra.mxu3 %vm5689_vm3, %v11771_v28  ;;  %7172 = vmatmul.msk.f32.gmra.mxu0 %vm5689_vm3, %v11771_v28  ;;  %v5628_v41 = vpop.permute.xlu1 %5627  ;;  %v4532_v14 = vmul.f32 0.57735026, %v4524_v50 }
 0xf6d   :  { %v11785_v51 = vpop.f32.mrf.mxu0  ;;  %5891 = vmatpush.msra.mxu2 %v271_v34 }
 0xf6e   :  { %v5678_v43 = vsel %vm3046_vm12, %v4532_v14, %v5628_v41  ;;  %v11901_v14 = vpop.f32.mrf.mxu2 }
 0xf6f   :  { %v11806_v5 = vsel %vm2073_vm4, %v5678_v43, %v5660_v44  ;;  %5892 = vmatpush.msra.mxu2 %v266_v2 }
 0xf70   :  { %v5626_v21 = vpop.permute.xlu0 %5625 }
 0xf71   :  { %v5677_v57 = vsel %vm3046_vm12, %v4531_v23, %v5626_v21  ;;  %v11888_v4 = vpop.f32.mrf.mxu3 }
 0xf72   :  { %v11790_v38 = vsel %vm2073_vm4, %v5677_v57, %v5658_v17  ;;  %v5630_v54 = vpop.permute.xlu2 %5629  ;;  %v261_v17 = vld [vmem:[%s12373_s7 + $0x20] sm:$0xff]  ;;  %s7623_s7 = smov 56  }
 0xf73   :  { %7149 = vmatmul.msk.f32.gmra.mxu2 %vm5689_vm3, %v11790_v38  ;;  %7157 = vmatmul.msk.f32.gmra.mxu1 %vm5689_vm3, %v11790_v38 }
 0xf74   :  { %7165 = vmatmul.msk.f32.gmra.mxu3 %vm5689_vm3, %v11790_v38  ;;  %7173 = vmatmul.msk.f32.gmra.mxu0 %vm5689_vm3, %v11790_v38  ;;  %v4492_v13 = vpop.permute.xlu1 %4491 }
 0xf75   :  { %v11800_v33 = vpop.f32.mrf.mxu0  ;;  %5893 = vmatpush.msra.mxu2 %v261_v17 }
 0xf76   :  { %v11912_v43 = vpop.f32.mrf.mxu2 }
 0xf78   :  { %v4468_v36 = vpop.permute.xlu0 %4467 }
 0xf79   :  { %v4509_v11 = vsel %vm12755_vm13, %v10646_v27, %v4468_v36  ;;  %v11890_v59 = vpop.f32.mrf.mxu3  ;;  %v5523_v36 = vpop.f32.mrf.mxu1 }
 0xf7a   :  { %v4517_v30 = vsel %vm603_vm10, %v4509_v11, %v4492_v13  ;;  %v4494_v7 = vpop.permute.xlu2 %4493 }
 0xf7b   :  { %v4525_v3 = vmul.f32 %v4517_v30, %v12756_v47  ;;  %7150 = vmatmul.msk.f32.gmra.mxu2 %vm5689_vm3, %v11806_v5  ;;  %7158 = vmatmul.msk.f32.gmra.mxu1 %vm5689_vm3, %v11806_v5 }
 0xf7c   :  { %7166 = vmatmul.msk.f32.gmra.mxu3 %vm5689_vm3, %v11806_v5  ;;  %7174 = vmatmul.msk.f32.gmra.mxu0 %vm5689_vm3, %v11806_v5  ;;  %v4470_v10 = vpop.permute.xlu1 %4469 }
 0xf7d   :  { %v4533_v27 = vmul.f32 0.57735026, %v4525_v3  ;;  %v11818_v53 = vpop.f32.mrf.mxu0  ;;  %v4510_v32 = vsel %vm12760_vm8, %v10641_v35, %v4470_v10 }
 0xf7e   :  { %v5601_v56 = vmul.f32 %v11818_v53, %v12757_v20  ;;  %v4518_v52 = vsel %vm603_vm10, %v4510_v32, %v4494_v7  ;;  %v11918_v11 = vpop.f32.mrf.mxu2  ;;  %v12765_v7 = vld [vmem:[#allocation12_spill] sm:$0xff] }
 0xf7f   :  { %v5679_v6 = vsel %vm3046_vm12, %v4533_v27, %v5630_v54  ;;  %v4526_v23 = vmul.f32 %v4518_v52, %v12761_v19 }
 0xf80   :  { %v5662_v55 = vpop.permute.xlu0 %5661  ;;  %6386 = vrot.lane.b32.xlu1 %v5601_v56, %s7617_s15  ;;  %6362 = vrot.lane.b32.xlu0 %v5601_v56, %s7622_s4 }
 0xf81   :  { %v11826_v42 = vsel %vm2073_vm4, %v5679_v6, %v5662_v55  ;;  %6338 = vrot.lane.b32.xlu2 %v5601_v56, %s7616_s8  ;;  %v11898_v22 = vpop.f32.mrf.mxu3  ;;  %v4534_v50 = vmul.f32 0.57735026, %v4526_v23  ;;  %v5525_v3 = vpop.f32.mrf.mxu1 }
 0xf83   :  { %7151 = vmatmul.msk.f32.gmra.mxu2 %vm5689_vm3, %v11826_v42  ;;  %7159 = vmatmul.msk.f32.gmra.mxu1 %vm5689_vm3, %v11826_v42 }
 0xf84   :  { %7167 = vmatmul.msk.f32.gmra.mxu3 %vm5689_vm3, %v11826_v42  ;;  %7175 = vmatmul.msk.f32.gmra.mxu0 %vm5689_vm3, %v11826_v42  ;;  %v5664_v21 = vpop.permute.xlu1 %5663 }
 0xf85   :  { %v11837_v8 = vpop.f32.mrf.mxu0 }
 0xf86   :  { %v11841_v16 = vmul.f32 %v11837_v8, %v12758_v12 }
 0xf88   :  { %6364 = vrot.lane.b32.xlu1 %v11841_v16, %s7622_s4 }
 0xf89   :  { %6388 = vrot.lane.b32.xlu2 %v11841_v16, %s7617_s15  ;;  %v11908_v35 = vpop.f32.mrf.mxu3 }
 0xf8d   :  { %v11849_v48 = vpop.f32.mrf.mxu0 }
 0xf8e   :  { %v11853_v63 = vmul.f32 %v11849_v48, %v12759_v29 }
 0xf90   :  { %6342 = vrot.lane.b32.xlu1 %v11853_v63, %s7616_s8 }
 0xf91   :  { %v11914_v13 = vpop.f32.mrf.mxu3 }
 0xf95   :  { %v11928_v27 = vpop.f32.mrf.mxu0 }
 0xf96   :  { %v5604_v24 = vmul.f32 %v11928_v27, %v12762_v15 }
 0xf9d   :  { %v11940_v6 = vpop.f32.mrf.mxu0 }
 0xfa5   :  { %v11956_v37 = vpop.f32.mrf.mxu0 }
 0xfad   :  { %v11981_v19 = vpop.f32.mrf.mxu0 }
 0xfbe   :  { %v5632_v41 = vpop.permute.xlu0 %5631 }
 0xfbf   :  { %v5680_v57 = vsel %vm3046_vm12, %v4534_v50, %v5632_v41 }
 0xfc0   :  { %v5688_v44 = vsel %vm2073_vm4, %v5680_v57, %v5664_v21  ;;  %vm12763_vm4 = vmmov %vm12744_vm0  ;;  %vm6031_vm0 = vcmask 785408  }
 0xfc1   :  { %7152 = vmatmul.msk.f32.gmra.mxu2 %vm5689_vm3, %v5688_v44  ;;  %7160 = vmatmul.msk.f32.gmra.mxu1 %vm5689_vm3, %v5688_v44 }
 0xfc2   :  { %7168 = vmatmul.msk.f32.gmra.mxu3 %vm5689_vm3, %v5688_v44  ;;  %7176 = vmatmul.msk.f32.gmra.mxu0 %vm5689_vm3, %v5688_v44 }
 0xfc9   :  { %7177 = vmatmul.msk.f32.vlgmr.msra.gmra.mxu2 %vm5689_vm3, %v11717_v40  ;;  %v11926_v40 = vpop.f32.mrf.mxu2 }
 0xfd1   :  { %7178 = vmatmul.msk.f32.gmra.mxu2 %vm5689_vm3, %v11738_v46  ;;  %v5528_v46 = vpop.f32.mrf.mxu1 }
 0xfd7   :  { %v5813_v30 = vpop.f32.mrf.mxu3 }
 0xfd8   :  { %v11920_v47 = vmul.f32 %v5813_v30, %v5523_v36 }
 0xfd9   :  { %7179 = vmatmul.msk.f32.gmra.mxu2 %vm5689_vm3, %v11754_v25  ;;  %v11938_v25 = vpop.f32.mrf.mxu2 }
 0xfda   :  { %5983 = vrot.lane.b32.xlu0 %v11920_v47, %s7610_s11 }
 0xfdb   :  { %v6339_v31 = vpop.permute.xlu2 %6338 }
 0xfdf   :  { %v5816_v54 = vpop.f32.mrf.mxu3 }
 0xfe0   :  { %v11930_v56 = vmul.f32 %v5816_v54, %v5525_v3 }
 0xfe1   :  { %7180 = vmatmul.msk.f32.gmra.mxu2 %vm5689_vm3, %v11771_v28  ;;  %v5530_v28 = vpop.f32.mrf.mxu1 }
 0xfe2   :  { %5989 = vrot.lane.b32.xlu2 %v11930_v56, %s7610_s11  ;;  %6340 = vrot.lane.b32.xlu0 %v11841_v16, %s7616_s8  ;;  %v11952_v16 = vpop.f32.mrf.mxu2 }
 0xfe7   :  { %v5819_v55 = vpop.f32.mrf.mxu3 }
 0xfe8   :  { %v11942_v39 = vmul.f32 %v5819_v55, %v5528_v46 }
 0xfe9   :  { %7181 = vmatmul.msk.f32.gmra.mxu2 %vm5689_vm3, %v11790_v38  ;;  %v5533_v17 = vpop.f32.mrf.mxu1 }
 0xfea   :  { %6390 = vrot.lane.b32.xlu0 %v11853_v63, %s7617_s15  ;;  %6366 = vrot.lane.b32.xlu2 %v11853_v63, %s7622_s4  ;;  %v11967_v32 = vpop.f32.mrf.mxu2 }
 0xfeb   :  { %5995 = vrot.lane.b32.xlu1 %v11942_v39, %s7610_s11 }
 0xfef   :  { %v5822_v18 = vpop.f32.mrf.mxu3 }
 0xff0   :  { %v11973_v52 = vmul.f32 %v5822_v18, %v5530_v28 }
 0xff1   :  { %7182 = vmatmul.msk.f32.gmra.mxu2 %vm5689_vm3, %v11806_v5  ;;  %v11971_v5 = vmul.f32 %v11940_v6, %v12765_v7  ;;  %v5535_v23 = vpop.f32.mrf.mxu1 }
 0xff2   :  { %6392 = vrot.lane.b32.xlu2 %v5604_v24, %s7617_s15  ;;  %6344 = vrot.lane.b32.xlu0 %v5604_v24, %s7616_s8  ;;  %v6387_v38 = vpop.permute.xlu1 %6386  ;;  %v6363_v63 = vpop.permute.xlu0 %6362 }
 0xff3   :  { %6368 = vrot.lane.b32.xlu1 %v5604_v24, %s7622_s4  ;;  %v6410_v34 = vsel %vm12763_vm4, %v6339_v31, %v6363_v63  ;;  %12766 = vst [vmem:[#allocation60_spill] sm:$0xff] %v11971_v5  ;;  %v11983_v41 = vpop.f32.mrf.mxu2  ;;  %v6389_v31 = vpop.permute.xlu2 %6388 }
 0xff4   :  { %v11965_v2 = vsel %vm603_vm10, %v6410_v34, %v6387_v38 }
 0xff5   :  { %12764 = vst [vmem:[#allocation51_spill] sm:$0xff] %v11965_v2 }
 0xff7   :  { %v5825_v10 = vpop.f32.mrf.mxu3 }
 0xff8   :  { %v11985_v21 = vmul.f32 %v5825_v10, %v5533_v17 }
 0xff9   :  { %7183 = vmatmul.msk.f32.gmra.mxu2 %vm5689_vm3, %v11826_v42  ;;  %v11990_v42 = vpop.f32.mrf.mxu0  ;;  %v5538_v57 = vpop.f32.mrf.mxu1 }
 0xffa   :  { %6001 = vrot.lane.b32.xlu0 %v11973_v52, %s7610_s11  ;;  %6346 = vrot.lane.b32.xlu2 %v11971_v5, %s7616_s8  ;;  %v6365_v63 = vpop.permute.xlu1 %6364 }
 0xffb   :  { %v11996_v54 = vpop.f32.mrf.mxu2 }
 0xfff   :  { %v5828_v50 = vpop.f32.mrf.mxu3 }
0x1000   :  { %v11992_v30 = vmul.f32 %v5828_v50, %v5535_v23 }
0x1001   :  { %7184 = vmatmul.msk.f32.gmra.mxu2 %vm5689_vm3, %v5688_v44  ;;  %v5854_v44 = vpop.f32.mrf.mxu0 }
0x1002   :  { %6007 = vrot.lane.b32.xlu0 %v11985_v21, %s7610_s11  ;;  %v5922_v46 = vmul.f32 %v5854_v44, %v11847_v62  ;;  %v6343_v23 = vpop.permute.xlu1 %6342 }
0x1003   :  { %v12004_v55 = vpop.f32.mrf.mxu2 }
0x1007   :  { %v5831_v36 = vpop.f32.mrf.mxu3 }
0x1008   :  { %v11994_v3 = vmul.f32 %v5831_v36, %v5538_v57  ;;  %v5540_v57 = vpop.f32.mrf.mxu1 }
0x1009   :  { %v5857_v38 = vpop.f32.mrf.mxu0 }
0x100a   :  { %6013 = vrot.lane.b32.xlu0 %v11992_v30, %s7610_s11  ;;  %6019 = vrot.lane.b32.xlu2 %v11994_v3, %s7610_s11  ;;  %v5927_v29 = vmul.f32 %v5857_v38, %v11863_v60 }
0x100b   :  { %v12006_v28 = vpop.f32.mrf.mxu2 }
0x1011   :  { %v5860_v10 = vpop.f32.mrf.mxu0 }
0x1012   :  { %5985 = vrot.lane.b32.xlu2 %v5922_v46, %s7610_s11 }
0x1013   :  { %v12008_v18 = vpop.f32.mrf.mxu2 }
0x1019   :  { %v5863_v12 = vpop.f32.mrf.mxu0 }
0x101b   :  { %v12010_v24 = vpop.f32.mrf.mxu2 }
0x1021   :  { %v5866_v60 = vpop.f32.mrf.mxu0 }
0x1023   :  { %v12012_v34 = vpop.f32.mrf.mxu2 }
0x103c   :  { %v12014_v17 = vpop.permute.xlu2 %5989 }
0x1044   :  { %v6367_v62 = vpop.permute.xlu2 %6366  ;;  %v12016_v50 = vpop.f32.mrf.mxu2 }
0x1045   :  { %v6412_v36 = vsel %vm12767_vm11, %v6343_v23, %v6367_v62  ;;  %v5834_v44 = vpop.f32.mrf.mxu3 }
0x1046   :  { %v12019_v46 = vmul.f32 %v5834_v44, %v5540_v57  ;;  %v5932_v57 = vmul.f32 %v5860_v10, %v11874_v26  ;;  %v5937_v26 = vmul.f32 %v5863_v12, %v11888_v4 }
0x1048   :  { %12768 = vst [vmem:[#allocation61_spill] sm:$0xff] %v12019_v46  ;;  %6025 = vrot.lane.b32.xlu1 %v12019_v46, %s7610_s11 }
0x104c   :  { %v5984_v7 = vpop.permute.xlu0 %5983  ;;  %v5895_v15 = vpop.f32.mrf.mxu2 }
0x104d   :  { %v5923_v20 = vmul.f32 %v5895_v15, %v11818_v53  ;;  %v6393_v2 = vpop.permute.xlu2 %6392 }
0x104f   :  { %5987 = vrot.lane.b32.xlu0 %v5923_v20, %s7610_s11 }
0x1050   :  { %5991 = vrot.lane.b32.xlu1 %v5927_v29, %s7610_s11 }
0x1054   :  { %v6341_v5 = vpop.permute.xlu0 %6340  ;;  %v5898_v62 = vpop.f32.mrf.mxu2 }
0x1055   :  { %v6411_v23 = vsel %vm12769_vm5, %v6341_v5, %v6365_v63  ;;  %v5928_v46 = vmul.f32 %v5898_v62, %v11837_v8  ;;  %v12035_v53 = vpop.permute.xlu2 %6346  ;;  %v5869_v8 = vpop.f32.mrf.mxu0 }
0x1056   :  { %v12030_v44 = vsel %vm603_vm10, %v6411_v23, %v6389_v31 }
0x1057   :  { %5993 = vrot.lane.b32.xlu2 %v5928_v46, %s7610_s11  ;;  %5997 = vrot.lane.b32.xlu0 %v5932_v57, %s7610_s11 }
0x105c   :  { %v6391_v20 = vpop.permute.xlu0 %6390  ;;  %v5901_v5 = vpop.f32.mrf.mxu2 }
0x105d   :  { %v12038_v29 = vsel %vm603_vm10, %v6412_v36, %v6391_v20  ;;  %v12040_v15 = vpop.permute.xlu1 %5995  ;;  %v5933_v31 = vmul.f32 %v5901_v5, %v11849_v48  ;;  %v5942_v36 = vmul.f32 %v5866_v60, %v11890_v59  ;;  %v5919_v48 = vmul.f32 %v11983_v41, %v11701_v9  ;;  %v5872_v4 = vpop.f32.mrf.mxu0 }
0x105e   :  { %v5947_v60 = vmul.f32 %v5869_v8, %v11898_v22 }
0x105f   :  { %5999 = vrot.lane.b32.xlu1 %v5933_v31, %s7610_s11  ;;  %6003 = vrot.lane.b32.xlu2 %v5937_v26, %s7610_s11 }
0x1064   :  { %v6345_v38 = vpop.permute.xlu0 %6344  ;;  %v12046_v63 = vpop.permute.xlu2 %6019 }
0x1065   :  { %v6369_v10 = vpop.permute.xlu1 %6368  ;;  %v5904_v46 = vpop.f32.mrf.mxu2 }
0x1066   :  { %v6413_v23 = vsel %vm12770_vm7, %v6345_v38, %v6369_v10  ;;  %v5938_v62 = vmul.f32 %v5904_v46, %v11928_v27  ;;  %v5772_v46 = vpop.f32.mrf.mxu1  ;;  %vm12781_vm7 = vmmov %vm12769_vm5 }
0x1067   :  { %v12052_v12 = vsel %vm603_vm10, %v6413_v23, %v6393_v2  ;;  %6009 = vrot.lane.b32.xlu1 %v5942_v36, %s7610_s11  ;;  %v5952_v2 = vmul.f32 %v5872_v4, %v11908_v35  ;;  %v5934_v23 = vmul.f32 %v12006_v28, %v11719_v49 }
0x1068   :  { %6005 = vrot.lane.b32.xlu0 %v5938_v62, %s7610_s11 }
0x106c   :  { %v5986_v57 = vpop.permute.xlu2 %5985  ;;  %v6002_v8 = vpop.permute.xlu0 %6001 }
0x106d   :  { %v6032_v20 = vsel %vm6031_vm0, %v5984_v7, %v5986_v57  ;;  %v5907_v59 = vpop.f32.mrf.mxu2  ;;  %v5875_v7 = vpop.f32.mrf.mxu0 }
0x106e   :  { %v12060_v5 = vadd.f32 %v6032_v20, %v5919_v48  ;;  %v5943_v27 = vmul.f32 %v5907_v59, %v11940_v6  ;;  %v5957_v22 = vmul.f32 %v5875_v7, %v11914_v13  ;;  %v5775_v20 = vpop.f32.mrf.mxu1  ;;  %v5920_v59 = vmul.f32 %v5772_v46, %v11894_v61 }
0x106f   :  { %6015 = vrot.lane.b32.xlu1 %v5947_v60, %s7610_s11  ;;  %v5925_v60 = vmul.f32 %v5775_v20, %v11901_v14  ;;  %v5929_v14 = vmul.f32 %v12004_v55, %v11706_v45  ;;  %v5954_v20 = vmul.f32 %v12016_v50, %v11800_v33 }
0x1070   :  { %6011 = vrot.lane.b32.xlu2 %v5943_v27, %s7610_s11  ;;  %6021 = vrot.lane.b32.xlu0 %v5952_v2, %s7610_s11  ;;  %v5924_v27 = vmul.f32 %v11996_v54, %v11703_v1 }
0x1074   :  { %v6008_v38 = vpop.permute.xlu0 %6007 }
0x1075   :  { %v5910_v9 = vpop.f32.mrf.mxu2 }
0x1076   :  { %v5948_v41 = vmul.f32 %v5910_v9, %v11956_v37  ;;  %v5778_v1 = vpop.f32.mrf.mxu1 }
0x1078   :  { %6017 = vrot.lane.b32.xlu2 %v5948_v41, %s7610_s11 }
0x107c   :  { %v6014_v36 = vpop.permute.xlu0 %6013 }
0x107d   :  { %v5913_v26 = vpop.f32.mrf.mxu2 }
0x107e   :  { %v5953_v31 = vmul.f32 %v5913_v26, %v11981_v19 }
0x1080   :  { %6023 = vrot.lane.b32.xlu1 %v5953_v31, %s7610_s11  ;;  %6027 = vrot.lane.b32.xlu2 %v5957_v22, %s7610_s11 }
0x1085   :  { %v5916_v35 = vpop.f32.mrf.mxu2 }
0x1086   :  { %v5958_v6 = vmul.f32 %v5916_v35, %v11990_v42  ;;  %v5781_v35 = vpop.f32.mrf.mxu1 }
0x1088   :  { %6029 = vrot.lane.b32.xlu0 %v5958_v6, %s7610_s11  ;;  %v5930_v6 = vmul.f32 %v5778_v1, %v11912_v43 }
0x10b1   :  { %v5994_v10 = vpop.permute.xlu2 %5993 }
0x10b9   :  { %v6004_v62 = vpop.permute.xlu2 %6003 }
0x10ba   :  { %v6026_v13 = vpop.permute.xlu1 %6025  ;;  %v6038_v48 = vsel %vm6031_vm0, %v6002_v8, %v6004_v62 }
0x10bb   :  { %v12078_v4 = vadd.f32 %v6038_v48, %v5934_v23  ;;  %v5784_v48 = vpop.f32.mrf.mxu1 }
0x10c1   :  { %v5988_v2 = vpop.permute.xlu0 %5987 }
0x10c2   :  { %v5992_v9 = vpop.permute.xlu1 %5991  ;;  %v6033_v41 = vsel %vm6031_vm0, %v5986_v57, %v5988_v2  ;;  %v6074_v49 = vadd.f32 %v5988_v2, %v11920_v47  ;;  %v6077_v57 = vadd.f32 %v5994_v10, %v11930_v56  ;;  %v5935_v56 = vmul.f32 %v5781_v35, %v11918_v11  ;;  %v12771_v35 = vld [vmem:[#allocation61_spill] sm:$0xff] }
0x10c3   :  { %v6034_v28 = vsel %vm6031_vm0, %v12014_v17, %v5992_v9  ;;  %v6035_v7 = vsel %vm6031_vm0, %v5992_v9, %v5994_v10  ;;  %v12089_v26 = vadd.f32 %v6033_v41, %v5920_v59 }
0x10c4   :  { %v12091_v22 = vadd.f32 %v6034_v28, %v5924_v27  ;;  %v12093_v61 = vadd.f32 %v6035_v7, %v5925_v60  ;;  %6114 = vrot.lane.b32.xlu1 %v6074_v49, %s7611_s18 }
0x10c5   :  { %6112 = vrot.lane.b32.xlu0 %v12089_v26, %s7611_s18 }
0x10c6   :  { %6116 = vrot.lane.b32.xlu2 %v12093_v61, %s7611_s18 }
0x10c9   :  { %v5998_v47 = vpop.permute.xlu0 %5997 }
0x10ca   :  { %v6012_v54 = vpop.permute.xlu2 %6011  ;;  %v6036_v17 = vsel %vm6031_vm0, %v12040_v15, %v5998_v47  ;;  %v5939_v15 = vmul.f32 %v12008_v18, %v11740_v0  ;;  %v5944_v18 = vmul.f32 %v12010_v24, %v11764_v58 }
0x10cb   :  { %v12105_v31 = vadd.f32 %v6036_v17, %v5929_v14 }
0x10cd   :  { %6118 = vrot.lane.b32.xlu0 %v6077_v57, %s7611_s18 }
0x10d1   :  { %v6000_v8 = vpop.permute.xlu1 %5999 }
0x10d2   :  { %v6018_v46 = vpop.permute.xlu2 %6017  ;;  %v6037_v23 = vsel %vm6031_vm0, %v5998_v47, %v6000_v8  ;;  %v6080_v45 = vadd.f32 %v6000_v8, %v11942_v39 }
0x10d3   :  { %v12111_v55 = vadd.f32 %v6037_v23, %v5930_v6 }
0x10d4   :  { %6122 = vrot.lane.b32.xlu2 %v6080_v45, %s7611_s18 }
0x10d5   :  { %6120 = vrot.lane.b32.xlu1 %v12111_v55, %s7611_s18 }
0x10d9   :  { %v6010_v43 = vpop.permute.xlu1 %6009 }
0x10da   :  { %v6006_v10 = vpop.permute.xlu0 %6005  ;;  %v6040_v60 = vsel %vm6031_vm0, %v6008_v38, %v6010_v43  ;;  %v6028_v27 = vpop.permute.xlu2 %6027  ;;  %v6041_v33 = vsel %vm6031_vm0, %v6010_v43, %v6012_v54  ;;  %v5949_v38 = vmul.f32 %v12012_v34, %v11785_v51 }
0x10db   :  { %v6039_v39 = vsel %vm6031_vm0, %v6004_v62, %v6006_v10  ;;  %v6083_v59 = vadd.f32 %v6006_v10, %v11973_v52  ;;  %v12126_v9 = vadd.f32 %v6040_v60, %v5939_v15  ;;  %v6046_v11 = vsel %vm6031_vm0, %v6026_v13, %v6028_v27 }
0x10dc   :  { %v12124_v2 = vadd.f32 %v6039_v39, %v5935_v56  ;;  %v12129_v0 = vadd.f32 %v6046_v11, %v5954_v20  ;;  %v5940_v52 = vmul.f32 %v5784_v48, %v11926_v40  ;;  %v6086_v13 = vadd.f32 %v6012_v54, %v11985_v21  ;;  %v5787_v40 = vpop.f32.mrf.mxu1 }
0x10dd   :  { %6126 = vrot.lane.b32.xlu2 %v6083_v59, %s7611_s18  ;;  %v5945_v51 = vmul.f32 %v5787_v40, %v11938_v25  ;;  %v6089_v21 = vadd.f32 %v6018_v46, %v11992_v30 }
0x10de   :  { %6124 = vrot.lane.b32.xlu1 %v12124_v2, %s7611_s18  ;;  %v12142_v49 = vadd.f32 %v6041_v33, %v5940_v52 }
0x10e1   :  { %v6016_v50 = vpop.permute.xlu1 %6015 }
0x10e2   :  { %v6042_v62 = vsel %vm6031_vm0, %v6014_v36, %v6016_v50  ;;  %v6022_v41 = vpop.permute.xlu0 %6021  ;;  %v6043_v58 = vsel %vm6031_vm0, %v6016_v50, %v6018_v46 }
0x10e3   :  { %v12144_v28 = vadd.f32 %v6042_v62, %v5944_v18  ;;  %v6044_v7 = vsel %vm6031_vm0, %v12046_v63, %v6022_v41  ;;  %v6088_v24 = vadd.f32 %v6043_v58, %v5945_v51 }
0x10e4   :  { %v12148_v1 = vadd.f32 %v6044_v7, %v5949_v38  ;;  %v5790_v34 = vpop.f32.mrf.mxu1 }
0x10e5   :  { %6130 = vrot.lane.b32.xlu2 %v6086_v13, %s7611_s18  ;;  %v5950_v63 = vmul.f32 %v5790_v34, %v11952_v16 }
0x10e6   :  { %6128 = vrot.lane.b32.xlu1 %v12142_v49, %s7611_s18 }
0x10ec   :  { %v5793_v25 = vpop.f32.mrf.mxu1 }
0x10ed   :  { %6134 = vrot.lane.b32.xlu2 %v6089_v21, %s7611_s18  ;;  %v5955_v30 = vmul.f32 %v5793_v25, %v11967_v32  ;;  %v12772_v21 = vld [vmem:[#allocation60_spill] sm:$0xff] }
0x10ee   :  { %6132 = vrot.lane.b32.xlu1 %v6088_v24, %s7611_s18 }
0x10f2   :  { %v6024_v36 = vpop.permute.xlu1 %6023 }
0x10f3   :  { %v6045_v14 = vsel %vm6031_vm0, %v6022_v41, %v6024_v36  ;;  %v6092_v47 = vadd.f32 %v6024_v36, %v11994_v3 }
0x10f4   :  { %v6091_v54 = vadd.f32 %v6045_v14, %v5950_v63 }
0x10f6   :  { %6138 = vrot.lane.b32.xlu1 %v6092_v47, %s7611_s18  ;;  %6136 = vrot.lane.b32.xlu0 %v6091_v54, %s7611_s18 }
0x10fa   :  { %v6030_v17 = vpop.permute.xlu0 %6029 }
0x10fb   :  { %v6047_v57 = vsel %vm6031_vm0, %v6028_v27, %v6030_v17  ;;  %v6095_v6 = vadd.f32 %v6030_v17, %v12771_v35  ;;  %v12773_v17 = vld [vmem:[#allocation13_spill] sm:$0xff]  ;;  %vm12782_vm0 = vmmov %vm12769_vm5 }
0x10fc   :  { %v6094_v8 = vadd.f32 %v6047_v57, %v5955_v30  ;;  %v5606_v57 = vmul.f32 %v11956_v37, %v12773_v17 }
0x10fe   :  { %6142 = vrot.lane.b32.xlu0 %v6095_v6, %s7611_s18  ;;  %6140 = vrot.lane.b32.xlu2 %v6094_v8, %s7611_s18 }
0x1120   :  { %v6117_v23 = vpop.permute.xlu2 %6116 }
0x112e   :  { %v6123_v15 = vpop.permute.xlu2 %6122 }
0x112f   :  { %v6174_v20 = vadd.f32 %v6123_v15, %v12111_v55 }
0x1136   :  { %v6115_v16 = vpop.permute.xlu1 %6114 }
0x1137   :  { %v6170_v3 = vadd.f32 %v6115_v16, %v12089_v26  ;;  %v6113_v46 = vpop.permute.xlu0 %6112  ;;  %v6127_v59 = vpop.permute.xlu2 %6126 }
0x1138   :  { %v6145_v45 = vsel %vm6144_vm1, %v6113_v46, %v6115_v16 }
0x1139   :  { %v6169_v32 = vadd.f32 %v6145_v45, %v12060_v5  ;;  %6203 = vrot.lane.b32.xlu1 %v6170_v3, %s7623_s7 }
0x113b   :  { %6201 = vrot.lane.b32.xlu0 %v6169_v32, %s7623_s7 }
0x113f   :  { %v6119_v56 = vpop.permute.xlu0 %6118  ;;  %v6131_v11 = vpop.permute.xlu2 %6130 }
0x1140   :  { %v6146_v10 = vsel %vm6144_vm1, %v6117_v23, %v6119_v56  ;;  %v6172_v43 = vadd.f32 %v6119_v56, %v12093_v61  ;;  %v6178_v33 = vadd.f32 %v6131_v11, %v12142_v49 }
0x1141   :  { %v6171_v48 = vadd.f32 %v6146_v10, %v12091_v22  ;;  %v6176_v22 = vadd.f32 %v6127_v59, %v12124_v2  ;;  %v12774_v10 = vld [vmem:[#allocation16_spill] sm:$0xff] }
0x1143   :  { %6207 = vrot.lane.b32.xlu0 %v6172_v43, %s7623_s7  ;;  %6205 = vrot.lane.b32.xlu2 %v6171_v48, %s7623_s7  ;;  %v5607_v43 = vmul.f32 %v11981_v19, %v12774_v10 }
0x1147   :  { %v6121_v26 = vpop.permute.xlu1 %6120  ;;  %v6135_v18 = vpop.permute.xlu2 %6134 }
0x1148   :  { %v6147_v5 = vsel %vm6144_vm1, %v6121_v26, %v6123_v15  ;;  %v6180_v50 = vadd.f32 %v6135_v18, %v6088_v24 }
0x1149   :  { %v6173_v39 = vadd.f32 %v6147_v5, %v12105_v31 }
0x114b   :  { %6211 = vrot.lane.b32.xlu2 %v6174_v20, %s7623_s7  ;;  %6209 = vrot.lane.b32.xlu1 %v6173_v39, %s7623_s7 }
0x1150   :  { %v6125_v60 = vpop.permute.xlu1 %6124 }
0x1151   :  { %v6148_v61 = vsel %vm6144_vm1, %v6125_v60, %v6127_v59 }
0x1152   :  { %v6175_v27 = vadd.f32 %v6148_v61, %v12078_v4 }
0x1153   :  { %6215 = vrot.lane.b32.xlu1 %v6176_v22, %s7623_s7  ;;  %v12775_v22 = vld [vmem:[#allocation17_spill] sm:$0xff] }
0x1154   :  { %6213 = vrot.lane.b32.xlu0 %v6175_v27, %s7623_s7 }
0x1158   :  { %v6129_v55 = vpop.permute.xlu1 %6128  ;;  %v6141_v7 = vpop.permute.xlu2 %6140 }
0x1159   :  { %v6149_v31 = vsel %vm6144_vm1, %v6129_v55, %v6131_v11  ;;  %v12776_v11 = vld [vmem:[#allocation3_spill] sm:$0xff] }
0x115a   :  { %v6177_v52 = vadd.f32 %v6149_v31, %v12126_v9  ;;  %v235_v55 = vadd.s32 16, %v12776_v11  ;;  %v12777_v31 = vld [vmem:[#allocation2_spill] sm:$0xff] }
0x115c   :  { %6219 = vrot.lane.b32.xlu0 %v6178_v33, %s7623_s7  ;;  %6217 = vrot.lane.b32.xlu2 %v6177_v52, %s7623_s7  ;;  %v236_v33 = vmul.u32 8, %v12777_v31 }
0x115e   :  { %vm239_vm3 = vcmp.ge.s32.totalorder %v235_v55, %v236_v33  ;;  %vm237_vm8 = vcmp.ge.s32.totalorder %v12776_v11, %v236_v33 }
0x1160   :  { %v6133_v2 = vpop.permute.xlu1 %6132 }
0x1161   :  { %v6150_v4 = vsel %vm6144_vm1, %v6133_v2, %v6135_v18  ;;  %v12778_v2 = vmov 0.0  }
0x1162   :  { %v6179_v38 = vadd.f32 %v6150_v4, %v12144_v28 }
0x1164   :  { %6223 = vrot.lane.b32.xlu2 %v6180_v50, %s7623_s7  ;;  %6221 = vrot.lane.b32.xlu1 %v6179_v38, %s7623_s7 }
0x1168   :  { %v6139_v13 = vpop.permute.xlu1 %6138  ;;  %v6137_v62 = vpop.permute.xlu0 %6136 }
0x1169   :  { %v6182_v41 = vadd.f32 %v6139_v13, %v6091_v54  ;;  %v6151_v9 = vsel %vm6144_vm1, %v6137_v62, %v6139_v13 }
0x116a   :  { %v6181_v49 = vadd.f32 %v6151_v9, %v12148_v1 }
0x116b   :  { %6227 = vrot.lane.b32.xlu0 %v6182_v41, %s7623_s7 }
0x116c   :  { %6225 = vrot.lane.b32.xlu2 %v6181_v49, %s7623_s7 }
0x1170   :  { %v6143_v40 = vpop.permute.xlu0 %6142 }
0x1171   :  { %v6152_v58 = vsel %vm6144_vm1, %v6141_v7, %v6143_v40  ;;  %v6184_v28 = vadd.f32 %v6143_v40, %v6094_v8  ;;  %vm12783_vm1 = vmmov %vm12782_vm0 }
0x1172   :  { %v6183_v51 = vadd.f32 %v6152_v58, %v12129_v0 }
0x1173   :  { %6231 = vrot.lane.b32.xlu1 %v6184_v28, %s7623_s7 }
0x1174   :  { %6229 = vrot.lane.b32.xlu0 %v6183_v51, %s7623_s7 }
0x117b   :  { %6394 = vrot.lane.b32.xlu1 %v12772_v21, %s7617_s15 }
0x119d   :  { %v6206_v0 = vpop.permute.xlu2 %6205 }
0x11a5   :  { %v6212_v54 = vpop.permute.xlu2 %6211 }
0x11ab   :  { %v6204_v1 = vpop.permute.xlu1 %6203 }
0x11ad   :  { %v6202_v24 = vpop.permute.xlu0 %6201 }
0x11ae   :  { %v6234_v34 = vsel %vm6233_vm2, %v6202_v24, %v6204_v1 }
0x11af   :  { %v12208_v63 = vadd.f32 %v6234_v34, %v6169_v32 }
0x11b1   :  { %6298 = vrot.lane.b32.xlu1 %v12208_v63, %s7617_s15  ;;  %6266 = vrot.lane.b32.xlu0 %v12208_v63, %s7618_s19 }
0x11b5   :  { %v6208_v36 = vpop.permute.xlu0 %6207 }
0x11b6   :  { %v6235_v14 = vsel %vm6233_vm2, %v6206_v0, %v6208_v36  ;;  %v6218_v46 = vpop.permute.xlu2 %6217 }
0x11b7   :  { %v12215_v47 = vadd.f32 %v6235_v14, %v6171_v48 }
0x11b9   :  { %6370 = vrot.lane.b32.xlu0 %v12772_v21, %s7622_s4  ;;  %6300 = vrot.lane.b32.xlu2 %v12215_v47, %s7617_s15  ;;  %v12780_v21 = vld [vmem:[#allocation51_spill] sm:$0xff] }
0x11ba   :  { %6268 = vrot.lane.b32.xlu1 %v12215_v47, %s7618_s19 }
0x11bd   :  { %v6210_v25 = vpop.permute.xlu1 %6209 }
0x11be   :  { %v6236_v30 = vsel %vm6233_vm2, %v6210_v25, %v6212_v54  ;;  %v6224_v32 = vpop.permute.xlu2 %6223 }
0x11bf   :  { %v12226_v35 = vadd.f32 %v6236_v30, %v6173_v39 }
0x11c1   :  { %6396 = vrot.lane.b32.xlu0 %v5606_v57, %s7617_s15  ;;  %6270 = vrot.lane.b32.xlu2 %v12226_v35, %s7618_s19 }
0x11c2   :  { %6348 = vrot.lane.b32.xlu1 %v5606_v57, %s7616_s8 }
0x11c5   :  { %v6216_v6 = vpop.permute.xlu1 %6215 }
0x11c6   :  { %v6214_v8 = vpop.permute.xlu0 %6213  ;;  %v6226_v26 = vpop.permute.xlu2 %6225 }
0x11c7   :  { %v6237_v16 = vsel %vm6233_vm2, %v6214_v8, %v6216_v6 }
0x11c8   :  { %v12233_v3 = vadd.f32 %v6237_v16, %v6175_v27  ;;  %v5608_v27 = vmul.f32 %v11990_v42, %v12775_v22  ;;  %v12779_v42 = vld [vmem:[#allocation29_spill] sm:$0xff] }
0x11c9   :  { %6302 = vrot.lane.b32.xlu0 %v12226_v35, %s7617_s15  ;;  %6372 = vrot.lane.b32.xlu2 %v5606_v57, %s7622_s4  ;;  %vm238_vm15 = vcmp.ge.s32.totalorder %v12779_v42, %v236_v33 }
0x11ca   :  { %6272 = vrot.lane.b32.xlu1 %v12233_v3, %s7618_s19 }
0x11ce   :  { %v6220_v37 = vpop.permute.xlu0 %6219 }
0x11cf   :  { %v6238_v23 = vsel %vm6233_vm2, %v6218_v46, %v6220_v37 }
0x11d0   :  { %v12241_v45 = vadd.f32 %v6238_v23, %v6177_v52  ;;  %v240_v52 = vadd.s32 1, %v12777_v31 }
0x11d1   :  { %6304 = vrot.lane.b32.xlu2 %v12233_v3, %s7617_s15 }
0x11d2   :  { %6274 = vrot.lane.b32.xlu0 %v12241_v45, %s7618_s19  ;;  %6306 = vrot.lane.b32.xlu1 %v12241_v45, %s7617_s15  ;;  %v241_v18 = vmul.u32 8, %v240_v52 }
0x11d4   :  { %vm244_vm9 = vcmp.lt.s32.totalorder %v235_v55, %v241_v18  ;;  %vm243_vm6 = vcmp.lt.s32.totalorder %v12779_v42, %v241_v18  ;;  %vm242_vm4 = vcmp.lt.s32.totalorder %v12776_v11, %v241_v18 }
0x11d5   :  { %vm247_vm14 = vmand %vm239_vm3, %vm244_vm9 }
0x11d6   :  { %v6222_v56 = vpop.permute.xlu1 %6221  ;;  %v6533_v4 = vsel %vm247_vm14, 1.0, %v12778_v2  ;;  %vm246_vm13 = vmand %vm238_vm15, %vm243_vm6 }
0x11d7   :  { %v6239_v15 = vsel %vm6233_vm2, %v6222_v56, %v6224_v32  ;;  %v256_v50 = vmul.f32 0.35355338, %v6533_v4  ;;  %vm245_vm11 = vmand %vm237_vm8, %vm242_vm4 }
0x11d8   :  { %v12252_v48 = vadd.f32 %v6239_v15, %v6179_v38  ;;  %v6532_v38 = vsel %vm246_vm13, 1.0, %v12778_v2  ;;  %v6531_v62 = vsel %vm245_vm11, 1.0, %v12778_v2  ;;  %vm12787_vm3 = vmmov %vm12782_vm0 }
0x11d9   :  { %6471 = vmatpush.msra.mxu1 %v256_v50  ;;  %v255_v13 = vmul.f32 0.35355338, %v6532_v38  ;;  %v254_v41 = vmul.f32 0.35355338, %v6531_v62  ;;  %vm12793_vm9 = vmmov %vm12782_vm0 }
0x11da   :  { %6350 = vrot.lane.b32.xlu0 %v5607_v43, %s7616_s8  ;;  %6276 = vrot.lane.b32.xlu2 %v12252_v48, %s7618_s19  ;;  %vm12794_vm14 = vmmov %vm12782_vm0 }
0x11db   :  { %6374 = vrot.lane.b32.xlu1 %v5607_v43, %s7622_s4  ;;  %6472 = vmatpush.msra.mxu1 %v255_v13  ;;  %vm12795_vm15 = vmmov %vm12782_vm0 }
0x11dc   :  { %vm12796_vm6 = vmmov %vm12782_vm0 }
0x11dd   :  { %v6228_v5 = vpop.permute.xlu0 %6227  ;;  %6473 = vmatpush.msra.mxu1 %v254_v41 }
0x11de   :  { %v6240_v20 = vsel %vm6233_vm2, %v6226_v26, %v6228_v5 }
0x11df   :  { %v12259_v39 = vadd.f32 %v6240_v20, %v6181_v49 }
0x11e2   :  { %6308 = vrot.lane.b32.xlu0 %v12252_v48, %s7617_s15  ;;  %6398 = vrot.lane.b32.xlu2 %v5607_v43, %s7617_s15 }
0x11e3   :  { %6278 = vrot.lane.b32.xlu1 %v12259_v39, %s7618_s19 }
0x11e5   :  { %v6232_v19 = vpop.permute.xlu1 %6231 }
0x11e6   :  { %v6230_v59 = vpop.permute.xlu0 %6229 }
0x11e7   :  { %v6241_v60 = vsel %vm6233_vm2, %v6230_v59, %v6232_v19  ;;  %vm12785_vm2 = vmmov %vm12782_vm0 }
0x11e8   :  { %v12267_v61 = vadd.f32 %v6241_v60, %v6183_v51 }
0x11ea   :  { %6280 = vrot.lane.b32.xlu0 %v12267_v61, %s7618_s19  ;;  %6310 = vrot.lane.b32.xlu2 %v12259_v39, %s7617_s15 }
0x11eb   :  { %6312 = vrot.lane.b32.xlu1 %v12267_v61, %s7617_s15 }
0x11ed   :  { %v6395_v9 = vpop.permute.xlu1 %6394 }
0x11f2   :  { %6376 = vrot.lane.b32.xlu0 %v5608_v27, %s7622_s4  ;;  %6352 = vrot.lane.b32.xlu2 %v5608_v27, %s7616_s8 }
0x11f3   :  { %6400 = vrot.lane.b32.xlu1 %v5608_v27, %s7617_s15 }
0x1213   :  { %v6301_v49 = vpop.permute.xlu2 %6300 }
0x121b   :  { %v6271_v51 = vpop.permute.xlu2 %6270 }
0x1223   :  { %v6299_v7 = vpop.permute.xlu1 %6298  ;;  %v6267_v40 = vpop.permute.xlu0 %6266 }
0x1224   :  { %v6290_v58 = vadd.f32 %v6267_v40, %v12208_v63  ;;  %v6373_v14 = vpop.permute.xlu2 %6372  ;;  %v6292_v63 = vadd.f32 %v6271_v51, %v12226_v35  ;;  %v12786_v40 = vld [vmem:[#allocation5_spill] sm:$0xff] }
0x1225   :  { %v12788_v51 = vld [vmem:[#allocation9_spill] sm:$0xff] }
0x1226   :  { %v6322_v28 = vadd.f32 %v6299_v7, %v6290_v58 }
0x1228   :  { %v6426_v1 = vmul.f32 %v12780_v21, %v6322_v28 }
0x122a   :  { %7185 = vmatmul.msk.f32.vlgmr.msra.gmra.mxu1 %vm3046_vm12, %v6426_v1 }
0x122b   :  { %v6371_v24 = vpop.permute.xlu0 %6370 }
0x122c   :  { %v6269_v34 = vpop.permute.xlu1 %6268  ;;  %v6305_v57 = vpop.permute.xlu2 %6304  ;;  %v6414_v35 = vsel %vm12769_vm5, %v12035_v53, %v6371_v24  ;;  %v12790_v24 = vld [vmem:[#allocation8_spill] sm:$0xff] }
0x122d   :  { %v6291_v0 = vadd.f32 %v6269_v34, %v12215_v47 }
0x122f   :  { %v6323_v36 = vadd.f32 %v6301_v49, %v6291_v0  ;;  %v12784_v49 = vld [vmem:[#allocation4_spill] sm:$0xff] }
0x1231   :  { %v6427_v54 = vmul.f32 %v12030_v44, %v6323_v36  ;;  %v12792_v36 = vld [vmem:[#allocation12_spill] sm:$0xff] }
0x1233   :  { %7186 = vmatmul.msk.f32.gmra.mxu1 %vm3046_vm12, %v6427_v54  ;;  %v6397_v25 = vpop.permute.xlu0 %6396 }
0x1234   :  { %v6349_v30 = vpop.permute.xlu1 %6348  ;;  %v6277_v44 = vpop.permute.xlu2 %6276 }
0x1235   :  { %v6415_v19 = vsel %vm12781_vm7, %v6349_v30, %v6373_v14 }
0x1236   :  { %v6423_v27 = vsel %vm603_vm10, %v6415_v19, %v6397_v25 }
0x123b   :  { %v6303_v6 = vpop.permute.xlu0 %6302 }
0x123c   :  { %v6273_v8 = vpop.permute.xlu1 %6272  ;;  %v6324_v16 = vadd.f32 %v6303_v6, %v6292_v63  ;;  %v6399_v20 = vpop.permute.xlu2 %6398 }
0x123d   :  { %v6293_v46 = vadd.f32 %v6273_v8, %v12233_v3 }
0x123e   :  { %v6428_v37 = vmul.f32 %v12038_v29, %v6324_v16  ;;  %v6422_v29 = vsel %vm603_vm10, %v6414_v35, %v6395_v9 }
0x123f   :  { %v6325_v47 = vadd.f32 %v6305_v57, %v6293_v46 }
0x1240   :  { %7187 = vmatmul.msk.f32.gmra.mxu1 %vm3046_vm12, %v6428_v37 }
0x1241   :  { %v6429_v56 = vmul.f32 %v12052_v12, %v6325_v47  ;;  %v6295_v12 = vadd.f32 %v6277_v44, %v12252_v48 }
0x1244   :  { %v6275_v23 = vpop.permute.xlu0 %6274  ;;  %v6307_v32 = vpop.permute.xlu1 %6306 }
0x1245   :  { %v6294_v15 = vadd.f32 %v6275_v23, %v12241_v45  ;;  %v6311_v55 = vpop.permute.xlu2 %6310 }
0x1247   :  { %v6326_v43 = vadd.f32 %v6307_v32, %v6294_v15 }
0x1248   :  { %7188 = vmatmul.msk.f32.gmra.mxu1 %vm3046_vm12, %v6429_v56 }
0x1249   :  { %v6430_v5 = vmul.f32 %v6422_v29, %v6326_v43 }
0x124c   :  { %v6351_v26 = vpop.permute.xlu0 %6350 }
0x124d   :  { %v6375_v3 = vpop.permute.xlu1 %6374  ;;  %v6353_v50 = vpop.permute.xlu2 %6352 }
0x124e   :  { %v6416_v31 = vsel %vm12782_vm0, %v6351_v26, %v6375_v3 }
0x124f   :  { %v6424_v2 = vsel %vm603_vm10, %v6416_v31, %v6399_v20 }
0x1250   :  { %7189 = vmatmul.msk.f32.gmra.mxu1 %vm3046_vm12, %v6430_v5 }
0x1254   :  { %v6309_v59 = vpop.permute.xlu0 %6308 }
0x1255   :  { %v6327_v45 = vadd.f32 %v6309_v59, %v6295_v12  ;;  %v6279_v60 = vpop.permute.xlu1 %6278 }
0x1256   :  { %v6296_v53 = vadd.f32 %v6279_v60, %v12259_v39 }
0x1257   :  { %v6431_v11 = vmul.f32 %v6423_v27, %v6327_v45 }
0x1258   :  { %v6328_v33 = vadd.f32 %v6311_v55, %v6296_v53 }
0x1259   :  { %7190 = vmatmul.msk.f32.gmra.mxu1 %vm3046_vm12, %v6431_v11 }
0x125a   :  { %v6432_v4 = vmul.f32 %v6424_v2, %v6328_v33 }
0x125c   :  { %v6281_v52 = vpop.permute.xlu0 %6280 }
0x125d   :  { %v6313_v18 = vpop.permute.xlu1 %6312  ;;  %v6297_v48 = vadd.f32 %v6281_v52, %v12267_v61 }
0x125f   :  { %v6329_v38 = vadd.f32 %v6313_v18, %v6297_v48 }
0x1261   :  { %7191 = vmatmul.msk.f32.gmra.mxu1 %vm3046_vm12, %v6432_v4 }
0x1264   :  { %v6377_v42 = vpop.permute.xlu0 %6376 }
0x1265   :  { %v6401_v13 = vpop.permute.xlu1 %6400  ;;  %v6417_v39 = vsel %vm12783_vm1, %v6353_v50, %v6377_v42 }
0x1266   :  { %v6425_v62 = vsel %vm603_vm10, %v6417_v39, %v6401_v13  ;;  %vm12789_vm10 = vmmov %vm12782_vm0 }
0x1267   :  { %v6433_v41 = vmul.f32 %v6425_v62, %v6329_v38 }
0x1269   :  { %7192 = vmatmul.msk.f32.gmra.mxu1 %vm3046_vm12, %v6433_v41  ;;  %vm12791_vm12 = vmmov %vm12782_vm0 }
0x12a7   :  { %v6475_v9 = vpop.f32.mrf.mxu1 }
0x12a8   :  { %v6499_v7 = vmul.f32 %v6475_v9, %v12784_v49 }
0x12aa   :  { %6507 = vst.msk [vmem:[%s12379_s20] sm:$0xff] %vm12785_vm2, %v6499_v7 }
0x12b0   :  { %v6478_v61 = vpop.f32.mrf.mxu1 }
0x12b1   :  { %v6500_v58 = vmul.f32 %v6478_v61, %v12786_v40 }
0x12b3   :  { %6508 = vst.msk [vmem:[%s12379_s20 + $0x8] sm:$0xff] %vm12787_vm3, %v6500_v58 }
0x12bd   :  { %v6481_v28 = vpop.f32.mrf.mxu1 }
0x12be   :  { %v6501_v21 = vmul.f32 %v6481_v28, %v12788_v51 }
0x12c0   :  { %6509 = vst.msk [vmem:[%s12379_s20 + $0x10] sm:$0xff] %vm12789_vm10, %v6501_v21 }
0x12c5   :  { %v6484_v1 = vpop.f32.mrf.mxu1 }
0x12c6   :  { %v6502_v34 = vmul.f32 %v6484_v1, %v12790_v24 }
0x12c8   :  { %6510 = vst.msk [vmem:[%s12379_s20 + $0x18] sm:$0xff] %vm12791_vm12, %v6502_v34 }
0x12cd   :  { %v6487_v0 = vpop.f32.mrf.mxu1 }
0x12ce   :  { %v6503_v14 = vmul.f32 %v6487_v0, %v12792_v36 }
0x12d0   :  { %6511 = vst.msk [vmem:[%s12379_s20 + $0x20] sm:$0xff] %vm12793_vm9, %v6503_v14 }
0x12d6   :  { %v6490_v54 = vpop.f32.mrf.mxu1 }
0x12d7   :  { %v6504_v25 = vmul.f32 %v6490_v54, %v12773_v17 }
0x12d9   :  { %6512 = vst.msk [vmem:[%s12379_s20 + $0x28] sm:$0xff] %vm12794_vm14, %v6504_v25 }
0x12de   :  { %v6493_v30 = vpop.f32.mrf.mxu1 }
0x12df   :  { %v6505_v63 = vmul.f32 %v6493_v30, %v12774_v10 }
0x12e1   :  { %6513 = vst.msk [vmem:[%s12379_s20 + $0x30] sm:$0xff] %vm12795_vm15, %v6505_v63 }
0x12e6   :  { %v6496_v57 = vpop.f32.mrf.mxu1 }
0x12e7   :  { %v6506_v6 = vmul.f32 %v6496_v57, %v12775_v22 }
0x12e9   :  { %6514 = vst.msk [vmem:[%s12379_s20 + $0x38] sm:$0xff] %vm12796_vm6, %v6506_v6 }

</bundles_post_ra>
